<compile_context>
chip_gen: v7x
topology: tpu7x:2x2x1
jax: 0.10.0
libtpu: 0.0.40
codegen_flags: <defaults>
</compile_context>

<pallas_src>
import functools

import numpy as np

import jax
import jax.numpy as jnp
from jax.experimental import pallas as pl
from jax.experimental.pallas import tpu as pltpu


# ------------------------------ Pallas kernels -------------------------------


def _first_stage_kernel(p_ref, w_ref, b_ref, o_ref, hbuf_ref, pad_ref, *,
                        Hc, Wc, Ho, Wo):
    """Fused stem: 3x3/2 conv (pre-im2col'd) + BN + ReLU + 3x3/2 maxpool."""
    # Conv as one bf16 matmul over this sample's (Hc*Wc, 27) patch rows.
    h = jnp.dot(p_ref[0].astype(jnp.bfloat16), w_ref[...],
                preferred_element_type=jnp.float32)
    hbuf_ref[...] = jnp.maximum(h + b_ref[...], 0.0)

    # Spatially padded copy for the maxpool taps.  Zero padding is exact here
    # because the pooled values are post-ReLU (>= 0).
    pad_ref[...] = jnp.zeros(pad_ref.shape, pad_ref.dtype)
    for r in range(Hc):
        pad_ref[r + 1, 1:Wc + 1, :] = hbuf_ref[r * Wc:(r + 1) * Wc, :]

    # Exact even-column selection matrix (Wo, Wc): sel[j, w] = (w == 2j).
    ri = jax.lax.broadcasted_iota(jnp.int32, (Wo, Wc), 0)
    ci = jax.lax.broadcasted_iota(jnp.int32, (Wo, Wc), 1)
    sel = jnp.where(ci == 2 * ri, 1.0, 0.0).astype(jnp.float32)

    for i in range(Ho):
        m = pad_ref[2 * i, 0:Wc, :]
        for kh in range(3):
            for kw in range(3):
                if kh == 0 and kw == 0:
                    continue
                m = jnp.maximum(m, pad_ref[2 * i + kh, kw:kw + Wc, :])
        o_ref[0, i * Wo:(i + 1) * Wo, :] = jnp.dot(
            sel, m, preferred_element_type=jnp.float32,
            precision=jax.lax.Precision.HIGHEST)


def _block_s1_kernel(x_ref, w1_ref, b1_ref, wdw_ref, bdw_ref, w2_ref, b2_ref,
                     o_ref, hbuf_ref, pad_ref, dwbuf_ref, *, H, W, inp, oup):
    """Fused stride-1 ShuffleV2 block (channel shuffle folded into weights)."""
    x = x_ref[0]                                              # (H*W, oup) f32

    # branch_main pw1 + BN + ReLU (odd "true" channels picked by zeroed rows).
    h = jnp.dot(x.astype(jnp.bfloat16), w1_ref[...],
                preferred_element_type=jnp.float32)
    hbuf_ref[...] = jnp.maximum(h + b1_ref[...], 0.0)         # (H*W, mid)

    pad_ref[...] = jnp.zeros(pad_ref.shape, pad_ref.dtype)
    for r in range(H):
        pad_ref[r + 1, 1:W + 1, :] = hbuf_ref[r * W:(r + 1) * W, :]

    # depthwise 3x3 / stride 1 (+ folded BN) via 9 shifted-window MACs.
    for i in range(H):
        acc = pad_ref[i, 0:W, :] * wdw_ref[0:1, :]
        for kh in range(3):
            for kw in range(3):
                if kh == 0 and kw == 0:
                    continue
                t = 3 * kh + kw
                acc = acc + pad_ref[i + kh, kw:kw + W, :] * wdw_ref[t:t + 1, :]
        dwbuf_ref[i * W:(i + 1) * W, :] = acc

    # pw2 + BN + ReLU, scattered into output columns [inp, oup).
    y = jnp.dot((dwbuf_ref[...] + bdw_ref[...]).astype(jnp.bfloat16),
                w2_ref[...], preferred_element_type=jnp.float32)
    y = jnp.maximum(y + b2_ref[...], 0.0)                     # (H*W, oup)

    # Exact pass-through of the first `inp` stored channels (= even true chans).
    ch = jax.lax.broadcasted_iota(jnp.int32, (1, oup), 1)
    keep = jnp.where(ch < inp, 1.0, 0.0).astype(jnp.float32)
    o_ref[0] = y + x * keep


def _block_s2_kernel(x_ref, w1_ref, b1_ref, wdw_ref, bdw_ref, w2_ref, b2_ref,
                     wpdw_ref, bpdw_ref, wpp_ref, bpp_ref, o_ref,
                     hbuf_ref, padx_ref, padh_ref, dwm_ref, dwp_ref, *, H, W):
    """Fused stride-2 ShuffleV2 block (main + projection branch + concat)."""
    Ho, Wo = H // 2, W // 2

    # branch_main pw1 + BN + ReLU (pointwise, computed at full resolution).
    h = jnp.dot(x_ref[0].astype(jnp.bfloat16), w1_ref[...],
                preferred_element_type=jnp.float32)
    hbuf_ref[...] = jnp.maximum(h + b1_ref[...], 0.0)         # (H*W, mid)

    padx_ref[...] = jnp.zeros(padx_ref.shape, padx_ref.dtype)
    padh_ref[...] = jnp.zeros(padh_ref.shape, padh_ref.dtype)
    for r in range(H):
        padx_ref[r + 1, 1:W + 1, :] = x_ref[0, r * W:(r + 1) * W, :]
        padh_ref[r + 1, 1:W + 1, :] = hbuf_ref[r * W:(r + 1) * W, :]

    # Exact even-column selection matrix (Wo, W).
    ri = jax.lax.broadcasted_iota(jnp.int32, (Wo, W), 0)
    ci = jax.lax.broadcasted_iota(jnp.int32, (Wo, W), 1)
    sel = jnp.where(ci == 2 * ri, 1.0, 0.0).astype(jnp.float32)

    # Both 3x3/2 depthwise convs: dense-along-W MACs, then exact column select.
    for i in range(Ho):
        am = padh_ref[2 * i, 0:W, :] * wdw_ref[0:1, :]
        ap = padx_ref[2 * i, 0:W, :] * wpdw_ref[0:1, :]
        for kh in range(3):
            for kw in range(3):
                if kh == 0 and kw == 0:
                    continue
                t = 3 * kh + kw
                am = am + padh_ref[2 * i + kh, kw:kw + W, :] * wdw_ref[t:t + 1, :]
                ap = ap + padx_ref[2 * i + kh, kw:kw + W, :] * wpdw_ref[t:t + 1, :]
        dwm_ref[i * Wo:(i + 1) * Wo, :] = jnp.dot(
            sel, am, preferred_element_type=jnp.float32,
            precision=jax.lax.Precision.HIGHEST)
        dwp_ref[i * Wo:(i + 1) * Wo, :] = jnp.dot(
            sel, ap, preferred_element_type=jnp.float32,
            precision=jax.lax.Precision.HIGHEST)

    # Final 1x1 convs of both branches; the concat is realized by scattering
    # each branch into disjoint (pre-permuted) output columns and summing.
    ym = jnp.dot((dwm_ref[...] + bdw_ref[...]).astype(jnp.bfloat16),
                 w2_ref[...], preferred_element_type=jnp.float32)
    ym = jnp.maximum(ym + b2_ref[...], 0.0)
    yp = jnp.dot((dwp_ref[...] + bpdw_ref[...]).astype(jnp.bfloat16),
                 wpp_ref[...], preferred_element_type=jnp.float32)
    yp = jnp.maximum(yp + bpp_ref[...], 0.0)
    o_ref[0] = ym + yp


# ------------------------------ kernel wrappers -------------------------------


def _first_stage_call(x_nhwc, p):
    N, H, W, Cin = x_nhwc.shape
    assert H % 4 == 0 and W % 4 == 0 and Cin == 3
    Hc, Wc = H // 2, W // 2          # conv output
    Ho, Wo = Hc // 2, Wc // 2        # after maxpool
    C0 = p['w'].shape[1]

    # im2col for the 3x3/stride-2/pad-1 stem conv (tiny XLA glue).
    xp = jnp.pad(x_nhwc, ((0, 0), (1, 1), (1, 1), (0, 0)))
    cols = []
    for kh in range(3):
        for kw in range(3):
            cols.append(xp[:, kh:kh + 2 * Hc:2, kw:kw + 2 * Wc:2, :])
    pat = jnp.stack(cols, axis=3).reshape(N, Hc * Wc, 9 * Cin)

    out = pl.pallas_call(
        functools.partial(_first_stage_kernel, Hc=Hc, Wc=Wc, Ho=Ho, Wo=Wo),
        out_shape=jax.ShapeDtypeStruct((N, Ho * Wo, C0), jnp.float32),
        grid=(N,),
        in_specs=[
            pl.BlockSpec((1, Hc * Wc, 9 * Cin), lambda n: (n, 0, 0)),
            pl.BlockSpec((9 * Cin, C0), lambda n: (0, 0)),
            pl.BlockSpec((1, C0), lambda n: (0, 0)),
        ],
        out_specs=pl.BlockSpec((1, Ho * Wo, C0), lambda n: (n, 0, 0)),
        scratch_shapes=[
            pltpu.VMEM((Hc * Wc, C0), jnp.float32),          # conv+relu out
            pltpu.VMEM((Hc + 2, Wc + 2, C0), jnp.float32),   # padded for pool
        ],
        compiler_params=pltpu.CompilerParams(dimension_semantics=("parallel",)),
    )(pat, p['w'], p['b'])
    return out, Ho, Wo


def _block_call(x3d, bp, H, W):
    N, HW, Cin = x3d.shape
    assert HW == H * W
    stride, inp, oup, mid = bp['stride'], bp['inp'], bp['oup'], bp['mid']

    if stride == 2:
        assert Cin == inp and H % 2 == 0 and W % 2 == 0
        Ho, Wo = H // 2, W // 2
        kernel = functools.partial(_block_s2_kernel, H=H, W=W)
        operands = (x3d, bp['w1'], bp['b1'], bp['wdw'], bp['bdw'], bp['w2'],
                    bp['b2'], bp['wpdw'], bp['bpdw'], bp['wpp'], bp['bpp'])
        scratch = [
            pltpu.VMEM((H * W, mid), jnp.float32),           # pw1 output
            pltpu.VMEM((H + 2, W + 2, inp), jnp.float32),    # padded x (proj)
            pltpu.VMEM((H + 2, W + 2, mid), jnp.float32),    # padded pw1 out
            pltpu.VMEM((Ho * Wo, mid), jnp.float32),         # dw out (main)
            pltpu.VMEM((Ho * Wo, inp), jnp.float32),         # dw out (proj)
        ]
    else:
        assert Cin == oup
        Ho, Wo = H, W
        kernel = functools.partial(_block_s1_kernel, H=H, W=W, inp=inp, oup=oup)
        operands = (x3d, bp['w1'], bp['b1'], bp['wdw'], bp['bdw'], bp['w2'],
                    bp['b2'])
        scratch = [
            pltpu.VMEM((H * W, mid), jnp.float32),           # pw1 output
            pltpu.VMEM((H + 2, W + 2, mid), jnp.float32),    # padded pw1 out
            pltpu.VMEM((H * W, mid), jnp.float32),           # dw out
        ]

    in_specs = [pl.BlockSpec((1, H * W, Cin), lambda n: (n, 0, 0))]
    for wgt in operands[1:]:
        in_specs.append(pl.BlockSpec(wgt.shape, lambda n: (0, 0)))

    out = pl.pallas_call(
        kernel,
        out_shape=jax.ShapeDtypeStruct((N, Ho * Wo, oup), jnp.float32),
        grid=(N,),
        in_specs=in_specs,
        out_specs=pl.BlockSpec((1, Ho * Wo, oup), lambda n: (n, 0, 0)),
        scratch_shapes=scratch,
        compiler_params=pltpu.CompilerParams(dimension_semantics=("parallel",)),
    )(*operands)
    return out, Ho, Wo


# ------------------------------ parameter prep --------------------------------


def _bn_fold(key, c, eps=1e-5):
    k1, k2, k3, k4 = jax.random.split(key, 4)
    gamma = 1.0 + 0.1 * jax.random.normal(k1, (c,), jnp.float32)
    beta = 0.1 * jax.random.normal(k2, (c,), jnp.float32)
    mean = 0.05 * jax.random.normal(k3, (c,), jnp.float32)
    var = 1.0 + 0.1 * jax.random.uniform(k4, (c,), jnp.float32)
    scale = gamma / jnp.sqrt(var + eps)
    bias = beta - mean * scale
    return scale, bias


def _conv_bn(key, cin, cout):
    kw_, kb = jax.random.split(key)
    w = 0.1 * jax.random.normal(kw_, (cin, cout), jnp.float32)
    s, b = _bn_fold(kb, cout)
    return w * s[None, :], b          # BN scale folded into weight columns


def _sf_order(c):
    # "shuffle friendly" stored channel order: even true channels, then odd.
    return list(range(0, c, 2)) + list(range(1, c, 2))


def _perm_to(cur, target):
    return np.asarray([cur.index(t) for t in target], dtype=np.int32)


def _prep_block(key, inp, oup, stride):
    mid = oup // 2
    outs = oup - inp
    if stride == 2:
        k = jax.random.split(key, 5)
        w1, b1 = _conv_bn(k[0], inp, mid)        # 1x1 inp->mid (+BN+ReLU)
        wdw, bdw = _conv_bn(k[1], 9, mid)        # dw 3x3/2 (+BN), taps-major
        w2, b2 = _conv_bn(k[2], mid, outs)       # 1x1 mid->outs (+BN+ReLU)
        wpdw, bpdw = _conv_bn(k[3], 9, inp)      # proj dw 3x3/2 (+BN)
        wpp, bpp = _conv_bn(k[4], inp, inp)      # proj 1x1 (+BN+ReLU)
        # Scatter both branches' true output channels into the block's stored
        # order (= even-true-first) so the following stride-1 block's channel
        # shuffle becomes a free contiguous split.
        sf = np.asarray(_sf_order(oup))
        w2_full = jnp.concatenate([jnp.zeros((mid, inp), jnp.float32), w2], 1)
        b2_full = jnp.concatenate([jnp.zeros((inp,), jnp.float32), b2])
        wpp_full = jnp.concatenate([wpp, jnp.zeros((inp, outs), jnp.float32)], 1)
        bpp_full = jnp.concatenate([bpp, jnp.zeros((outs,), jnp.float32)])
        return {
            'stride': 2, 'inp': inp, 'oup': oup, 'mid': mid,
            'w1': w1.astype(jnp.bfloat16), 'b1': b1.reshape(1, mid),
            'wdw': wdw, 'bdw': bdw.reshape(1, mid),
            'w2': w2_full[:, sf].astype(jnp.bfloat16),
            'b2': b2_full[sf].reshape(1, oup),
            'wpdw': wpdw, 'bpdw': bpdw.reshape(1, inp),
            'wpp': wpp_full[:, sf].astype(jnp.bfloat16),
            'bpp': bpp_full[sf].reshape(1, oup),
        }
    else:
        # stride-1 block: input arrives in even-true-first stored order, so the
        # shuffle's odd half is just the trailing `inp` columns (selected via
        # zeroed weight rows) and the even half passes through contiguously.
        k = jax.random.split(key, 3)
        w1, b1 = _conv_bn(k[0], inp, mid)
        wdw, bdw = _conv_bn(k[1], 9, mid)
        w2, b2 = _conv_bn(k[2], mid, outs)
        w1_st = jnp.concatenate([jnp.zeros((inp, mid), jnp.float32), w1], 0)
        w2_st = jnp.concatenate([jnp.zeros((mid, inp), jnp.float32), w2], 1)
        b2_st = jnp.concatenate([jnp.zeros((inp,), jnp.float32), b2])
        return {
            'stride': 1, 'inp': inp, 'oup': oup, 'mid': mid,
            'w1': w1_st.astype(jnp.bfloat16), 'b1': b1.reshape(1, mid),
            'wdw': wdw, 'bdw': bdw.reshape(1, mid),
            'w2': w2_st.astype(jnp.bfloat16), 'b2': b2_st.reshape(1, oup),
        }


def init_shufflenetv2(key, stage_out_channels, stage_repeats):
    reps = stage_repeats[1:]
    key, kf = jax.random.split(key)
    c0 = stage_out_channels[0]
    wf, bf = _conv_bn(kf, 27, c0)                # stem 3x3/2 conv (+BN+ReLU)
    params = {'first': {'w': wf.astype(jnp.bfloat16), 'b': bf.reshape(1, c0)}}

    stages = []
    input_channel = c0
    cur_order = list(range(c0))                  # static stored-channel order
    for idxstage in range(len(reps)):
        output_channel = stage_out_channels[idxstage + 1]
        blocks = []
        for i in range(reps[idxstage]):
            key, kb = jax.random.split(key)
            if i == 0:
                inp, stride = input_channel, 2
            else:
                inp, stride = input_channel // 2, 1
            bp = _prep_block(kb, inp, output_channel, stride)
            want = (list(range(len(cur_order))) if stride == 2
                    else _sf_order(len(cur_order)))
            bp['pre_perm'] = (None if cur_order == want
                              else _perm_to(cur_order, want))
            cur_order = (_sf_order(output_channel) if stride == 2
                         else list(range(output_channel)))
            blocks.append(bp)
            input_channel = output_channel
        ident = list(range(output_channel))
        post = None if cur_order == ident else _perm_to(cur_order, ident)
        if post is not None:
            cur_order = ident
        stages.append({'blocks': blocks, 'post_perm': post})
    params['stages'] = stages
    return params


# ------------------------------ forward ---------------------------------------


def _rows_to_nchw(y, H, W):
    N, _, C = y.shape
    return jnp.transpose(y.reshape(N, H, W, C), (0, 3, 1, 2))


def shufflenetv2_forward(x_nchw, params, out_indices):
    x = jnp.transpose(x_nchw, (0, 2, 3, 1)).astype(jnp.float32)   # NCHW -> NHWC
    feats = []
    y, H, W = _first_stage_call(x, params['first'])
    if 0 in out_indices:
        feats.append(_rows_to_nchw(y, H, W))
    for si, stage in enumerate(params['stages'], start=1):
        for bp in stage['blocks']:
            if bp['pre_perm'] is not None:     # never hit for [s2, s1] stages
                y = y[:, :, jnp.asarray(bp['pre_perm'])]
            y, H, W = _block_call(y, bp, H, W)
        if stage['post_perm'] is not None:     # never hit for [s2, s1] stages
            y = y[:, :, jnp.asarray(stage['post_perm'])]
        if si in out_indices:
            feats.append(_rows_to_nchw(y, H, W))
    return feats


# ------------------------------ main -------------------------------------------


if __name__ == "__main__":
    key = jax.random.PRNGKey(0)
    kp, kx = jax.random.split(key)

    stage_out_channels = [16, 32, 64, 128]
    stage_repeats = [4, 2, 2, 2]      # [0] unused; 3 stages of [stride-2, stride-1]
    out_indices = (0, 1, 2)

    params = init_shufflenetv2(kp, stage_out_channels, stage_repeats)

    x = jax.random.normal(kx, (2, 3, 32, 32), jnp.float32)   # NCHW input
    fwd = jax.jit(functools.partial(shufflenetv2_forward, params=params,
                                    out_indices=out_indices))
    outs = fwd(x)
    for o in outs:
        jax.block_until_ready(o)
    # expected feature shapes: (2,16,8,8), (2,32,4,4), (2,64,2,2)
    print("KERNEL_OK")
</pallas_src>

<mosaic_0001>
module attributes {stable_mosaic.version = 11 : i64} {
  func.func @_first_stage_kernel(%arg0: i32, %arg1: memref<1x256x27xf32, #tpu.memory_space<vmem>>, %arg2: memref<27x16xbf16, #tpu.memory_space<vmem>>, %arg3: memref<1x16xf32, #tpu.memory_space<vmem>>, %arg4: memref<1x64x16xf32, #tpu.memory_space<vmem>>, %arg5: memref<256x16xf32, #tpu.memory_space<vmem>>, %arg6: memref<18x18x16xf32, #tpu.memory_space<vmem>>) attributes {dimension_semantics = [#tpu.dimension_semantics<parallel>], iteration_bounds = array<i64: 2>, scalar_prefetch = 0 : i64, scratch_operands = 2 : i64, tpu.core_type = #tpu.core_type<tc>, window_params = [{transform_indices = @transform_0, window_bounds = array<i64: 1, 256, 27>}, {pipeline_mode = #tpu.pipeline_mode<synchronous>, transform_indices = @transform_1, window_bounds = array<i64: 27, 16>}, {pipeline_mode = #tpu.pipeline_mode<synchronous>, transform_indices = @transform_2, window_bounds = array<i64: 1, 16>}, {transform_indices = @transform_3, window_bounds = array<i64: 1, 64, 16>}]} {
    %c0 = arith.constant 0 : index
    %c0_0 = arith.constant 0 : index
    %c0_1 = arith.constant 0 : index
    %0 = vector.load %arg1[%c0, %c0_0, %c0_1] : memref<1x256x27xf32, #tpu.memory_space<vmem>>, vector<1x256x27xf32>
    %1 = vector.shape_cast %0 : vector<1x256x27xf32> to vector<256x27xf32>
    %2 = arith.truncf %1 : vector<256x27xf32> to vector<256x27xbf16>
    %c0_2 = arith.constant 0 : index
    %c0_3 = arith.constant 0 : index
    %3 = vector.load %arg2[%c0_2, %c0_3] : memref<27x16xbf16, #tpu.memory_space<vmem>>, vector<27x16xbf16>
    %cst = arith.constant dense<0.000000e+00> : vector<256x16xf32>
    %4 = tpu.matmul %2, %3, %cst {dimension_numbers = #tpu.dot_dimension_numbers<[1], [0], [0], [1], [0, 0, 1, 1], [], []>} : vector<256x27xbf16>, vector<27x16xbf16>, vector<256x16xf32> -> vector<256x16xf32>
    %c0_4 = arith.constant 0 : index
    %c0_5 = arith.constant 0 : index
    %5 = vector.load %arg3[%c0_4, %c0_5] : memref<1x16xf32, #tpu.memory_space<vmem>>, vector<1x16xf32>
    %6 = vector.broadcast %5 : vector<1x16xf32> to vector<256x16xf32>
    %7 = arith.addf %4, %6 : vector<256x16xf32>
    %cst_6 = arith.constant 0.000000e+00 : f32
    %8 = vector.broadcast %cst_6 : f32 to vector<256x16xf32>
    %9 = arith.maximumf %7, %8 : vector<256x16xf32>
    %c0_7 = arith.constant 0 : index
    %c0_8 = arith.constant 0 : index
    %10 = vector.load %arg5[%c0_7, %c0_8] : memref<256x16xf32, #tpu.memory_space<vmem>>, vector<256x16xf32>
    tpu.vector_store %arg5[%c0_7, %c0_8], %9 {strides = array<i32>} : memref<256x16xf32, #tpu.memory_space<vmem>>, vector<256x16xf32>,
    %cst_9 = arith.constant 0.000000e+00 : f32
    %11 = vector.broadcast %cst_9 : f32 to vector<18x18x16xf32>
    %c0_10 = arith.constant 0 : index
    %c0_11 = arith.constant 0 : index
    %c0_12 = arith.constant 0 : index
    %12 = vector.load %arg6[%c0_10, %c0_11, %c0_12] : memref<18x18x16xf32, #tpu.memory_space<vmem>>, vector<18x18x16xf32>
    tpu.vector_store %arg6[%c0_10, %c0_11, %c0_12], %11 {strides = array<i32>} : memref<18x18x16xf32, #tpu.memory_space<vmem>>, vector<18x18x16xf32>,
    %c0_13 = arith.constant 0 : index
    %c0_14 = arith.constant 0 : index
    %13 = vector.load %arg5[%c0_13, %c0_14] : memref<256x16xf32, #tpu.memory_space<vmem>>, vector<16x16xf32>
    %c1 = arith.constant 1 : index
    %c1_15 = arith.constant 1 : index
    %c0_16 = arith.constant 0 : index
    %14 = vector.load %arg6[%c1, %c1_15, %c0_16] : memref<18x18x16xf32, #tpu.memory_space<vmem>>, vector<1x16x16xf32>
    %15 = vector.shape_cast %14 : vector<1x16x16xf32> to vector<16x16xf32>
    %16 = vector.shape_cast %13 : vector<16x16xf32> to vector<1x16x16xf32>
    tpu.vector_store %arg6[%c1, %c1_15, %c0_16], %16 {strides = array<i32>} : memref<18x18x16xf32, #tpu.memory_space<vmem>>, vector<1x16x16xf32>,
    %c16 = arith.constant 16 : index
    %c0_17 = arith.constant 0 : index
    %17 = vector.load %arg5[%c16, %c0_17] : memref<256x16xf32, #tpu.memory_space<vmem>>, vector<16x16xf32>
    %c2 = arith.constant 2 : index
    %c1_18 = arith.constant 1 : index
    %c0_19 = arith.constant 0 : index
    %18 = vector.load %arg6[%c2, %c1_18, %c0_19] : memref<18x18x16xf32, #tpu.memory_space<vmem>>, vector<1x16x16xf32>
    %19 = vector.shape_cast %18 : vector<1x16x16xf32> to vector<16x16xf32>
    %20 = vector.shape_cast %17 : vector<16x16xf32> to vector<1x16x16xf32>
    tpu.vector_store %arg6[%c2, %c1_18, %c0_19], %20 {strides = array<i32>} : memref<18x18x16xf32, #tpu.memory_space<vmem>>, vector<1x16x16xf32>,
    %c32 = arith.constant 32 : index
    %c0_20 = arith.constant 0 : index
    %21 = vector.load %arg5[%c32, %c0_20] : memref<256x16xf32, #tpu.memory_space<vmem>>, vector<16x16xf32>
    %c3 = arith.constant 3 : index
    %c1_21 = arith.constant 1 : index
    %c0_22 = arith.constant 0 : index
    %22 = vector.load %arg6[%c3, %c1_21, %c0_22] : memref<18x18x16xf32, #tpu.memory_space<vmem>>, vector<1x16x16xf32>
    %23 = vector.shape_cast %22 : vector<1x16x16xf32> to vector<16x16xf32>
    %24 = vector.shape_cast %21 : vector<16x16xf32> to vector<1x16x16xf32>
    tpu.vector_store %arg6[%c3, %c1_21, %c0_22], %24 {strides = array<i32>} : memref<18x18x16xf32, #tpu.memory_space<vmem>>, vector<1x16x16xf32>,
    %c48 = arith.constant 48 : index
    %c0_23 = arith.constant 0 : index
    %25 = vector.load %arg5[%c48, %c0_23] : memref<256x16xf32, #tpu.memory_space<vmem>>, vector<16x16xf32>
    %c4 = arith.constant 4 : index
    %c1_24 = arith.constant 1 : index
    %c0_25 = arith.constant 0 : index
    %26 = vector.load %arg6[%c4, %c1_24, %c0_25] : memref<18x18x16xf32, #tpu.memory_space<vmem>>, vector<1x16x16xf32>
    %27 = vector.shape_cast %26 : vector<1x16x16xf32> to vector<16x16xf32>
    %28 = vector.shape_cast %25 : vector<16x16xf32> to vector<1x16x16xf32>
    tpu.vector_store %arg6[%c4, %c1_24, %c0_25], %28 {strides = array<i32>} : memref<18x18x16xf32, #tpu.memory_space<vmem>>, vector<1x16x16xf32>,
    %c64 = arith.constant 64 : index
    %c0_26 = arith.constant 0 : index
    %29 = vector.load %arg5[%c64, %c0_26] : memref<256x16xf32, #tpu.memory_space<vmem>>, vector<16x16xf32>
    %c5 = arith.constant 5 : index
    %c1_27 = arith.constant 1 : index
    %c0_28 = arith.constant 0 : index
    %30 = vector.load %arg6[%c5, %c1_27, %c0_28] : memref<18x18x16xf32, #tpu.memory_space<vmem>>, vector<1x16x16xf32>
    %31 = vector.shape_cast %30 : vector<1x16x16xf32> to vector<16x16xf32>
    %32 = vector.shape_cast %29 : vector<16x16xf32> to vector<1x16x16xf32>
    tpu.vector_store %arg6[%c5, %c1_27, %c0_28], %32 {strides = array<i32>} : memref<18x18x16xf32, #tpu.memory_space<vmem>>, vector<1x16x16xf32>,
    %c80 = arith.constant 80 : index
    %c0_29 = arith.constant 0 : index
    %33 = vector.load %arg5[%c80, %c0_29] : memref<256x16xf32, #tpu.memory_space<vmem>>, vector<16x16xf32>
    %c6 = arith.constant 6 : index
    %c1_30 = arith.constant 1 : index
    %c0_31 = arith.constant 0 : index
    %34 = vector.load %arg6[%c6, %c1_30, %c0_31] : memref<18x18x16xf32, #tpu.memory_space<vmem>>, vector<1x16x16xf32>
    %35 = vector.shape_cast %34 : vector<1x16x16xf32> to vector<16x16xf32>
    %36 = vector.shape_cast %33 : vector<16x16xf32> to vector<1x16x16xf32>
    tpu.vector_store %arg6[%c6, %c1_30, %c0_31], %36 {strides = array<i32>} : memref<18x18x16xf32, #tpu.memory_space<vmem>>, vector<1x16x16xf32>,
    %c96 = arith.constant 96 : index
    %c0_32 = arith.constant 0 : index
    %37 = vector.load %arg5[%c96, %c0_32] : memref<256x16xf32, #tpu.memory_space<vmem>>, vector<16x16xf32>
    %c7 = arith.constant 7 : index
    %c1_33 = arith.constant 1 : index
    %c0_34 = arith.constant 0 : index
    %38 = vector.load %arg6[%c7, %c1_33, %c0_34] : memref<18x18x16xf32, #tpu.memory_space<vmem>>, vector<1x16x16xf32>
    %39 = vector.shape_cast %38 : vector<1x16x16xf32> to vector<16x16xf32>
    %40 = vector.shape_cast %37 : vector<16x16xf32> to vector<1x16x16xf32>
    tpu.vector_store %arg6[%c7, %c1_33, %c0_34], %40 {strides = array<i32>} : memref<18x18x16xf32, #tpu.memory_space<vmem>>, vector<1x16x16xf32>,
    %c112 = arith.constant 112 : index
    %c0_35 = arith.constant 0 : index
    %41 = vector.load %arg5[%c112, %c0_35] : memref<256x16xf32, #tpu.memory_space<vmem>>, vector<16x16xf32>
    %c8 = arith.constant 8 : index
    %c1_36 = arith.constant 1 : index
    %c0_37 = arith.constant 0 : index
    %42 = vector.load %arg6[%c8, %c1_36, %c0_37] : memref<18x18x16xf32, #tpu.memory_space<vmem>>, vector<1x16x16xf32>
    %43 = vector.shape_cast %42 : vector<1x16x16xf32> to vector<16x16xf32>
    %44 = vector.shape_cast %41 : vector<16x16xf32> to vector<1x16x16xf32>
    tpu.vector_store %arg6[%c8, %c1_36, %c0_37], %44 {strides = array<i32>} : memref<18x18x16xf32, #tpu.memory_space<vmem>>, vector<1x16x16xf32>,
    %c128 = arith.constant 128 : index
    %c0_38 = arith.constant 0 : index
    %45 = vector.load %arg5[%c128, %c0_38] : memref<256x16xf32, #tpu.memory_space<vmem>>, vector<16x16xf32>
    %c9 = arith.constant 9 : index
    %c1_39 = arith.constant 1 : index
    %c0_40 = arith.constant 0 : index
    %46 = vector.load %arg6[%c9, %c1_39, %c0_40] : memref<18x18x16xf32, #tpu.memory_space<vmem>>, vector<1x16x16xf32>
    %47 = vector.shape_cast %46 : vector<1x16x16xf32> to vector<16x16xf32>
    %48 = vector.shape_cast %45 : vector<16x16xf32> to vector<1x16x16xf32>
    tpu.vector_store %arg6[%c9, %c1_39, %c0_40], %48 {strides = array<i32>} : memref<18x18x16xf32, #tpu.memory_space<vmem>>, vector<1x16x16xf32>,
    %c144 = arith.constant 144 : index
    %c0_41 = arith.constant 0 : index
    %49 = vector.load %arg5[%c144, %c0_41] : memref<256x16xf32, #tpu.memory_space<vmem>>, vector<16x16xf32>
    %c10 = arith.constant 10 : index
    %c1_42 = arith.constant 1 : index
    %c0_43 = arith.constant 0 : index
    %50 = vector.load %arg6[%c10, %c1_42, %c0_43] : memref<18x18x16xf32, #tpu.memory_space<vmem>>, vector<1x16x16xf32>
    %51 = vector.shape_cast %50 : vector<1x16x16xf32> to vector<16x16xf32>
    %52 = vector.shape_cast %49 : vector<16x16xf32> to vector<1x16x16xf32>
    tpu.vector_store %arg6[%c10, %c1_42, %c0_43], %52 {strides = array<i32>} : memref<18x18x16xf32, #tpu.memory_space<vmem>>, vector<1x16x16xf32>,
    %c160 = arith.constant 160 : index
    %c0_44 = arith.constant 0 : index
    %53 = vector.load %arg5[%c160, %c0_44] : memref<256x16xf32, #tpu.memory_space<vmem>>, vector<16x16xf32>
    %c11 = arith.constant 11 : index
    %c1_45 = arith.constant 1 : index
    %c0_46 = arith.constant 0 : index
    %54 = vector.load %arg6[%c11, %c1_45, %c0_46] : memref<18x18x16xf32, #tpu.memory_space<vmem>>, vector<1x16x16xf32>
    %55 = vector.shape_cast %54 : vector<1x16x16xf32> to vector<16x16xf32>
    %56 = vector.shape_cast %53 : vector<16x16xf32> to vector<1x16x16xf32>
    tpu.vector_store %arg6[%c11, %c1_45, %c0_46], %56 {strides = array<i32>} : memref<18x18x16xf32, #tpu.memory_space<vmem>>, vector<1x16x16xf32>,
    %c176 = arith.constant 176 : index
    %c0_47 = arith.constant 0 : index
    %57 = vector.load %arg5[%c176, %c0_47] : memref<256x16xf32, #tpu.memory_space<vmem>>, vector<16x16xf32>
    %c12 = arith.constant 12 : index
    %c1_48 = arith.constant 1 : index
    %c0_49 = arith.constant 0 : index
    %58 = vector.load %arg6[%c12, %c1_48, %c0_49] : memref<18x18x16xf32, #tpu.memory_space<vmem>>, vector<1x16x16xf32>
    %59 = vector.shape_cast %58 : vector<1x16x16xf32> to vector<16x16xf32>
    %60 = vector.shape_cast %57 : vector<16x16xf32> to vector<1x16x16xf32>
    tpu.vector_store %arg6[%c12, %c1_48, %c0_49], %60 {strides = array<i32>} : memref<18x18x16xf32, #tpu.memory_space<vmem>>, vector<1x16x16xf32>,
    %c192 = arith.constant 192 : index
    %c0_50 = arith.constant 0 : index
    %61 = vector.load %arg5[%c192, %c0_50] : memref<256x16xf32, #tpu.memory_space<vmem>>, vector<16x16xf32>
    %c13 = arith.constant 13 : index
    %c1_51 = arith.constant 1 : index
    %c0_52 = arith.constant 0 : index
    %62 = vector.load %arg6[%c13, %c1_51, %c0_52] : memref<18x18x16xf32, #tpu.memory_space<vmem>>, vector<1x16x16xf32>
    %63 = vector.shape_cast %62 : vector<1x16x16xf32> to vector<16x16xf32>
    %64 = vector.shape_cast %61 : vector<16x16xf32> to vector<1x16x16xf32>
    tpu.vector_store %arg6[%c13, %c1_51, %c0_52], %64 {strides = array<i32>} : memref<18x18x16xf32, #tpu.memory_space<vmem>>, vector<1x16x16xf32>,
    %c208 = arith.constant 208 : index
    %c0_53 = arith.constant 0 : index
    %65 = vector.load %arg5[%c208, %c0_53] : memref<256x16xf32, #tpu.memory_space<vmem>>, vector<16x16xf32>
    %c14 = arith.constant 14 : index
    %c1_54 = arith.constant 1 : index
    %c0_55 = arith.constant 0 : index
    %66 = vector.load %arg6[%c14, %c1_54, %c0_55] : memref<18x18x16xf32, #tpu.memory_space<vmem>>, vector<1x16x16xf32>
    %67 = vector.shape_cast %66 : vector<1x16x16xf32> to vector<16x16xf32>
    %68 = vector.shape_cast %65 : vector<16x16xf32> to vector<1x16x16xf32>
    tpu.vector_store %arg6[%c14, %c1_54, %c0_55], %68 {strides = array<i32>} : memref<18x18x16xf32, #tpu.memory_space<vmem>>, vector<1x16x16xf32>,
    %c224 = arith.constant 224 : index
    %c0_56 = arith.constant 0 : index
    %69 = vector.load %arg5[%c224, %c0_56] : memref<256x16xf32, #tpu.memory_space<vmem>>, vector<16x16xf32>
    %c15 = arith.constant 15 : index
    %c1_57 = arith.constant 1 : index
    %c0_58 = arith.constant 0 : index
    %70 = vector.load %arg6[%c15, %c1_57, %c0_58] : memref<18x18x16xf32, #tpu.memory_space<vmem>>, vector<1x16x16xf32>
    %71 = vector.shape_cast %70 : vector<1x16x16xf32> to vector<16x16xf32>
    %72 = vector.shape_cast %69 : vector<16x16xf32> to vector<1x16x16xf32>
    tpu.vector_store %arg6[%c15, %c1_57, %c0_58], %72 {strides = array<i32>} : memref<18x18x16xf32, #tpu.memory_space<vmem>>, vector<1x16x16xf32>,
    %c240 = arith.constant 240 : index
    %c0_59 = arith.constant 0 : index
    %73 = vector.load %arg5[%c240, %c0_59] : memref<256x16xf32, #tpu.memory_space<vmem>>, vector<16x16xf32>
    %c16_60 = arith.constant 16 : index
    %c1_61 = arith.constant 1 : index
    %c0_62 = arith.constant 0 : index
    %74 = vector.load %arg6[%c16_60, %c1_61, %c0_62] : memref<18x18x16xf32, #tpu.memory_space<vmem>>, vector<1x16x16xf32>
    %75 = vector.shape_cast %74 : vector<1x16x16xf32> to vector<16x16xf32>
    %76 = vector.shape_cast %73 : vector<16x16xf32> to vector<1x16x16xf32>
    tpu.vector_store %arg6[%c16_60, %c1_61, %c0_62], %76 {strides = array<i32>} : memref<18x18x16xf32, #tpu.memory_space<vmem>>, vector<1x16x16xf32>,
    %77 = tpu.iota {dimensions = array<i32: 0>} : vector<8x16xi32>
    %78 = tpu.iota {dimensions = array<i32: 1>} : vector<8x16xi32>
    %c2_i32 = arith.constant 2 : i32
    %79 = vector.broadcast %c2_i32 : i32 to vector<8x16xi32>
    %80 = arith.muli %79, %77 : vector<8x16xi32>
    %81 = arith.cmpi eq, %78, %80 : vector<8x16xi32>
    %cst_63 = arith.constant 1.000000e+00 : f32
    %cst_64 = arith.constant 0.000000e+00 : f32
    %82 = vector.broadcast %cst_63 : f32 to vector<8x16xf32>
    %83 = vector.broadcast %cst_64 : f32 to vector<8x16xf32>
    %84 = arith.select %81, %82, %83 : vector<8x16xi1>, vector<8x16xf32>
    %c0_65 = arith.constant 0 : index
    %c0_66 = arith.constant 0 : index
    %c0_67 = arith.constant 0 : index
    %85 = vector.load %arg6[%c0_65, %c0_66, %c0_67] : memref<18x18x16xf32, #tpu.memory_space<vmem>>, vector<1x16x16xf32>
    %86 = vector.shape_cast %85 : vector<1x16x16xf32> to vector<16x16xf32>
    %c0_68 = arith.constant 0 : index
    %c1_69 = arith.constant 1 : index
    %c0_70 = arith.constant 0 : index
    %87 = vector.load %arg6[%c0_68, %c1_69, %c0_70] : memref<18x18x16xf32, #tpu.memory_space<vmem>>, vector<1x16x16xf32>
    %88 = vector.shape_cast %87 : vector<1x16x16xf32> to vector<16x16xf32>
    %89 = arith.maximumf %86, %88 : vector<16x16xf32>
    %c0_71 = arith.constant 0 : index
    %c2_72 = arith.constant 2 : index
    %c0_73 = arith.constant 0 : index
    %90 = vector.load %arg6[%c0_71, %c2_72, %c0_73] : memref<18x18x16xf32, #tpu.memory_space<vmem>>, vector<1x16x16xf32>
    %91 = vector.shape_cast %90 : vector<1x16x16xf32> to vector<16x16xf32>
    %92 = arith.maximumf %89, %91 : vector<16x16xf32>
    %c1_74 = arith.constant 1 : index
    %c0_75 = arith.constant 0 : index
    %c0_76 = arith.constant 0 : index
    %93 = vector.load %arg6[%c1_74, %c0_75, %c0_76] : memref<18x18x16xf32, #tpu.memory_space<vmem>>, vector<1x16x16xf32>
    %94 = vector.shape_cast %93 : vector<1x16x16xf32> to vector<16x16xf32>
    %95 = arith.maximumf %92, %94 : vector<16x16xf32>
    %c1_77 = arith.constant 1 : index
    %c1_78 = arith.constant 1 : index
    %c0_79 = arith.constant 0 : index
    %96 = vector.load %arg6[%c1_77, %c1_78, %c0_79] : memref<18x18x16xf32, #tpu.memory_space<vmem>>, vector<1x16x16xf32>
    %97 = vector.shape_cast %96 : vector<1x16x16xf32> to vector<16x16xf32>
    %98 = arith.maximumf %95, %97 : vector<16x16xf32>
    %c1_80 = arith.constant 1 : index
    %c2_81 = arith.constant 2 : index
    %c0_82 = arith.constant 0 : index
    %99 = vector.load %arg6[%c1_80, %c2_81, %c0_82] : memref<18x18x16xf32, #tpu.memory_space<vmem>>, vector<1x16x16xf32>
    %100 = vector.shape_cast %99 : vector<1x16x16xf32> to vector<16x16xf32>
    %101 = arith.maximumf %98, %100 : vector<16x16xf32>
    %c2_83 = arith.constant 2 : index
    %c0_84 = arith.constant 0 : index
    %c0_85 = arith.constant 0 : index
    %102 = vector.load %arg6[%c2_83, %c0_84, %c0_85] : memref<18x18x16xf32, #tpu.memory_space<vmem>>, vector<1x16x16xf32>
    %103 = vector.shape_cast %102 : vector<1x16x16xf32> to vector<16x16xf32>
    %104 = arith.maximumf %101, %103 : vector<16x16xf32>
    %c2_86 = arith.constant 2 : index
    %c1_87 = arith.constant 1 : index
    %c0_88 = arith.constant 0 : index
    %105 = vector.load %arg6[%c2_86, %c1_87, %c0_88] : memref<18x18x16xf32, #tpu.memory_space<vmem>>, vector<1x16x16xf32>
    %106 = vector.shape_cast %105 : vector<1x16x16xf32> to vector<16x16xf32>
    %107 = arith.maximumf %104, %106 : vector<16x16xf32>
    %c2_89 = arith.constant 2 : index
    %c2_90 = arith.constant 2 : index
    %c0_91 = arith.constant 0 : index
    %108 = vector.load %arg6[%c2_89, %c2_90, %c0_91] : memref<18x18x16xf32, #tpu.memory_space<vmem>>, vector<1x16x16xf32>
    %109 = vector.shape_cast %108 : vector<1x16x16xf32> to vector<16x16xf32>
    %110 = arith.maximumf %107, %109 : vector<16x16xf32>
    %cst_92 = arith.constant dense<0.000000e+00> : vector<8x16xf32>
    %111 = tpu.matmul %84, %110, %cst_92 {dimension_numbers = #tpu.dot_dimension_numbers<[1], [0], [0], [1], [0, 0, 1, 1], [], []>, precision = #tpu.contract_precision<fp32>} : vector<8x16xf32>, vector<16x16xf32>, vector<8x16xf32> -> vector<8x16xf32>
    %c0_93 = arith.constant 0 : index
    %c0_94 = arith.constant 0 : index
    %c0_95 = arith.constant 0 : index
    %112 = vector.load %arg4[%c0_93, %c0_94, %c0_95] : memref<1x64x16xf32, #tpu.memory_space<vmem>>, vector<1x8x16xf32>
    %113 = vector.shape_cast %112 : vector<1x8x16xf32> to vector<8x16xf32>
    %114 = vector.shape_cast %111 : vector<8x16xf32> to vector<1x8x16xf32>
    tpu.vector_store %arg4[%c0_93, %c0_94, %c0_95], %114 {strides = array<i32>} : memref<1x64x16xf32, #tpu.memory_space<vmem>>, vector<1x8x16xf32>,
    %c2_96 = arith.constant 2 : index
    %c0_97 = arith.constant 0 : index
    %c0_98 = arith.constant 0 : index
    %115 = vector.load %arg6[%c2_96, %c0_97, %c0_98] : memref<18x18x16xf32, #tpu.memory_space<vmem>>, vector<1x16x16xf32>
    %116 = vector.shape_cast %115 : vector<1x16x16xf32> to vector<16x16xf32>
    %c2_99 = arith.constant 2 : index
    %c1_100 = arith.constant 1 : index
    %c0_101 = arith.constant 0 : index
    %117 = vector.load %arg6[%c2_99, %c1_100, %c0_101] : memref<18x18x16xf32, #tpu.memory_space<vmem>>, vector<1x16x16xf32>
    %118 = vector.shape_cast %117 : vector<1x16x16xf32> to vector<16x16xf32>
    %119 = arith.maximumf %116, %118 : vector<16x16xf32>
    %c2_102 = arith.constant 2 : index
    %c2_103 = arith.constant 2 : index
    %c0_104 = arith.constant 0 : index
    %120 = vector.load %arg6[%c2_102, %c2_103, %c0_104] : memref<18x18x16xf32, #tpu.memory_space<vmem>>, vector<1x16x16xf32>
    %121 = vector.shape_cast %120 : vector<1x16x16xf32> to vector<16x16xf32>
    %122 = arith.maximumf %119, %121 : vector<16x16xf32>
    %c3_105 = arith.constant 3 : index
    %c0_106 = arith.constant 0 : index
    %c0_107 = arith.constant 0 : index
    %123 = vector.load %arg6[%c3_105, %c0_106, %c0_107] : memref<18x18x16xf32, #tpu.memory_space<vmem>>, vector<1x16x16xf32>
    %124 = vector.shape_cast %123 : vector<1x16x16xf32> to vector<16x16xf32>
    %125 = arith.maximumf %122, %124 : vector<16x16xf32>
    %c3_108 = arith.constant 3 : index
    %c1_109 = arith.constant 1 : index
    %c0_110 = arith.constant 0 : index
    %126 = vector.load %arg6[%c3_108, %c1_109, %c0_110] : memref<18x18x16xf32, #tpu.memory_space<vmem>>, vector<1x16x16xf32>
    %127 = vector.shape_cast %126 : vector<1x16x16xf32> to vector<16x16xf32>
    %128 = arith.maximumf %125, %127 : vector<16x16xf32>
    %c3_111 = arith.constant 3 : index
    %c2_112 = arith.constant 2 : index
    %c0_113 = arith.constant 0 : index
    %129 = vector.load %arg6[%c3_111, %c2_112, %c0_113] : memref<18x18x16xf32, #tpu.memory_space<vmem>>, vector<1x16x16xf32>
    %130 = vector.shape_cast %129 : vector<1x16x16xf32> to vector<16x16xf32>
    %131 = arith.maximumf %128, %130 : vector<16x16xf32>
    %c4_114 = arith.constant 4 : index
    %c0_115 = arith.constant 0 : index
    %c0_116 = arith.constant 0 : index
    %132 = vector.load %arg6[%c4_114, %c0_115, %c0_116] : memref<18x18x16xf32, #tpu.memory_space<vmem>>, vector<1x16x16xf32>
    %133 = vector.shape_cast %132 : vector<1x16x16xf32> to vector<16x16xf32>
    %134 = arith.maximumf %131, %133 : vector<16x16xf32>
    %c4_117 = arith.constant 4 : index
    %c1_118 = arith.constant 1 : index
    %c0_119 = arith.constant 0 : index
    %135 = vector.load %arg6[%c4_117, %c1_118, %c0_119] : memref<18x18x16xf32, #tpu.memory_space<vmem>>, vector<1x16x16xf32>
    %136 = vector.shape_cast %135 : vector<1x16x16xf32> to vector<16x16xf32>
    %137 = arith.maximumf %134, %136 : vector<16x16xf32>
    %c4_120 = arith.constant 4 : index
    %c2_121 = arith.constant 2 : index
    %c0_122 = arith.constant 0 : index
    %138 = vector.load %arg6[%c4_120, %c2_121, %c0_122] : memref<18x18x16xf32, #tpu.memory_space<vmem>>, vector<1x16x16xf32>
    %139 = vector.shape_cast %138 : vector<1x16x16xf32> to vector<16x16xf32>
    %140 = arith.maximumf %137, %139 : vector<16x16xf32>
    %cst_123 = arith.constant dense<0.000000e+00> : vector<8x16xf32>
    %141 = tpu.matmul %84, %140, %cst_123 {dimension_numbers = #tpu.dot_dimension_numbers<[1], [0], [0], [1], [0, 0, 1, 1], [], []>, precision = #tpu.contract_precision<fp32>} : vector<8x16xf32>, vector<16x16xf32>, vector<8x16xf32> -> vector<8x16xf32>
    %c0_124 = arith.constant 0 : index
    %c8_125 = arith.constant 8 : index
    %c0_126 = arith.constant 0 : index
    %142 = vector.load %arg4[%c0_124, %c8_125, %c0_126] : memref<1x64x16xf32, #tpu.memory_space<vmem>>, vector<1x8x16xf32>
    %143 = vector.shape_cast %142 : vector<1x8x16xf32> to vector<8x16xf32>
    %144 = vector.shape_cast %141 : vector<8x16xf32> to vector<1x8x16xf32>
    tpu.vector_store %arg4[%c0_124, %c8_125, %c0_126], %144 {strides = array<i32>} : memref<1x64x16xf32, #tpu.memory_space<vmem>>, vector<1x8x16xf32>,
    %c4_127 = arith.constant 4 : index
    %c0_128 = arith.constant 0 : index
    %c0_129 = arith.constant 0 : index
    %145 = vector.load %arg6[%c4_127, %c0_128, %c0_129] : memref<18x18x16xf32, #tpu.memory_space<vmem>>, vector<1x16x16xf32>
    %146 = vector.shape_cast %145 : vector<1x16x16xf32> to vector<16x16xf32>
    %c4_130 = arith.constant 4 : index
    %c1_131 = arith.constant 1 : index
    %c0_132 = arith.constant 0 : index
    %147 = vector.load %arg6[%c4_130, %c1_131, %c0_132] : memref<18x18x16xf32, #tpu.memory_space<vmem>>, vector<1x16x16xf32>
    %148 = vector.shape_cast %147 : vector<1x16x16xf32> to vector<16x16xf32>
    %149 = arith.maximumf %146, %148 : vector<16x16xf32>
    %c4_133 = arith.constant 4 : index
    %c2_134 = arith.constant 2 : index
    %c0_135 = arith.constant 0 : index
    %150 = vector.load %arg6[%c4_133, %c2_134, %c0_135] : memref<18x18x16xf32, #tpu.memory_space<vmem>>, vector<1x16x16xf32>
    %151 = vector.shape_cast %150 : vector<1x16x16xf32> to vector<16x16xf32>
    %152 = arith.maximumf %149, %151 : vector<16x16xf32>
    %c5_136 = arith.constant 5 : index
    %c0_137 = arith.constant 0 : index
    %c0_138 = arith.constant 0 : index
    %153 = vector.load %arg6[%c5_136, %c0_137, %c0_138] : memref<18x18x16xf32, #tpu.memory_space<vmem>>, vector<1x16x16xf32>
    %154 = vector.shape_cast %153 : vector<1x16x16xf32> to vector<16x16xf32>
    %155 = arith.maximumf %152, %154 : vector<16x16xf32>
    %c5_139 = arith.constant 5 : index
    %c1_140 = arith.constant 1 : index
    %c0_141 = arith.constant 0 : index
    %156 = vector.load %arg6[%c5_139, %c1_140, %c0_141] : memref<18x18x16xf32, #tpu.memory_space<vmem>>, vector<1x16x16xf32>
    %157 = vector.shape_cast %156 : vector<1x16x16xf32> to vector<16x16xf32>
    %158 = arith.maximumf %155, %157 : vector<16x16xf32>
    %c5_142 = arith.constant 5 : index
    %c2_143 = arith.constant 2 : index
    %c0_144 = arith.constant 0 : index
    %159 = vector.load %arg6[%c5_142, %c2_143, %c0_144] : memref<18x18x16xf32, #tpu.memory_space<vmem>>, vector<1x16x16xf32>
    %160 = vector.shape_cast %159 : vector<1x16x16xf32> to vector<16x16xf32>
    %161 = arith.maximumf %158, %160 : vector<16x16xf32>
    %c6_145 = arith.constant 6 : index
    %c0_146 = arith.constant 0 : index
    %c0_147 = arith.constant 0 : index
    %162 = vector.load %arg6[%c6_145, %c0_146, %c0_147] : memref<18x18x16xf32, #tpu.memory_space<vmem>>, vector<1x16x16xf32>
    %163 = vector.shape_cast %162 : vector<1x16x16xf32> to vector<16x16xf32>
    %164 = arith.maximumf %161, %163 : vector<16x16xf32>
    %c6_148 = arith.constant 6 : index
    %c1_149 = arith.constant 1 : index
    %c0_150 = arith.constant 0 : index
    %165 = vector.load %arg6[%c6_148, %c1_149, %c0_150] : memref<18x18x16xf32, #tpu.memory_space<vmem>>, vector<1x16x16xf32>
    %166 = vector.shape_cast %165 : vector<1x16x16xf32> to vector<16x16xf32>
    %167 = arith.maximumf %164, %166 : vector<16x16xf32>
    %c6_151 = arith.constant 6 : index
    %c2_152 = arith.constant 2 : index
    %c0_153 = arith.constant 0 : index
    %168 = vector.load %arg6[%c6_151, %c2_152, %c0_153] : memref<18x18x16xf32, #tpu.memory_space<vmem>>, vector<1x16x16xf32>
    %169 = vector.shape_cast %168 : vector<1x16x16xf32> to vector<16x16xf32>
    %170 = arith.maximumf %167, %169 : vector<16x16xf32>
    %cst_154 = arith.constant dense<0.000000e+00> : vector<8x16xf32>
    %171 = tpu.matmul %84, %170, %cst_154 {dimension_numbers = #tpu.dot_dimension_numbers<[1], [0], [0], [1], [0, 0, 1, 1], [], []>, precision = #tpu.contract_precision<fp32>} : vector<8x16xf32>, vector<16x16xf32>, vector<8x16xf32> -> vector<8x16xf32>
    %c0_155 = arith.constant 0 : index
    %c16_156 = arith.constant 16 : index
    %c0_157 = arith.constant 0 : index
    %172 = vector.load %arg4[%c0_155, %c16_156, %c0_157] : memref<1x64x16xf32, #tpu.memory_space<vmem>>, vector<1x8x16xf32>
    %173 = vector.shape_cast %172 : vector<1x8x16xf32> to vector<8x16xf32>
    %174 = vector.shape_cast %171 : vector<8x16xf32> to vector<1x8x16xf32>
    tpu.vector_store %arg4[%c0_155, %c16_156, %c0_157], %174 {strides = array<i32>} : memref<1x64x16xf32, #tpu.memory_space<vmem>>, vector<1x8x16xf32>,
    %c6_158 = arith.constant 6 : index
    %c0_159 = arith.constant 0 : index
    %c0_160 = arith.constant 0 : index
    %175 = vector.load %arg6[%c6_158, %c0_159, %c0_160] : memref<18x18x16xf32, #tpu.memory_space<vmem>>, vector<1x16x16xf32>
    %176 = vector.shape_cast %175 : vector<1x16x16xf32> to vector<16x16xf32>
    %c6_161 = arith.constant 6 : index
    %c1_162 = arith.constant 1 : index
    %c0_163 = arith.constant 0 : index
    %177 = vector.load %arg6[%c6_161, %c1_162, %c0_163] : memref<18x18x16xf32, #tpu.memory_space<vmem>>, vector<1x16x16xf32>
    %178 = vector.shape_cast %177 : vector<1x16x16xf32> to vector<16x16xf32>
    %179 = arith.maximumf %176, %178 : vector<16x16xf32>
    %c6_164 = arith.constant 6 : index
    %c2_165 = arith.constant 2 : index
    %c0_166 = arith.constant 0 : index
    %180 = vector.load %arg6[%c6_164, %c2_165, %c0_166] : memref<18x18x16xf32, #tpu.memory_space<vmem>>, vector<1x16x16xf32>
    %181 = vector.shape_cast %180 : vector<1x16x16xf32> to vector<16x16xf32>
    %182 = arith.maximumf %179, %181 : vector<16x16xf32>
    %c7_167 = arith.constant 7 : index
    %c0_168 = arith.constant 0 : index
    %c0_169 = arith.constant 0 : index
    %183 = vector.load %arg6[%c7_167, %c0_168, %c0_169] : memref<18x18x16xf32, #tpu.memory_space<vmem>>, vector<1x16x16xf32>
    %184 = vector.shape_cast %183 : vector<1x16x16xf32> to vector<16x16xf32>
    %185 = arith.maximumf %182, %184 : vector<16x16xf32>
    %c7_170 = arith.constant 7 : index
    %c1_171 = arith.constant 1 : index
    %c0_172 = arith.constant 0 : index
    %186 = vector.load %arg6[%c7_170, %c1_171, %c0_172] : memref<18x18x16xf32, #tpu.memory_space<vmem>>, vector<1x16x16xf32>
    %187 = vector.shape_cast %186 : vector<1x16x16xf32> to vector<16x16xf32>
    %188 = arith.maximumf %185, %187 : vector<16x16xf32>
    %c7_173 = arith.constant 7 : index
    %c2_174 = arith.constant 2 : index
    %c0_175 = arith.constant 0 : index
    %189 = vector.load %arg6[%c7_173, %c2_174, %c0_175] : memref<18x18x16xf32, #tpu.memory_space<vmem>>, vector<1x16x16xf32>
    %190 = vector.shape_cast %189 : vector<1x16x16xf32> to vector<16x16xf32>
    %191 = arith.maximumf %188, %190 : vector<16x16xf32>
    %c8_176 = arith.constant 8 : index
    %c0_177 = arith.constant 0 : index
    %c0_178 = arith.constant 0 : index
    %192 = vector.load %arg6[%c8_176, %c0_177, %c0_178] : memref<18x18x16xf32, #tpu.memory_space<vmem>>, vector<1x16x16xf32>
    %193 = vector.shape_cast %192 : vector<1x16x16xf32> to vector<16x16xf32>
    %194 = arith.maximumf %191, %193 : vector<16x16xf32>
    %c8_179 = arith.constant 8 : index
    %c1_180 = arith.constant 1 : index
    %c0_181 = arith.constant 0 : index
    %195 = vector.load %arg6[%c8_179, %c1_180, %c0_181] : memref<18x18x16xf32, #tpu.memory_space<vmem>>, vector<1x16x16xf32>
    %196 = vector.shape_cast %195 : vector<1x16x16xf32> to vector<16x16xf32>
    %197 = arith.maximumf %194, %196 : vector<16x16xf32>
    %c8_182 = arith.constant 8 : index
    %c2_183 = arith.constant 2 : index
    %c0_184 = arith.constant 0 : index
    %198 = vector.load %arg6[%c8_182, %c2_183, %c0_184] : memref<18x18x16xf32, #tpu.memory_space<vmem>>, vector<1x16x16xf32>
    %199 = vector.shape_cast %198 : vector<1x16x16xf32> to vector<16x16xf32>
    %200 = arith.maximumf %197, %199 : vector<16x16xf32>
    %cst_185 = arith.constant dense<0.000000e+00> : vector<8x16xf32>
    %201 = tpu.matmul %84, %200, %cst_185 {dimension_numbers = #tpu.dot_dimension_numbers<[1], [0], [0], [1], [0, 0, 1, 1], [], []>, precision = #tpu.contract_precision<fp32>} : vector<8x16xf32>, vector<16x16xf32>, vector<8x16xf32> -> vector<8x16xf32>
    %c0_186 = arith.constant 0 : index
    %c24 = arith.constant 24 : index
    %c0_187 = arith.constant 0 : index
    %202 = vector.load %arg4[%c0_186, %c24, %c0_187] : memref<1x64x16xf32, #tpu.memory_space<vmem>>, vector<1x8x16xf32>
    %203 = vector.shape_cast %202 : vector<1x8x16xf32> to vector<8x16xf32>
    %204 = vector.shape_cast %201 : vector<8x16xf32> to vector<1x8x16xf32>
    tpu.vector_store %arg4[%c0_186, %c24, %c0_187], %204 {strides = array<i32>} : memref<1x64x16xf32, #tpu.memory_space<vmem>>, vector<1x8x16xf32>,
    %c8_188 = arith.constant 8 : index
    %c0_189 = arith.constant 0 : index
    %c0_190 = arith.constant 0 : index
    %205 = vector.load %arg6[%c8_188, %c0_189, %c0_190] : memref<18x18x16xf32, #tpu.memory_space<vmem>>, vector<1x16x16xf32>
    %206 = vector.shape_cast %205 : vector<1x16x16xf32> to vector<16x16xf32>
    %c8_191 = arith.constant 8 : index
    %c1_192 = arith.constant 1 : index
    %c0_193 = arith.constant 0 : index
    %207 = vector.load %arg6[%c8_191, %c1_192, %c0_193] : memref<18x18x16xf32, #tpu.memory_space<vmem>>, vector<1x16x16xf32>
    %208 = vector.shape_cast %207 : vector<1x16x16xf32> to vector<16x16xf32>
    %209 = arith.maximumf %206, %208 : vector<16x16xf32>
    %c8_194 = arith.constant 8 : index
    %c2_195 = arith.constant 2 : index
    %c0_196 = arith.constant 0 : index
    %210 = vector.load %arg6[%c8_194, %c2_195, %c0_196] : memref<18x18x16xf32, #tpu.memory_space<vmem>>, vector<1x16x16xf32>
    %211 = vector.shape_cast %210 : vector<1x16x16xf32> to vector<16x16xf32>
    %212 = arith.maximumf %209, %211 : vector<16x16xf32>
    %c9_197 = arith.constant 9 : index
    %c0_198 = arith.constant 0 : index
    %c0_199 = arith.constant 0 : index
    %213 = vector.load %arg6[%c9_197, %c0_198, %c0_199] : memref<18x18x16xf32, #tpu.memory_space<vmem>>, vector<1x16x16xf32>
    %214 = vector.shape_cast %213 : vector<1x16x16xf32> to vector<16x16xf32>
    %215 = arith.maximumf %212, %214 : vector<16x16xf32>
    %c9_200 = arith.constant 9 : index
    %c1_201 = arith.constant 1 : index
    %c0_202 = arith.constant 0 : index
    %216 = vector.load %arg6[%c9_200, %c1_201, %c0_202] : memref<18x18x16xf32, #tpu.memory_space<vmem>>, vector<1x16x16xf32>
    %217 = vector.shape_cast %216 : vector<1x16x16xf32> to vector<16x16xf32>
    %218 = arith.maximumf %215, %217 : vector<16x16xf32>
    %c9_203 = arith.constant 9 : index
    %c2_204 = arith.constant 2 : index
    %c0_205 = arith.constant 0 : index
    %219 = vector.load %arg6[%c9_203, %c2_204, %c0_205] : memref<18x18x16xf32, #tpu.memory_space<vmem>>, vector<1x16x16xf32>
    %220 = vector.shape_cast %219 : vector<1x16x16xf32> to vector<16x16xf32>
    %221 = arith.maximumf %218, %220 : vector<16x16xf32>
    %c10_206 = arith.constant 10 : index
    %c0_207 = arith.constant 0 : index
    %c0_208 = arith.constant 0 : index
    %222 = vector.load %arg6[%c10_206, %c0_207, %c0_208] : memref<18x18x16xf32, #tpu.memory_space<vmem>>, vector<1x16x16xf32>
    %223 = vector.shape_cast %222 : vector<1x16x16xf32> to vector<16x16xf32>
    %224 = arith.maximumf %221, %223 : vector<16x16xf32>
    %c10_209 = arith.constant 10 : index
    %c1_210 = arith.constant 1 : index
    %c0_211 = arith.constant 0 : index
    %225 = vector.load %arg6[%c10_209, %c1_210, %c0_211] : memref<18x18x16xf32, #tpu.memory_space<vmem>>, vector<1x16x16xf32>
    %226 = vector.shape_cast %225 : vector<1x16x16xf32> to vector<16x16xf32>
    %227 = arith.maximumf %224, %226 : vector<16x16xf32>
    %c10_212 = arith.constant 10 : index
    %c2_213 = arith.constant 2 : index
    %c0_214 = arith.constant 0 : index
    %228 = vector.load %arg6[%c10_212, %c2_213, %c0_214] : memref<18x18x16xf32, #tpu.memory_space<vmem>>, vector<1x16x16xf32>
    %229 = vector.shape_cast %228 : vector<1x16x16xf32> to vector<16x16xf32>
    %230 = arith.maximumf %227, %229 : vector<16x16xf32>
    %cst_215 = arith.constant dense<0.000000e+00> : vector<8x16xf32>
    %231 = tpu.matmul %84, %230, %cst_215 {dimension_numbers = #tpu.dot_dimension_numbers<[1], [0], [0], [1], [0, 0, 1, 1], [], []>, precision = #tpu.contract_precision<fp32>} : vector<8x16xf32>, vector<16x16xf32>, vector<8x16xf32> -> vector<8x16xf32>
    %c0_216 = arith.constant 0 : index
    %c32_217 = arith.constant 32 : index
    %c0_218 = arith.constant 0 : index
    %232 = vector.load %arg4[%c0_216, %c32_217, %c0_218] : memref<1x64x16xf32, #tpu.memory_space<vmem>>, vector<1x8x16xf32>
    %233 = vector.shape_cast %232 : vector<1x8x16xf32> to vector<8x16xf32>
    %234 = vector.shape_cast %231 : vector<8x16xf32> to vector<1x8x16xf32>
    tpu.vector_store %arg4[%c0_216, %c32_217, %c0_218], %234 {strides = array<i32>} : memref<1x64x16xf32, #tpu.memory_space<vmem>>, vector<1x8x16xf32>,
    %c10_219 = arith.constant 10 : index
    %c0_220 = arith.constant 0 : index
    %c0_221 = arith.constant 0 : index
    %235 = vector.load %arg6[%c10_219, %c0_220, %c0_221] : memref<18x18x16xf32, #tpu.memory_space<vmem>>, vector<1x16x16xf32>
    %236 = vector.shape_cast %235 : vector<1x16x16xf32> to vector<16x16xf32>
    %c10_222 = arith.constant 10 : index
    %c1_223 = arith.constant 1 : index
    %c0_224 = arith.constant 0 : index
    %237 = vector.load %arg6[%c10_222, %c1_223, %c0_224] : memref<18x18x16xf32, #tpu.memory_space<vmem>>, vector<1x16x16xf32>
    %238 = vector.shape_cast %237 : vector<1x16x16xf32> to vector<16x16xf32>
    %239 = arith.maximumf %236, %238 : vector<16x16xf32>
    %c10_225 = arith.constant 10 : index
    %c2_226 = arith.constant 2 : index
    %c0_227 = arith.constant 0 : index
    %240 = vector.load %arg6[%c10_225, %c2_226, %c0_227] : memref<18x18x16xf32, #tpu.memory_space<vmem>>, vector<1x16x16xf32>
    %241 = vector.shape_cast %240 : vector<1x16x16xf32> to vector<16x16xf32>
    %242 = arith.maximumf %239, %241 : vector<16x16xf32>
    %c11_228 = arith.constant 11 : index
    %c0_229 = arith.constant 0 : index
    %c0_230 = arith.constant 0 : index
    %243 = vector.load %arg6[%c11_228, %c0_229, %c0_230] : memref<18x18x16xf32, #tpu.memory_space<vmem>>, vector<1x16x16xf32>
    %244 = vector.shape_cast %243 : vector<1x16x16xf32> to vector<16x16xf32>
    %245 = arith.maximumf %242, %244 : vector<16x16xf32>
    %c11_231 = arith.constant 11 : index
    %c1_232 = arith.constant 1 : index
    %c0_233 = arith.constant 0 : index
    %246 = vector.load %arg6[%c11_231, %c1_232, %c0_233] : memref<18x18x16xf32, #tpu.memory_space<vmem>>, vector<1x16x16xf32>
    %247 = vector.shape_cast %246 : vector<1x16x16xf32> to vector<16x16xf32>
    %248 = arith.maximumf %245, %247 : vector<16x16xf32>
    %c11_234 = arith.constant 11 : index
    %c2_235 = arith.constant 2 : index
    %c0_236 = arith.constant 0 : index
    %249 = vector.load %arg6[%c11_234, %c2_235, %c0_236] : memref<18x18x16xf32, #tpu.memory_space<vmem>>, vector<1x16x16xf32>
    %250 = vector.shape_cast %249 : vector<1x16x16xf32> to vector<16x16xf32>
    %251 = arith.maximumf %248, %250 : vector<16x16xf32>
    %c12_237 = arith.constant 12 : index
    %c0_238 = arith.constant 0 : index
    %c0_239 = arith.constant 0 : index
    %252 = vector.load %arg6[%c12_237, %c0_238, %c0_239] : memref<18x18x16xf32, #tpu.memory_space<vmem>>, vector<1x16x16xf32>
    %253 = vector.shape_cast %252 : vector<1x16x16xf32> to vector<16x16xf32>
    %254 = arith.maximumf %251, %253 : vector<16x16xf32>
    %c12_240 = arith.constant 12 : index
    %c1_241 = arith.constant 1 : index
    %c0_242 = arith.constant 0 : index
    %255 = vector.load %arg6[%c12_240, %c1_241, %c0_242] : memref<18x18x16xf32, #tpu.memory_space<vmem>>, vector<1x16x16xf32>
    %256 = vector.shape_cast %255 : vector<1x16x16xf32> to vector<16x16xf32>
    %257 = arith.maximumf %254, %256 : vector<16x16xf32>
    %c12_243 = arith.constant 12 : index
    %c2_244 = arith.constant 2 : index
    %c0_245 = arith.constant 0 : index
    %258 = vector.load %arg6[%c12_243, %c2_244, %c0_245] : memref<18x18x16xf32, #tpu.memory_space<vmem>>, vector<1x16x16xf32>
    %259 = vector.shape_cast %258 : vector<1x16x16xf32> to vector<16x16xf32>
    %260 = arith.maximumf %257, %259 : vector<16x16xf32>
    %cst_246 = arith.constant dense<0.000000e+00> : vector<8x16xf32>
    %261 = tpu.matmul %84, %260, %cst_246 {dimension_numbers = #tpu.dot_dimension_numbers<[1], [0], [0], [1], [0, 0, 1, 1], [], []>, precision = #tpu.contract_precision<fp32>} : vector<8x16xf32>, vector<16x16xf32>, vector<8x16xf32> -> vector<8x16xf32>
    %c0_247 = arith.constant 0 : index
    %c40 = arith.constant 40 : index
    %c0_248 = arith.constant 0 : index
    %262 = vector.load %arg4[%c0_247, %c40, %c0_248] : memref<1x64x16xf32, #tpu.memory_space<vmem>>, vector<1x8x16xf32>
    %263 = vector.shape_cast %262 : vector<1x8x16xf32> to vector<8x16xf32>
    %264 = vector.shape_cast %261 : vector<8x16xf32> to vector<1x8x16xf32>
    tpu.vector_store %arg4[%c0_247, %c40, %c0_248], %264 {strides = array<i32>} : memref<1x64x16xf32, #tpu.memory_space<vmem>>, vector<1x8x16xf32>,
    %c12_249 = arith.constant 12 : index
    %c0_250 = arith.constant 0 : index
    %c0_251 = arith.constant 0 : index
    %265 = vector.load %arg6[%c12_249, %c0_250, %c0_251] : memref<18x18x16xf32, #tpu.memory_space<vmem>>, vector<1x16x16xf32>
    %266 = vector.shape_cast %265 : vector<1x16x16xf32> to vector<16x16xf32>
    %c12_252 = arith.constant 12 : index
    %c1_253 = arith.constant 1 : index
    %c0_254 = arith.constant 0 : index
    %267 = vector.load %arg6[%c12_252, %c1_253, %c0_254] : memref<18x18x16xf32, #tpu.memory_space<vmem>>, vector<1x16x16xf32>
    %268 = vector.shape_cast %267 : vector<1x16x16xf32> to vector<16x16xf32>
    %269 = arith.maximumf %266, %268 : vector<16x16xf32>
    %c12_255 = arith.constant 12 : index
    %c2_256 = arith.constant 2 : index
    %c0_257 = arith.constant 0 : index
    %270 = vector.load %arg6[%c12_255, %c2_256, %c0_257] : memref<18x18x16xf32, #tpu.memory_space<vmem>>, vector<1x16x16xf32>
    %271 = vector.shape_cast %270 : vector<1x16x16xf32> to vector<16x16xf32>
    %272 = arith.maximumf %269, %271 : vector<16x16xf32>
    %c13_258 = arith.constant 13 : index
    %c0_259 = arith.constant 0 : index
    %c0_260 = arith.constant 0 : index
    %273 = vector.load %arg6[%c13_258, %c0_259, %c0_260] : memref<18x18x16xf32, #tpu.memory_space<vmem>>, vector<1x16x16xf32>
    %274 = vector.shape_cast %273 : vector<1x16x16xf32> to vector<16x16xf32>
    %275 = arith.maximumf %272, %274 : vector<16x16xf32>
    %c13_261 = arith.constant 13 : index
    %c1_262 = arith.constant 1 : index
    %c0_263 = arith.constant 0 : index
    %276 = vector.load %arg6[%c13_261, %c1_262, %c0_263] : memref<18x18x16xf32, #tpu.memory_space<vmem>>, vector<1x16x16xf32>
    %277 = vector.shape_cast %276 : vector<1x16x16xf32> to vector<16x16xf32>
    %278 = arith.maximumf %275, %277 : vector<16x16xf32>
    %c13_264 = arith.constant 13 : index
    %c2_265 = arith.constant 2 : index
    %c0_266 = arith.constant 0 : index
    %279 = vector.load %arg6[%c13_264, %c2_265, %c0_266] : memref<18x18x16xf32, #tpu.memory_space<vmem>>, vector<1x16x16xf32>
    %280 = vector.shape_cast %279 : vector<1x16x16xf32> to vector<16x16xf32>
    %281 = arith.maximumf %278, %280 : vector<16x16xf32>
    %c14_267 = arith.constant 14 : index
    %c0_268 = arith.constant 0 : index
    %c0_269 = arith.constant 0 : index
    %282 = vector.load %arg6[%c14_267, %c0_268, %c0_269] : memref<18x18x16xf32, #tpu.memory_space<vmem>>, vector<1x16x16xf32>
    %283 = vector.shape_cast %282 : vector<1x16x16xf32> to vector<16x16xf32>
    %284 = arith.maximumf %281, %283 : vector<16x16xf32>
    %c14_270 = arith.constant 14 : index
    %c1_271 = arith.constant 1 : index
    %c0_272 = arith.constant 0 : index
    %285 = vector.load %arg6[%c14_270, %c1_271, %c0_272] : memref<18x18x16xf32, #tpu.memory_space<vmem>>, vector<1x16x16xf32>
    %286 = vector.shape_cast %285 : vector<1x16x16xf32> to vector<16x16xf32>
    %287 = arith.maximumf %284, %286 : vector<16x16xf32>
    %c14_273 = arith.constant 14 : index
    %c2_274 = arith.constant 2 : index
    %c0_275 = arith.constant 0 : index
    %288 = vector.load %arg6[%c14_273, %c2_274, %c0_275] : memref<18x18x16xf32, #tpu.memory_space<vmem>>, vector<1x16x16xf32>
    %289 = vector.shape_cast %288 : vector<1x16x16xf32> to vector<16x16xf32>
    %290 = arith.maximumf %287, %289 : vector<16x16xf32>
    %cst_276 = arith.constant dense<0.000000e+00> : vector<8x16xf32>
    %291 = tpu.matmul %84, %290, %cst_276 {dimension_numbers = #tpu.dot_dimension_numbers<[1], [0], [0], [1], [0, 0, 1, 1], [], []>, precision = #tpu.contract_precision<fp32>} : vector<8x16xf32>, vector<16x16xf32>, vector<8x16xf32> -> vector<8x16xf32>
    %c0_277 = arith.constant 0 : index
    %c48_278 = arith.constant 48 : index
    %c0_279 = arith.constant 0 : index
    %292 = vector.load %arg4[%c0_277, %c48_278, %c0_279] : memref<1x64x16xf32, #tpu.memory_space<vmem>>, vector<1x8x16xf32>
    %293 = vector.shape_cast %292 : vector<1x8x16xf32> to vector<8x16xf32>
    %294 = vector.shape_cast %291 : vector<8x16xf32> to vector<1x8x16xf32>
    tpu.vector_store %arg4[%c0_277, %c48_278, %c0_279], %294 {strides = array<i32>} : memref<1x64x16xf32, #tpu.memory_space<vmem>>, vector<1x8x16xf32>,
    %c14_280 = arith.constant 14 : index
    %c0_281 = arith.constant 0 : index
    %c0_282 = arith.constant 0 : index
    %295 = vector.load %arg6[%c14_280, %c0_281, %c0_282] : memref<18x18x16xf32, #tpu.memory_space<vmem>>, vector<1x16x16xf32>
    %296 = vector.shape_cast %295 : vector<1x16x16xf32> to vector<16x16xf32>
    %c14_283 = arith.constant 14 : index
    %c1_284 = arith.constant 1 : index
    %c0_285 = arith.constant 0 : index
    %297 = vector.load %arg6[%c14_283, %c1_284, %c0_285] : memref<18x18x16xf32, #tpu.memory_space<vmem>>, vector<1x16x16xf32>
    %298 = vector.shape_cast %297 : vector<1x16x16xf32> to vector<16x16xf32>
    %299 = arith.maximumf %296, %298 : vector<16x16xf32>
    %c14_286 = arith.constant 14 : index
    %c2_287 = arith.constant 2 : index
    %c0_288 = arith.constant 0 : index
    %300 = vector.load %arg6[%c14_286, %c2_287, %c0_288] : memref<18x18x16xf32, #tpu.memory_space<vmem>>, vector<1x16x16xf32>
    %301 = vector.shape_cast %300 : vector<1x16x16xf32> to vector<16x16xf32>
    %302 = arith.maximumf %299, %301 : vector<16x16xf32>
    %c15_289 = arith.constant 15 : index
    %c0_290 = arith.constant 0 : index
    %c0_291 = arith.constant 0 : index
    %303 = vector.load %arg6[%c15_289, %c0_290, %c0_291] : memref<18x18x16xf32, #tpu.memory_space<vmem>>, vector<1x16x16xf32>
    %304 = vector.shape_cast %303 : vector<1x16x16xf32> to vector<16x16xf32>
    %305 = arith.maximumf %302, %304 : vector<16x16xf32>
    %c15_292 = arith.constant 15 : index
    %c1_293 = arith.constant 1 : index
    %c0_294 = arith.constant 0 : index
    %306 = vector.load %arg6[%c15_292, %c1_293, %c0_294] : memref<18x18x16xf32, #tpu.memory_space<vmem>>, vector<1x16x16xf32>
    %307 = vector.shape_cast %306 : vector<1x16x16xf32> to vector<16x16xf32>
    %308 = arith.maximumf %305, %307 : vector<16x16xf32>
    %c15_295 = arith.constant 15 : index
    %c2_296 = arith.constant 2 : index
    %c0_297 = arith.constant 0 : index
    %309 = vector.load %arg6[%c15_295, %c2_296, %c0_297] : memref<18x18x16xf32, #tpu.memory_space<vmem>>, vector<1x16x16xf32>
    %310 = vector.shape_cast %309 : vector<1x16x16xf32> to vector<16x16xf32>
    %311 = arith.maximumf %308, %310 : vector<16x16xf32>
    %c16_298 = arith.constant 16 : index
    %c0_299 = arith.constant 0 : index
    %c0_300 = arith.constant 0 : index
    %312 = vector.load %arg6[%c16_298, %c0_299, %c0_300] : memref<18x18x16xf32, #tpu.memory_space<vmem>>, vector<1x16x16xf32>
    %313 = vector.shape_cast %312 : vector<1x16x16xf32> to vector<16x16xf32>
    %314 = arith.maximumf %311, %313 : vector<16x16xf32>
    %c16_301 = arith.constant 16 : index
    %c1_302 = arith.constant 1 : index
    %c0_303 = arith.constant 0 : index
    %315 = vector.load %arg6[%c16_301, %c1_302, %c0_303] : memref<18x18x16xf32, #tpu.memory_space<vmem>>, vector<1x16x16xf32>
    %316 = vector.shape_cast %315 : vector<1x16x16xf32> to vector<16x16xf32>
    %317 = arith.maximumf %314, %316 : vector<16x16xf32>
    %c16_304 = arith.constant 16 : index
    %c2_305 = arith.constant 2 : index
    %c0_306 = arith.constant 0 : index
    %318 = vector.load %arg6[%c16_304, %c2_305, %c0_306] : memref<18x18x16xf32, #tpu.memory_space<vmem>>, vector<1x16x16xf32>
    %319 = vector.shape_cast %318 : vector<1x16x16xf32> to vector<16x16xf32>
    %320 = arith.maximumf %317, %319 : vector<16x16xf32>
    %cst_307 = arith.constant dense<0.000000e+00> : vector<8x16xf32>
    %321 = tpu.matmul %84, %320, %cst_307 {dimension_numbers = #tpu.dot_dimension_numbers<[1], [0], [0], [1], [0, 0, 1, 1], [], []>, precision = #tpu.contract_precision<fp32>} : vector<8x16xf32>, vector<16x16xf32>, vector<8x16xf32> -> vector<8x16xf32>
    %c0_308 = arith.constant 0 : index
    %c56 = arith.constant 56 : index
    %c0_309 = arith.constant 0 : index
    %322 = vector.load %arg4[%c0_308, %c56, %c0_309] : memref<1x64x16xf32, #tpu.memory_space<vmem>>, vector<1x8x16xf32>
    %323 = vector.shape_cast %322 : vector<1x8x16xf32> to vector<8x16xf32>
    %324 = vector.shape_cast %321 : vector<8x16xf32> to vector<1x8x16xf32>
    tpu.vector_store %arg4[%c0_308, %c56, %c0_309], %324 {strides = array<i32>} : memref<1x64x16xf32, #tpu.memory_space<vmem>>, vector<1x8x16xf32>,
    return
  }
  func.func @transform_0(%arg0: i32) -> (i32, i32, i32) {
    %c0_i32 = arith.constant 0 : i32
    %c0_i32_0 = arith.constant 0 : i32
    %c0_i32_1 = arith.constant 0 : i32
    return %arg0, %c0_i32, %c0_i32_0 : i32, i32, i32
  }
  func.func @transform_1(%arg0: i32) -> (i32, i32) {
    %c0_i32 = arith.constant 0 : i32
    %c0_i32_0 = arith.constant 0 : i32
    %c0_i32_1 = arith.constant 0 : i32
    return %c0_i32, %c0_i32_0 : i32, i32
  }
  func.func @transform_2(%arg0: i32) -> (i32, i32) {
    %c0_i32 = arith.constant 0 : i32
    %c0_i32_0 = arith.constant 0 : i32
    %c0_i32_1 = arith.constant 0 : i32
    return %c0_i32, %c0_i32_0 : i32, i32
  }
  func.func @transform_3(%arg0: i32) -> (i32, i32, i32) {
    %c0_i32 = arith.constant 0 : i32
    %c0_i32_0 = arith.constant 0 : i32
    %c0_i32_1 = arith.constant 0 : i32
    return %arg0, %c0_i32, %c0_i32_0 : i32, i32, i32
  }
}

module attributes {stable_mosaic.version = 11 : i64} {
  func.func @_block_s1_kernel(%arg0: i32, %arg1: memref<1x16x32xf32, #tpu.memory_space<vmem>>, %arg2: memref<32x16xbf16, #tpu.memory_space<vmem>>, %arg3: memref<1x16xf32, #tpu.memory_space<vmem>>, %arg4: memref<9x16xf32, #tpu.memory_space<vmem>>, %arg5: memref<1x16xf32, #tpu.memory_space<vmem>>, %arg6: memref<16x32xbf16, #tpu.memory_space<vmem>>, %arg7: memref<1x32xf32, #tpu.memory_space<vmem>>, %arg8: memref<1x16x32xf32, #tpu.memory_space<vmem>>, %arg9: memref<16x16xf32, #tpu.memory_space<vmem>>, %arg10: memref<6x6x16xf32, #tpu.memory_space<vmem>>, %arg11: memref<16x16xf32, #tpu.memory_space<vmem>>) attributes {dimension_semantics = [#tpu.dimension_semantics<parallel>], iteration_bounds = array<i64: 2>, scalar_prefetch = 0 : i64, scratch_operands = 3 : i64, tpu.core_type = #tpu.core_type<tc>, window_params = [{transform_indices = @transform_0, window_bounds = array<i64: 1, 16, 32>}, {pipeline_mode = #tpu.pipeline_mode<synchronous>, transform_indices = @transform_1, window_bounds = array<i64: 32, 16>}, {pipeline_mode = #tpu.pipeline_mode<synchronous>, transform_indices = @transform_2, window_bounds = array<i64: 1, 16>}, {pipeline_mode = #tpu.pipeline_mode<synchronous>, transform_indices = @transform_3, window_bounds = array<i64: 9, 16>}, {pipeline_mode = #tpu.pipeline_mode<synchronous>, transform_indices = @transform_4, window_bounds = array<i64: 1, 16>}, {pipeline_mode = #tpu.pipeline_mode<synchronous>, transform_indices = @transform_5, window_bounds = array<i64: 16, 32>}, {pipeline_mode = #tpu.pipeline_mode<synchronous>, transform_indices = @transform_6, window_bounds = array<i64: 1, 32>}, {transform_indices = @transform_7, window_bounds = array<i64: 1, 16, 32>}]} {
    %c0 = arith.constant 0 : index
    %c0_0 = arith.constant 0 : index
    %c0_1 = arith.constant 0 : index
    %0 = vector.load %arg1[%c0, %c0_0, %c0_1] : memref<1x16x32xf32, #tpu.memory_space<vmem>>, vector<1x16x32xf32>
    %1 = vector.shape_cast %0 : vector<1x16x32xf32> to vector<16x32xf32>
    %2 = arith.truncf %1 : vector<16x32xf32> to vector<16x32xbf16>
    %c0_2 = arith.constant 0 : index
    %c0_3 = arith.constant 0 : index
    %3 = vector.load %arg2[%c0_2, %c0_3] : memref<32x16xbf16, #tpu.memory_space<vmem>>, vector<32x16xbf16>
    %cst = arith.constant dense<0.000000e+00> : vector<16x16xf32>
    %4 = tpu.matmul %2, %3, %cst {dimension_numbers = #tpu.dot_dimension_numbers<[1], [0], [0], [1], [0, 0, 1, 1], [], []>} : vector<16x32xbf16>, vector<32x16xbf16>, vector<16x16xf32> -> vector<16x16xf32>
    %c0_4 = arith.constant 0 : index
    %c0_5 = arith.constant 0 : index
    %5 = vector.load %arg3[%c0_4, %c0_5] : memref<1x16xf32, #tpu.memory_space<vmem>>, vector<1x16xf32>
    %6 = vector.broadcast %5 : vector<1x16xf32> to vector<16x16xf32>
    %7 = arith.addf %4, %6 : vector<16x16xf32>
    %cst_6 = arith.constant 0.000000e+00 : f32
    %8 = vector.broadcast %cst_6 : f32 to vector<16x16xf32>
    %9 = arith.maximumf %7, %8 : vector<16x16xf32>
    %c0_7 = arith.constant 0 : index
    %c0_8 = arith.constant 0 : index
    %10 = vector.load %arg9[%c0_7, %c0_8] : memref<16x16xf32, #tpu.memory_space<vmem>>, vector<16x16xf32>
    tpu.vector_store %arg9[%c0_7, %c0_8], %9 {strides = array<i32>} : memref<16x16xf32, #tpu.memory_space<vmem>>, vector<16x16xf32>,
    %cst_9 = arith.constant 0.000000e+00 : f32
    %11 = vector.broadcast %cst_9 : f32 to vector<6x6x16xf32>
    %c0_10 = arith.constant 0 : index
    %c0_11 = arith.constant 0 : index
    %c0_12 = arith.constant 0 : index
    %12 = vector.load %arg10[%c0_10, %c0_11, %c0_12] : memref<6x6x16xf32, #tpu.memory_space<vmem>>, vector<6x6x16xf32>
    tpu.vector_store %arg10[%c0_10, %c0_11, %c0_12], %11 {strides = array<i32>} : memref<6x6x16xf32, #tpu.memory_space<vmem>>, vector<6x6x16xf32>,
    %c0_13 = arith.constant 0 : index
    %c0_14 = arith.constant 0 : index
    %13 = vector.load %arg9[%c0_13, %c0_14] : memref<16x16xf32, #tpu.memory_space<vmem>>, vector<4x16xf32>
    %c1 = arith.constant 1 : index
    %c1_15 = arith.constant 1 : index
    %c0_16 = arith.constant 0 : index
    %14 = vector.load %arg10[%c1, %c1_15, %c0_16] : memref<6x6x16xf32, #tpu.memory_space<vmem>>, vector<1x4x16xf32>
    %15 = vector.shape_cast %14 : vector<1x4x16xf32> to vector<4x16xf32>
    %16 = vector.shape_cast %13 : vector<4x16xf32> to vector<1x4x16xf32>
    tpu.vector_store %arg10[%c1, %c1_15, %c0_16], %16 {strides = array<i32>} : memref<6x6x16xf32, #tpu.memory_space<vmem>>, vector<1x4x16xf32>,
    %c4 = arith.constant 4 : index
    %c0_17 = arith.constant 0 : index
    %17 = vector.load %arg9[%c4, %c0_17] : memref<16x16xf32, #tpu.memory_space<vmem>>, vector<4x16xf32>
    %c2 = arith.constant 2 : index
    %c1_18 = arith.constant 1 : index
    %c0_19 = arith.constant 0 : index
    %18 = vector.load %arg10[%c2, %c1_18, %c0_19] : memref<6x6x16xf32, #tpu.memory_space<vmem>>, vector<1x4x16xf32>
    %19 = vector.shape_cast %18 : vector<1x4x16xf32> to vector<4x16xf32>
    %20 = vector.shape_cast %17 : vector<4x16xf32> to vector<1x4x16xf32>
    tpu.vector_store %arg10[%c2, %c1_18, %c0_19], %20 {strides = array<i32>} : memref<6x6x16xf32, #tpu.memory_space<vmem>>, vector<1x4x16xf32>,
    %c8 = arith.constant 8 : index
    %c0_20 = arith.constant 0 : index
    %21 = vector.load %arg9[%c8, %c0_20] : memref<16x16xf32, #tpu.memory_space<vmem>>, vector<4x16xf32>
    %c3 = arith.constant 3 : index
    %c1_21 = arith.constant 1 : index
    %c0_22 = arith.constant 0 : index
    %22 = vector.load %arg10[%c3, %c1_21, %c0_22] : memref<6x6x16xf32, #tpu.memory_space<vmem>>, vector<1x4x16xf32>
    %23 = vector.shape_cast %22 : vector<1x4x16xf32> to vector<4x16xf32>
    %24 = vector.shape_cast %21 : vector<4x16xf32> to vector<1x4x16xf32>
    tpu.vector_store %arg10[%c3, %c1_21, %c0_22], %24 {strides = array<i32>} : memref<6x6x16xf32, #tpu.memory_space<vmem>>, vector<1x4x16xf32>,
    %c12 = arith.constant 12 : index
    %c0_23 = arith.constant 0 : index
    %25 = vector.load %arg9[%c12, %c0_23] : memref<16x16xf32, #tpu.memory_space<vmem>>, vector<4x16xf32>
    %c4_24 = arith.constant 4 : index
    %c1_25 = arith.constant 1 : index
    %c0_26 = arith.constant 0 : index
    %26 = vector.load %arg10[%c4_24, %c1_25, %c0_26] : memref<6x6x16xf32, #tpu.memory_space<vmem>>, vector<1x4x16xf32>
    %27 = vector.shape_cast %26 : vector<1x4x16xf32> to vector<4x16xf32>
    %28 = vector.shape_cast %25 : vector<4x16xf32> to vector<1x4x16xf32>
    tpu.vector_store %arg10[%c4_24, %c1_25, %c0_26], %28 {strides = array<i32>} : memref<6x6x16xf32, #tpu.memory_space<vmem>>, vector<1x4x16xf32>,
    %c0_27 = arith.constant 0 : index
    %c0_28 = arith.constant 0 : index
    %c0_29 = arith.constant 0 : index
    %29 = vector.load %arg10[%c0_27, %c0_28, %c0_29] : memref<6x6x16xf32, #tpu.memory_space<vmem>>, vector<1x4x16xf32>
    %30 = vector.shape_cast %29 : vector<1x4x16xf32> to vector<4x16xf32>
    %c0_30 = arith.constant 0 : index
    %c0_31 = arith.constant 0 : index
    %31 = vector.load %arg4[%c0_30, %c0_31] : memref<9x16xf32, #tpu.memory_space<vmem>>, vector<1x16xf32>
    %32 = vector.broadcast %31 : vector<1x16xf32> to vector<4x16xf32>
    %33 = arith.mulf %30, %32 : vector<4x16xf32>
    %c0_32 = arith.constant 0 : index
    %c1_33 = arith.constant 1 : index
    %c0_34 = arith.constant 0 : index
    %34 = vector.load %arg10[%c0_32, %c1_33, %c0_34] : memref<6x6x16xf32, #tpu.memory_space<vmem>>, vector<1x4x16xf32>
    %35 = vector.shape_cast %34 : vector<1x4x16xf32> to vector<4x16xf32>
    %c1_35 = arith.constant 1 : index
    %c0_36 = arith.constant 0 : index
    %36 = vector.load %arg4[%c1_35, %c0_36] : memref<9x16xf32, #tpu.memory_space<vmem>>, vector<1x16xf32>
    %37 = vector.broadcast %36 : vector<1x16xf32> to vector<4x16xf32>
    %38 = arith.mulf %35, %37 : vector<4x16xf32>
    %39 = arith.addf %33, %38 : vector<4x16xf32>
    %c0_37 = arith.constant 0 : index
    %c2_38 = arith.constant 2 : index
    %c0_39 = arith.constant 0 : index
    %40 = vector.load %arg10[%c0_37, %c2_38, %c0_39] : memref<6x6x16xf32, #tpu.memory_space<vmem>>, vector<1x4x16xf32>
    %41 = vector.shape_cast %40 : vector<1x4x16xf32> to vector<4x16xf32>
    %c2_40 = arith.constant 2 : index
    %c0_41 = arith.constant 0 : index
    %42 = vector.load %arg4[%c2_40, %c0_41] : memref<9x16xf32, #tpu.memory_space<vmem>>, vector<1x16xf32>
    %43 = vector.broadcast %42 : vector<1x16xf32> to vector<4x16xf32>
    %44 = arith.mulf %41, %43 : vector<4x16xf32>
    %45 = arith.addf %39, %44 : vector<4x16xf32>
    %c1_42 = arith.constant 1 : index
    %c0_43 = arith.constant 0 : index
    %c0_44 = arith.constant 0 : index
    %46 = vector.load %arg10[%c1_42, %c0_43, %c0_44] : memref<6x6x16xf32, #tpu.memory_space<vmem>>, vector<1x4x16xf32>
    %47 = vector.shape_cast %46 : vector<1x4x16xf32> to vector<4x16xf32>
    %c3_45 = arith.constant 3 : index
    %c0_46 = arith.constant 0 : index
    %48 = vector.load %arg4[%c3_45, %c0_46] : memref<9x16xf32, #tpu.memory_space<vmem>>, vector<1x16xf32>
    %49 = vector.broadcast %48 : vector<1x16xf32> to vector<4x16xf32>
    %50 = arith.mulf %47, %49 : vector<4x16xf32>
    %51 = arith.addf %45, %50 : vector<4x16xf32>
    %c1_47 = arith.constant 1 : index
    %c1_48 = arith.constant 1 : index
    %c0_49 = arith.constant 0 : index
    %52 = vector.load %arg10[%c1_47, %c1_48, %c0_49] : memref<6x6x16xf32, #tpu.memory_space<vmem>>, vector<1x4x16xf32>
    %53 = vector.shape_cast %52 : vector<1x4x16xf32> to vector<4x16xf32>
    %c4_50 = arith.constant 4 : index
    %c0_51 = arith.constant 0 : index
    %54 = vector.load %arg4[%c4_50, %c0_51] : memref<9x16xf32, #tpu.memory_space<vmem>>, vector<1x16xf32>
    %55 = vector.broadcast %54 : vector<1x16xf32> to vector<4x16xf32>
    %56 = arith.mulf %53, %55 : vector<4x16xf32>
    %57 = arith.addf %51, %56 : vector<4x16xf32>
    %c1_52 = arith.constant 1 : index
    %c2_53 = arith.constant 2 : index
    %c0_54 = arith.constant 0 : index
    %58 = vector.load %arg10[%c1_52, %c2_53, %c0_54] : memref<6x6x16xf32, #tpu.memory_space<vmem>>, vector<1x4x16xf32>
    %59 = vector.shape_cast %58 : vector<1x4x16xf32> to vector<4x16xf32>
    %c5 = arith.constant 5 : index
    %c0_55 = arith.constant 0 : index
    %60 = vector.load %arg4[%c5, %c0_55] : memref<9x16xf32, #tpu.memory_space<vmem>>, vector<1x16xf32>
    %61 = vector.broadcast %60 : vector<1x16xf32> to vector<4x16xf32>
    %62 = arith.mulf %59, %61 : vector<4x16xf32>
    %63 = arith.addf %57, %62 : vector<4x16xf32>
    %c2_56 = arith.constant 2 : index
    %c0_57 = arith.constant 0 : index
    %c0_58 = arith.constant 0 : index
    %64 = vector.load %arg10[%c2_56, %c0_57, %c0_58] : memref<6x6x16xf32, #tpu.memory_space<vmem>>, vector<1x4x16xf32>
    %65 = vector.shape_cast %64 : vector<1x4x16xf32> to vector<4x16xf32>
    %c6 = arith.constant 6 : index
    %c0_59 = arith.constant 0 : index
    %66 = vector.load %arg4[%c6, %c0_59] : memref<9x16xf32, #tpu.memory_space<vmem>>, vector<1x16xf32>
    %67 = vector.broadcast %66 : vector<1x16xf32> to vector<4x16xf32>
    %68 = arith.mulf %65, %67 : vector<4x16xf32>
    %69 = arith.addf %63, %68 : vector<4x16xf32>
    %c2_60 = arith.constant 2 : index
    %c1_61 = arith.constant 1 : index
    %c0_62 = arith.constant 0 : index
    %70 = vector.load %arg10[%c2_60, %c1_61, %c0_62] : memref<6x6x16xf32, #tpu.memory_space<vmem>>, vector<1x4x16xf32>
    %71 = vector.shape_cast %70 : vector<1x4x16xf32> to vector<4x16xf32>
    %c7 = arith.constant 7 : index
    %c0_63 = arith.constant 0 : index
    %72 = vector.load %arg4[%c7, %c0_63] : memref<9x16xf32, #tpu.memory_space<vmem>>, vector<1x16xf32>
    %73 = vector.broadcast %72 : vector<1x16xf32> to vector<4x16xf32>
    %74 = arith.mulf %71, %73 : vector<4x16xf32>
    %75 = arith.addf %69, %74 : vector<4x16xf32>
    %c2_64 = arith.constant 2 : index
    %c2_65 = arith.constant 2 : index
    %c0_66 = arith.constant 0 : index
    %76 = vector.load %arg10[%c2_64, %c2_65, %c0_66] : memref<6x6x16xf32, #tpu.memory_space<vmem>>, vector<1x4x16xf32>
    %77 = vector.shape_cast %76 : vector<1x4x16xf32> to vector<4x16xf32>
    %c8_67 = arith.constant 8 : index
    %c0_68 = arith.constant 0 : index
    %78 = vector.load %arg4[%c8_67, %c0_68] : memref<9x16xf32, #tpu.memory_space<vmem>>, vector<1x16xf32>
    %79 = vector.broadcast %78 : vector<1x16xf32> to vector<4x16xf32>
    %80 = arith.mulf %77, %79 : vector<4x16xf32>
    %81 = arith.addf %75, %80 : vector<4x16xf32>
    %c0_69 = arith.constant 0 : index
    %c0_70 = arith.constant 0 : index
    %82 = vector.load %arg11[%c0_69, %c0_70] : memref<16x16xf32, #tpu.memory_space<vmem>>, vector<4x16xf32>
    tpu.vector_store %arg11[%c0_69, %c0_70], %81 {strides = array<i32>} : memref<16x16xf32, #tpu.memory_space<vmem>>, vector<4x16xf32>,
    %c1_71 = arith.constant 1 : index
    %c0_72 = arith.constant 0 : index
    %c0_73 = arith.constant 0 : index
    %83 = vector.load %arg10[%c1_71, %c0_72, %c0_73] : memref<6x6x16xf32, #tpu.memory_space<vmem>>, vector<1x4x16xf32>
    %84 = vector.shape_cast %83 : vector<1x4x16xf32> to vector<4x16xf32>
    %c0_74 = arith.constant 0 : index
    %c0_75 = arith.constant 0 : index
    %85 = vector.load %arg4[%c0_74, %c0_75] : memref<9x16xf32, #tpu.memory_space<vmem>>, vector<1x16xf32>
    %86 = vector.broadcast %85 : vector<1x16xf32> to vector<4x16xf32>
    %87 = arith.mulf %84, %86 : vector<4x16xf32>
    %c1_76 = arith.constant 1 : index
    %c1_77 = arith.constant 1 : index
    %c0_78 = arith.constant 0 : index
    %88 = vector.load %arg10[%c1_76, %c1_77, %c0_78] : memref<6x6x16xf32, #tpu.memory_space<vmem>>, vector<1x4x16xf32>
    %89 = vector.shape_cast %88 : vector<1x4x16xf32> to vector<4x16xf32>
    %c1_79 = arith.constant 1 : index
    %c0_80 = arith.constant 0 : index
    %90 = vector.load %arg4[%c1_79, %c0_80] : memref<9x16xf32, #tpu.memory_space<vmem>>, vector<1x16xf32>
    %91 = vector.broadcast %90 : vector<1x16xf32> to vector<4x16xf32>
    %92 = arith.mulf %89, %91 : vector<4x16xf32>
    %93 = arith.addf %87, %92 : vector<4x16xf32>
    %c1_81 = arith.constant 1 : index
    %c2_82 = arith.constant 2 : index
    %c0_83 = arith.constant 0 : index
    %94 = vector.load %arg10[%c1_81, %c2_82, %c0_83] : memref<6x6x16xf32, #tpu.memory_space<vmem>>, vector<1x4x16xf32>
    %95 = vector.shape_cast %94 : vector<1x4x16xf32> to vector<4x16xf32>
    %c2_84 = arith.constant 2 : index
    %c0_85 = arith.constant 0 : index
    %96 = vector.load %arg4[%c2_84, %c0_85] : memref<9x16xf32, #tpu.memory_space<vmem>>, vector<1x16xf32>
    %97 = vector.broadcast %96 : vector<1x16xf32> to vector<4x16xf32>
    %98 = arith.mulf %95, %97 : vector<4x16xf32>
    %99 = arith.addf %93, %98 : vector<4x16xf32>
    %c2_86 = arith.constant 2 : index
    %c0_87 = arith.constant 0 : index
    %c0_88 = arith.constant 0 : index
    %100 = vector.load %arg10[%c2_86, %c0_87, %c0_88] : memref<6x6x16xf32, #tpu.memory_space<vmem>>, vector<1x4x16xf32>
    %101 = vector.shape_cast %100 : vector<1x4x16xf32> to vector<4x16xf32>
    %c3_89 = arith.constant 3 : index
    %c0_90 = arith.constant 0 : index
    %102 = vector.load %arg4[%c3_89, %c0_90] : memref<9x16xf32, #tpu.memory_space<vmem>>, vector<1x16xf32>
    %103 = vector.broadcast %102 : vector<1x16xf32> to vector<4x16xf32>
    %104 = arith.mulf %101, %103 : vector<4x16xf32>
    %105 = arith.addf %99, %104 : vector<4x16xf32>
    %c2_91 = arith.constant 2 : index
    %c1_92 = arith.constant 1 : index
    %c0_93 = arith.constant 0 : index
    %106 = vector.load %arg10[%c2_91, %c1_92, %c0_93] : memref<6x6x16xf32, #tpu.memory_space<vmem>>, vector<1x4x16xf32>
    %107 = vector.shape_cast %106 : vector<1x4x16xf32> to vector<4x16xf32>
    %c4_94 = arith.constant 4 : index
    %c0_95 = arith.constant 0 : index
    %108 = vector.load %arg4[%c4_94, %c0_95] : memref<9x16xf32, #tpu.memory_space<vmem>>, vector<1x16xf32>
    %109 = vector.broadcast %108 : vector<1x16xf32> to vector<4x16xf32>
    %110 = arith.mulf %107, %109 : vector<4x16xf32>
    %111 = arith.addf %105, %110 : vector<4x16xf32>
    %c2_96 = arith.constant 2 : index
    %c2_97 = arith.constant 2 : index
    %c0_98 = arith.constant 0 : index
    %112 = vector.load %arg10[%c2_96, %c2_97, %c0_98] : memref<6x6x16xf32, #tpu.memory_space<vmem>>, vector<1x4x16xf32>
    %113 = vector.shape_cast %112 : vector<1x4x16xf32> to vector<4x16xf32>
    %c5_99 = arith.constant 5 : index
    %c0_100 = arith.constant 0 : index
    %114 = vector.load %arg4[%c5_99, %c0_100] : memref<9x16xf32, #tpu.memory_space<vmem>>, vector<1x16xf32>
    %115 = vector.broadcast %114 : vector<1x16xf32> to vector<4x16xf32>
    %116 = arith.mulf %113, %115 : vector<4x16xf32>
    %117 = arith.addf %111, %116 : vector<4x16xf32>
    %c3_101 = arith.constant 3 : index
    %c0_102 = arith.constant 0 : index
    %c0_103 = arith.constant 0 : index
    %118 = vector.load %arg10[%c3_101, %c0_102, %c0_103] : memref<6x6x16xf32, #tpu.memory_space<vmem>>, vector<1x4x16xf32>
    %119 = vector.shape_cast %118 : vector<1x4x16xf32> to vector<4x16xf32>
    %c6_104 = arith.constant 6 : index
    %c0_105 = arith.constant 0 : index
    %120 = vector.load %arg4[%c6_104, %c0_105] : memref<9x16xf32, #tpu.memory_space<vmem>>, vector<1x16xf32>
    %121 = vector.broadcast %120 : vector<1x16xf32> to vector<4x16xf32>
    %122 = arith.mulf %119, %121 : vector<4x16xf32>
    %123 = arith.addf %117, %122 : vector<4x16xf32>
    %c3_106 = arith.constant 3 : index
    %c1_107 = arith.constant 1 : index
    %c0_108 = arith.constant 0 : index
    %124 = vector.load %arg10[%c3_106, %c1_107, %c0_108] : memref<6x6x16xf32, #tpu.memory_space<vmem>>, vector<1x4x16xf32>
    %125 = vector.shape_cast %124 : vector<1x4x16xf32> to vector<4x16xf32>
    %c7_109 = arith.constant 7 : index
    %c0_110 = arith.constant 0 : index
    %126 = vector.load %arg4[%c7_109, %c0_110] : memref<9x16xf32, #tpu.memory_space<vmem>>, vector<1x16xf32>
    %127 = vector.broadcast %126 : vector<1x16xf32> to vector<4x16xf32>
    %128 = arith.mulf %125, %127 : vector<4x16xf32>
    %129 = arith.addf %123, %128 : vector<4x16xf32>
    %c3_111 = arith.constant 3 : index
    %c2_112 = arith.constant 2 : index
    %c0_113 = arith.constant 0 : index
    %130 = vector.load %arg10[%c3_111, %c2_112, %c0_113] : memref<6x6x16xf32, #tpu.memory_space<vmem>>, vector<1x4x16xf32>
    %131 = vector.shape_cast %130 : vector<1x4x16xf32> to vector<4x16xf32>
    %c8_114 = arith.constant 8 : index
    %c0_115 = arith.constant 0 : index
    %132 = vector.load %arg4[%c8_114, %c0_115] : memref<9x16xf32, #tpu.memory_space<vmem>>, vector<1x16xf32>
    %133 = vector.broadcast %132 : vector<1x16xf32> to vector<4x16xf32>
    %134 = arith.mulf %131, %133 : vector<4x16xf32>
    %135 = arith.addf %129, %134 : vector<4x16xf32>
    %c4_116 = arith.constant 4 : index
    %c0_117 = arith.constant 0 : index
    %136 = vector.load %arg11[%c4_116, %c0_117] : memref<16x16xf32, #tpu.memory_space<vmem>>, vector<4x16xf32>
    tpu.vector_store %arg11[%c4_116, %c0_117], %135 {strides = array<i32>} : memref<16x16xf32, #tpu.memory_space<vmem>>, vector<4x16xf32>,
    %c2_118 = arith.constant 2 : index
    %c0_119 = arith.constant 0 : index
    %c0_120 = arith.constant 0 : index
    %137 = vector.load %arg10[%c2_118, %c0_119, %c0_120] : memref<6x6x16xf32, #tpu.memory_space<vmem>>, vector<1x4x16xf32>
    %138 = vector.shape_cast %137 : vector<1x4x16xf32> to vector<4x16xf32>
    %c0_121 = arith.constant 0 : index
    %c0_122 = arith.constant 0 : index
    %139 = vector.load %arg4[%c0_121, %c0_122] : memref<9x16xf32, #tpu.memory_space<vmem>>, vector<1x16xf32>
    %140 = vector.broadcast %139 : vector<1x16xf32> to vector<4x16xf32>
    %141 = arith.mulf %138, %140 : vector<4x16xf32>
    %c2_123 = arith.constant 2 : index
    %c1_124 = arith.constant 1 : index
    %c0_125 = arith.constant 0 : index
    %142 = vector.load %arg10[%c2_123, %c1_124, %c0_125] : memref<6x6x16xf32, #tpu.memory_space<vmem>>, vector<1x4x16xf32>
    %143 = vector.shape_cast %142 : vector<1x4x16xf32> to vector<4x16xf32>
    %c1_126 = arith.constant 1 : index
    %c0_127 = arith.constant 0 : index
    %144 = vector.load %arg4[%c1_126, %c0_127] : memref<9x16xf32, #tpu.memory_space<vmem>>, vector<1x16xf32>
    %145 = vector.broadcast %144 : vector<1x16xf32> to vector<4x16xf32>
    %146 = arith.mulf %143, %145 : vector<4x16xf32>
    %147 = arith.addf %141, %146 : vector<4x16xf32>
    %c2_128 = arith.constant 2 : index
    %c2_129 = arith.constant 2 : index
    %c0_130 = arith.constant 0 : index
    %148 = vector.load %arg10[%c2_128, %c2_129, %c0_130] : memref<6x6x16xf32, #tpu.memory_space<vmem>>, vector<1x4x16xf32>
    %149 = vector.shape_cast %148 : vector<1x4x16xf32> to vector<4x16xf32>
    %c2_131 = arith.constant 2 : index
    %c0_132 = arith.constant 0 : index
    %150 = vector.load %arg4[%c2_131, %c0_132] : memref<9x16xf32, #tpu.memory_space<vmem>>, vector<1x16xf32>
    %151 = vector.broadcast %150 : vector<1x16xf32> to vector<4x16xf32>
    %152 = arith.mulf %149, %151 : vector<4x16xf32>
    %153 = arith.addf %147, %152 : vector<4x16xf32>
    %c3_133 = arith.constant 3 : index
    %c0_134 = arith.constant 0 : index
    %c0_135 = arith.constant 0 : index
    %154 = vector.load %arg10[%c3_133, %c0_134, %c0_135] : memref<6x6x16xf32, #tpu.memory_space<vmem>>, vector<1x4x16xf32>
    %155 = vector.shape_cast %154 : vector<1x4x16xf32> to vector<4x16xf32>
    %c3_136 = arith.constant 3 : index
    %c0_137 = arith.constant 0 : index
    %156 = vector.load %arg4[%c3_136, %c0_137] : memref<9x16xf32, #tpu.memory_space<vmem>>, vector<1x16xf32>
    %157 = vector.broadcast %156 : vector<1x16xf32> to vector<4x16xf32>
    %158 = arith.mulf %155, %157 : vector<4x16xf32>
    %159 = arith.addf %153, %158 : vector<4x16xf32>
    %c3_138 = arith.constant 3 : index
    %c1_139 = arith.constant 1 : index
    %c0_140 = arith.constant 0 : index
    %160 = vector.load %arg10[%c3_138, %c1_139, %c0_140] : memref<6x6x16xf32, #tpu.memory_space<vmem>>, vector<1x4x16xf32>
    %161 = vector.shape_cast %160 : vector<1x4x16xf32> to vector<4x16xf32>
    %c4_141 = arith.constant 4 : index
    %c0_142 = arith.constant 0 : index
    %162 = vector.load %arg4[%c4_141, %c0_142] : memref<9x16xf32, #tpu.memory_space<vmem>>, vector<1x16xf32>
    %163 = vector.broadcast %162 : vector<1x16xf32> to vector<4x16xf32>
    %164 = arith.mulf %161, %163 : vector<4x16xf32>
    %165 = arith.addf %159, %164 : vector<4x16xf32>
    %c3_143 = arith.constant 3 : index
    %c2_144 = arith.constant 2 : index
    %c0_145 = arith.constant 0 : index
    %166 = vector.load %arg10[%c3_143, %c2_144, %c0_145] : memref<6x6x16xf32, #tpu.memory_space<vmem>>, vector<1x4x16xf32>
    %167 = vector.shape_cast %166 : vector<1x4x16xf32> to vector<4x16xf32>
    %c5_146 = arith.constant 5 : index
    %c0_147 = arith.constant 0 : index
    %168 = vector.load %arg4[%c5_146, %c0_147] : memref<9x16xf32, #tpu.memory_space<vmem>>, vector<1x16xf32>
    %169 = vector.broadcast %168 : vector<1x16xf32> to vector<4x16xf32>
    %170 = arith.mulf %167, %169 : vector<4x16xf32>
    %171 = arith.addf %165, %170 : vector<4x16xf32>
    %c4_148 = arith.constant 4 : index
    %c0_149 = arith.constant 0 : index
    %c0_150 = arith.constant 0 : index
    %172 = vector.load %arg10[%c4_148, %c0_149, %c0_150] : memref<6x6x16xf32, #tpu.memory_space<vmem>>, vector<1x4x16xf32>
    %173 = vector.shape_cast %172 : vector<1x4x16xf32> to vector<4x16xf32>
    %c6_151 = arith.constant 6 : index
    %c0_152 = arith.constant 0 : index
    %174 = vector.load %arg4[%c6_151, %c0_152] : memref<9x16xf32, #tpu.memory_space<vmem>>, vector<1x16xf32>
    %175 = vector.broadcast %174 : vector<1x16xf32> to vector<4x16xf32>
    %176 = arith.mulf %173, %175 : vector<4x16xf32>
    %177 = arith.addf %171, %176 : vector<4x16xf32>
    %c4_153 = arith.constant 4 : index
    %c1_154 = arith.constant 1 : index
    %c0_155 = arith.constant 0 : index
    %178 = vector.load %arg10[%c4_153, %c1_154, %c0_155] : memref<6x6x16xf32, #tpu.memory_space<vmem>>, vector<1x4x16xf32>
    %179 = vector.shape_cast %178 : vector<1x4x16xf32> to vector<4x16xf32>
    %c7_156 = arith.constant 7 : index
    %c0_157 = arith.constant 0 : index
    %180 = vector.load %arg4[%c7_156, %c0_157] : memref<9x16xf32, #tpu.memory_space<vmem>>, vector<1x16xf32>
    %181 = vector.broadcast %180 : vector<1x16xf32> to vector<4x16xf32>
    %182 = arith.mulf %179, %181 : vector<4x16xf32>
    %183 = arith.addf %177, %182 : vector<4x16xf32>
    %c4_158 = arith.constant 4 : index
    %c2_159 = arith.constant 2 : index
    %c0_160 = arith.constant 0 : index
    %184 = vector.load %arg10[%c4_158, %c2_159, %c0_160] : memref<6x6x16xf32, #tpu.memory_space<vmem>>, vector<1x4x16xf32>
    %185 = vector.shape_cast %184 : vector<1x4x16xf32> to vector<4x16xf32>
    %c8_161 = arith.constant 8 : index
    %c0_162 = arith.constant 0 : index
    %186 = vector.load %arg4[%c8_161, %c0_162] : memref<9x16xf32, #tpu.memory_space<vmem>>, vector<1x16xf32>
    %187 = vector.broadcast %186 : vector<1x16xf32> to vector<4x16xf32>
    %188 = arith.mulf %185, %187 : vector<4x16xf32>
    %189 = arith.addf %183, %188 : vector<4x16xf32>
    %c8_163 = arith.constant 8 : index
    %c0_164 = arith.constant 0 : index
    %190 = vector.load %arg11[%c8_163, %c0_164] : memref<16x16xf32, #tpu.memory_space<vmem>>, vector<4x16xf32>
    tpu.vector_store %arg11[%c8_163, %c0_164], %189 {strides = array<i32>} : memref<16x16xf32, #tpu.memory_space<vmem>>, vector<4x16xf32>,
    %c3_165 = arith.constant 3 : index
    %c0_166 = arith.constant 0 : index
    %c0_167 = arith.constant 0 : index
    %191 = vector.load %arg10[%c3_165, %c0_166, %c0_167] : memref<6x6x16xf32, #tpu.memory_space<vmem>>, vector<1x4x16xf32>
    %192 = vector.shape_cast %191 : vector<1x4x16xf32> to vector<4x16xf32>
    %c0_168 = arith.constant 0 : index
    %c0_169 = arith.constant 0 : index
    %193 = vector.load %arg4[%c0_168, %c0_169] : memref<9x16xf32, #tpu.memory_space<vmem>>, vector<1x16xf32>
    %194 = vector.broadcast %193 : vector<1x16xf32> to vector<4x16xf32>
    %195 = arith.mulf %192, %194 : vector<4x16xf32>
    %c3_170 = arith.constant 3 : index
    %c1_171 = arith.constant 1 : index
    %c0_172 = arith.constant 0 : index
    %196 = vector.load %arg10[%c3_170, %c1_171, %c0_172] : memref<6x6x16xf32, #tpu.memory_space<vmem>>, vector<1x4x16xf32>
    %197 = vector.shape_cast %196 : vector<1x4x16xf32> to vector<4x16xf32>
    %c1_173 = arith.constant 1 : index
    %c0_174 = arith.constant 0 : index
    %198 = vector.load %arg4[%c1_173, %c0_174] : memref<9x16xf32, #tpu.memory_space<vmem>>, vector<1x16xf32>
    %199 = vector.broadcast %198 : vector<1x16xf32> to vector<4x16xf32>
    %200 = arith.mulf %197, %199 : vector<4x16xf32>
    %201 = arith.addf %195, %200 : vector<4x16xf32>
    %c3_175 = arith.constant 3 : index
    %c2_176 = arith.constant 2 : index
    %c0_177 = arith.constant 0 : index
    %202 = vector.load %arg10[%c3_175, %c2_176, %c0_177] : memref<6x6x16xf32, #tpu.memory_space<vmem>>, vector<1x4x16xf32>
    %203 = vector.shape_cast %202 : vector<1x4x16xf32> to vector<4x16xf32>
    %c2_178 = arith.constant 2 : index
    %c0_179 = arith.constant 0 : index
    %204 = vector.load %arg4[%c2_178, %c0_179] : memref<9x16xf32, #tpu.memory_space<vmem>>, vector<1x16xf32>
    %205 = vector.broadcast %204 : vector<1x16xf32> to vector<4x16xf32>
    %206 = arith.mulf %203, %205 : vector<4x16xf32>
    %207 = arith.addf %201, %206 : vector<4x16xf32>
    %c4_180 = arith.constant 4 : index
    %c0_181 = arith.constant 0 : index
    %c0_182 = arith.constant 0 : index
    %208 = vector.load %arg10[%c4_180, %c0_181, %c0_182] : memref<6x6x16xf32, #tpu.memory_space<vmem>>, vector<1x4x16xf32>
    %209 = vector.shape_cast %208 : vector<1x4x16xf32> to vector<4x16xf32>
    %c3_183 = arith.constant 3 : index
    %c0_184 = arith.constant 0 : index
    %210 = vector.load %arg4[%c3_183, %c0_184] : memref<9x16xf32, #tpu.memory_space<vmem>>, vector<1x16xf32>
    %211 = vector.broadcast %210 : vector<1x16xf32> to vector<4x16xf32>
    %212 = arith.mulf %209, %211 : vector<4x16xf32>
    %213 = arith.addf %207, %212 : vector<4x16xf32>
    %c4_185 = arith.constant 4 : index
    %c1_186 = arith.constant 1 : index
    %c0_187 = arith.constant 0 : index
    %214 = vector.load %arg10[%c4_185, %c1_186, %c0_187] : memref<6x6x16xf32, #tpu.memory_space<vmem>>, vector<1x4x16xf32>
    %215 = vector.shape_cast %214 : vector<1x4x16xf32> to vector<4x16xf32>
    %c4_188 = arith.constant 4 : index
    %c0_189 = arith.constant 0 : index
    %216 = vector.load %arg4[%c4_188, %c0_189] : memref<9x16xf32, #tpu.memory_space<vmem>>, vector<1x16xf32>
    %217 = vector.broadcast %216 : vector<1x16xf32> to vector<4x16xf32>
    %218 = arith.mulf %215, %217 : vector<4x16xf32>
    %219 = arith.addf %213, %218 : vector<4x16xf32>
    %c4_190 = arith.constant 4 : index
    %c2_191 = arith.constant 2 : index
    %c0_192 = arith.constant 0 : index
    %220 = vector.load %arg10[%c4_190, %c2_191, %c0_192] : memref<6x6x16xf32, #tpu.memory_space<vmem>>, vector<1x4x16xf32>
    %221 = vector.shape_cast %220 : vector<1x4x16xf32> to vector<4x16xf32>
    %c5_193 = arith.constant 5 : index
    %c0_194 = arith.constant 0 : index
    %222 = vector.load %arg4[%c5_193, %c0_194] : memref<9x16xf32, #tpu.memory_space<vmem>>, vector<1x16xf32>
    %223 = vector.broadcast %222 : vector<1x16xf32> to vector<4x16xf32>
    %224 = arith.mulf %221, %223 : vector<4x16xf32>
    %225 = arith.addf %219, %224 : vector<4x16xf32>
    %c5_195 = arith.constant 5 : index
    %c0_196 = arith.constant 0 : index
    %c0_197 = arith.constant 0 : index
    %226 = vector.load %arg10[%c5_195, %c0_196, %c0_197] : memref<6x6x16xf32, #tpu.memory_space<vmem>>, vector<1x4x16xf32>
    %227 = vector.shape_cast %226 : vector<1x4x16xf32> to vector<4x16xf32>
    %c6_198 = arith.constant 6 : index
    %c0_199 = arith.constant 0 : index
    %228 = vector.load %arg4[%c6_198, %c0_199] : memref<9x16xf32, #tpu.memory_space<vmem>>, vector<1x16xf32>
    %229 = vector.broadcast %228 : vector<1x16xf32> to vector<4x16xf32>
    %230 = arith.mulf %227, %229 : vector<4x16xf32>
    %231 = arith.addf %225, %230 : vector<4x16xf32>
    %c5_200 = arith.constant 5 : index
    %c1_201 = arith.constant 1 : index
    %c0_202 = arith.constant 0 : index
    %232 = vector.load %arg10[%c5_200, %c1_201, %c0_202] : memref<6x6x16xf32, #tpu.memory_space<vmem>>, vector<1x4x16xf32>
    %233 = vector.shape_cast %232 : vector<1x4x16xf32> to vector<4x16xf32>
    %c7_203 = arith.constant 7 : index
    %c0_204 = arith.constant 0 : index
    %234 = vector.load %arg4[%c7_203, %c0_204] : memref<9x16xf32, #tpu.memory_space<vmem>>, vector<1x16xf32>
    %235 = vector.broadcast %234 : vector<1x16xf32> to vector<4x16xf32>
    %236 = arith.mulf %233, %235 : vector<4x16xf32>
    %237 = arith.addf %231, %236 : vector<4x16xf32>
    %c5_205 = arith.constant 5 : index
    %c2_206 = arith.constant 2 : index
    %c0_207 = arith.constant 0 : index
    %238 = vector.load %arg10[%c5_205, %c2_206, %c0_207] : memref<6x6x16xf32, #tpu.memory_space<vmem>>, vector<1x4x16xf32>
    %239 = vector.shape_cast %238 : vector<1x4x16xf32> to vector<4x16xf32>
    %c8_208 = arith.constant 8 : index
    %c0_209 = arith.constant 0 : index
    %240 = vector.load %arg4[%c8_208, %c0_209] : memref<9x16xf32, #tpu.memory_space<vmem>>, vector<1x16xf32>
    %241 = vector.broadcast %240 : vector<1x16xf32> to vector<4x16xf32>
    %242 = arith.mulf %239, %241 : vector<4x16xf32>
    %243 = arith.addf %237, %242 : vector<4x16xf32>
    %c12_210 = arith.constant 12 : index
    %c0_211 = arith.constant 0 : index
    %244 = vector.load %arg11[%c12_210, %c0_211] : memref<16x16xf32, #tpu.memory_space<vmem>>, vector<4x16xf32>
    tpu.vector_store %arg11[%c12_210, %c0_211], %243 {strides = array<i32>} : memref<16x16xf32, #tpu.memory_space<vmem>>, vector<4x16xf32>,
    %c0_212 = arith.constant 0 : index
    %c0_213 = arith.constant 0 : index
    %245 = vector.load %arg11[%c0_212, %c0_213] : memref<16x16xf32, #tpu.memory_space<vmem>>, vector<16x16xf32>
    %c0_214 = arith.constant 0 : index
    %c0_215 = arith.constant 0 : index
    %246 = vector.load %arg5[%c0_214, %c0_215] : memref<1x16xf32, #tpu.memory_space<vmem>>, vector<1x16xf32>
    %247 = vector.broadcast %246 : vector<1x16xf32> to vector<16x16xf32>
    %248 = arith.addf %245, %247 : vector<16x16xf32>
    %249 = arith.truncf %248 : vector<16x16xf32> to vector<16x16xbf16>
    %c0_216 = arith.constant 0 : index
    %c0_217 = arith.constant 0 : index
    %250 = vector.load %arg6[%c0_216, %c0_217] : memref<16x32xbf16, #tpu.memory_space<vmem>>, vector<16x32xbf16>
    %cst_218 = arith.constant dense<0.000000e+00> : vector<16x32xf32>
    %251 = tpu.matmul %249, %250, %cst_218 {dimension_numbers = #tpu.dot_dimension_numbers<[1], [0], [0], [1], [0, 0, 1, 1], [], []>} : vector<16x16xbf16>, vector<16x32xbf16>, vector<16x32xf32> -> vector<16x32xf32>
    %c0_219 = arith.constant 0 : index
    %c0_220 = arith.constant 0 : index
    %252 = vector.load %arg7[%c0_219, %c0_220] : memref<1x32xf32, #tpu.memory_space<vmem>>, vector<1x32xf32>
    %253 = vector.broadcast %252 : vector<1x32xf32> to vector<16x32xf32>
    %254 = arith.addf %251, %253 : vector<16x32xf32>
    %cst_221 = arith.constant 0.000000e+00 : f32
    %255 = vector.broadcast %cst_221 : f32 to vector<16x32xf32>
    %256 = arith.maximumf %254, %255 : vector<16x32xf32>
    %257 = tpu.iota {dimensions = array<i32: 1>} : vector<1x32xi32>
    %c16_i32 = arith.constant 16 : i32
    %258 = vector.broadcast %c16_i32 : i32 to vector<1x32xi32>
    %259 = arith.cmpi slt, %257, %258 : vector<1x32xi32>
    %cst_222 = arith.constant 1.000000e+00 : f32
    %cst_223 = arith.constant 0.000000e+00 : f32
    %260 = vector.broadcast %cst_222 : f32 to vector<1x32xf32>
    %261 = vector.broadcast %cst_223 : f32 to vector<1x32xf32>
    %262 = arith.select %259, %260, %261 : vector<1x32xi1>, vector<1x32xf32>
    %263 = vector.broadcast %262 : vector<1x32xf32> to vector<16x32xf32>
    %264 = arith.mulf %1, %263 : vector<16x32xf32>
    %265 = arith.addf %256, %264 : vector<16x32xf32>
    %c0_224 = arith.constant 0 : index
    %c0_225 = arith.constant 0 : index
    %c0_226 = arith.constant 0 : index
    %266 = vector.load %arg8[%c0_224, %c0_225, %c0_226] : memref<1x16x32xf32, #tpu.memory_space<vmem>>, vector<1x16x32xf32>
    %267 = vector.shape_cast %266 : vector<1x16x32xf32> to vector<16x32xf32>
    %268 = vector.shape_cast %265 : vector<16x32xf32> to vector<1x16x32xf32>
    tpu.vector_store %arg8[%c0_224, %c0_225, %c0_226], %268 {strides = array<i32>} : memref<1x16x32xf32, #tpu.memory_space<vmem>>, vector<1x16x32xf32>,
    return
  }
  func.func @transform_0(%arg0: i32) -> (i32, i32, i32) {
    %c0_i32 = arith.constant 0 : i32
    %c0_i32_0 = arith.constant 0 : i32
    %c0_i32_1 = arith.constant 0 : i32
    return %arg0, %c0_i32, %c0_i32_0 : i32, i32, i32
  }
  func.func @transform_1(%arg0: i32) -> (i32, i32) {
    %c0_i32 = arith.constant 0 : i32
    %c0_i32_0 = arith.constant 0 : i32
    %c0_i32_1 = arith.constant 0 : i32
    return %c0_i32, %c0_i32_0 : i32, i32
  }
  func.func @transform_2(%arg0: i32) -> (i32, i32) {
    %c0_i32 = arith.constant 0 : i32
    %c0_i32_0 = arith.constant 0 : i32
    %c0_i32_1 = arith.constant 0 : i32
    return %c0_i32, %c0_i32_0 : i32, i32
  }
  func.func @transform_3(%arg0: i32) -> (i32, i32) {
    %c0_i32 = arith.constant 0 : i32
    %c0_i32_0 = arith.constant 0 : i32
    %c0_i32_1 = arith.constant 0 : i32
    return %c0_i32, %c0_i32_0 : i32, i32
  }
  func.func @transform_4(%arg0: i32) -> (i32, i32) {
    %c0_i32 = arith.constant 0 : i32
    %c0_i32_0 = arith.constant 0 : i32
    %c0_i32_1 = arith.constant 0 : i32
    return %c0_i32, %c0_i32_0 : i32, i32
  }
  func.func @transform_5(%arg0: i32) -> (i32, i32) {
    %c0_i32 = arith.constant 0 : i32
    %c0_i32_0 = arith.constant 0 : i32
    %c0_i32_1 = arith.constant 0 : i32
    return %c0_i32, %c0_i32_0 : i32, i32
  }
  func.func @transform_6(%arg0: i32) -> (i32, i32) {
    %c0_i32 = arith.constant 0 : i32
    %c0_i32_0 = arith.constant 0 : i32
    %c0_i32_1 = arith.constant 0 : i32
    return %c0_i32, %c0_i32_0 : i32, i32
  }
  func.func @transform_7(%arg0: i32) -> (i32, i32, i32) {
    %c0_i32 = arith.constant 0 : i32
    %c0_i32_0 = arith.constant 0 : i32
    %c0_i32_1 = arith.constant 0 : i32
    return %arg0, %c0_i32, %c0_i32_0 : i32, i32, i32
  }
}

module attributes {stable_mosaic.version = 11 : i64} {
  func.func @_block_s2_kernel(%arg0: i32, %arg1: memref<1x64x16xf32, #tpu.memory_space<vmem>>, %arg2: memref<16x16xbf16, #tpu.memory_space<vmem>>, %arg3: memref<1x16xf32, #tpu.memory_space<vmem>>, %arg4: memref<9x16xf32, #tpu.memory_space<vmem>>, %arg5: memref<1x16xf32, #tpu.memory_space<vmem>>, %arg6: memref<16x32xbf16, #tpu.memory_space<vmem>>, %arg7: memref<1x32xf32, #tpu.memory_space<vmem>>, %arg8: memref<9x16xf32, #tpu.memory_space<vmem>>, %arg9: memref<1x16xf32, #tpu.memory_space<vmem>>, %arg10: memref<16x32xbf16, #tpu.memory_space<vmem>>, %arg11: memref<1x32xf32, #tpu.memory_space<vmem>>, %arg12: memref<1x16x32xf32, #tpu.memory_space<vmem>>, %arg13: memref<64x16xf32, #tpu.memory_space<vmem>>, %arg14: memref<10x10x16xf32, #tpu.memory_space<vmem>>, %arg15: memref<10x10x16xf32, #tpu.memory_space<vmem>>, %arg16: memref<16x16xf32, #tpu.memory_space<vmem>>, %arg17: memref<16x16xf32, #tpu.memory_space<vmem>>) attributes {dimension_semantics = [#tpu.dimension_semantics<parallel>], iteration_bounds = array<i64: 2>, scalar_prefetch = 0 : i64, scratch_operands = 5 : i64, tpu.core_type = #tpu.core_type<tc>, window_params = [{transform_indices = @transform_0, window_bounds = array<i64: 1, 64, 16>}, {pipeline_mode = #tpu.pipeline_mode<synchronous>, transform_indices = @transform_1, window_bounds = array<i64: 16, 16>}, {pipeline_mode = #tpu.pipeline_mode<synchronous>, transform_indices = @transform_2, window_bounds = array<i64: 1, 16>}, {pipeline_mode = #tpu.pipeline_mode<synchronous>, transform_indices = @transform_3, window_bounds = array<i64: 9, 16>}, {pipeline_mode = #tpu.pipeline_mode<synchronous>, transform_indices = @transform_4, window_bounds = array<i64: 1, 16>}, {pipeline_mode = #tpu.pipeline_mode<synchronous>, transform_indices = @transform_5, window_bounds = array<i64: 16, 32>}, {pipeline_mode = #tpu.pipeline_mode<synchronous>, transform_indices = @transform_6, window_bounds = array<i64: 1, 32>}, {pipeline_mode = #tpu.pipeline_mode<synchronous>, transform_indices = @transform_7, window_bounds = array<i64: 9, 16>}, {pipeline_mode = #tpu.pipeline_mode<synchronous>, transform_indices = @transform_8, window_bounds = array<i64: 1, 16>}, {pipeline_mode = #tpu.pipeline_mode<synchronous>, transform_indices = @transform_9, window_bounds = array<i64: 16, 32>}, {pipeline_mode = #tpu.pipeline_mode<synchronous>, transform_indices = @transform_10, window_bounds = array<i64: 1, 32>}, {transform_indices = @transform_11, window_bounds = array<i64: 1, 16, 32>}]} {
    %c0 = arith.constant 0 : index
    %c0_0 = arith.constant 0 : index
    %c0_1 = arith.constant 0 : index
    %0 = vector.load %arg1[%c0, %c0_0, %c0_1] : memref<1x64x16xf32, #tpu.memory_space<vmem>>, vector<1x64x16xf32>
    %1 = vector.shape_cast %0 : vector<1x64x16xf32> to vector<64x16xf32>
    %2 = arith.truncf %1 : vector<64x16xf32> to vector<64x16xbf16>
    %c0_2 = arith.constant 0 : index
    %c0_3 = arith.constant 0 : index
    %3 = vector.load %arg2[%c0_2, %c0_3] : memref<16x16xbf16, #tpu.memory_space<vmem>>, vector<16x16xbf16>
    %cst = arith.constant dense<0.000000e+00> : vector<64x16xf32>
    %4 = tpu.matmul %2, %3, %cst {dimension_numbers = #tpu.dot_dimension_numbers<[1], [0], [0], [1], [0, 0, 1, 1], [], []>} : vector<64x16xbf16>, vector<16x16xbf16>, vector<64x16xf32> -> vector<64x16xf32>
    %c0_4 = arith.constant 0 : index
    %c0_5 = arith.constant 0 : index
    %5 = vector.load %arg3[%c0_4, %c0_5] : memref<1x16xf32, #tpu.memory_space<vmem>>, vector<1x16xf32>
    %6 = vector.broadcast %5 : vector<1x16xf32> to vector<64x16xf32>
    %7 = arith.addf %4, %6 : vector<64x16xf32>
    %cst_6 = arith.constant 0.000000e+00 : f32
    %8 = vector.broadcast %cst_6 : f32 to vector<64x16xf32>
    %9 = arith.maximumf %7, %8 : vector<64x16xf32>
    %c0_7 = arith.constant 0 : index
    %c0_8 = arith.constant 0 : index
    %10 = vector.load %arg13[%c0_7, %c0_8] : memref<64x16xf32, #tpu.memory_space<vmem>>, vector<64x16xf32>
    tpu.vector_store %arg13[%c0_7, %c0_8], %9 {strides = array<i32>} : memref<64x16xf32, #tpu.memory_space<vmem>>, vector<64x16xf32>,
    %cst_9 = arith.constant 0.000000e+00 : f32
    %11 = vector.broadcast %cst_9 : f32 to vector<10x10x16xf32>
    %c0_10 = arith.constant 0 : index
    %c0_11 = arith.constant 0 : index
    %c0_12 = arith.constant 0 : index
    %12 = vector.load %arg14[%c0_10, %c0_11, %c0_12] : memref<10x10x16xf32, #tpu.memory_space<vmem>>, vector<10x10x16xf32>
    tpu.vector_store %arg14[%c0_10, %c0_11, %c0_12], %11 {strides = array<i32>} : memref<10x10x16xf32, #tpu.memory_space<vmem>>, vector<10x10x16xf32>,
    %cst_13 = arith.constant 0.000000e+00 : f32
    %13 = vector.broadcast %cst_13 : f32 to vector<10x10x16xf32>
    %c0_14 = arith.constant 0 : index
    %c0_15 = arith.constant 0 : index
    %c0_16 = arith.constant 0 : index
    %14 = vector.load %arg15[%c0_14, %c0_15, %c0_16] : memref<10x10x16xf32, #tpu.memory_space<vmem>>, vector<10x10x16xf32>
    tpu.vector_store %arg15[%c0_14, %c0_15, %c0_16], %13 {strides = array<i32>} : memref<10x10x16xf32, #tpu.memory_space<vmem>>, vector<10x10x16xf32>,
    %c0_17 = arith.constant 0 : index
    %c0_18 = arith.constant 0 : index
    %c0_19 = arith.constant 0 : index
    %15 = vector.load %arg1[%c0_17, %c0_18, %c0_19] : memref<1x64x16xf32, #tpu.memory_space<vmem>>, vector<1x8x16xf32>
    %16 = vector.shape_cast %15 : vector<1x8x16xf32> to vector<8x16xf32>
    %c1 = arith.constant 1 : index
    %c1_20 = arith.constant 1 : index
    %c0_21 = arith.constant 0 : index
    %17 = vector.load %arg14[%c1, %c1_20, %c0_21] : memref<10x10x16xf32, #tpu.memory_space<vmem>>, vector<1x8x16xf32>
    %18 = vector.shape_cast %17 : vector<1x8x16xf32> to vector<8x16xf32>
    %19 = vector.shape_cast %16 : vector<8x16xf32> to vector<1x8x16xf32>
    tpu.vector_store %arg14[%c1, %c1_20, %c0_21], %19 {strides = array<i32>} : memref<10x10x16xf32, #tpu.memory_space<vmem>>, vector<1x8x16xf32>,
    %c0_22 = arith.constant 0 : index
    %c0_23 = arith.constant 0 : index
    %20 = vector.load %arg13[%c0_22, %c0_23] : memref<64x16xf32, #tpu.memory_space<vmem>>, vector<8x16xf32>
    %c1_24 = arith.constant 1 : index
    %c1_25 = arith.constant 1 : index
    %c0_26 = arith.constant 0 : index
    %21 = vector.load %arg15[%c1_24, %c1_25, %c0_26] : memref<10x10x16xf32, #tpu.memory_space<vmem>>, vector<1x8x16xf32>
    %22 = vector.shape_cast %21 : vector<1x8x16xf32> to vector<8x16xf32>
    %23 = vector.shape_cast %20 : vector<8x16xf32> to vector<1x8x16xf32>
    tpu.vector_store %arg15[%c1_24, %c1_25, %c0_26], %23 {strides = array<i32>} : memref<10x10x16xf32, #tpu.memory_space<vmem>>, vector<1x8x16xf32>,
    %c0_27 = arith.constant 0 : index
    %c8 = arith.constant 8 : index
    %c0_28 = arith.constant 0 : index
    %24 = vector.load %arg1[%c0_27, %c8, %c0_28] : memref<1x64x16xf32, #tpu.memory_space<vmem>>, vector<1x8x16xf32>
    %25 = vector.shape_cast %24 : vector<1x8x16xf32> to vector<8x16xf32>
    %c2 = arith.constant 2 : index
    %c1_29 = arith.constant 1 : index
    %c0_30 = arith.constant 0 : index
    %26 = vector.load %arg14[%c2, %c1_29, %c0_30] : memref<10x10x16xf32, #tpu.memory_space<vmem>>, vector<1x8x16xf32>
    %27 = vector.shape_cast %26 : vector<1x8x16xf32> to vector<8x16xf32>
    %28 = vector.shape_cast %25 : vector<8x16xf32> to vector<1x8x16xf32>
    tpu.vector_store %arg14[%c2, %c1_29, %c0_30], %28 {strides = array<i32>} : memref<10x10x16xf32, #tpu.memory_space<vmem>>, vector<1x8x16xf32>,
    %c8_31 = arith.constant 8 : index
    %c0_32 = arith.constant 0 : index
    %29 = vector.load %arg13[%c8_31, %c0_32] : memref<64x16xf32, #tpu.memory_space<vmem>>, vector<8x16xf32>
    %c2_33 = arith.constant 2 : index
    %c1_34 = arith.constant 1 : index
    %c0_35 = arith.constant 0 : index
    %30 = vector.load %arg15[%c2_33, %c1_34, %c0_35] : memref<10x10x16xf32, #tpu.memory_space<vmem>>, vector<1x8x16xf32>
    %31 = vector.shape_cast %30 : vector<1x8x16xf32> to vector<8x16xf32>
    %32 = vector.shape_cast %29 : vector<8x16xf32> to vector<1x8x16xf32>
    tpu.vector_store %arg15[%c2_33, %c1_34, %c0_35], %32 {strides = array<i32>} : memref<10x10x16xf32, #tpu.memory_space<vmem>>, vector<1x8x16xf32>,
    %c0_36 = arith.constant 0 : index
    %c16 = arith.constant 16 : index
    %c0_37 = arith.constant 0 : index
    %33 = vector.load %arg1[%c0_36, %c16, %c0_37] : memref<1x64x16xf32, #tpu.memory_space<vmem>>, vector<1x8x16xf32>
    %34 = vector.shape_cast %33 : vector<1x8x16xf32> to vector<8x16xf32>
    %c3 = arith.constant 3 : index
    %c1_38 = arith.constant 1 : index
    %c0_39 = arith.constant 0 : index
    %35 = vector.load %arg14[%c3, %c1_38, %c0_39] : memref<10x10x16xf32, #tpu.memory_space<vmem>>, vector<1x8x16xf32>
    %36 = vector.shape_cast %35 : vector<1x8x16xf32> to vector<8x16xf32>
    %37 = vector.shape_cast %34 : vector<8x16xf32> to vector<1x8x16xf32>
    tpu.vector_store %arg14[%c3, %c1_38, %c0_39], %37 {strides = array<i32>} : memref<10x10x16xf32, #tpu.memory_space<vmem>>, vector<1x8x16xf32>,
    %c16_40 = arith.constant 16 : index
    %c0_41 = arith.constant 0 : index
    %38 = vector.load %arg13[%c16_40, %c0_41] : memref<64x16xf32, #tpu.memory_space<vmem>>, vector<8x16xf32>
    %c3_42 = arith.constant 3 : index
    %c1_43 = arith.constant 1 : index
    %c0_44 = arith.constant 0 : index
    %39 = vector.load %arg15[%c3_42, %c1_43, %c0_44] : memref<10x10x16xf32, #tpu.memory_space<vmem>>, vector<1x8x16xf32>
    %40 = vector.shape_cast %39 : vector<1x8x16xf32> to vector<8x16xf32>
    %41 = vector.shape_cast %38 : vector<8x16xf32> to vector<1x8x16xf32>
    tpu.vector_store %arg15[%c3_42, %c1_43, %c0_44], %41 {strides = array<i32>} : memref<10x10x16xf32, #tpu.memory_space<vmem>>, vector<1x8x16xf32>,
    %c0_45 = arith.constant 0 : index
    %c24 = arith.constant 24 : index
    %c0_46 = arith.constant 0 : index
    %42 = vector.load %arg1[%c0_45, %c24, %c0_46] : memref<1x64x16xf32, #tpu.memory_space<vmem>>, vector<1x8x16xf32>
    %43 = vector.shape_cast %42 : vector<1x8x16xf32> to vector<8x16xf32>
    %c4 = arith.constant 4 : index
    %c1_47 = arith.constant 1 : index
    %c0_48 = arith.constant 0 : index
    %44 = vector.load %arg14[%c4, %c1_47, %c0_48] : memref<10x10x16xf32, #tpu.memory_space<vmem>>, vector<1x8x16xf32>
    %45 = vector.shape_cast %44 : vector<1x8x16xf32> to vector<8x16xf32>
    %46 = vector.shape_cast %43 : vector<8x16xf32> to vector<1x8x16xf32>
    tpu.vector_store %arg14[%c4, %c1_47, %c0_48], %46 {strides = array<i32>} : memref<10x10x16xf32, #tpu.memory_space<vmem>>, vector<1x8x16xf32>,
    %c24_49 = arith.constant 24 : index
    %c0_50 = arith.constant 0 : index
    %47 = vector.load %arg13[%c24_49, %c0_50] : memref<64x16xf32, #tpu.memory_space<vmem>>, vector<8x16xf32>
    %c4_51 = arith.constant 4 : index
    %c1_52 = arith.constant 1 : index
    %c0_53 = arith.constant 0 : index
    %48 = vector.load %arg15[%c4_51, %c1_52, %c0_53] : memref<10x10x16xf32, #tpu.memory_space<vmem>>, vector<1x8x16xf32>
    %49 = vector.shape_cast %48 : vector<1x8x16xf32> to vector<8x16xf32>
    %50 = vector.shape_cast %47 : vector<8x16xf32> to vector<1x8x16xf32>
    tpu.vector_store %arg15[%c4_51, %c1_52, %c0_53], %50 {strides = array<i32>} : memref<10x10x16xf32, #tpu.memory_space<vmem>>, vector<1x8x16xf32>,
    %c0_54 = arith.constant 0 : index
    %c32 = arith.constant 32 : index
    %c0_55 = arith.constant 0 : index
    %51 = vector.load %arg1[%c0_54, %c32, %c0_55] : memref<1x64x16xf32, #tpu.memory_space<vmem>>, vector<1x8x16xf32>
    %52 = vector.shape_cast %51 : vector<1x8x16xf32> to vector<8x16xf32>
    %c5 = arith.constant 5 : index
    %c1_56 = arith.constant 1 : index
    %c0_57 = arith.constant 0 : index
    %53 = vector.load %arg14[%c5, %c1_56, %c0_57] : memref<10x10x16xf32, #tpu.memory_space<vmem>>, vector<1x8x16xf32>
    %54 = vector.shape_cast %53 : vector<1x8x16xf32> to vector<8x16xf32>
    %55 = vector.shape_cast %52 : vector<8x16xf32> to vector<1x8x16xf32>
    tpu.vector_store %arg14[%c5, %c1_56, %c0_57], %55 {strides = array<i32>} : memref<10x10x16xf32, #tpu.memory_space<vmem>>, vector<1x8x16xf32>,
    %c32_58 = arith.constant 32 : index
    %c0_59 = arith.constant 0 : index
    %56 = vector.load %arg13[%c32_58, %c0_59] : memref<64x16xf32, #tpu.memory_space<vmem>>, vector<8x16xf32>
    %c5_60 = arith.constant 5 : index
    %c1_61 = arith.constant 1 : index
    %c0_62 = arith.constant 0 : index
    %57 = vector.load %arg15[%c5_60, %c1_61, %c0_62] : memref<10x10x16xf32, #tpu.memory_space<vmem>>, vector<1x8x16xf32>
    %58 = vector.shape_cast %57 : vector<1x8x16xf32> to vector<8x16xf32>
    %59 = vector.shape_cast %56 : vector<8x16xf32> to vector<1x8x16xf32>
    tpu.vector_store %arg15[%c5_60, %c1_61, %c0_62], %59 {strides = array<i32>} : memref<10x10x16xf32, #tpu.memory_space<vmem>>, vector<1x8x16xf32>,
    %c0_63 = arith.constant 0 : index
    %c40 = arith.constant 40 : index
    %c0_64 = arith.constant 0 : index
    %60 = vector.load %arg1[%c0_63, %c40, %c0_64] : memref<1x64x16xf32, #tpu.memory_space<vmem>>, vector<1x8x16xf32>
    %61 = vector.shape_cast %60 : vector<1x8x16xf32> to vector<8x16xf32>
    %c6 = arith.constant 6 : index
    %c1_65 = arith.constant 1 : index
    %c0_66 = arith.constant 0 : index
    %62 = vector.load %arg14[%c6, %c1_65, %c0_66] : memref<10x10x16xf32, #tpu.memory_space<vmem>>, vector<1x8x16xf32>
    %63 = vector.shape_cast %62 : vector<1x8x16xf32> to vector<8x16xf32>
    %64 = vector.shape_cast %61 : vector<8x16xf32> to vector<1x8x16xf32>
    tpu.vector_store %arg14[%c6, %c1_65, %c0_66], %64 {strides = array<i32>} : memref<10x10x16xf32, #tpu.memory_space<vmem>>, vector<1x8x16xf32>,
    %c40_67 = arith.constant 40 : index
    %c0_68 = arith.constant 0 : index
    %65 = vector.load %arg13[%c40_67, %c0_68] : memref<64x16xf32, #tpu.memory_space<vmem>>, vector<8x16xf32>
    %c6_69 = arith.constant 6 : index
    %c1_70 = arith.constant 1 : index
    %c0_71 = arith.constant 0 : index
    %66 = vector.load %arg15[%c6_69, %c1_70, %c0_71] : memref<10x10x16xf32, #tpu.memory_space<vmem>>, vector<1x8x16xf32>
    %67 = vector.shape_cast %66 : vector<1x8x16xf32> to vector<8x16xf32>
    %68 = vector.shape_cast %65 : vector<8x16xf32> to vector<1x8x16xf32>
    tpu.vector_store %arg15[%c6_69, %c1_70, %c0_71], %68 {strides = array<i32>} : memref<10x10x16xf32, #tpu.memory_space<vmem>>, vector<1x8x16xf32>,
    %c0_72 = arith.constant 0 : index
    %c48 = arith.constant 48 : index
    %c0_73 = arith.constant 0 : index
    %69 = vector.load %arg1[%c0_72, %c48, %c0_73] : memref<1x64x16xf32, #tpu.memory_space<vmem>>, vector<1x8x16xf32>
    %70 = vector.shape_cast %69 : vector<1x8x16xf32> to vector<8x16xf32>
    %c7 = arith.constant 7 : index
    %c1_74 = arith.constant 1 : index
    %c0_75 = arith.constant 0 : index
    %71 = vector.load %arg14[%c7, %c1_74, %c0_75] : memref<10x10x16xf32, #tpu.memory_space<vmem>>, vector<1x8x16xf32>
    %72 = vector.shape_cast %71 : vector<1x8x16xf32> to vector<8x16xf32>
    %73 = vector.shape_cast %70 : vector<8x16xf32> to vector<1x8x16xf32>
    tpu.vector_store %arg14[%c7, %c1_74, %c0_75], %73 {strides = array<i32>} : memref<10x10x16xf32, #tpu.memory_space<vmem>>, vector<1x8x16xf32>,
    %c48_76 = arith.constant 48 : index
    %c0_77 = arith.constant 0 : index
    %74 = vector.load %arg13[%c48_76, %c0_77] : memref<64x16xf32, #tpu.memory_space<vmem>>, vector<8x16xf32>
    %c7_78 = arith.constant 7 : index
    %c1_79 = arith.constant 1 : index
    %c0_80 = arith.constant 0 : index
    %75 = vector.load %arg15[%c7_78, %c1_79, %c0_80] : memref<10x10x16xf32, #tpu.memory_space<vmem>>, vector<1x8x16xf32>
    %76 = vector.shape_cast %75 : vector<1x8x16xf32> to vector<8x16xf32>
    %77 = vector.shape_cast %74 : vector<8x16xf32> to vector<1x8x16xf32>
    tpu.vector_store %arg15[%c7_78, %c1_79, %c0_80], %77 {strides = array<i32>} : memref<10x10x16xf32, #tpu.memory_space<vmem>>, vector<1x8x16xf32>,
    %c0_81 = arith.constant 0 : index
    %c56 = arith.constant 56 : index
    %c0_82 = arith.constant 0 : index
    %78 = vector.load %arg1[%c0_81, %c56, %c0_82] : memref<1x64x16xf32, #tpu.memory_space<vmem>>, vector<1x8x16xf32>
    %79 = vector.shape_cast %78 : vector<1x8x16xf32> to vector<8x16xf32>
    %c8_83 = arith.constant 8 : index
    %c1_84 = arith.constant 1 : index
    %c0_85 = arith.constant 0 : index
    %80 = vector.load %arg14[%c8_83, %c1_84, %c0_85] : memref<10x10x16xf32, #tpu.memory_space<vmem>>, vector<1x8x16xf32>
    %81 = vector.shape_cast %80 : vector<1x8x16xf32> to vector<8x16xf32>
    %82 = vector.shape_cast %79 : vector<8x16xf32> to vector<1x8x16xf32>
    tpu.vector_store %arg14[%c8_83, %c1_84, %c0_85], %82 {strides = array<i32>} : memref<10x10x16xf32, #tpu.memory_space<vmem>>, vector<1x8x16xf32>,
    %c56_86 = arith.constant 56 : index
    %c0_87 = arith.constant 0 : index
    %83 = vector.load %arg13[%c56_86, %c0_87] : memref<64x16xf32, #tpu.memory_space<vmem>>, vector<8x16xf32>
    %c8_88 = arith.constant 8 : index
    %c1_89 = arith.constant 1 : index
    %c0_90 = arith.constant 0 : index
    %84 = vector.load %arg15[%c8_88, %c1_89, %c0_90] : memref<10x10x16xf32, #tpu.memory_space<vmem>>, vector<1x8x16xf32>
    %85 = vector.shape_cast %84 : vector<1x8x16xf32> to vector<8x16xf32>
    %86 = vector.shape_cast %83 : vector<8x16xf32> to vector<1x8x16xf32>
    tpu.vector_store %arg15[%c8_88, %c1_89, %c0_90], %86 {strides = array<i32>} : memref<10x10x16xf32, #tpu.memory_space<vmem>>, vector<1x8x16xf32>,
    %87 = tpu.iota {dimensions = array<i32: 0>} : vector<4x8xi32>
    %88 = tpu.iota {dimensions = array<i32: 1>} : vector<4x8xi32>
    %c2_i32 = arith.constant 2 : i32
    %89 = vector.broadcast %c2_i32 : i32 to vector<4x8xi32>
    %90 = arith.muli %89, %87 : vector<4x8xi32>
    %91 = arith.cmpi eq, %88, %90 : vector<4x8xi32>
    %cst_91 = arith.constant 1.000000e+00 : f32
    %cst_92 = arith.constant 0.000000e+00 : f32
    %92 = vector.broadcast %cst_91 : f32 to vector<4x8xf32>
    %93 = vector.broadcast %cst_92 : f32 to vector<4x8xf32>
    %94 = arith.select %91, %92, %93 : vector<4x8xi1>, vector<4x8xf32>
    %c0_93 = arith.constant 0 : index
    %c0_94 = arith.constant 0 : index
    %c0_95 = arith.constant 0 : index
    %95 = vector.load %arg15[%c0_93, %c0_94, %c0_95] : memref<10x10x16xf32, #tpu.memory_space<vmem>>, vector<1x8x16xf32>
    %96 = vector.shape_cast %95 : vector<1x8x16xf32> to vector<8x16xf32>
    %c0_96 = arith.constant 0 : index
    %c0_97 = arith.constant 0 : index
    %97 = vector.load %arg4[%c0_96, %c0_97] : memref<9x16xf32, #tpu.memory_space<vmem>>, vector<1x16xf32>
    %98 = vector.broadcast %97 : vector<1x16xf32> to vector<8x16xf32>
    %99 = arith.mulf %96, %98 : vector<8x16xf32>
    %c0_98 = arith.constant 0 : index
    %c0_99 = arith.constant 0 : index
    %c0_100 = arith.constant 0 : index
    %100 = vector.load %arg14[%c0_98, %c0_99, %c0_100] : memref<10x10x16xf32, #tpu.memory_space<vmem>>, vector<1x8x16xf32>
    %101 = vector.shape_cast %100 : vector<1x8x16xf32> to vector<8x16xf32>
    %c0_101 = arith.constant 0 : index
    %c0_102 = arith.constant 0 : index
    %102 = vector.load %arg8[%c0_101, %c0_102] : memref<9x16xf32, #tpu.memory_space<vmem>>, vector<1x16xf32>
    %103 = vector.broadcast %102 : vector<1x16xf32> to vector<8x16xf32>
    %104 = arith.mulf %101, %103 : vector<8x16xf32>
    %c0_103 = arith.constant 0 : index
    %c1_104 = arith.constant 1 : index
    %c0_105 = arith.constant 0 : index
    %105 = vector.load %arg15[%c0_103, %c1_104, %c0_105] : memref<10x10x16xf32, #tpu.memory_space<vmem>>, vector<1x8x16xf32>
    %106 = vector.shape_cast %105 : vector<1x8x16xf32> to vector<8x16xf32>
    %c1_106 = arith.constant 1 : index
    %c0_107 = arith.constant 0 : index
    %107 = vector.load %arg4[%c1_106, %c0_107] : memref<9x16xf32, #tpu.memory_space<vmem>>, vector<1x16xf32>
    %108 = vector.broadcast %107 : vector<1x16xf32> to vector<8x16xf32>
    %109 = arith.mulf %106, %108 : vector<8x16xf32>
    %110 = arith.addf %99, %109 : vector<8x16xf32>
    %c0_108 = arith.constant 0 : index
    %c1_109 = arith.constant 1 : index
    %c0_110 = arith.constant 0 : index
    %111 = vector.load %arg14[%c0_108, %c1_109, %c0_110] : memref<10x10x16xf32, #tpu.memory_space<vmem>>, vector<1x8x16xf32>
    %112 = vector.shape_cast %111 : vector<1x8x16xf32> to vector<8x16xf32>
    %c1_111 = arith.constant 1 : index
    %c0_112 = arith.constant 0 : index
    %113 = vector.load %arg8[%c1_111, %c0_112] : memref<9x16xf32, #tpu.memory_space<vmem>>, vector<1x16xf32>
    %114 = vector.broadcast %113 : vector<1x16xf32> to vector<8x16xf32>
    %115 = arith.mulf %112, %114 : vector<8x16xf32>
    %116 = arith.addf %104, %115 : vector<8x16xf32>
    %c0_113 = arith.constant 0 : index
    %c2_114 = arith.constant 2 : index
    %c0_115 = arith.constant 0 : index
    %117 = vector.load %arg15[%c0_113, %c2_114, %c0_115] : memref<10x10x16xf32, #tpu.memory_space<vmem>>, vector<1x8x16xf32>
    %118 = vector.shape_cast %117 : vector<1x8x16xf32> to vector<8x16xf32>
    %c2_116 = arith.constant 2 : index
    %c0_117 = arith.constant 0 : index
    %119 = vector.load %arg4[%c2_116, %c0_117] : memref<9x16xf32, #tpu.memory_space<vmem>>, vector<1x16xf32>
    %120 = vector.broadcast %119 : vector<1x16xf32> to vector<8x16xf32>
    %121 = arith.mulf %118, %120 : vector<8x16xf32>
    %122 = arith.addf %110, %121 : vector<8x16xf32>
    %c0_118 = arith.constant 0 : index
    %c2_119 = arith.constant 2 : index
    %c0_120 = arith.constant 0 : index
    %123 = vector.load %arg14[%c0_118, %c2_119, %c0_120] : memref<10x10x16xf32, #tpu.memory_space<vmem>>, vector<1x8x16xf32>
    %124 = vector.shape_cast %123 : vector<1x8x16xf32> to vector<8x16xf32>
    %c2_121 = arith.constant 2 : index
    %c0_122 = arith.constant 0 : index
    %125 = vector.load %arg8[%c2_121, %c0_122] : memref<9x16xf32, #tpu.memory_space<vmem>>, vector<1x16xf32>
    %126 = vector.broadcast %125 : vector<1x16xf32> to vector<8x16xf32>
    %127 = arith.mulf %124, %126 : vector<8x16xf32>
    %128 = arith.addf %116, %127 : vector<8x16xf32>
    %c1_123 = arith.constant 1 : index
    %c0_124 = arith.constant 0 : index
    %c0_125 = arith.constant 0 : index
    %129 = vector.load %arg15[%c1_123, %c0_124, %c0_125] : memref<10x10x16xf32, #tpu.memory_space<vmem>>, vector<1x8x16xf32>
    %130 = vector.shape_cast %129 : vector<1x8x16xf32> to vector<8x16xf32>
    %c3_126 = arith.constant 3 : index
    %c0_127 = arith.constant 0 : index
    %131 = vector.load %arg4[%c3_126, %c0_127] : memref<9x16xf32, #tpu.memory_space<vmem>>, vector<1x16xf32>
    %132 = vector.broadcast %131 : vector<1x16xf32> to vector<8x16xf32>
    %133 = arith.mulf %130, %132 : vector<8x16xf32>
    %134 = arith.addf %122, %133 : vector<8x16xf32>
    %c1_128 = arith.constant 1 : index
    %c0_129 = arith.constant 0 : index
    %c0_130 = arith.constant 0 : index
    %135 = vector.load %arg14[%c1_128, %c0_129, %c0_130] : memref<10x10x16xf32, #tpu.memory_space<vmem>>, vector<1x8x16xf32>
    %136 = vector.shape_cast %135 : vector<1x8x16xf32> to vector<8x16xf32>
    %c3_131 = arith.constant 3 : index
    %c0_132 = arith.constant 0 : index
    %137 = vector.load %arg8[%c3_131, %c0_132] : memref<9x16xf32, #tpu.memory_space<vmem>>, vector<1x16xf32>
    %138 = vector.broadcast %137 : vector<1x16xf32> to vector<8x16xf32>
    %139 = arith.mulf %136, %138 : vector<8x16xf32>
    %140 = arith.addf %128, %139 : vector<8x16xf32>
    %c1_133 = arith.constant 1 : index
    %c1_134 = arith.constant 1 : index
    %c0_135 = arith.constant 0 : index
    %141 = vector.load %arg15[%c1_133, %c1_134, %c0_135] : memref<10x10x16xf32, #tpu.memory_space<vmem>>, vector<1x8x16xf32>
    %142 = vector.shape_cast %141 : vector<1x8x16xf32> to vector<8x16xf32>
    %c4_136 = arith.constant 4 : index
    %c0_137 = arith.constant 0 : index
    %143 = vector.load %arg4[%c4_136, %c0_137] : memref<9x16xf32, #tpu.memory_space<vmem>>, vector<1x16xf32>
    %144 = vector.broadcast %143 : vector<1x16xf32> to vector<8x16xf32>
    %145 = arith.mulf %142, %144 : vector<8x16xf32>
    %146 = arith.addf %134, %145 : vector<8x16xf32>
    %c1_138 = arith.constant 1 : index
    %c1_139 = arith.constant 1 : index
    %c0_140 = arith.constant 0 : index
    %147 = vector.load %arg14[%c1_138, %c1_139, %c0_140] : memref<10x10x16xf32, #tpu.memory_space<vmem>>, vector<1x8x16xf32>
    %148 = vector.shape_cast %147 : vector<1x8x16xf32> to vector<8x16xf32>
    %c4_141 = arith.constant 4 : index
    %c0_142 = arith.constant 0 : index
    %149 = vector.load %arg8[%c4_141, %c0_142] : memref<9x16xf32, #tpu.memory_space<vmem>>, vector<1x16xf32>
    %150 = vector.broadcast %149 : vector<1x16xf32> to vector<8x16xf32>
    %151 = arith.mulf %148, %150 : vector<8x16xf32>
    %152 = arith.addf %140, %151 : vector<8x16xf32>
    %c1_143 = arith.constant 1 : index
    %c2_144 = arith.constant 2 : index
    %c0_145 = arith.constant 0 : index
    %153 = vector.load %arg15[%c1_143, %c2_144, %c0_145] : memref<10x10x16xf32, #tpu.memory_space<vmem>>, vector<1x8x16xf32>
    %154 = vector.shape_cast %153 : vector<1x8x16xf32> to vector<8x16xf32>
    %c5_146 = arith.constant 5 : index
    %c0_147 = arith.constant 0 : index
    %155 = vector.load %arg4[%c5_146, %c0_147] : memref<9x16xf32, #tpu.memory_space<vmem>>, vector<1x16xf32>
    %156 = vector.broadcast %155 : vector<1x16xf32> to vector<8x16xf32>
    %157 = arith.mulf %154, %156 : vector<8x16xf32>
    %158 = arith.addf %146, %157 : vector<8x16xf32>
    %c1_148 = arith.constant 1 : index
    %c2_149 = arith.constant 2 : index
    %c0_150 = arith.constant 0 : index
    %159 = vector.load %arg14[%c1_148, %c2_149, %c0_150] : memref<10x10x16xf32, #tpu.memory_space<vmem>>, vector<1x8x16xf32>
    %160 = vector.shape_cast %159 : vector<1x8x16xf32> to vector<8x16xf32>
    %c5_151 = arith.constant 5 : index
    %c0_152 = arith.constant 0 : index
    %161 = vector.load %arg8[%c5_151, %c0_152] : memref<9x16xf32, #tpu.memory_space<vmem>>, vector<1x16xf32>
    %162 = vector.broadcast %161 : vector<1x16xf32> to vector<8x16xf32>
    %163 = arith.mulf %160, %162 : vector<8x16xf32>
    %164 = arith.addf %152, %163 : vector<8x16xf32>
    %c2_153 = arith.constant 2 : index
    %c0_154 = arith.constant 0 : index
    %c0_155 = arith.constant 0 : index
    %165 = vector.load %arg15[%c2_153, %c0_154, %c0_155] : memref<10x10x16xf32, #tpu.memory_space<vmem>>, vector<1x8x16xf32>
    %166 = vector.shape_cast %165 : vector<1x8x16xf32> to vector<8x16xf32>
    %c6_156 = arith.constant 6 : index
    %c0_157 = arith.constant 0 : index
    %167 = vector.load %arg4[%c6_156, %c0_157] : memref<9x16xf32, #tpu.memory_space<vmem>>, vector<1x16xf32>
    %168 = vector.broadcast %167 : vector<1x16xf32> to vector<8x16xf32>
    %169 = arith.mulf %166, %168 : vector<8x16xf32>
    %170 = arith.addf %158, %169 : vector<8x16xf32>
    %c2_158 = arith.constant 2 : index
    %c0_159 = arith.constant 0 : index
    %c0_160 = arith.constant 0 : index
    %171 = vector.load %arg14[%c2_158, %c0_159, %c0_160] : memref<10x10x16xf32, #tpu.memory_space<vmem>>, vector<1x8x16xf32>
    %172 = vector.shape_cast %171 : vector<1x8x16xf32> to vector<8x16xf32>
    %c6_161 = arith.constant 6 : index
    %c0_162 = arith.constant 0 : index
    %173 = vector.load %arg8[%c6_161, %c0_162] : memref<9x16xf32, #tpu.memory_space<vmem>>, vector<1x16xf32>
    %174 = vector.broadcast %173 : vector<1x16xf32> to vector<8x16xf32>
    %175 = arith.mulf %172, %174 : vector<8x16xf32>
    %176 = arith.addf %164, %175 : vector<8x16xf32>
    %c2_163 = arith.constant 2 : index
    %c1_164 = arith.constant 1 : index
    %c0_165 = arith.constant 0 : index
    %177 = vector.load %arg15[%c2_163, %c1_164, %c0_165] : memref<10x10x16xf32, #tpu.memory_space<vmem>>, vector<1x8x16xf32>
    %178 = vector.shape_cast %177 : vector<1x8x16xf32> to vector<8x16xf32>
    %c7_166 = arith.constant 7 : index
    %c0_167 = arith.constant 0 : index
    %179 = vector.load %arg4[%c7_166, %c0_167] : memref<9x16xf32, #tpu.memory_space<vmem>>, vector<1x16xf32>
    %180 = vector.broadcast %179 : vector<1x16xf32> to vector<8x16xf32>
    %181 = arith.mulf %178, %180 : vector<8x16xf32>
    %182 = arith.addf %170, %181 : vector<8x16xf32>
    %c2_168 = arith.constant 2 : index
    %c1_169 = arith.constant 1 : index
    %c0_170 = arith.constant 0 : index
    %183 = vector.load %arg14[%c2_168, %c1_169, %c0_170] : memref<10x10x16xf32, #tpu.memory_space<vmem>>, vector<1x8x16xf32>
    %184 = vector.shape_cast %183 : vector<1x8x16xf32> to vector<8x16xf32>
    %c7_171 = arith.constant 7 : index
    %c0_172 = arith.constant 0 : index
    %185 = vector.load %arg8[%c7_171, %c0_172] : memref<9x16xf32, #tpu.memory_space<vmem>>, vector<1x16xf32>
    %186 = vector.broadcast %185 : vector<1x16xf32> to vector<8x16xf32>
    %187 = arith.mulf %184, %186 : vector<8x16xf32>
    %188 = arith.addf %176, %187 : vector<8x16xf32>
    %c2_173 = arith.constant 2 : index
    %c2_174 = arith.constant 2 : index
    %c0_175 = arith.constant 0 : index
    %189 = vector.load %arg15[%c2_173, %c2_174, %c0_175] : memref<10x10x16xf32, #tpu.memory_space<vmem>>, vector<1x8x16xf32>
    %190 = vector.shape_cast %189 : vector<1x8x16xf32> to vector<8x16xf32>
    %c8_176 = arith.constant 8 : index
    %c0_177 = arith.constant 0 : index
    %191 = vector.load %arg4[%c8_176, %c0_177] : memref<9x16xf32, #tpu.memory_space<vmem>>, vector<1x16xf32>
    %192 = vector.broadcast %191 : vector<1x16xf32> to vector<8x16xf32>
    %193 = arith.mulf %190, %192 : vector<8x16xf32>
    %194 = arith.addf %182, %193 : vector<8x16xf32>
    %c2_178 = arith.constant 2 : index
    %c2_179 = arith.constant 2 : index
    %c0_180 = arith.constant 0 : index
    %195 = vector.load %arg14[%c2_178, %c2_179, %c0_180] : memref<10x10x16xf32, #tpu.memory_space<vmem>>, vector<1x8x16xf32>
    %196 = vector.shape_cast %195 : vector<1x8x16xf32> to vector<8x16xf32>
    %c8_181 = arith.constant 8 : index
    %c0_182 = arith.constant 0 : index
    %197 = vector.load %arg8[%c8_181, %c0_182] : memref<9x16xf32, #tpu.memory_space<vmem>>, vector<1x16xf32>
    %198 = vector.broadcast %197 : vector<1x16xf32> to vector<8x16xf32>
    %199 = arith.mulf %196, %198 : vector<8x16xf32>
    %200 = arith.addf %188, %199 : vector<8x16xf32>
    %cst_183 = arith.constant dense<0.000000e+00> : vector<4x16xf32>
    %201 = tpu.matmul %94, %194, %cst_183 {dimension_numbers = #tpu.dot_dimension_numbers<[1], [0], [0], [1], [0, 0, 1, 1], [], []>, precision = #tpu.contract_precision<fp32>} : vector<4x8xf32>, vector<8x16xf32>, vector<4x16xf32> -> vector<4x16xf32>
    %c0_184 = arith.constant 0 : index
    %c0_185 = arith.constant 0 : index
    %202 = vector.load %arg16[%c0_184, %c0_185] : memref<16x16xf32, #tpu.memory_space<vmem>>, vector<4x16xf32>
    tpu.vector_store %arg16[%c0_184, %c0_185], %201 {strides = array<i32>} : memref<16x16xf32, #tpu.memory_space<vmem>>, vector<4x16xf32>,
    %cst_186 = arith.constant dense<0.000000e+00> : vector<4x16xf32>
    %203 = tpu.matmul %94, %200, %cst_186 {dimension_numbers = #tpu.dot_dimension_numbers<[1], [0], [0], [1], [0, 0, 1, 1], [], []>, precision = #tpu.contract_precision<fp32>} : vector<4x8xf32>, vector<8x16xf32>, vector<4x16xf32> -> vector<4x16xf32>
    %c0_187 = arith.constant 0 : index
    %c0_188 = arith.constant 0 : index
    %204 = vector.load %arg17[%c0_187, %c0_188] : memref<16x16xf32, #tpu.memory_space<vmem>>, vector<4x16xf32>
    tpu.vector_store %arg17[%c0_187, %c0_188], %203 {strides = array<i32>} : memref<16x16xf32, #tpu.memory_space<vmem>>, vector<4x16xf32>,
    %c2_189 = arith.constant 2 : index
    %c0_190 = arith.constant 0 : index
    %c0_191 = arith.constant 0 : index
    %205 = vector.load %arg15[%c2_189, %c0_190, %c0_191] : memref<10x10x16xf32, #tpu.memory_space<vmem>>, vector<1x8x16xf32>
    %206 = vector.shape_cast %205 : vector<1x8x16xf32> to vector<8x16xf32>
    %c0_192 = arith.constant 0 : index
    %c0_193 = arith.constant 0 : index
    %207 = vector.load %arg4[%c0_192, %c0_193] : memref<9x16xf32, #tpu.memory_space<vmem>>, vector<1x16xf32>
    %208 = vector.broadcast %207 : vector<1x16xf32> to vector<8x16xf32>
    %209 = arith.mulf %206, %208 : vector<8x16xf32>
    %c2_194 = arith.constant 2 : index
    %c0_195 = arith.constant 0 : index
    %c0_196 = arith.constant 0 : index
    %210 = vector.load %arg14[%c2_194, %c0_195, %c0_196] : memref<10x10x16xf32, #tpu.memory_space<vmem>>, vector<1x8x16xf32>
    %211 = vector.shape_cast %210 : vector<1x8x16xf32> to vector<8x16xf32>
    %c0_197 = arith.constant 0 : index
    %c0_198 = arith.constant 0 : index
    %212 = vector.load %arg8[%c0_197, %c0_198] : memref<9x16xf32, #tpu.memory_space<vmem>>, vector<1x16xf32>
    %213 = vector.broadcast %212 : vector<1x16xf32> to vector<8x16xf32>
    %214 = arith.mulf %211, %213 : vector<8x16xf32>
    %c2_199 = arith.constant 2 : index
    %c1_200 = arith.constant 1 : index
    %c0_201 = arith.constant 0 : index
    %215 = vector.load %arg15[%c2_199, %c1_200, %c0_201] : memref<10x10x16xf32, #tpu.memory_space<vmem>>, vector<1x8x16xf32>
    %216 = vector.shape_cast %215 : vector<1x8x16xf32> to vector<8x16xf32>
    %c1_202 = arith.constant 1 : index
    %c0_203 = arith.constant 0 : index
    %217 = vector.load %arg4[%c1_202, %c0_203] : memref<9x16xf32, #tpu.memory_space<vmem>>, vector<1x16xf32>
    %218 = vector.broadcast %217 : vector<1x16xf32> to vector<8x16xf32>
    %219 = arith.mulf %216, %218 : vector<8x16xf32>
    %220 = arith.addf %209, %219 : vector<8x16xf32>
    %c2_204 = arith.constant 2 : index
    %c1_205 = arith.constant 1 : index
    %c0_206 = arith.constant 0 : index
    %221 = vector.load %arg14[%c2_204, %c1_205, %c0_206] : memref<10x10x16xf32, #tpu.memory_space<vmem>>, vector<1x8x16xf32>
    %222 = vector.shape_cast %221 : vector<1x8x16xf32> to vector<8x16xf32>
    %c1_207 = arith.constant 1 : index
    %c0_208 = arith.constant 0 : index
    %223 = vector.load %arg8[%c1_207, %c0_208] : memref<9x16xf32, #tpu.memory_space<vmem>>, vector<1x16xf32>
    %224 = vector.broadcast %223 : vector<1x16xf32> to vector<8x16xf32>
    %225 = arith.mulf %222, %224 : vector<8x16xf32>
    %226 = arith.addf %214, %225 : vector<8x16xf32>
    %c2_209 = arith.constant 2 : index
    %c2_210 = arith.constant 2 : index
    %c0_211 = arith.constant 0 : index
    %227 = vector.load %arg15[%c2_209, %c2_210, %c0_211] : memref<10x10x16xf32, #tpu.memory_space<vmem>>, vector<1x8x16xf32>
    %228 = vector.shape_cast %227 : vector<1x8x16xf32> to vector<8x16xf32>
    %c2_212 = arith.constant 2 : index
    %c0_213 = arith.constant 0 : index
    %229 = vector.load %arg4[%c2_212, %c0_213] : memref<9x16xf32, #tpu.memory_space<vmem>>, vector<1x16xf32>
    %230 = vector.broadcast %229 : vector<1x16xf32> to vector<8x16xf32>
    %231 = arith.mulf %228, %230 : vector<8x16xf32>
    %232 = arith.addf %220, %231 : vector<8x16xf32>
    %c2_214 = arith.constant 2 : index
    %c2_215 = arith.constant 2 : index
    %c0_216 = arith.constant 0 : index
    %233 = vector.load %arg14[%c2_214, %c2_215, %c0_216] : memref<10x10x16xf32, #tpu.memory_space<vmem>>, vector<1x8x16xf32>
    %234 = vector.shape_cast %233 : vector<1x8x16xf32> to vector<8x16xf32>
    %c2_217 = arith.constant 2 : index
    %c0_218 = arith.constant 0 : index
    %235 = vector.load %arg8[%c2_217, %c0_218] : memref<9x16xf32, #tpu.memory_space<vmem>>, vector<1x16xf32>
    %236 = vector.broadcast %235 : vector<1x16xf32> to vector<8x16xf32>
    %237 = arith.mulf %234, %236 : vector<8x16xf32>
    %238 = arith.addf %226, %237 : vector<8x16xf32>
    %c3_219 = arith.constant 3 : index
    %c0_220 = arith.constant 0 : index
    %c0_221 = arith.constant 0 : index
    %239 = vector.load %arg15[%c3_219, %c0_220, %c0_221] : memref<10x10x16xf32, #tpu.memory_space<vmem>>, vector<1x8x16xf32>
    %240 = vector.shape_cast %239 : vector<1x8x16xf32> to vector<8x16xf32>
    %c3_222 = arith.constant 3 : index
    %c0_223 = arith.constant 0 : index
    %241 = vector.load %arg4[%c3_222, %c0_223] : memref<9x16xf32, #tpu.memory_space<vmem>>, vector<1x16xf32>
    %242 = vector.broadcast %241 : vector<1x16xf32> to vector<8x16xf32>
    %243 = arith.mulf %240, %242 : vector<8x16xf32>
    %244 = arith.addf %232, %243 : vector<8x16xf32>
    %c3_224 = arith.constant 3 : index
    %c0_225 = arith.constant 0 : index
    %c0_226 = arith.constant 0 : index
    %245 = vector.load %arg14[%c3_224, %c0_225, %c0_226] : memref<10x10x16xf32, #tpu.memory_space<vmem>>, vector<1x8x16xf32>
    %246 = vector.shape_cast %245 : vector<1x8x16xf32> to vector<8x16xf32>
    %c3_227 = arith.constant 3 : index
    %c0_228 = arith.constant 0 : index
    %247 = vector.load %arg8[%c3_227, %c0_228] : memref<9x16xf32, #tpu.memory_space<vmem>>, vector<1x16xf32>
    %248 = vector.broadcast %247 : vector<1x16xf32> to vector<8x16xf32>
    %249 = arith.mulf %246, %248 : vector<8x16xf32>
    %250 = arith.addf %238, %249 : vector<8x16xf32>
    %c3_229 = arith.constant 3 : index
    %c1_230 = arith.constant 1 : index
    %c0_231 = arith.constant 0 : index
    %251 = vector.load %arg15[%c3_229, %c1_230, %c0_231] : memref<10x10x16xf32, #tpu.memory_space<vmem>>, vector<1x8x16xf32>
    %252 = vector.shape_cast %251 : vector<1x8x16xf32> to vector<8x16xf32>
    %c4_232 = arith.constant 4 : index
    %c0_233 = arith.constant 0 : index
    %253 = vector.load %arg4[%c4_232, %c0_233] : memref<9x16xf32, #tpu.memory_space<vmem>>, vector<1x16xf32>
    %254 = vector.broadcast %253 : vector<1x16xf32> to vector<8x16xf32>
    %255 = arith.mulf %252, %254 : vector<8x16xf32>
    %256 = arith.addf %244, %255 : vector<8x16xf32>
    %c3_234 = arith.constant 3 : index
    %c1_235 = arith.constant 1 : index
    %c0_236 = arith.constant 0 : index
    %257 = vector.load %arg14[%c3_234, %c1_235, %c0_236] : memref<10x10x16xf32, #tpu.memory_space<vmem>>, vector<1x8x16xf32>
    %258 = vector.shape_cast %257 : vector<1x8x16xf32> to vector<8x16xf32>
    %c4_237 = arith.constant 4 : index
    %c0_238 = arith.constant 0 : index
    %259 = vector.load %arg8[%c4_237, %c0_238] : memref<9x16xf32, #tpu.memory_space<vmem>>, vector<1x16xf32>
    %260 = vector.broadcast %259 : vector<1x16xf32> to vector<8x16xf32>
    %261 = arith.mulf %258, %260 : vector<8x16xf32>
    %262 = arith.addf %250, %261 : vector<8x16xf32>
    %c3_239 = arith.constant 3 : index
    %c2_240 = arith.constant 2 : index
    %c0_241 = arith.constant 0 : index
    %263 = vector.load %arg15[%c3_239, %c2_240, %c0_241] : memref<10x10x16xf32, #tpu.memory_space<vmem>>, vector<1x8x16xf32>
    %264 = vector.shape_cast %263 : vector<1x8x16xf32> to vector<8x16xf32>
    %c5_242 = arith.constant 5 : index
    %c0_243 = arith.constant 0 : index
    %265 = vector.load %arg4[%c5_242, %c0_243] : memref<9x16xf32, #tpu.memory_space<vmem>>, vector<1x16xf32>
    %266 = vector.broadcast %265 : vector<1x16xf32> to vector<8x16xf32>
    %267 = arith.mulf %264, %266 : vector<8x16xf32>
    %268 = arith.addf %256, %267 : vector<8x16xf32>
    %c3_244 = arith.constant 3 : index
    %c2_245 = arith.constant 2 : index
    %c0_246 = arith.constant 0 : index
    %269 = vector.load %arg14[%c3_244, %c2_245, %c0_246] : memref<10x10x16xf32, #tpu.memory_space<vmem>>, vector<1x8x16xf32>
    %270 = vector.shape_cast %269 : vector<1x8x16xf32> to vector<8x16xf32>
    %c5_247 = arith.constant 5 : index
    %c0_248 = arith.constant 0 : index
    %271 = vector.load %arg8[%c5_247, %c0_248] : memref<9x16xf32, #tpu.memory_space<vmem>>, vector<1x16xf32>
    %272 = vector.broadcast %271 : vector<1x16xf32> to vector<8x16xf32>
    %273 = arith.mulf %270, %272 : vector<8x16xf32>
    %274 = arith.addf %262, %273 : vector<8x16xf32>
    %c4_249 = arith.constant 4 : index
    %c0_250 = arith.constant 0 : index
    %c0_251 = arith.constant 0 : index
    %275 = vector.load %arg15[%c4_249, %c0_250, %c0_251] : memref<10x10x16xf32, #tpu.memory_space<vmem>>, vector<1x8x16xf32>
    %276 = vector.shape_cast %275 : vector<1x8x16xf32> to vector<8x16xf32>
    %c6_252 = arith.constant 6 : index
    %c0_253 = arith.constant 0 : index
    %277 = vector.load %arg4[%c6_252, %c0_253] : memref<9x16xf32, #tpu.memory_space<vmem>>, vector<1x16xf32>
    %278 = vector.broadcast %277 : vector<1x16xf32> to vector<8x16xf32>
    %279 = arith.mulf %276, %278 : vector<8x16xf32>
    %280 = arith.addf %268, %279 : vector<8x16xf32>
    %c4_254 = arith.constant 4 : index
    %c0_255 = arith.constant 0 : index
    %c0_256 = arith.constant 0 : index
    %281 = vector.load %arg14[%c4_254, %c0_255, %c0_256] : memref<10x10x16xf32, #tpu.memory_space<vmem>>, vector<1x8x16xf32>
    %282 = vector.shape_cast %281 : vector<1x8x16xf32> to vector<8x16xf32>
    %c6_257 = arith.constant 6 : index
    %c0_258 = arith.constant 0 : index
    %283 = vector.load %arg8[%c6_257, %c0_258] : memref<9x16xf32, #tpu.memory_space<vmem>>, vector<1x16xf32>
    %284 = vector.broadcast %283 : vector<1x16xf32> to vector<8x16xf32>
    %285 = arith.mulf %282, %284 : vector<8x16xf32>
    %286 = arith.addf %274, %285 : vector<8x16xf32>
    %c4_259 = arith.constant 4 : index
    %c1_260 = arith.constant 1 : index
    %c0_261 = arith.constant 0 : index
    %287 = vector.load %arg15[%c4_259, %c1_260, %c0_261] : memref<10x10x16xf32, #tpu.memory_space<vmem>>, vector<1x8x16xf32>
    %288 = vector.shape_cast %287 : vector<1x8x16xf32> to vector<8x16xf32>
    %c7_262 = arith.constant 7 : index
    %c0_263 = arith.constant 0 : index
    %289 = vector.load %arg4[%c7_262, %c0_263] : memref<9x16xf32, #tpu.memory_space<vmem>>, vector<1x16xf32>
    %290 = vector.broadcast %289 : vector<1x16xf32> to vector<8x16xf32>
    %291 = arith.mulf %288, %290 : vector<8x16xf32>
    %292 = arith.addf %280, %291 : vector<8x16xf32>
    %c4_264 = arith.constant 4 : index
    %c1_265 = arith.constant 1 : index
    %c0_266 = arith.constant 0 : index
    %293 = vector.load %arg14[%c4_264, %c1_265, %c0_266] : memref<10x10x16xf32, #tpu.memory_space<vmem>>, vector<1x8x16xf32>
    %294 = vector.shape_cast %293 : vector<1x8x16xf32> to vector<8x16xf32>
    %c7_267 = arith.constant 7 : index
    %c0_268 = arith.constant 0 : index
    %295 = vector.load %arg8[%c7_267, %c0_268] : memref<9x16xf32, #tpu.memory_space<vmem>>, vector<1x16xf32>
    %296 = vector.broadcast %295 : vector<1x16xf32> to vector<8x16xf32>
    %297 = arith.mulf %294, %296 : vector<8x16xf32>
    %298 = arith.addf %286, %297 : vector<8x16xf32>
    %c4_269 = arith.constant 4 : index
    %c2_270 = arith.constant 2 : index
    %c0_271 = arith.constant 0 : index
    %299 = vector.load %arg15[%c4_269, %c2_270, %c0_271] : memref<10x10x16xf32, #tpu.memory_space<vmem>>, vector<1x8x16xf32>
    %300 = vector.shape_cast %299 : vector<1x8x16xf32> to vector<8x16xf32>
    %c8_272 = arith.constant 8 : index
    %c0_273 = arith.constant 0 : index
    %301 = vector.load %arg4[%c8_272, %c0_273] : memref<9x16xf32, #tpu.memory_space<vmem>>, vector<1x16xf32>
    %302 = vector.broadcast %301 : vector<1x16xf32> to vector<8x16xf32>
    %303 = arith.mulf %300, %302 : vector<8x16xf32>
    %304 = arith.addf %292, %303 : vector<8x16xf32>
    %c4_274 = arith.constant 4 : index
    %c2_275 = arith.constant 2 : index
    %c0_276 = arith.constant 0 : index
    %305 = vector.load %arg14[%c4_274, %c2_275, %c0_276] : memref<10x10x16xf32, #tpu.memory_space<vmem>>, vector<1x8x16xf32>
    %306 = vector.shape_cast %305 : vector<1x8x16xf32> to vector<8x16xf32>
    %c8_277 = arith.constant 8 : index
    %c0_278 = arith.constant 0 : index
    %307 = vector.load %arg8[%c8_277, %c0_278] : memref<9x16xf32, #tpu.memory_space<vmem>>, vector<1x16xf32>
    %308 = vector.broadcast %307 : vector<1x16xf32> to vector<8x16xf32>
    %309 = arith.mulf %306, %308 : vector<8x16xf32>
    %310 = arith.addf %298, %309 : vector<8x16xf32>
    %cst_279 = arith.constant dense<0.000000e+00> : vector<4x16xf32>
    %311 = tpu.matmul %94, %304, %cst_279 {dimension_numbers = #tpu.dot_dimension_numbers<[1], [0], [0], [1], [0, 0, 1, 1], [], []>, precision = #tpu.contract_precision<fp32>} : vector<4x8xf32>, vector<8x16xf32>, vector<4x16xf32> -> vector<4x16xf32>
    %c4_280 = arith.constant 4 : index
    %c0_281 = arith.constant 0 : index
    %312 = vector.load %arg16[%c4_280, %c0_281] : memref<16x16xf32, #tpu.memory_space<vmem>>, vector<4x16xf32>
    tpu.vector_store %arg16[%c4_280, %c0_281], %311 {strides = array<i32>} : memref<16x16xf32, #tpu.memory_space<vmem>>, vector<4x16xf32>,
    %cst_282 = arith.constant dense<0.000000e+00> : vector<4x16xf32>
    %313 = tpu.matmul %94, %310, %cst_282 {dimension_numbers = #tpu.dot_dimension_numbers<[1], [0], [0], [1], [0, 0, 1, 1], [], []>, precision = #tpu.contract_precision<fp32>} : vector<4x8xf32>, vector<8x16xf32>, vector<4x16xf32> -> vector<4x16xf32>
    %c4_283 = arith.constant 4 : index
    %c0_284 = arith.constant 0 : index
    %314 = vector.load %arg17[%c4_283, %c0_284] : memref<16x16xf32, #tpu.memory_space<vmem>>, vector<4x16xf32>
    tpu.vector_store %arg17[%c4_283, %c0_284], %313 {strides = array<i32>} : memref<16x16xf32, #tpu.memory_space<vmem>>, vector<4x16xf32>,
    %c4_285 = arith.constant 4 : index
    %c0_286 = arith.constant 0 : index
    %c0_287 = arith.constant 0 : index
    %315 = vector.load %arg15[%c4_285, %c0_286, %c0_287] : memref<10x10x16xf32, #tpu.memory_space<vmem>>, vector<1x8x16xf32>
    %316 = vector.shape_cast %315 : vector<1x8x16xf32> to vector<8x16xf32>
    %c0_288 = arith.constant 0 : index
    %c0_289 = arith.constant 0 : index
    %317 = vector.load %arg4[%c0_288, %c0_289] : memref<9x16xf32, #tpu.memory_space<vmem>>, vector<1x16xf32>
    %318 = vector.broadcast %317 : vector<1x16xf32> to vector<8x16xf32>
    %319 = arith.mulf %316, %318 : vector<8x16xf32>
    %c4_290 = arith.constant 4 : index
    %c0_291 = arith.constant 0 : index
    %c0_292 = arith.constant 0 : index
    %320 = vector.load %arg14[%c4_290, %c0_291, %c0_292] : memref<10x10x16xf32, #tpu.memory_space<vmem>>, vector<1x8x16xf32>
    %321 = vector.shape_cast %320 : vector<1x8x16xf32> to vector<8x16xf32>
    %c0_293 = arith.constant 0 : index
    %c0_294 = arith.constant 0 : index
    %322 = vector.load %arg8[%c0_293, %c0_294] : memref<9x16xf32, #tpu.memory_space<vmem>>, vector<1x16xf32>
    %323 = vector.broadcast %322 : vector<1x16xf32> to vector<8x16xf32>
    %324 = arith.mulf %321, %323 : vector<8x16xf32>
    %c4_295 = arith.constant 4 : index
    %c1_296 = arith.constant 1 : index
    %c0_297 = arith.constant 0 : index
    %325 = vector.load %arg15[%c4_295, %c1_296, %c0_297] : memref<10x10x16xf32, #tpu.memory_space<vmem>>, vector<1x8x16xf32>
    %326 = vector.shape_cast %325 : vector<1x8x16xf32> to vector<8x16xf32>
    %c1_298 = arith.constant 1 : index
    %c0_299 = arith.constant 0 : index
    %327 = vector.load %arg4[%c1_298, %c0_299] : memref<9x16xf32, #tpu.memory_space<vmem>>, vector<1x16xf32>
    %328 = vector.broadcast %327 : vector<1x16xf32> to vector<8x16xf32>
    %329 = arith.mulf %326, %328 : vector<8x16xf32>
    %330 = arith.addf %319, %329 : vector<8x16xf32>
    %c4_300 = arith.constant 4 : index
    %c1_301 = arith.constant 1 : index
    %c0_302 = arith.constant 0 : index
    %331 = vector.load %arg14[%c4_300, %c1_301, %c0_302] : memref<10x10x16xf32, #tpu.memory_space<vmem>>, vector<1x8x16xf32>
    %332 = vector.shape_cast %331 : vector<1x8x16xf32> to vector<8x16xf32>
    %c1_303 = arith.constant 1 : index
    %c0_304 = arith.constant 0 : index
    %333 = vector.load %arg8[%c1_303, %c0_304] : memref<9x16xf32, #tpu.memory_space<vmem>>, vector<1x16xf32>
    %334 = vector.broadcast %333 : vector<1x16xf32> to vector<8x16xf32>
    %335 = arith.mulf %332, %334 : vector<8x16xf32>
    %336 = arith.addf %324, %335 : vector<8x16xf32>
    %c4_305 = arith.constant 4 : index
    %c2_306 = arith.constant 2 : index
    %c0_307 = arith.constant 0 : index
    %337 = vector.load %arg15[%c4_305, %c2_306, %c0_307] : memref<10x10x16xf32, #tpu.memory_space<vmem>>, vector<1x8x16xf32>
    %338 = vector.shape_cast %337 : vector<1x8x16xf32> to vector<8x16xf32>
    %c2_308 = arith.constant 2 : index
    %c0_309 = arith.constant 0 : index
    %339 = vector.load %arg4[%c2_308, %c0_309] : memref<9x16xf32, #tpu.memory_space<vmem>>, vector<1x16xf32>
    %340 = vector.broadcast %339 : vector<1x16xf32> to vector<8x16xf32>
    %341 = arith.mulf %338, %340 : vector<8x16xf32>
    %342 = arith.addf %330, %341 : vector<8x16xf32>
    %c4_310 = arith.constant 4 : index
    %c2_311 = arith.constant 2 : index
    %c0_312 = arith.constant 0 : index
    %343 = vector.load %arg14[%c4_310, %c2_311, %c0_312] : memref<10x10x16xf32, #tpu.memory_space<vmem>>, vector<1x8x16xf32>
    %344 = vector.shape_cast %343 : vector<1x8x16xf32> to vector<8x16xf32>
    %c2_313 = arith.constant 2 : index
    %c0_314 = arith.constant 0 : index
    %345 = vector.load %arg8[%c2_313, %c0_314] : memref<9x16xf32, #tpu.memory_space<vmem>>, vector<1x16xf32>
    %346 = vector.broadcast %345 : vector<1x16xf32> to vector<8x16xf32>
    %347 = arith.mulf %344, %346 : vector<8x16xf32>
    %348 = arith.addf %336, %347 : vector<8x16xf32>
    %c5_315 = arith.constant 5 : index
    %c0_316 = arith.constant 0 : index
    %c0_317 = arith.constant 0 : index
    %349 = vector.load %arg15[%c5_315, %c0_316, %c0_317] : memref<10x10x16xf32, #tpu.memory_space<vmem>>, vector<1x8x16xf32>
    %350 = vector.shape_cast %349 : vector<1x8x16xf32> to vector<8x16xf32>
    %c3_318 = arith.constant 3 : index
    %c0_319 = arith.constant 0 : index
    %351 = vector.load %arg4[%c3_318, %c0_319] : memref<9x16xf32, #tpu.memory_space<vmem>>, vector<1x16xf32>
    %352 = vector.broadcast %351 : vector<1x16xf32> to vector<8x16xf32>
    %353 = arith.mulf %350, %352 : vector<8x16xf32>
    %354 = arith.addf %342, %353 : vector<8x16xf32>
    %c5_320 = arith.constant 5 : index
    %c0_321 = arith.constant 0 : index
    %c0_322 = arith.constant 0 : index
    %355 = vector.load %arg14[%c5_320, %c0_321, %c0_322] : memref<10x10x16xf32, #tpu.memory_space<vmem>>, vector<1x8x16xf32>
    %356 = vector.shape_cast %355 : vector<1x8x16xf32> to vector<8x16xf32>
    %c3_323 = arith.constant 3 : index
    %c0_324 = arith.constant 0 : index
    %357 = vector.load %arg8[%c3_323, %c0_324] : memref<9x16xf32, #tpu.memory_space<vmem>>, vector<1x16xf32>
    %358 = vector.broadcast %357 : vector<1x16xf32> to vector<8x16xf32>
    %359 = arith.mulf %356, %358 : vector<8x16xf32>
    %360 = arith.addf %348, %359 : vector<8x16xf32>
    %c5_325 = arith.constant 5 : index
    %c1_326 = arith.constant 1 : index
    %c0_327 = arith.constant 0 : index
    %361 = vector.load %arg15[%c5_325, %c1_326, %c0_327] : memref<10x10x16xf32, #tpu.memory_space<vmem>>, vector<1x8x16xf32>
    %362 = vector.shape_cast %361 : vector<1x8x16xf32> to vector<8x16xf32>
    %c4_328 = arith.constant 4 : index
    %c0_329 = arith.constant 0 : index
    %363 = vector.load %arg4[%c4_328, %c0_329] : memref<9x16xf32, #tpu.memory_space<vmem>>, vector<1x16xf32>
    %364 = vector.broadcast %363 : vector<1x16xf32> to vector<8x16xf32>
    %365 = arith.mulf %362, %364 : vector<8x16xf32>
    %366 = arith.addf %354, %365 : vector<8x16xf32>
    %c5_330 = arith.constant 5 : index
    %c1_331 = arith.constant 1 : index
    %c0_332 = arith.constant 0 : index
    %367 = vector.load %arg14[%c5_330, %c1_331, %c0_332] : memref<10x10x16xf32, #tpu.memory_space<vmem>>, vector<1x8x16xf32>
    %368 = vector.shape_cast %367 : vector<1x8x16xf32> to vector<8x16xf32>
    %c4_333 = arith.constant 4 : index
    %c0_334 = arith.constant 0 : index
    %369 = vector.load %arg8[%c4_333, %c0_334] : memref<9x16xf32, #tpu.memory_space<vmem>>, vector<1x16xf32>
    %370 = vector.broadcast %369 : vector<1x16xf32> to vector<8x16xf32>
    %371 = arith.mulf %368, %370 : vector<8x16xf32>
    %372 = arith.addf %360, %371 : vector<8x16xf32>
    %c5_335 = arith.constant 5 : index
    %c2_336 = arith.constant 2 : index
    %c0_337 = arith.constant 0 : index
    %373 = vector.load %arg15[%c5_335, %c2_336, %c0_337] : memref<10x10x16xf32, #tpu.memory_space<vmem>>, vector<1x8x16xf32>
    %374 = vector.shape_cast %373 : vector<1x8x16xf32> to vector<8x16xf32>
    %c5_338 = arith.constant 5 : index
    %c0_339 = arith.constant 0 : index
    %375 = vector.load %arg4[%c5_338, %c0_339] : memref<9x16xf32, #tpu.memory_space<vmem>>, vector<1x16xf32>
    %376 = vector.broadcast %375 : vector<1x16xf32> to vector<8x16xf32>
    %377 = arith.mulf %374, %376 : vector<8x16xf32>
    %378 = arith.addf %366, %377 : vector<8x16xf32>
    %c5_340 = arith.constant 5 : index
    %c2_341 = arith.constant 2 : index
    %c0_342 = arith.constant 0 : index
    %379 = vector.load %arg14[%c5_340, %c2_341, %c0_342] : memref<10x10x16xf32, #tpu.memory_space<vmem>>, vector<1x8x16xf32>
    %380 = vector.shape_cast %379 : vector<1x8x16xf32> to vector<8x16xf32>
    %c5_343 = arith.constant 5 : index
    %c0_344 = arith.constant 0 : index
    %381 = vector.load %arg8[%c5_343, %c0_344] : memref<9x16xf32, #tpu.memory_space<vmem>>, vector<1x16xf32>
    %382 = vector.broadcast %381 : vector<1x16xf32> to vector<8x16xf32>
    %383 = arith.mulf %380, %382 : vector<8x16xf32>
    %384 = arith.addf %372, %383 : vector<8x16xf32>
    %c6_345 = arith.constant 6 : index
    %c0_346 = arith.constant 0 : index
    %c0_347 = arith.constant 0 : index
    %385 = vector.load %arg15[%c6_345, %c0_346, %c0_347] : memref<10x10x16xf32, #tpu.memory_space<vmem>>, vector<1x8x16xf32>
    %386 = vector.shape_cast %385 : vector<1x8x16xf32> to vector<8x16xf32>
    %c6_348 = arith.constant 6 : index
    %c0_349 = arith.constant 0 : index
    %387 = vector.load %arg4[%c6_348, %c0_349] : memref<9x16xf32, #tpu.memory_space<vmem>>, vector<1x16xf32>
    %388 = vector.broadcast %387 : vector<1x16xf32> to vector<8x16xf32>
    %389 = arith.mulf %386, %388 : vector<8x16xf32>
    %390 = arith.addf %378, %389 : vector<8x16xf32>
    %c6_350 = arith.constant 6 : index
    %c0_351 = arith.constant 0 : index
    %c0_352 = arith.constant 0 : index
    %391 = vector.load %arg14[%c6_350, %c0_351, %c0_352] : memref<10x10x16xf32, #tpu.memory_space<vmem>>, vector<1x8x16xf32>
    %392 = vector.shape_cast %391 : vector<1x8x16xf32> to vector<8x16xf32>
    %c6_353 = arith.constant 6 : index
    %c0_354 = arith.constant 0 : index
    %393 = vector.load %arg8[%c6_353, %c0_354] : memref<9x16xf32, #tpu.memory_space<vmem>>, vector<1x16xf32>
    %394 = vector.broadcast %393 : vector<1x16xf32> to vector<8x16xf32>
    %395 = arith.mulf %392, %394 : vector<8x16xf32>
    %396 = arith.addf %384, %395 : vector<8x16xf32>
    %c6_355 = arith.constant 6 : index
    %c1_356 = arith.constant 1 : index
    %c0_357 = arith.constant 0 : index
    %397 = vector.load %arg15[%c6_355, %c1_356, %c0_357] : memref<10x10x16xf32, #tpu.memory_space<vmem>>, vector<1x8x16xf32>
    %398 = vector.shape_cast %397 : vector<1x8x16xf32> to vector<8x16xf32>
    %c7_358 = arith.constant 7 : index
    %c0_359 = arith.constant 0 : index
    %399 = vector.load %arg4[%c7_358, %c0_359] : memref<9x16xf32, #tpu.memory_space<vmem>>, vector<1x16xf32>
    %400 = vector.broadcast %399 : vector<1x16xf32> to vector<8x16xf32>
    %401 = arith.mulf %398, %400 : vector<8x16xf32>
    %402 = arith.addf %390, %401 : vector<8x16xf32>
    %c6_360 = arith.constant 6 : index
    %c1_361 = arith.constant 1 : index
    %c0_362 = arith.constant 0 : index
    %403 = vector.load %arg14[%c6_360, %c1_361, %c0_362] : memref<10x10x16xf32, #tpu.memory_space<vmem>>, vector<1x8x16xf32>
    %404 = vector.shape_cast %403 : vector<1x8x16xf32> to vector<8x16xf32>
    %c7_363 = arith.constant 7 : index
    %c0_364 = arith.constant 0 : index
    %405 = vector.load %arg8[%c7_363, %c0_364] : memref<9x16xf32, #tpu.memory_space<vmem>>, vector<1x16xf32>
    %406 = vector.broadcast %405 : vector<1x16xf32> to vector<8x16xf32>
    %407 = arith.mulf %404, %406 : vector<8x16xf32>
    %408 = arith.addf %396, %407 : vector<8x16xf32>
    %c6_365 = arith.constant 6 : index
    %c2_366 = arith.constant 2 : index
    %c0_367 = arith.constant 0 : index
    %409 = vector.load %arg15[%c6_365, %c2_366, %c0_367] : memref<10x10x16xf32, #tpu.memory_space<vmem>>, vector<1x8x16xf32>
    %410 = vector.shape_cast %409 : vector<1x8x16xf32> to vector<8x16xf32>
    %c8_368 = arith.constant 8 : index
    %c0_369 = arith.constant 0 : index
    %411 = vector.load %arg4[%c8_368, %c0_369] : memref<9x16xf32, #tpu.memory_space<vmem>>, vector<1x16xf32>
    %412 = vector.broadcast %411 : vector<1x16xf32> to vector<8x16xf32>
    %413 = arith.mulf %410, %412 : vector<8x16xf32>
    %414 = arith.addf %402, %413 : vector<8x16xf32>
    %c6_370 = arith.constant 6 : index
    %c2_371 = arith.constant 2 : index
    %c0_372 = arith.constant 0 : index
    %415 = vector.load %arg14[%c6_370, %c2_371, %c0_372] : memref<10x10x16xf32, #tpu.memory_space<vmem>>, vector<1x8x16xf32>
    %416 = vector.shape_cast %415 : vector<1x8x16xf32> to vector<8x16xf32>
    %c8_373 = arith.constant 8 : index
    %c0_374 = arith.constant 0 : index
    %417 = vector.load %arg8[%c8_373, %c0_374] : memref<9x16xf32, #tpu.memory_space<vmem>>, vector<1x16xf32>
    %418 = vector.broadcast %417 : vector<1x16xf32> to vector<8x16xf32>
    %419 = arith.mulf %416, %418 : vector<8x16xf32>
    %420 = arith.addf %408, %419 : vector<8x16xf32>
    %cst_375 = arith.constant dense<0.000000e+00> : vector<4x16xf32>
    %421 = tpu.matmul %94, %414, %cst_375 {dimension_numbers = #tpu.dot_dimension_numbers<[1], [0], [0], [1], [0, 0, 1, 1], [], []>, precision = #tpu.contract_precision<fp32>} : vector<4x8xf32>, vector<8x16xf32>, vector<4x16xf32> -> vector<4x16xf32>
    %c8_376 = arith.constant 8 : index
    %c0_377 = arith.constant 0 : index
    %422 = vector.load %arg16[%c8_376, %c0_377] : memref<16x16xf32, #tpu.memory_space<vmem>>, vector<4x16xf32>
    tpu.vector_store %arg16[%c8_376, %c0_377], %421 {strides = array<i32>} : memref<16x16xf32, #tpu.memory_space<vmem>>, vector<4x16xf32>,
    %cst_378 = arith.constant dense<0.000000e+00> : vector<4x16xf32>
    %423 = tpu.matmul %94, %420, %cst_378 {dimension_numbers = #tpu.dot_dimension_numbers<[1], [0], [0], [1], [0, 0, 1, 1], [], []>, precision = #tpu.contract_precision<fp32>} : vector<4x8xf32>, vector<8x16xf32>, vector<4x16xf32> -> vector<4x16xf32>
    %c8_379 = arith.constant 8 : index
    %c0_380 = arith.constant 0 : index
    %424 = vector.load %arg17[%c8_379, %c0_380] : memref<16x16xf32, #tpu.memory_space<vmem>>, vector<4x16xf32>
    tpu.vector_store %arg17[%c8_379, %c0_380], %423 {strides = array<i32>} : memref<16x16xf32, #tpu.memory_space<vmem>>, vector<4x16xf32>,
    %c6_381 = arith.constant 6 : index
    %c0_382 = arith.constant 0 : index
    %c0_383 = arith.constant 0 : index
    %425 = vector.load %arg15[%c6_381, %c0_382, %c0_383] : memref<10x10x16xf32, #tpu.memory_space<vmem>>, vector<1x8x16xf32>
    %426 = vector.shape_cast %425 : vector<1x8x16xf32> to vector<8x16xf32>
    %c0_384 = arith.constant 0 : index
    %c0_385 = arith.constant 0 : index
    %427 = vector.load %arg4[%c0_384, %c0_385] : memref<9x16xf32, #tpu.memory_space<vmem>>, vector<1x16xf32>
    %428 = vector.broadcast %427 : vector<1x16xf32> to vector<8x16xf32>
    %429 = arith.mulf %426, %428 : vector<8x16xf32>
    %c6_386 = arith.constant 6 : index
    %c0_387 = arith.constant 0 : index
    %c0_388 = arith.constant 0 : index
    %430 = vector.load %arg14[%c6_386, %c0_387, %c0_388] : memref<10x10x16xf32, #tpu.memory_space<vmem>>, vector<1x8x16xf32>
    %431 = vector.shape_cast %430 : vector<1x8x16xf32> to vector<8x16xf32>
    %c0_389 = arith.constant 0 : index
    %c0_390 = arith.constant 0 : index
    %432 = vector.load %arg8[%c0_389, %c0_390] : memref<9x16xf32, #tpu.memory_space<vmem>>, vector<1x16xf32>
    %433 = vector.broadcast %432 : vector<1x16xf32> to vector<8x16xf32>
    %434 = arith.mulf %431, %433 : vector<8x16xf32>
    %c6_391 = arith.constant 6 : index
    %c1_392 = arith.constant 1 : index
    %c0_393 = arith.constant 0 : index
    %435 = vector.load %arg15[%c6_391, %c1_392, %c0_393] : memref<10x10x16xf32, #tpu.memory_space<vmem>>, vector<1x8x16xf32>
    %436 = vector.shape_cast %435 : vector<1x8x16xf32> to vector<8x16xf32>
    %c1_394 = arith.constant 1 : index
    %c0_395 = arith.constant 0 : index
    %437 = vector.load %arg4[%c1_394, %c0_395] : memref<9x16xf32, #tpu.memory_space<vmem>>, vector<1x16xf32>
    %438 = vector.broadcast %437 : vector<1x16xf32> to vector<8x16xf32>
    %439 = arith.mulf %436, %438 : vector<8x16xf32>
    %440 = arith.addf %429, %439 : vector<8x16xf32>
    %c6_396 = arith.constant 6 : index
    %c1_397 = arith.constant 1 : index
    %c0_398 = arith.constant 0 : index
    %441 = vector.load %arg14[%c6_396, %c1_397, %c0_398] : memref<10x10x16xf32, #tpu.memory_space<vmem>>, vector<1x8x16xf32>
    %442 = vector.shape_cast %441 : vector<1x8x16xf32> to vector<8x16xf32>
    %c1_399 = arith.constant 1 : index
    %c0_400 = arith.constant 0 : index
    %443 = vector.load %arg8[%c1_399, %c0_400] : memref<9x16xf32, #tpu.memory_space<vmem>>, vector<1x16xf32>
    %444 = vector.broadcast %443 : vector<1x16xf32> to vector<8x16xf32>
    %445 = arith.mulf %442, %444 : vector<8x16xf32>
    %446 = arith.addf %434, %445 : vector<8x16xf32>
    %c6_401 = arith.constant 6 : index
    %c2_402 = arith.constant 2 : index
    %c0_403 = arith.constant 0 : index
    %447 = vector.load %arg15[%c6_401, %c2_402, %c0_403] : memref<10x10x16xf32, #tpu.memory_space<vmem>>, vector<1x8x16xf32>
    %448 = vector.shape_cast %447 : vector<1x8x16xf32> to vector<8x16xf32>
    %c2_404 = arith.constant 2 : index
    %c0_405 = arith.constant 0 : index
    %449 = vector.load %arg4[%c2_404, %c0_405] : memref<9x16xf32, #tpu.memory_space<vmem>>, vector<1x16xf32>
    %450 = vector.broadcast %449 : vector<1x16xf32> to vector<8x16xf32>
    %451 = arith.mulf %448, %450 : vector<8x16xf32>
    %452 = arith.addf %440, %451 : vector<8x16xf32>
    %c6_406 = arith.constant 6 : index
    %c2_407 = arith.constant 2 : index
    %c0_408 = arith.constant 0 : index
    %453 = vector.load %arg14[%c6_406, %c2_407, %c0_408] : memref<10x10x16xf32, #tpu.memory_space<vmem>>, vector<1x8x16xf32>
    %454 = vector.shape_cast %453 : vector<1x8x16xf32> to vector<8x16xf32>
    %c2_409 = arith.constant 2 : index
    %c0_410 = arith.constant 0 : index
    %455 = vector.load %arg8[%c2_409, %c0_410] : memref<9x16xf32, #tpu.memory_space<vmem>>, vector<1x16xf32>
    %456 = vector.broadcast %455 : vector<1x16xf32> to vector<8x16xf32>
    %457 = arith.mulf %454, %456 : vector<8x16xf32>
    %458 = arith.addf %446, %457 : vector<8x16xf32>
    %c7_411 = arith.constant 7 : index
    %c0_412 = arith.constant 0 : index
    %c0_413 = arith.constant 0 : index
    %459 = vector.load %arg15[%c7_411, %c0_412, %c0_413] : memref<10x10x16xf32, #tpu.memory_space<vmem>>, vector<1x8x16xf32>
    %460 = vector.shape_cast %459 : vector<1x8x16xf32> to vector<8x16xf32>
    %c3_414 = arith.constant 3 : index
    %c0_415 = arith.constant 0 : index
    %461 = vector.load %arg4[%c3_414, %c0_415] : memref<9x16xf32, #tpu.memory_space<vmem>>, vector<1x16xf32>
    %462 = vector.broadcast %461 : vector<1x16xf32> to vector<8x16xf32>
    %463 = arith.mulf %460, %462 : vector<8x16xf32>
    %464 = arith.addf %452, %463 : vector<8x16xf32>
    %c7_416 = arith.constant 7 : index
    %c0_417 = arith.constant 0 : index
    %c0_418 = arith.constant 0 : index
    %465 = vector.load %arg14[%c7_416, %c0_417, %c0_418] : memref<10x10x16xf32, #tpu.memory_space<vmem>>, vector<1x8x16xf32>
    %466 = vector.shape_cast %465 : vector<1x8x16xf32> to vector<8x16xf32>
    %c3_419 = arith.constant 3 : index
    %c0_420 = arith.constant 0 : index
    %467 = vector.load %arg8[%c3_419, %c0_420] : memref<9x16xf32, #tpu.memory_space<vmem>>, vector<1x16xf32>
    %468 = vector.broadcast %467 : vector<1x16xf32> to vector<8x16xf32>
    %469 = arith.mulf %466, %468 : vector<8x16xf32>
    %470 = arith.addf %458, %469 : vector<8x16xf32>
    %c7_421 = arith.constant 7 : index
    %c1_422 = arith.constant 1 : index
    %c0_423 = arith.constant 0 : index
    %471 = vector.load %arg15[%c7_421, %c1_422, %c0_423] : memref<10x10x16xf32, #tpu.memory_space<vmem>>, vector<1x8x16xf32>
    %472 = vector.shape_cast %471 : vector<1x8x16xf32> to vector<8x16xf32>
    %c4_424 = arith.constant 4 : index
    %c0_425 = arith.constant 0 : index
    %473 = vector.load %arg4[%c4_424, %c0_425] : memref<9x16xf32, #tpu.memory_space<vmem>>, vector<1x16xf32>
    %474 = vector.broadcast %473 : vector<1x16xf32> to vector<8x16xf32>
    %475 = arith.mulf %472, %474 : vector<8x16xf32>
    %476 = arith.addf %464, %475 : vector<8x16xf32>
    %c7_426 = arith.constant 7 : index
    %c1_427 = arith.constant 1 : index
    %c0_428 = arith.constant 0 : index
    %477 = vector.load %arg14[%c7_426, %c1_427, %c0_428] : memref<10x10x16xf32, #tpu.memory_space<vmem>>, vector<1x8x16xf32>
    %478 = vector.shape_cast %477 : vector<1x8x16xf32> to vector<8x16xf32>
    %c4_429 = arith.constant 4 : index
    %c0_430 = arith.constant 0 : index
    %479 = vector.load %arg8[%c4_429, %c0_430] : memref<9x16xf32, #tpu.memory_space<vmem>>, vector<1x16xf32>
    %480 = vector.broadcast %479 : vector<1x16xf32> to vector<8x16xf32>
    %481 = arith.mulf %478, %480 : vector<8x16xf32>
    %482 = arith.addf %470, %481 : vector<8x16xf32>
    %c7_431 = arith.constant 7 : index
    %c2_432 = arith.constant 2 : index
    %c0_433 = arith.constant 0 : index
    %483 = vector.load %arg15[%c7_431, %c2_432, %c0_433] : memref<10x10x16xf32, #tpu.memory_space<vmem>>, vector<1x8x16xf32>
    %484 = vector.shape_cast %483 : vector<1x8x16xf32> to vector<8x16xf32>
    %c5_434 = arith.constant 5 : index
    %c0_435 = arith.constant 0 : index
    %485 = vector.load %arg4[%c5_434, %c0_435] : memref<9x16xf32, #tpu.memory_space<vmem>>, vector<1x16xf32>
    %486 = vector.broadcast %485 : vector<1x16xf32> to vector<8x16xf32>
    %487 = arith.mulf %484, %486 : vector<8x16xf32>
    %488 = arith.addf %476, %487 : vector<8x16xf32>
    %c7_436 = arith.constant 7 : index
    %c2_437 = arith.constant 2 : index
    %c0_438 = arith.constant 0 : index
    %489 = vector.load %arg14[%c7_436, %c2_437, %c0_438] : memref<10x10x16xf32, #tpu.memory_space<vmem>>, vector<1x8x16xf32>
    %490 = vector.shape_cast %489 : vector<1x8x16xf32> to vector<8x16xf32>
    %c5_439 = arith.constant 5 : index
    %c0_440 = arith.constant 0 : index
    %491 = vector.load %arg8[%c5_439, %c0_440] : memref<9x16xf32, #tpu.memory_space<vmem>>, vector<1x16xf32>
    %492 = vector.broadcast %491 : vector<1x16xf32> to vector<8x16xf32>
    %493 = arith.mulf %490, %492 : vector<8x16xf32>
    %494 = arith.addf %482, %493 : vector<8x16xf32>
    %c8_441 = arith.constant 8 : index
    %c0_442 = arith.constant 0 : index
    %c0_443 = arith.constant 0 : index
    %495 = vector.load %arg15[%c8_441, %c0_442, %c0_443] : memref<10x10x16xf32, #tpu.memory_space<vmem>>, vector<1x8x16xf32>
    %496 = vector.shape_cast %495 : vector<1x8x16xf32> to vector<8x16xf32>
    %c6_444 = arith.constant 6 : index
    %c0_445 = arith.constant 0 : index
    %497 = vector.load %arg4[%c6_444, %c0_445] : memref<9x16xf32, #tpu.memory_space<vmem>>, vector<1x16xf32>
    %498 = vector.broadcast %497 : vector<1x16xf32> to vector<8x16xf32>
    %499 = arith.mulf %496, %498 : vector<8x16xf32>
    %500 = arith.addf %488, %499 : vector<8x16xf32>
    %c8_446 = arith.constant 8 : index
    %c0_447 = arith.constant 0 : index
    %c0_448 = arith.constant 0 : index
    %501 = vector.load %arg14[%c8_446, %c0_447, %c0_448] : memref<10x10x16xf32, #tpu.memory_space<vmem>>, vector<1x8x16xf32>
    %502 = vector.shape_cast %501 : vector<1x8x16xf32> to vector<8x16xf32>
    %c6_449 = arith.constant 6 : index
    %c0_450 = arith.constant 0 : index
    %503 = vector.load %arg8[%c6_449, %c0_450] : memref<9x16xf32, #tpu.memory_space<vmem>>, vector<1x16xf32>
    %504 = vector.broadcast %503 : vector<1x16xf32> to vector<8x16xf32>
    %505 = arith.mulf %502, %504 : vector<8x16xf32>
    %506 = arith.addf %494, %505 : vector<8x16xf32>
    %c8_451 = arith.constant 8 : index
    %c1_452 = arith.constant 1 : index
    %c0_453 = arith.constant 0 : index
    %507 = vector.load %arg15[%c8_451, %c1_452, %c0_453] : memref<10x10x16xf32, #tpu.memory_space<vmem>>, vector<1x8x16xf32>
    %508 = vector.shape_cast %507 : vector<1x8x16xf32> to vector<8x16xf32>
    %c7_454 = arith.constant 7 : index
    %c0_455 = arith.constant 0 : index
    %509 = vector.load %arg4[%c7_454, %c0_455] : memref<9x16xf32, #tpu.memory_space<vmem>>, vector<1x16xf32>
    %510 = vector.broadcast %509 : vector<1x16xf32> to vector<8x16xf32>
    %511 = arith.mulf %508, %510 : vector<8x16xf32>
    %512 = arith.addf %500, %511 : vector<8x16xf32>
    %c8_456 = arith.constant 8 : index
    %c1_457 = arith.constant 1 : index
    %c0_458 = arith.constant 0 : index
    %513 = vector.load %arg14[%c8_456, %c1_457, %c0_458] : memref<10x10x16xf32, #tpu.memory_space<vmem>>, vector<1x8x16xf32>
    %514 = vector.shape_cast %513 : vector<1x8x16xf32> to vector<8x16xf32>
    %c7_459 = arith.constant 7 : index
    %c0_460 = arith.constant 0 : index
    %515 = vector.load %arg8[%c7_459, %c0_460] : memref<9x16xf32, #tpu.memory_space<vmem>>, vector<1x16xf32>
    %516 = vector.broadcast %515 : vector<1x16xf32> to vector<8x16xf32>
    %517 = arith.mulf %514, %516 : vector<8x16xf32>
    %518 = arith.addf %506, %517 : vector<8x16xf32>
    %c8_461 = arith.constant 8 : index
    %c2_462 = arith.constant 2 : index
    %c0_463 = arith.constant 0 : index
    %519 = vector.load %arg15[%c8_461, %c2_462, %c0_463] : memref<10x10x16xf32, #tpu.memory_space<vmem>>, vector<1x8x16xf32>
    %520 = vector.shape_cast %519 : vector<1x8x16xf32> to vector<8x16xf32>
    %c8_464 = arith.constant 8 : index
    %c0_465 = arith.constant 0 : index
    %521 = vector.load %arg4[%c8_464, %c0_465] : memref<9x16xf32, #tpu.memory_space<vmem>>, vector<1x16xf32>
    %522 = vector.broadcast %521 : vector<1x16xf32> to vector<8x16xf32>
    %523 = arith.mulf %520, %522 : vector<8x16xf32>
    %524 = arith.addf %512, %523 : vector<8x16xf32>
    %c8_466 = arith.constant 8 : index
    %c2_467 = arith.constant 2 : index
    %c0_468 = arith.constant 0 : index
    %525 = vector.load %arg14[%c8_466, %c2_467, %c0_468] : memref<10x10x16xf32, #tpu.memory_space<vmem>>, vector<1x8x16xf32>
    %526 = vector.shape_cast %525 : vector<1x8x16xf32> to vector<8x16xf32>
    %c8_469 = arith.constant 8 : index
    %c0_470 = arith.constant 0 : index
    %527 = vector.load %arg8[%c8_469, %c0_470] : memref<9x16xf32, #tpu.memory_space<vmem>>, vector<1x16xf32>
    %528 = vector.broadcast %527 : vector<1x16xf32> to vector<8x16xf32>
    %529 = arith.mulf %526, %528 : vector<8x16xf32>
    %530 = arith.addf %518, %529 : vector<8x16xf32>
    %cst_471 = arith.constant dense<0.000000e+00> : vector<4x16xf32>
    %531 = tpu.matmul %94, %524, %cst_471 {dimension_numbers = #tpu.dot_dimension_numbers<[1], [0], [0], [1], [0, 0, 1, 1], [], []>, precision = #tpu.contract_precision<fp32>} : vector<4x8xf32>, vector<8x16xf32>, vector<4x16xf32> -> vector<4x16xf32>
    %c12 = arith.constant 12 : index
    %c0_472 = arith.constant 0 : index
    %532 = vector.load %arg16[%c12, %c0_472] : memref<16x16xf32, #tpu.memory_space<vmem>>, vector<4x16xf32>
    tpu.vector_store %arg16[%c12, %c0_472], %531 {strides = array<i32>} : memref<16x16xf32, #tpu.memory_space<vmem>>, vector<4x16xf32>,
    %cst_473 = arith.constant dense<0.000000e+00> : vector<4x16xf32>
    %533 = tpu.matmul %94, %530, %cst_473 {dimension_numbers = #tpu.dot_dimension_numbers<[1], [0], [0], [1], [0, 0, 1, 1], [], []>, precision = #tpu.contract_precision<fp32>} : vector<4x8xf32>, vector<8x16xf32>, vector<4x16xf32> -> vector<4x16xf32>
    %c12_474 = arith.constant 12 : index
    %c0_475 = arith.constant 0 : index
    %534 = vector.load %arg17[%c12_474, %c0_475] : memref<16x16xf32, #tpu.memory_space<vmem>>, vector<4x16xf32>
    tpu.vector_store %arg17[%c12_474, %c0_475], %533 {strides = array<i32>} : memref<16x16xf32, #tpu.memory_space<vmem>>, vector<4x16xf32>,
    %c0_476 = arith.constant 0 : index
    %c0_477 = arith.constant 0 : index
    %535 = vector.load %arg16[%c0_476, %c0_477] : memref<16x16xf32, #tpu.memory_space<vmem>>, vector<16x16xf32>
    %c0_478 = arith.constant 0 : index
    %c0_479 = arith.constant 0 : index
    %536 = vector.load %arg5[%c0_478, %c0_479] : memref<1x16xf32, #tpu.memory_space<vmem>>, vector<1x16xf32>
    %537 = vector.broadcast %536 : vector<1x16xf32> to vector<16x16xf32>
    %538 = arith.addf %535, %537 : vector<16x16xf32>
    %539 = arith.truncf %538 : vector<16x16xf32> to vector<16x16xbf16>
    %c0_480 = arith.constant 0 : index
    %c0_481 = arith.constant 0 : index
    %540 = vector.load %arg6[%c0_480, %c0_481] : memref<16x32xbf16, #tpu.memory_space<vmem>>, vector<16x32xbf16>
    %cst_482 = arith.constant dense<0.000000e+00> : vector<16x32xf32>
    %541 = tpu.matmul %539, %540, %cst_482 {dimension_numbers = #tpu.dot_dimension_numbers<[1], [0], [0], [1], [0, 0, 1, 1], [], []>} : vector<16x16xbf16>, vector<16x32xbf16>, vector<16x32xf32> -> vector<16x32xf32>
    %c0_483 = arith.constant 0 : index
    %c0_484 = arith.constant 0 : index
    %542 = vector.load %arg7[%c0_483, %c0_484] : memref<1x32xf32, #tpu.memory_space<vmem>>, vector<1x32xf32>
    %543 = vector.broadcast %542 : vector<1x32xf32> to vector<16x32xf32>
    %544 = arith.addf %541, %543 : vector<16x32xf32>
    %cst_485 = arith.constant 0.000000e+00 : f32
    %545 = vector.broadcast %cst_485 : f32 to vector<16x32xf32>
    %546 = arith.maximumf %544, %545 : vector<16x32xf32>
    %c0_486 = arith.constant 0 : index
    %c0_487 = arith.constant 0 : index
    %547 = vector.load %arg17[%c0_486, %c0_487] : memref<16x16xf32, #tpu.memory_space<vmem>>, vector<16x16xf32>
    %c0_488 = arith.constant 0 : index
    %c0_489 = arith.constant 0 : index
    %548 = vector.load %arg9[%c0_488, %c0_489] : memref<1x16xf32, #tpu.memory_space<vmem>>, vector<1x16xf32>
    %549 = vector.broadcast %548 : vector<1x16xf32> to vector<16x16xf32>
    %550 = arith.addf %547, %549 : vector<16x16xf32>
    %551 = arith.truncf %550 : vector<16x16xf32> to vector<16x16xbf16>
    %c0_490 = arith.constant 0 : index
    %c0_491 = arith.constant 0 : index
    %552 = vector.load %arg10[%c0_490, %c0_491] : memref<16x32xbf16, #tpu.memory_space<vmem>>, vector<16x32xbf16>
    %cst_492 = arith.constant dense<0.000000e+00> : vector<16x32xf32>
    %553 = tpu.matmul %551, %552, %cst_492 {dimension_numbers = #tpu.dot_dimension_numbers<[1], [0], [0], [1], [0, 0, 1, 1], [], []>} : vector<16x16xbf16>, vector<16x32xbf16>, vector<16x32xf32> -> vector<16x32xf32>
    %c0_493 = arith.constant 0 : index
    %c0_494 = arith.constant 0 : index
    %554 = vector.load %arg11[%c0_493, %c0_494] : memref<1x32xf32, #tpu.memory_space<vmem>>, vector<1x32xf32>
    %555 = vector.broadcast %554 : vector<1x32xf32> to vector<16x32xf32>
    %556 = arith.addf %553, %555 : vector<16x32xf32>
    %cst_495 = arith.constant 0.000000e+00 : f32
    %557 = vector.broadcast %cst_495 : f32 to vector<16x32xf32>
    %558 = arith.maximumf %556, %557 : vector<16x32xf32>
    %559 = arith.addf %546, %558 : vector<16x32xf32>
    %c0_496 = arith.constant 0 : index
    %c0_497 = arith.constant 0 : index
    %c0_498 = arith.constant 0 : index
    %560 = vector.load %arg12[%c0_496, %c0_497, %c0_498] : memref<1x16x32xf32, #tpu.memory_space<vmem>>, vector<1x16x32xf32>
    %561 = vector.shape_cast %560 : vector<1x16x32xf32> to vector<16x32xf32>
    %562 = vector.shape_cast %559 : vector<16x32xf32> to vector<1x16x32xf32>
    tpu.vector_store %arg12[%c0_496, %c0_497, %c0_498], %562 {strides = array<i32>} : memref<1x16x32xf32, #tpu.memory_space<vmem>>, vector<1x16x32xf32>,
    return
  }
  func.func @transform_0(%arg0: i32) -> (i32, i32, i32) {
    %c0_i32 = arith.constant 0 : i32
    %c0_i32_0 = arith.constant 0 : i32
    %c0_i32_1 = arith.constant 0 : i32
    return %arg0, %c0_i32, %c0_i32_0 : i32, i32, i32
  }
  func.func @transform_1(%arg0: i32) -> (i32, i32) {
    %c0_i32 = arith.constant 0 : i32
    %c0_i32_0 = arith.constant 0 : i32
    %c0_i32_1 = arith.constant 0 : i32
    return %c0_i32, %c0_i32_0 : i32, i32
  }
  func.func @transform_2(%arg0: i32) -> (i32, i32) {
    %c0_i32 = arith.constant 0 : i32
    %c0_i32_0 = arith.constant 0 : i32
    %c0_i32_1 = arith.constant 0 : i32
    return %c0_i32, %c0_i32_0 : i32, i32
  }
  func.func @transform_3(%arg0: i32) -> (i32, i32) {
    %c0_i32 = arith.constant 0 : i32
    %c0_i32_0 = arith.constant 0 : i32
    %c0_i32_1 = arith.constant 0 : i32
    return %c0_i32, %c0_i32_0 : i32, i32
  }
  func.func @transform_4(%arg0: i32) -> (i32, i32) {
    %c0_i32 = arith.constant 0 : i32
    %c0_i32_0 = arith.constant 0 : i32
    %c0_i32_1 = arith.constant 0 : i32
    return %c0_i32, %c0_i32_0 : i32, i32
  }
  func.func @transform_5(%arg0: i32) -> (i32, i32) {
    %c0_i32 = arith.constant 0 : i32
    %c0_i32_0 = arith.constant 0 : i32
    %c0_i32_1 = arith.constant 0 : i32
    return %c0_i32, %c0_i32_0 : i32, i32
  }
  func.func @transform_6(%arg0: i32) -> (i32, i32) {
    %c0_i32 = arith.constant 0 : i32
    %c0_i32_0 = arith.constant 0 : i32
    %c0_i32_1 = arith.constant 0 : i32
    return %c0_i32, %c0_i32_0 : i32, i32
  }
  func.func @transform_7(%arg0: i32) -> (i32, i32) {
    %c0_i32 = arith.constant 0 : i32
    %c0_i32_0 = arith.constant 0 : i32
    %c0_i32_1 = arith.constant 0 : i32
    return %c0_i32, %c0_i32_0 : i32, i32
  }
  func.func @transform_8(%arg0: i32) -> (i32, i32) {
    %c0_i32 = arith.constant 0 : i32
    %c0_i32_0 = arith.constant 0 : i32
    %c0_i32_1 = arith.constant 0 : i32
    return %c0_i32, %c0_i32_0 : i32, i32
  }
  func.func @transform_9(%arg0: i32) -> (i32, i32) {
    %c0_i32 = arith.constant 0 : i32
    %c0_i32_0 = arith.constant 0 : i32
    %c0_i32_1 = arith.constant 0 : i32
    return %c0_i32, %c0_i32_0 : i32, i32
  }
  func.func @transform_10(%arg0: i32) -> (i32, i32) {
    %c0_i32 = arith.constant 0 : i32
    %c0_i32_0 = arith.constant 0 : i32
    %c0_i32_1 = arith.constant 0 : i32
    return %c0_i32, %c0_i32_0 : i32, i32
  }
  func.func @transform_11(%arg0: i32) -> (i32, i32, i32) {
    %c0_i32 = arith.constant 0 : i32
    %c0_i32_0 = arith.constant 0 : i32
    %c0_i32_1 = arith.constant 0 : i32
    return %arg0, %c0_i32, %c0_i32_0 : i32, i32, i32
  }
}

module attributes {stable_mosaic.version = 11 : i64} {
  func.func @_block_s2_kernel(%arg0: i32, %arg1: memref<1x16x32xf32, #tpu.memory_space<vmem>>, %arg2: memref<32x32xbf16, #tpu.memory_space<vmem>>, %arg3: memref<1x32xf32, #tpu.memory_space<vmem>>, %arg4: memref<9x32xf32, #tpu.memory_space<vmem>>, %arg5: memref<1x32xf32, #tpu.memory_space<vmem>>, %arg6: memref<32x64xbf16, #tpu.memory_space<vmem>>, %arg7: memref<1x64xf32, #tpu.memory_space<vmem>>, %arg8: memref<9x32xf32, #tpu.memory_space<vmem>>, %arg9: memref<1x32xf32, #tpu.memory_space<vmem>>, %arg10: memref<32x64xbf16, #tpu.memory_space<vmem>>, %arg11: memref<1x64xf32, #tpu.memory_space<vmem>>, %arg12: memref<1x4x64xf32, #tpu.memory_space<vmem>>, %arg13: memref<16x32xf32, #tpu.memory_space<vmem>>, %arg14: memref<6x6x32xf32, #tpu.memory_space<vmem>>, %arg15: memref<6x6x32xf32, #tpu.memory_space<vmem>>, %arg16: memref<4x32xf32, #tpu.memory_space<vmem>>, %arg17: memref<4x32xf32, #tpu.memory_space<vmem>>) attributes {dimension_semantics = [#tpu.dimension_semantics<parallel>], iteration_bounds = array<i64: 2>, scalar_prefetch = 0 : i64, scratch_operands = 5 : i64, tpu.core_type = #tpu.core_type<tc>, window_params = [{transform_indices = @transform_0, window_bounds = array<i64: 1, 16, 32>}, {pipeline_mode = #tpu.pipeline_mode<synchronous>, transform_indices = @transform_1, window_bounds = array<i64: 32, 32>}, {pipeline_mode = #tpu.pipeline_mode<synchronous>, transform_indices = @transform_2, window_bounds = array<i64: 1, 32>}, {pipeline_mode = #tpu.pipeline_mode<synchronous>, transform_indices = @transform_3, window_bounds = array<i64: 9, 32>}, {pipeline_mode = #tpu.pipeline_mode<synchronous>, transform_indices = @transform_4, window_bounds = array<i64: 1, 32>}, {pipeline_mode = #tpu.pipeline_mode<synchronous>, transform_indices = @transform_5, window_bounds = array<i64: 32, 64>}, {pipeline_mode = #tpu.pipeline_mode<synchronous>, transform_indices = @transform_6, window_bounds = array<i64: 1, 64>}, {pipeline_mode = #tpu.pipeline_mode<synchronous>, transform_indices = @transform_7, window_bounds = array<i64: 9, 32>}, {pipeline_mode = #tpu.pipeline_mode<synchronous>, transform_indices = @transform_8, window_bounds = array<i64: 1, 32>}, {pipeline_mode = #tpu.pipeline_mode<synchronous>, transform_indices = @transform_9, window_bounds = array<i64: 32, 64>}, {pipeline_mode = #tpu.pipeline_mode<synchronous>, transform_indices = @transform_10, window_bounds = array<i64: 1, 64>}, {transform_indices = @transform_11, window_bounds = array<i64: 1, 4, 64>}]} {
    %c0 = arith.constant 0 : index
    %c0_0 = arith.constant 0 : index
    %c0_1 = arith.constant 0 : index
    %0 = vector.load %arg1[%c0, %c0_0, %c0_1] : memref<1x16x32xf32, #tpu.memory_space<vmem>>, vector<1x16x32xf32>
    %1 = vector.shape_cast %0 : vector<1x16x32xf32> to vector<16x32xf32>
    %2 = arith.truncf %1 : vector<16x32xf32> to vector<16x32xbf16>
    %c0_2 = arith.constant 0 : index
    %c0_3 = arith.constant 0 : index
    %3 = vector.load %arg2[%c0_2, %c0_3] : memref<32x32xbf16, #tpu.memory_space<vmem>>, vector<32x32xbf16>
    %cst = arith.constant dense<0.000000e+00> : vector<16x32xf32>
    %4 = tpu.matmul %2, %3, %cst {dimension_numbers = #tpu.dot_dimension_numbers<[1], [0], [0], [1], [0, 0, 1, 1], [], []>} : vector<16x32xbf16>, vector<32x32xbf16>, vector<16x32xf32> -> vector<16x32xf32>
    %c0_4 = arith.constant 0 : index
    %c0_5 = arith.constant 0 : index
    %5 = vector.load %arg3[%c0_4, %c0_5] : memref<1x32xf32, #tpu.memory_space<vmem>>, vector<1x32xf32>
    %6 = vector.broadcast %5 : vector<1x32xf32> to vector<16x32xf32>
    %7 = arith.addf %4, %6 : vector<16x32xf32>
    %cst_6 = arith.constant 0.000000e+00 : f32
    %8 = vector.broadcast %cst_6 : f32 to vector<16x32xf32>
    %9 = arith.maximumf %7, %8 : vector<16x32xf32>
    %c0_7 = arith.constant 0 : index
    %c0_8 = arith.constant 0 : index
    %10 = vector.load %arg13[%c0_7, %c0_8] : memref<16x32xf32, #tpu.memory_space<vmem>>, vector<16x32xf32>
    tpu.vector_store %arg13[%c0_7, %c0_8], %9 {strides = array<i32>} : memref<16x32xf32, #tpu.memory_space<vmem>>, vector<16x32xf32>,
    %cst_9 = arith.constant 0.000000e+00 : f32
    %11 = vector.broadcast %cst_9 : f32 to vector<6x6x32xf32>
    %c0_10 = arith.constant 0 : index
    %c0_11 = arith.constant 0 : index
    %c0_12 = arith.constant 0 : index
    %12 = vector.load %arg14[%c0_10, %c0_11, %c0_12] : memref<6x6x32xf32, #tpu.memory_space<vmem>>, vector<6x6x32xf32>
    tpu.vector_store %arg14[%c0_10, %c0_11, %c0_12], %11 {strides = array<i32>} : memref<6x6x32xf32, #tpu.memory_space<vmem>>, vector<6x6x32xf32>,
    %cst_13 = arith.constant 0.000000e+00 : f32
    %13 = vector.broadcast %cst_13 : f32 to vector<6x6x32xf32>
    %c0_14 = arith.constant 0 : index
    %c0_15 = arith.constant 0 : index
    %c0_16 = arith.constant 0 : index
    %14 = vector.load %arg15[%c0_14, %c0_15, %c0_16] : memref<6x6x32xf32, #tpu.memory_space<vmem>>, vector<6x6x32xf32>
    tpu.vector_store %arg15[%c0_14, %c0_15, %c0_16], %13 {strides = array<i32>} : memref<6x6x32xf32, #tpu.memory_space<vmem>>, vector<6x6x32xf32>,
    %c0_17 = arith.constant 0 : index
    %c0_18 = arith.constant 0 : index
    %c0_19 = arith.constant 0 : index
    %15 = vector.load %arg1[%c0_17, %c0_18, %c0_19] : memref<1x16x32xf32, #tpu.memory_space<vmem>>, vector<1x4x32xf32>
    %16 = vector.shape_cast %15 : vector<1x4x32xf32> to vector<4x32xf32>
    %c1 = arith.constant 1 : index
    %c1_20 = arith.constant 1 : index
    %c0_21 = arith.constant 0 : index
    %17 = vector.load %arg14[%c1, %c1_20, %c0_21] : memref<6x6x32xf32, #tpu.memory_space<vmem>>, vector<1x4x32xf32>
    %18 = vector.shape_cast %17 : vector<1x4x32xf32> to vector<4x32xf32>
    %19 = vector.shape_cast %16 : vector<4x32xf32> to vector<1x4x32xf32>
    tpu.vector_store %arg14[%c1, %c1_20, %c0_21], %19 {strides = array<i32>} : memref<6x6x32xf32, #tpu.memory_space<vmem>>, vector<1x4x32xf32>,
    %c0_22 = arith.constant 0 : index
    %c0_23 = arith.constant 0 : index
    %20 = vector.load %arg13[%c0_22, %c0_23] : memref<16x32xf32, #tpu.memory_space<vmem>>, vector<4x32xf32>
    %c1_24 = arith.constant 1 : index
    %c1_25 = arith.constant 1 : index
    %c0_26 = arith.constant 0 : index
    %21 = vector.load %arg15[%c1_24, %c1_25, %c0_26] : memref<6x6x32xf32, #tpu.memory_space<vmem>>, vector<1x4x32xf32>
    %22 = vector.shape_cast %21 : vector<1x4x32xf32> to vector<4x32xf32>
    %23 = vector.shape_cast %20 : vector<4x32xf32> to vector<1x4x32xf32>
    tpu.vector_store %arg15[%c1_24, %c1_25, %c0_26], %23 {strides = array<i32>} : memref<6x6x32xf32, #tpu.memory_space<vmem>>, vector<1x4x32xf32>,
    %c0_27 = arith.constant 0 : index
    %c4 = arith.constant 4 : index
    %c0_28 = arith.constant 0 : index
    %24 = vector.load %arg1[%c0_27, %c4, %c0_28] : memref<1x16x32xf32, #tpu.memory_space<vmem>>, vector<1x4x32xf32>
    %25 = vector.shape_cast %24 : vector<1x4x32xf32> to vector<4x32xf32>
    %c2 = arith.constant 2 : index
    %c1_29 = arith.constant 1 : index
    %c0_30 = arith.constant 0 : index
    %26 = vector.load %arg14[%c2, %c1_29, %c0_30] : memref<6x6x32xf32, #tpu.memory_space<vmem>>, vector<1x4x32xf32>
    %27 = vector.shape_cast %26 : vector<1x4x32xf32> to vector<4x32xf32>
    %28 = vector.shape_cast %25 : vector<4x32xf32> to vector<1x4x32xf32>
    tpu.vector_store %arg14[%c2, %c1_29, %c0_30], %28 {strides = array<i32>} : memref<6x6x32xf32, #tpu.memory_space<vmem>>, vector<1x4x32xf32>,
    %c4_31 = arith.constant 4 : index
    %c0_32 = arith.constant 0 : index
    %29 = vector.load %arg13[%c4_31, %c0_32] : memref<16x32xf32, #tpu.memory_space<vmem>>, vector<4x32xf32>
    %c2_33 = arith.constant 2 : index
    %c1_34 = arith.constant 1 : index
    %c0_35 = arith.constant 0 : index
    %30 = vector.load %arg15[%c2_33, %c1_34, %c0_35] : memref<6x6x32xf32, #tpu.memory_space<vmem>>, vector<1x4x32xf32>
    %31 = vector.shape_cast %30 : vector<1x4x32xf32> to vector<4x32xf32>
    %32 = vector.shape_cast %29 : vector<4x32xf32> to vector<1x4x32xf32>
    tpu.vector_store %arg15[%c2_33, %c1_34, %c0_35], %32 {strides = array<i32>} : memref<6x6x32xf32, #tpu.memory_space<vmem>>, vector<1x4x32xf32>,
    %c0_36 = arith.constant 0 : index
    %c8 = arith.constant 8 : index
    %c0_37 = arith.constant 0 : index
    %33 = vector.load %arg1[%c0_36, %c8, %c0_37] : memref<1x16x32xf32, #tpu.memory_space<vmem>>, vector<1x4x32xf32>
    %34 = vector.shape_cast %33 : vector<1x4x32xf32> to vector<4x32xf32>
    %c3 = arith.constant 3 : index
    %c1_38 = arith.constant 1 : index
    %c0_39 = arith.constant 0 : index
    %35 = vector.load %arg14[%c3, %c1_38, %c0_39] : memref<6x6x32xf32, #tpu.memory_space<vmem>>, vector<1x4x32xf32>
    %36 = vector.shape_cast %35 : vector<1x4x32xf32> to vector<4x32xf32>
    %37 = vector.shape_cast %34 : vector<4x32xf32> to vector<1x4x32xf32>
    tpu.vector_store %arg14[%c3, %c1_38, %c0_39], %37 {strides = array<i32>} : memref<6x6x32xf32, #tpu.memory_space<vmem>>, vector<1x4x32xf32>,
    %c8_40 = arith.constant 8 : index
    %c0_41 = arith.constant 0 : index
    %38 = vector.load %arg13[%c8_40, %c0_41] : memref<16x32xf32, #tpu.memory_space<vmem>>, vector<4x32xf32>
    %c3_42 = arith.constant 3 : index
    %c1_43 = arith.constant 1 : index
    %c0_44 = arith.constant 0 : index
    %39 = vector.load %arg15[%c3_42, %c1_43, %c0_44] : memref<6x6x32xf32, #tpu.memory_space<vmem>>, vector<1x4x32xf32>
    %40 = vector.shape_cast %39 : vector<1x4x32xf32> to vector<4x32xf32>
    %41 = vector.shape_cast %38 : vector<4x32xf32> to vector<1x4x32xf32>
    tpu.vector_store %arg15[%c3_42, %c1_43, %c0_44], %41 {strides = array<i32>} : memref<6x6x32xf32, #tpu.memory_space<vmem>>, vector<1x4x32xf32>,
    %c0_45 = arith.constant 0 : index
    %c12 = arith.constant 12 : index
    %c0_46 = arith.constant 0 : index
    %42 = vector.load %arg1[%c0_45, %c12, %c0_46] : memref<1x16x32xf32, #tpu.memory_space<vmem>>, vector<1x4x32xf32>
    %43 = vector.shape_cast %42 : vector<1x4x32xf32> to vector<4x32xf32>
    %c4_47 = arith.constant 4 : index
    %c1_48 = arith.constant 1 : index
    %c0_49 = arith.constant 0 : index
    %44 = vector.load %arg14[%c4_47, %c1_48, %c0_49] : memref<6x6x32xf32, #tpu.memory_space<vmem>>, vector<1x4x32xf32>
    %45 = vector.shape_cast %44 : vector<1x4x32xf32> to vector<4x32xf32>
    %46 = vector.shape_cast %43 : vector<4x32xf32> to vector<1x4x32xf32>
    tpu.vector_store %arg14[%c4_47, %c1_48, %c0_49], %46 {strides = array<i32>} : memref<6x6x32xf32, #tpu.memory_space<vmem>>, vector<1x4x32xf32>,
    %c12_50 = arith.constant 12 : index
    %c0_51 = arith.constant 0 : index
    %47 = vector.load %arg13[%c12_50, %c0_51] : memref<16x32xf32, #tpu.memory_space<vmem>>, vector<4x32xf32>
    %c4_52 = arith.constant 4 : index
    %c1_53 = arith.constant 1 : index
    %c0_54 = arith.constant 0 : index
    %48 = vector.load %arg15[%c4_52, %c1_53, %c0_54] : memref<6x6x32xf32, #tpu.memory_space<vmem>>, vector<1x4x32xf32>
    %49 = vector.shape_cast %48 : vector<1x4x32xf32> to vector<4x32xf32>
    %50 = vector.shape_cast %47 : vector<4x32xf32> to vector<1x4x32xf32>
    tpu.vector_store %arg15[%c4_52, %c1_53, %c0_54], %50 {strides = array<i32>} : memref<6x6x32xf32, #tpu.memory_space<vmem>>, vector<1x4x32xf32>,
    %51 = tpu.iota {dimensions = array<i32: 0>} : vector<2x4xi32>
    %52 = tpu.iota {dimensions = array<i32: 1>} : vector<2x4xi32>
    %c2_i32 = arith.constant 2 : i32
    %53 = vector.broadcast %c2_i32 : i32 to vector<2x4xi32>
    %54 = arith.muli %53, %51 : vector<2x4xi32>
    %55 = arith.cmpi eq, %52, %54 : vector<2x4xi32>
    %cst_55 = arith.constant 1.000000e+00 : f32
    %cst_56 = arith.constant 0.000000e+00 : f32
    %56 = vector.broadcast %cst_55 : f32 to vector<2x4xf32>
    %57 = vector.broadcast %cst_56 : f32 to vector<2x4xf32>
    %58 = arith.select %55, %56, %57 : vector<2x4xi1>, vector<2x4xf32>
    %c0_57 = arith.constant 0 : index
    %c0_58 = arith.constant 0 : index
    %c0_59 = arith.constant 0 : index
    %59 = vector.load %arg15[%c0_57, %c0_58, %c0_59] : memref<6x6x32xf32, #tpu.memory_space<vmem>>, vector<1x4x32xf32>
    %60 = vector.shape_cast %59 : vector<1x4x32xf32> to vector<4x32xf32>
    %c0_60 = arith.constant 0 : index
    %c0_61 = arith.constant 0 : index
    %61 = vector.load %arg4[%c0_60, %c0_61] : memref<9x32xf32, #tpu.memory_space<vmem>>, vector<1x32xf32>
    %62 = vector.broadcast %61 : vector<1x32xf32> to vector<4x32xf32>
    %63 = arith.mulf %60, %62 : vector<4x32xf32>
    %c0_62 = arith.constant 0 : index
    %c0_63 = arith.constant 0 : index
    %c0_64 = arith.constant 0 : index
    %64 = vector.load %arg14[%c0_62, %c0_63, %c0_64] : memref<6x6x32xf32, #tpu.memory_space<vmem>>, vector<1x4x32xf32>
    %65 = vector.shape_cast %64 : vector<1x4x32xf32> to vector<4x32xf32>
    %c0_65 = arith.constant 0 : index
    %c0_66 = arith.constant 0 : index
    %66 = vector.load %arg8[%c0_65, %c0_66] : memref<9x32xf32, #tpu.memory_space<vmem>>, vector<1x32xf32>
    %67 = vector.broadcast %66 : vector<1x32xf32> to vector<4x32xf32>
    %68 = arith.mulf %65, %67 : vector<4x32xf32>
    %c0_67 = arith.constant 0 : index
    %c1_68 = arith.constant 1 : index
    %c0_69 = arith.constant 0 : index
    %69 = vector.load %arg15[%c0_67, %c1_68, %c0_69] : memref<6x6x32xf32, #tpu.memory_space<vmem>>, vector<1x4x32xf32>
    %70 = vector.shape_cast %69 : vector<1x4x32xf32> to vector<4x32xf32>
    %c1_70 = arith.constant 1 : index
    %c0_71 = arith.constant 0 : index
    %71 = vector.load %arg4[%c1_70, %c0_71] : memref<9x32xf32, #tpu.memory_space<vmem>>, vector<1x32xf32>
    %72 = vector.broadcast %71 : vector<1x32xf32> to vector<4x32xf32>
    %73 = arith.mulf %70, %72 : vector<4x32xf32>
    %74 = arith.addf %63, %73 : vector<4x32xf32>
    %c0_72 = arith.constant 0 : index
    %c1_73 = arith.constant 1 : index
    %c0_74 = arith.constant 0 : index
    %75 = vector.load %arg14[%c0_72, %c1_73, %c0_74] : memref<6x6x32xf32, #tpu.memory_space<vmem>>, vector<1x4x32xf32>
    %76 = vector.shape_cast %75 : vector<1x4x32xf32> to vector<4x32xf32>
    %c1_75 = arith.constant 1 : index
    %c0_76 = arith.constant 0 : index
    %77 = vector.load %arg8[%c1_75, %c0_76] : memref<9x32xf32, #tpu.memory_space<vmem>>, vector<1x32xf32>
    %78 = vector.broadcast %77 : vector<1x32xf32> to vector<4x32xf32>
    %79 = arith.mulf %76, %78 : vector<4x32xf32>
    %80 = arith.addf %68, %79 : vector<4x32xf32>
    %c0_77 = arith.constant 0 : index
    %c2_78 = arith.constant 2 : index
    %c0_79 = arith.constant 0 : index
    %81 = vector.load %arg15[%c0_77, %c2_78, %c0_79] : memref<6x6x32xf32, #tpu.memory_space<vmem>>, vector<1x4x32xf32>
    %82 = vector.shape_cast %81 : vector<1x4x32xf32> to vector<4x32xf32>
    %c2_80 = arith.constant 2 : index
    %c0_81 = arith.constant 0 : index
    %83 = vector.load %arg4[%c2_80, %c0_81] : memref<9x32xf32, #tpu.memory_space<vmem>>, vector<1x32xf32>
    %84 = vector.broadcast %83 : vector<1x32xf32> to vector<4x32xf32>
    %85 = arith.mulf %82, %84 : vector<4x32xf32>
    %86 = arith.addf %74, %85 : vector<4x32xf32>
    %c0_82 = arith.constant 0 : index
    %c2_83 = arith.constant 2 : index
    %c0_84 = arith.constant 0 : index
    %87 = vector.load %arg14[%c0_82, %c2_83, %c0_84] : memref<6x6x32xf32, #tpu.memory_space<vmem>>, vector<1x4x32xf32>
    %88 = vector.shape_cast %87 : vector<1x4x32xf32> to vector<4x32xf32>
    %c2_85 = arith.constant 2 : index
    %c0_86 = arith.constant 0 : index
    %89 = vector.load %arg8[%c2_85, %c0_86] : memref<9x32xf32, #tpu.memory_space<vmem>>, vector<1x32xf32>
    %90 = vector.broadcast %89 : vector<1x32xf32> to vector<4x32xf32>
    %91 = arith.mulf %88, %90 : vector<4x32xf32>
    %92 = arith.addf %80, %91 : vector<4x32xf32>
    %c1_87 = arith.constant 1 : index
    %c0_88 = arith.constant 0 : index
    %c0_89 = arith.constant 0 : index
    %93 = vector.load %arg15[%c1_87, %c0_88, %c0_89] : memref<6x6x32xf32, #tpu.memory_space<vmem>>, vector<1x4x32xf32>
    %94 = vector.shape_cast %93 : vector<1x4x32xf32> to vector<4x32xf32>
    %c3_90 = arith.constant 3 : index
    %c0_91 = arith.constant 0 : index
    %95 = vector.load %arg4[%c3_90, %c0_91] : memref<9x32xf32, #tpu.memory_space<vmem>>, vector<1x32xf32>
    %96 = vector.broadcast %95 : vector<1x32xf32> to vector<4x32xf32>
    %97 = arith.mulf %94, %96 : vector<4x32xf32>
    %98 = arith.addf %86, %97 : vector<4x32xf32>
    %c1_92 = arith.constant 1 : index
    %c0_93 = arith.constant 0 : index
    %c0_94 = arith.constant 0 : index
    %99 = vector.load %arg14[%c1_92, %c0_93, %c0_94] : memref<6x6x32xf32, #tpu.memory_space<vmem>>, vector<1x4x32xf32>
    %100 = vector.shape_cast %99 : vector<1x4x32xf32> to vector<4x32xf32>
    %c3_95 = arith.constant 3 : index
    %c0_96 = arith.constant 0 : index
    %101 = vector.load %arg8[%c3_95, %c0_96] : memref<9x32xf32, #tpu.memory_space<vmem>>, vector<1x32xf32>
    %102 = vector.broadcast %101 : vector<1x32xf32> to vector<4x32xf32>
    %103 = arith.mulf %100, %102 : vector<4x32xf32>
    %104 = arith.addf %92, %103 : vector<4x32xf32>
    %c1_97 = arith.constant 1 : index
    %c1_98 = arith.constant 1 : index
    %c0_99 = arith.constant 0 : index
    %105 = vector.load %arg15[%c1_97, %c1_98, %c0_99] : memref<6x6x32xf32, #tpu.memory_space<vmem>>, vector<1x4x32xf32>
    %106 = vector.shape_cast %105 : vector<1x4x32xf32> to vector<4x32xf32>
    %c4_100 = arith.constant 4 : index
    %c0_101 = arith.constant 0 : index
    %107 = vector.load %arg4[%c4_100, %c0_101] : memref<9x32xf32, #tpu.memory_space<vmem>>, vector<1x32xf32>
    %108 = vector.broadcast %107 : vector<1x32xf32> to vector<4x32xf32>
    %109 = arith.mulf %106, %108 : vector<4x32xf32>
    %110 = arith.addf %98, %109 : vector<4x32xf32>
    %c1_102 = arith.constant 1 : index
    %c1_103 = arith.constant 1 : index
    %c0_104 = arith.constant 0 : index
    %111 = vector.load %arg14[%c1_102, %c1_103, %c0_104] : memref<6x6x32xf32, #tpu.memory_space<vmem>>, vector<1x4x32xf32>
    %112 = vector.shape_cast %111 : vector<1x4x32xf32> to vector<4x32xf32>
    %c4_105 = arith.constant 4 : index
    %c0_106 = arith.constant 0 : index
    %113 = vector.load %arg8[%c4_105, %c0_106] : memref<9x32xf32, #tpu.memory_space<vmem>>, vector<1x32xf32>
    %114 = vector.broadcast %113 : vector<1x32xf32> to vector<4x32xf32>
    %115 = arith.mulf %112, %114 : vector<4x32xf32>
    %116 = arith.addf %104, %115 : vector<4x32xf32>
    %c1_107 = arith.constant 1 : index
    %c2_108 = arith.constant 2 : index
    %c0_109 = arith.constant 0 : index
    %117 = vector.load %arg15[%c1_107, %c2_108, %c0_109] : memref<6x6x32xf32, #tpu.memory_space<vmem>>, vector<1x4x32xf32>
    %118 = vector.shape_cast %117 : vector<1x4x32xf32> to vector<4x32xf32>
    %c5 = arith.constant 5 : index
    %c0_110 = arith.constant 0 : index
    %119 = vector.load %arg4[%c5, %c0_110] : memref<9x32xf32, #tpu.memory_space<vmem>>, vector<1x32xf32>
    %120 = vector.broadcast %119 : vector<1x32xf32> to vector<4x32xf32>
    %121 = arith.mulf %118, %120 : vector<4x32xf32>
    %122 = arith.addf %110, %121 : vector<4x32xf32>
    %c1_111 = arith.constant 1 : index
    %c2_112 = arith.constant 2 : index
    %c0_113 = arith.constant 0 : index
    %123 = vector.load %arg14[%c1_111, %c2_112, %c0_113] : memref<6x6x32xf32, #tpu.memory_space<vmem>>, vector<1x4x32xf32>
    %124 = vector.shape_cast %123 : vector<1x4x32xf32> to vector<4x32xf32>
    %c5_114 = arith.constant 5 : index
    %c0_115 = arith.constant 0 : index
    %125 = vector.load %arg8[%c5_114, %c0_115] : memref<9x32xf32, #tpu.memory_space<vmem>>, vector<1x32xf32>
    %126 = vector.broadcast %125 : vector<1x32xf32> to vector<4x32xf32>
    %127 = arith.mulf %124, %126 : vector<4x32xf32>
    %128 = arith.addf %116, %127 : vector<4x32xf32>
    %c2_116 = arith.constant 2 : index
    %c0_117 = arith.constant 0 : index
    %c0_118 = arith.constant 0 : index
    %129 = vector.load %arg15[%c2_116, %c0_117, %c0_118] : memref<6x6x32xf32, #tpu.memory_space<vmem>>, vector<1x4x32xf32>
    %130 = vector.shape_cast %129 : vector<1x4x32xf32> to vector<4x32xf32>
    %c6 = arith.constant 6 : index
    %c0_119 = arith.constant 0 : index
    %131 = vector.load %arg4[%c6, %c0_119] : memref<9x32xf32, #tpu.memory_space<vmem>>, vector<1x32xf32>
    %132 = vector.broadcast %131 : vector<1x32xf32> to vector<4x32xf32>
    %133 = arith.mulf %130, %132 : vector<4x32xf32>
    %134 = arith.addf %122, %133 : vector<4x32xf32>
    %c2_120 = arith.constant 2 : index
    %c0_121 = arith.constant 0 : index
    %c0_122 = arith.constant 0 : index
    %135 = vector.load %arg14[%c2_120, %c0_121, %c0_122] : memref<6x6x32xf32, #tpu.memory_space<vmem>>, vector<1x4x32xf32>
    %136 = vector.shape_cast %135 : vector<1x4x32xf32> to vector<4x32xf32>
    %c6_123 = arith.constant 6 : index
    %c0_124 = arith.constant 0 : index
    %137 = vector.load %arg8[%c6_123, %c0_124] : memref<9x32xf32, #tpu.memory_space<vmem>>, vector<1x32xf32>
    %138 = vector.broadcast %137 : vector<1x32xf32> to vector<4x32xf32>
    %139 = arith.mulf %136, %138 : vector<4x32xf32>
    %140 = arith.addf %128, %139 : vector<4x32xf32>
    %c2_125 = arith.constant 2 : index
    %c1_126 = arith.constant 1 : index
    %c0_127 = arith.constant 0 : index
    %141 = vector.load %arg15[%c2_125, %c1_126, %c0_127] : memref<6x6x32xf32, #tpu.memory_space<vmem>>, vector<1x4x32xf32>
    %142 = vector.shape_cast %141 : vector<1x4x32xf32> to vector<4x32xf32>
    %c7 = arith.constant 7 : index
    %c0_128 = arith.constant 0 : index
    %143 = vector.load %arg4[%c7, %c0_128] : memref<9x32xf32, #tpu.memory_space<vmem>>, vector<1x32xf32>
    %144 = vector.broadcast %143 : vector<1x32xf32> to vector<4x32xf32>
    %145 = arith.mulf %142, %144 : vector<4x32xf32>
    %146 = arith.addf %134, %145 : vector<4x32xf32>
    %c2_129 = arith.constant 2 : index
    %c1_130 = arith.constant 1 : index
    %c0_131 = arith.constant 0 : index
    %147 = vector.load %arg14[%c2_129, %c1_130, %c0_131] : memref<6x6x32xf32, #tpu.memory_space<vmem>>, vector<1x4x32xf32>
    %148 = vector.shape_cast %147 : vector<1x4x32xf32> to vector<4x32xf32>
    %c7_132 = arith.constant 7 : index
    %c0_133 = arith.constant 0 : index
    %149 = vector.load %arg8[%c7_132, %c0_133] : memref<9x32xf32, #tpu.memory_space<vmem>>, vector<1x32xf32>
    %150 = vector.broadcast %149 : vector<1x32xf32> to vector<4x32xf32>
    %151 = arith.mulf %148, %150 : vector<4x32xf32>
    %152 = arith.addf %140, %151 : vector<4x32xf32>
    %c2_134 = arith.constant 2 : index
    %c2_135 = arith.constant 2 : index
    %c0_136 = arith.constant 0 : index
    %153 = vector.load %arg15[%c2_134, %c2_135, %c0_136] : memref<6x6x32xf32, #tpu.memory_space<vmem>>, vector<1x4x32xf32>
    %154 = vector.shape_cast %153 : vector<1x4x32xf32> to vector<4x32xf32>
    %c8_137 = arith.constant 8 : index
    %c0_138 = arith.constant 0 : index
    %155 = vector.load %arg4[%c8_137, %c0_138] : memref<9x32xf32, #tpu.memory_space<vmem>>, vector<1x32xf32>
    %156 = vector.broadcast %155 : vector<1x32xf32> to vector<4x32xf32>
    %157 = arith.mulf %154, %156 : vector<4x32xf32>
    %158 = arith.addf %146, %157 : vector<4x32xf32>
    %c2_139 = arith.constant 2 : index
    %c2_140 = arith.constant 2 : index
    %c0_141 = arith.constant 0 : index
    %159 = vector.load %arg14[%c2_139, %c2_140, %c0_141] : memref<6x6x32xf32, #tpu.memory_space<vmem>>, vector<1x4x32xf32>
    %160 = vector.shape_cast %159 : vector<1x4x32xf32> to vector<4x32xf32>
    %c8_142 = arith.constant 8 : index
    %c0_143 = arith.constant 0 : index
    %161 = vector.load %arg8[%c8_142, %c0_143] : memref<9x32xf32, #tpu.memory_space<vmem>>, vector<1x32xf32>
    %162 = vector.broadcast %161 : vector<1x32xf32> to vector<4x32xf32>
    %163 = arith.mulf %160, %162 : vector<4x32xf32>
    %164 = arith.addf %152, %163 : vector<4x32xf32>
    %cst_144 = arith.constant dense<0.000000e+00> : vector<2x32xf32>
    %165 = tpu.matmul %58, %158, %cst_144 {dimension_numbers = #tpu.dot_dimension_numbers<[1], [0], [0], [1], [0, 0, 1, 1], [], []>, precision = #tpu.contract_precision<fp32>} : vector<2x4xf32>, vector<4x32xf32>, vector<2x32xf32> -> vector<2x32xf32>
    %c0_145 = arith.constant 0 : index
    %c0_146 = arith.constant 0 : index
    %166 = vector.load %arg16[%c0_145, %c0_146] : memref<4x32xf32, #tpu.memory_space<vmem>>, vector<2x32xf32>
    tpu.vector_store %arg16[%c0_145, %c0_146], %165 {strides = array<i32>} : memref<4x32xf32, #tpu.memory_space<vmem>>, vector<2x32xf32>,
    %cst_147 = arith.constant dense<0.000000e+00> : vector<2x32xf32>
    %167 = tpu.matmul %58, %164, %cst_147 {dimension_numbers = #tpu.dot_dimension_numbers<[1], [0], [0], [1], [0, 0, 1, 1], [], []>, precision = #tpu.contract_precision<fp32>} : vector<2x4xf32>, vector<4x32xf32>, vector<2x32xf32> -> vector<2x32xf32>
    %c0_148 = arith.constant 0 : index
    %c0_149 = arith.constant 0 : index
    %168 = vector.load %arg17[%c0_148, %c0_149] : memref<4x32xf32, #tpu.memory_space<vmem>>, vector<2x32xf32>
    tpu.vector_store %arg17[%c0_148, %c0_149], %167 {strides = array<i32>} : memref<4x32xf32, #tpu.memory_space<vmem>>, vector<2x32xf32>,
    %c2_150 = arith.constant 2 : index
    %c0_151 = arith.constant 0 : index
    %c0_152 = arith.constant 0 : index
    %169 = vector.load %arg15[%c2_150, %c0_151, %c0_152] : memref<6x6x32xf32, #tpu.memory_space<vmem>>, vector<1x4x32xf32>
    %170 = vector.shape_cast %169 : vector<1x4x32xf32> to vector<4x32xf32>
    %c0_153 = arith.constant 0 : index
    %c0_154 = arith.constant 0 : index
    %171 = vector.load %arg4[%c0_153, %c0_154] : memref<9x32xf32, #tpu.memory_space<vmem>>, vector<1x32xf32>
    %172 = vector.broadcast %171 : vector<1x32xf32> to vector<4x32xf32>
    %173 = arith.mulf %170, %172 : vector<4x32xf32>
    %c2_155 = arith.constant 2 : index
    %c0_156 = arith.constant 0 : index
    %c0_157 = arith.constant 0 : index
    %174 = vector.load %arg14[%c2_155, %c0_156, %c0_157] : memref<6x6x32xf32, #tpu.memory_space<vmem>>, vector<1x4x32xf32>
    %175 = vector.shape_cast %174 : vector<1x4x32xf32> to vector<4x32xf32>
    %c0_158 = arith.constant 0 : index
    %c0_159 = arith.constant 0 : index
    %176 = vector.load %arg8[%c0_158, %c0_159] : memref<9x32xf32, #tpu.memory_space<vmem>>, vector<1x32xf32>
    %177 = vector.broadcast %176 : vector<1x32xf32> to vector<4x32xf32>
    %178 = arith.mulf %175, %177 : vector<4x32xf32>
    %c2_160 = arith.constant 2 : index
    %c1_161 = arith.constant 1 : index
    %c0_162 = arith.constant 0 : index
    %179 = vector.load %arg15[%c2_160, %c1_161, %c0_162] : memref<6x6x32xf32, #tpu.memory_space<vmem>>, vector<1x4x32xf32>
    %180 = vector.shape_cast %179 : vector<1x4x32xf32> to vector<4x32xf32>
    %c1_163 = arith.constant 1 : index
    %c0_164 = arith.constant 0 : index
    %181 = vector.load %arg4[%c1_163, %c0_164] : memref<9x32xf32, #tpu.memory_space<vmem>>, vector<1x32xf32>
    %182 = vector.broadcast %181 : vector<1x32xf32> to vector<4x32xf32>
    %183 = arith.mulf %180, %182 : vector<4x32xf32>
    %184 = arith.addf %173, %183 : vector<4x32xf32>
    %c2_165 = arith.constant 2 : index
    %c1_166 = arith.constant 1 : index
    %c0_167 = arith.constant 0 : index
    %185 = vector.load %arg14[%c2_165, %c1_166, %c0_167] : memref<6x6x32xf32, #tpu.memory_space<vmem>>, vector<1x4x32xf32>
    %186 = vector.shape_cast %185 : vector<1x4x32xf32> to vector<4x32xf32>
    %c1_168 = arith.constant 1 : index
    %c0_169 = arith.constant 0 : index
    %187 = vector.load %arg8[%c1_168, %c0_169] : memref<9x32xf32, #tpu.memory_space<vmem>>, vector<1x32xf32>
    %188 = vector.broadcast %187 : vector<1x32xf32> to vector<4x32xf32>
    %189 = arith.mulf %186, %188 : vector<4x32xf32>
    %190 = arith.addf %178, %189 : vector<4x32xf32>
    %c2_170 = arith.constant 2 : index
    %c2_171 = arith.constant 2 : index
    %c0_172 = arith.constant 0 : index
    %191 = vector.load %arg15[%c2_170, %c2_171, %c0_172] : memref<6x6x32xf32, #tpu.memory_space<vmem>>, vector<1x4x32xf32>
    %192 = vector.shape_cast %191 : vector<1x4x32xf32> to vector<4x32xf32>
    %c2_173 = arith.constant 2 : index
    %c0_174 = arith.constant 0 : index
    %193 = vector.load %arg4[%c2_173, %c0_174] : memref<9x32xf32, #tpu.memory_space<vmem>>, vector<1x32xf32>
    %194 = vector.broadcast %193 : vector<1x32xf32> to vector<4x32xf32>
    %195 = arith.mulf %192, %194 : vector<4x32xf32>
    %196 = arith.addf %184, %195 : vector<4x32xf32>
    %c2_175 = arith.constant 2 : index
    %c2_176 = arith.constant 2 : index
    %c0_177 = arith.constant 0 : index
    %197 = vector.load %arg14[%c2_175, %c2_176, %c0_177] : memref<6x6x32xf32, #tpu.memory_space<vmem>>, vector<1x4x32xf32>
    %198 = vector.shape_cast %197 : vector<1x4x32xf32> to vector<4x32xf32>
    %c2_178 = arith.constant 2 : index
    %c0_179 = arith.constant 0 : index
    %199 = vector.load %arg8[%c2_178, %c0_179] : memref<9x32xf32, #tpu.memory_space<vmem>>, vector<1x32xf32>
    %200 = vector.broadcast %199 : vector<1x32xf32> to vector<4x32xf32>
    %201 = arith.mulf %198, %200 : vector<4x32xf32>
    %202 = arith.addf %190, %201 : vector<4x32xf32>
    %c3_180 = arith.constant 3 : index
    %c0_181 = arith.constant 0 : index
    %c0_182 = arith.constant 0 : index
    %203 = vector.load %arg15[%c3_180, %c0_181, %c0_182] : memref<6x6x32xf32, #tpu.memory_space<vmem>>, vector<1x4x32xf32>
    %204 = vector.shape_cast %203 : vector<1x4x32xf32> to vector<4x32xf32>
    %c3_183 = arith.constant 3 : index
    %c0_184 = arith.constant 0 : index
    %205 = vector.load %arg4[%c3_183, %c0_184] : memref<9x32xf32, #tpu.memory_space<vmem>>, vector<1x32xf32>
    %206 = vector.broadcast %205 : vector<1x32xf32> to vector<4x32xf32>
    %207 = arith.mulf %204, %206 : vector<4x32xf32>
    %208 = arith.addf %196, %207 : vector<4x32xf32>
    %c3_185 = arith.constant 3 : index
    %c0_186 = arith.constant 0 : index
    %c0_187 = arith.constant 0 : index
    %209 = vector.load %arg14[%c3_185, %c0_186, %c0_187] : memref<6x6x32xf32, #tpu.memory_space<vmem>>, vector<1x4x32xf32>
    %210 = vector.shape_cast %209 : vector<1x4x32xf32> to vector<4x32xf32>
    %c3_188 = arith.constant 3 : index
    %c0_189 = arith.constant 0 : index
    %211 = vector.load %arg8[%c3_188, %c0_189] : memref<9x32xf32, #tpu.memory_space<vmem>>, vector<1x32xf32>
    %212 = vector.broadcast %211 : vector<1x32xf32> to vector<4x32xf32>
    %213 = arith.mulf %210, %212 : vector<4x32xf32>
    %214 = arith.addf %202, %213 : vector<4x32xf32>
    %c3_190 = arith.constant 3 : index
    %c1_191 = arith.constant 1 : index
    %c0_192 = arith.constant 0 : index
    %215 = vector.load %arg15[%c3_190, %c1_191, %c0_192] : memref<6x6x32xf32, #tpu.memory_space<vmem>>, vector<1x4x32xf32>
    %216 = vector.shape_cast %215 : vector<1x4x32xf32> to vector<4x32xf32>
    %c4_193 = arith.constant 4 : index
    %c0_194 = arith.constant 0 : index
    %217 = vector.load %arg4[%c4_193, %c0_194] : memref<9x32xf32, #tpu.memory_space<vmem>>, vector<1x32xf32>
    %218 = vector.broadcast %217 : vector<1x32xf32> to vector<4x32xf32>
    %219 = arith.mulf %216, %218 : vector<4x32xf32>
    %220 = arith.addf %208, %219 : vector<4x32xf32>
    %c3_195 = arith.constant 3 : index
    %c1_196 = arith.constant 1 : index
    %c0_197 = arith.constant 0 : index
    %221 = vector.load %arg14[%c3_195, %c1_196, %c0_197] : memref<6x6x32xf32, #tpu.memory_space<vmem>>, vector<1x4x32xf32>
    %222 = vector.shape_cast %221 : vector<1x4x32xf32> to vector<4x32xf32>
    %c4_198 = arith.constant 4 : index
    %c0_199 = arith.constant 0 : index
    %223 = vector.load %arg8[%c4_198, %c0_199] : memref<9x32xf32, #tpu.memory_space<vmem>>, vector<1x32xf32>
    %224 = vector.broadcast %223 : vector<1x32xf32> to vector<4x32xf32>
    %225 = arith.mulf %222, %224 : vector<4x32xf32>
    %226 = arith.addf %214, %225 : vector<4x32xf32>
    %c3_200 = arith.constant 3 : index
    %c2_201 = arith.constant 2 : index
    %c0_202 = arith.constant 0 : index
    %227 = vector.load %arg15[%c3_200, %c2_201, %c0_202] : memref<6x6x32xf32, #tpu.memory_space<vmem>>, vector<1x4x32xf32>
    %228 = vector.shape_cast %227 : vector<1x4x32xf32> to vector<4x32xf32>
    %c5_203 = arith.constant 5 : index
    %c0_204 = arith.constant 0 : index
    %229 = vector.load %arg4[%c5_203, %c0_204] : memref<9x32xf32, #tpu.memory_space<vmem>>, vector<1x32xf32>
    %230 = vector.broadcast %229 : vector<1x32xf32> to vector<4x32xf32>
    %231 = arith.mulf %228, %230 : vector<4x32xf32>
    %232 = arith.addf %220, %231 : vector<4x32xf32>
    %c3_205 = arith.constant 3 : index
    %c2_206 = arith.constant 2 : index
    %c0_207 = arith.constant 0 : index
    %233 = vector.load %arg14[%c3_205, %c2_206, %c0_207] : memref<6x6x32xf32, #tpu.memory_space<vmem>>, vector<1x4x32xf32>
    %234 = vector.shape_cast %233 : vector<1x4x32xf32> to vector<4x32xf32>
    %c5_208 = arith.constant 5 : index
    %c0_209 = arith.constant 0 : index
    %235 = vector.load %arg8[%c5_208, %c0_209] : memref<9x32xf32, #tpu.memory_space<vmem>>, vector<1x32xf32>
    %236 = vector.broadcast %235 : vector<1x32xf32> to vector<4x32xf32>
    %237 = arith.mulf %234, %236 : vector<4x32xf32>
    %238 = arith.addf %226, %237 : vector<4x32xf32>
    %c4_210 = arith.constant 4 : index
    %c0_211 = arith.constant 0 : index
    %c0_212 = arith.constant 0 : index
    %239 = vector.load %arg15[%c4_210, %c0_211, %c0_212] : memref<6x6x32xf32, #tpu.memory_space<vmem>>, vector<1x4x32xf32>
    %240 = vector.shape_cast %239 : vector<1x4x32xf32> to vector<4x32xf32>
    %c6_213 = arith.constant 6 : index
    %c0_214 = arith.constant 0 : index
    %241 = vector.load %arg4[%c6_213, %c0_214] : memref<9x32xf32, #tpu.memory_space<vmem>>, vector<1x32xf32>
    %242 = vector.broadcast %241 : vector<1x32xf32> to vector<4x32xf32>
    %243 = arith.mulf %240, %242 : vector<4x32xf32>
    %244 = arith.addf %232, %243 : vector<4x32xf32>
    %c4_215 = arith.constant 4 : index
    %c0_216 = arith.constant 0 : index
    %c0_217 = arith.constant 0 : index
    %245 = vector.load %arg14[%c4_215, %c0_216, %c0_217] : memref<6x6x32xf32, #tpu.memory_space<vmem>>, vector<1x4x32xf32>
    %246 = vector.shape_cast %245 : vector<1x4x32xf32> to vector<4x32xf32>
    %c6_218 = arith.constant 6 : index
    %c0_219 = arith.constant 0 : index
    %247 = vector.load %arg8[%c6_218, %c0_219] : memref<9x32xf32, #tpu.memory_space<vmem>>, vector<1x32xf32>
    %248 = vector.broadcast %247 : vector<1x32xf32> to vector<4x32xf32>
    %249 = arith.mulf %246, %248 : vector<4x32xf32>
    %250 = arith.addf %238, %249 : vector<4x32xf32>
    %c4_220 = arith.constant 4 : index
    %c1_221 = arith.constant 1 : index
    %c0_222 = arith.constant 0 : index
    %251 = vector.load %arg15[%c4_220, %c1_221, %c0_222] : memref<6x6x32xf32, #tpu.memory_space<vmem>>, vector<1x4x32xf32>
    %252 = vector.shape_cast %251 : vector<1x4x32xf32> to vector<4x32xf32>
    %c7_223 = arith.constant 7 : index
    %c0_224 = arith.constant 0 : index
    %253 = vector.load %arg4[%c7_223, %c0_224] : memref<9x32xf32, #tpu.memory_space<vmem>>, vector<1x32xf32>
    %254 = vector.broadcast %253 : vector<1x32xf32> to vector<4x32xf32>
    %255 = arith.mulf %252, %254 : vector<4x32xf32>
    %256 = arith.addf %244, %255 : vector<4x32xf32>
    %c4_225 = arith.constant 4 : index
    %c1_226 = arith.constant 1 : index
    %c0_227 = arith.constant 0 : index
    %257 = vector.load %arg14[%c4_225, %c1_226, %c0_227] : memref<6x6x32xf32, #tpu.memory_space<vmem>>, vector<1x4x32xf32>
    %258 = vector.shape_cast %257 : vector<1x4x32xf32> to vector<4x32xf32>
    %c7_228 = arith.constant 7 : index
    %c0_229 = arith.constant 0 : index
    %259 = vector.load %arg8[%c7_228, %c0_229] : memref<9x32xf32, #tpu.memory_space<vmem>>, vector<1x32xf32>
    %260 = vector.broadcast %259 : vector<1x32xf32> to vector<4x32xf32>
    %261 = arith.mulf %258, %260 : vector<4x32xf32>
    %262 = arith.addf %250, %261 : vector<4x32xf32>
    %c4_230 = arith.constant 4 : index
    %c2_231 = arith.constant 2 : index
    %c0_232 = arith.constant 0 : index
    %263 = vector.load %arg15[%c4_230, %c2_231, %c0_232] : memref<6x6x32xf32, #tpu.memory_space<vmem>>, vector<1x4x32xf32>
    %264 = vector.shape_cast %263 : vector<1x4x32xf32> to vector<4x32xf32>
    %c8_233 = arith.constant 8 : index
    %c0_234 = arith.constant 0 : index
    %265 = vector.load %arg4[%c8_233, %c0_234] : memref<9x32xf32, #tpu.memory_space<vmem>>, vector<1x32xf32>
    %266 = vector.broadcast %265 : vector<1x32xf32> to vector<4x32xf32>
    %267 = arith.mulf %264, %266 : vector<4x32xf32>
    %268 = arith.addf %256, %267 : vector<4x32xf32>
    %c4_235 = arith.constant 4 : index
    %c2_236 = arith.constant 2 : index
    %c0_237 = arith.constant 0 : index
    %269 = vector.load %arg14[%c4_235, %c2_236, %c0_237] : memref<6x6x32xf32, #tpu.memory_space<vmem>>, vector<1x4x32xf32>
    %270 = vector.shape_cast %269 : vector<1x4x32xf32> to vector<4x32xf32>
    %c8_238 = arith.constant 8 : index
    %c0_239 = arith.constant 0 : index
    %271 = vector.load %arg8[%c8_238, %c0_239] : memref<9x32xf32, #tpu.memory_space<vmem>>, vector<1x32xf32>
    %272 = vector.broadcast %271 : vector<1x32xf32> to vector<4x32xf32>
    %273 = arith.mulf %270, %272 : vector<4x32xf32>
    %274 = arith.addf %262, %273 : vector<4x32xf32>
    %cst_240 = arith.constant dense<0.000000e+00> : vector<2x32xf32>
    %275 = tpu.matmul %58, %268, %cst_240 {dimension_numbers = #tpu.dot_dimension_numbers<[1], [0], [0], [1], [0, 0, 1, 1], [], []>, precision = #tpu.contract_precision<fp32>} : vector<2x4xf32>, vector<4x32xf32>, vector<2x32xf32> -> vector<2x32xf32>
    %c2_241 = arith.constant 2 : index
    %c0_242 = arith.constant 0 : index
    %276 = vector.load %arg16[%c2_241, %c0_242] : memref<4x32xf32, #tpu.memory_space<vmem>>, vector<2x32xf32>
    tpu.vector_store %arg16[%c2_241, %c0_242], %275 {strides = array<i32>} : memref<4x32xf32, #tpu.memory_space<vmem>>, vector<2x32xf32>,
    %cst_243 = arith.constant dense<0.000000e+00> : vector<2x32xf32>
    %277 = tpu.matmul %58, %274, %cst_243 {dimension_numbers = #tpu.dot_dimension_numbers<[1], [0], [0], [1], [0, 0, 1, 1], [], []>, precision = #tpu.contract_precision<fp32>} : vector<2x4xf32>, vector<4x32xf32>, vector<2x32xf32> -> vector<2x32xf32>
    %c2_244 = arith.constant 2 : index
    %c0_245 = arith.constant 0 : index
    %278 = vector.load %arg17[%c2_244, %c0_245] : memref<4x32xf32, #tpu.memory_space<vmem>>, vector<2x32xf32>
    tpu.vector_store %arg17[%c2_244, %c0_245], %277 {strides = array<i32>} : memref<4x32xf32, #tpu.memory_space<vmem>>, vector<2x32xf32>,
    %c0_246 = arith.constant 0 : index
    %c0_247 = arith.constant 0 : index
    %279 = vector.load %arg16[%c0_246, %c0_247] : memref<4x32xf32, #tpu.memory_space<vmem>>, vector<4x32xf32>
    %c0_248 = arith.constant 0 : index
    %c0_249 = arith.constant 0 : index
    %280 = vector.load %arg5[%c0_248, %c0_249] : memref<1x32xf32, #tpu.memory_space<vmem>>, vector<1x32xf32>
    %281 = vector.broadcast %280 : vector<1x32xf32> to vector<4x32xf32>
    %282 = arith.addf %279, %281 : vector<4x32xf32>
    %283 = arith.truncf %282 : vector<4x32xf32> to vector<4x32xbf16>
    %c0_250 = arith.constant 0 : index
    %c0_251 = arith.constant 0 : index
    %284 = vector.load %arg6[%c0_250, %c0_251] : memref<32x64xbf16, #tpu.memory_space<vmem>>, vector<32x64xbf16>
    %cst_252 = arith.constant dense<0.000000e+00> : vector<4x64xf32>
    %285 = tpu.matmul %283, %284, %cst_252 {dimension_numbers = #tpu.dot_dimension_numbers<[1], [0], [0], [1], [0, 0, 1, 1], [], []>} : vector<4x32xbf16>, vector<32x64xbf16>, vector<4x64xf32> -> vector<4x64xf32>
    %c0_253 = arith.constant 0 : index
    %c0_254 = arith.constant 0 : index
    %286 = vector.load %arg7[%c0_253, %c0_254] : memref<1x64xf32, #tpu.memory_space<vmem>>, vector<1x64xf32>
    %287 = vector.broadcast %286 : vector<1x64xf32> to vector<4x64xf32>
    %288 = arith.addf %285, %287 : vector<4x64xf32>
    %cst_255 = arith.constant 0.000000e+00 : f32
    %289 = vector.broadcast %cst_255 : f32 to vector<4x64xf32>
    %290 = arith.maximumf %288, %289 : vector<4x64xf32>
    %c0_256 = arith.constant 0 : index
    %c0_257 = arith.constant 0 : index
    %291 = vector.load %arg17[%c0_256, %c0_257] : memref<4x32xf32, #tpu.memory_space<vmem>>, vector<4x32xf32>
    %c0_258 = arith.constant 0 : index
    %c0_259 = arith.constant 0 : index
    %292 = vector.load %arg9[%c0_258, %c0_259] : memref<1x32xf32, #tpu.memory_space<vmem>>, vector<1x32xf32>
    %293 = vector.broadcast %292 : vector<1x32xf32> to vector<4x32xf32>
    %294 = arith.addf %291, %293 : vector<4x32xf32>
    %295 = arith.truncf %294 : vector<4x32xf32> to vector<4x32xbf16>
    %c0_260 = arith.constant 0 : index
    %c0_261 = arith.constant 0 : index
    %296 = vector.load %arg10[%c0_260, %c0_261] : memref<32x64xbf16, #tpu.memory_space<vmem>>, vector<32x64xbf16>
    %cst_262 = arith.constant dense<0.000000e+00> : vector<4x64xf32>
    %297 = tpu.matmul %295, %296, %cst_262 {dimension_numbers = #tpu.dot_dimension_numbers<[1], [0], [0], [1], [0, 0, 1, 1], [], []>} : vector<4x32xbf16>, vector<32x64xbf16>, vector<4x64xf32> -> vector<4x64xf32>
    %c0_263 = arith.constant 0 : index
    %c0_264 = arith.constant 0 : index
    %298 = vector.load %arg11[%c0_263, %c0_264] : memref<1x64xf32, #tpu.memory_space<vmem>>, vector<1x64xf32>
    %299 = vector.broadcast %298 : vector<1x64xf32> to vector<4x64xf32>
    %300 = arith.addf %297, %299 : vector<4x64xf32>
    %cst_265 = arith.constant 0.000000e+00 : f32
    %301 = vector.broadcast %cst_265 : f32 to vector<4x64xf32>
    %302 = arith.maximumf %300, %301 : vector<4x64xf32>
    %303 = arith.addf %290, %302 : vector<4x64xf32>
    %c0_266 = arith.constant 0 : index
    %c0_267 = arith.constant 0 : index
    %c0_268 = arith.constant 0 : index
    %304 = vector.load %arg12[%c0_266, %c0_267, %c0_268] : memref<1x4x64xf32, #tpu.memory_space<vmem>>, vector<1x4x64xf32>
    %305 = vector.shape_cast %304 : vector<1x4x64xf32> to vector<4x64xf32>
    %306 = vector.shape_cast %303 : vector<4x64xf32> to vector<1x4x64xf32>
    tpu.vector_store %arg12[%c0_266, %c0_267, %c0_268], %306 {strides = array<i32>} : memref<1x4x64xf32, #tpu.memory_space<vmem>>, vector<1x4x64xf32>,
    return
  }
  func.func @transform_0(%arg0: i32) -> (i32, i32, i32) {
    %c0_i32 = arith.constant 0 : i32
    %c0_i32_0 = arith.constant 0 : i32
    %c0_i32_1 = arith.constant 0 : i32
    return %arg0, %c0_i32, %c0_i32_0 : i32, i32, i32
  }
  func.func @transform_1(%arg0: i32) -> (i32, i32) {
    %c0_i32 = arith.constant 0 : i32
    %c0_i32_0 = arith.constant 0 : i32
    %c0_i32_1 = arith.constant 0 : i32
    return %c0_i32, %c0_i32_0 : i32, i32
  }
  func.func @transform_2(%arg0: i32) -> (i32, i32) {
    %c0_i32 = arith.constant 0 : i32
    %c0_i32_0 = arith.constant 0 : i32
    %c0_i32_1 = arith.constant 0 : i32
    return %c0_i32, %c0_i32_0 : i32, i32
  }
  func.func @transform_3(%arg0: i32) -> (i32, i32) {
    %c0_i32 = arith.constant 0 : i32
    %c0_i32_0 = arith.constant 0 : i32
    %c0_i32_1 = arith.constant 0 : i32
    return %c0_i32, %c0_i32_0 : i32, i32
  }
  func.func @transform_4(%arg0: i32) -> (i32, i32) {
    %c0_i32 = arith.constant 0 : i32
    %c0_i32_0 = arith.constant 0 : i32
    %c0_i32_1 = arith.constant 0 : i32
    return %c0_i32, %c0_i32_0 : i32, i32
  }
  func.func @transform_5(%arg0: i32) -> (i32, i32) {
    %c0_i32 = arith.constant 0 : i32
    %c0_i32_0 = arith.constant 0 : i32
    %c0_i32_1 = arith.constant 0 : i32
    return %c0_i32, %c0_i32_0 : i32, i32
  }
  func.func @transform_6(%arg0: i32) -> (i32, i32) {
    %c0_i32 = arith.constant 0 : i32
    %c0_i32_0 = arith.constant 0 : i32
    %c0_i32_1 = arith.constant 0 : i32
    return %c0_i32, %c0_i32_0 : i32, i32
  }
  func.func @transform_7(%arg0: i32) -> (i32, i32) {
    %c0_i32 = arith.constant 0 : i32
    %c0_i32_0 = arith.constant 0 : i32
    %c0_i32_1 = arith.constant 0 : i32
    return %c0_i32, %c0_i32_0 : i32, i32
  }
  func.func @transform_8(%arg0: i32) -> (i32, i32) {
    %c0_i32 = arith.constant 0 : i32
    %c0_i32_0 = arith.constant 0 : i32
    %c0_i32_1 = arith.constant 0 : i32
    return %c0_i32, %c0_i32_0 : i32, i32
  }
  func.func @transform_9(%arg0: i32) -> (i32, i32) {
    %c0_i32 = arith.constant 0 : i32
    %c0_i32_0 = arith.constant 0 : i32
    %c0_i32_1 = arith.constant 0 : i32
    return %c0_i32, %c0_i32_0 : i32, i32
  }
  func.func @transform_10(%arg0: i32) -> (i32, i32) {
    %c0_i32 = arith.constant 0 : i32
    %c0_i32_0 = arith.constant 0 : i32
    %c0_i32_1 = arith.constant 0 : i32
    return %c0_i32, %c0_i32_0 : i32, i32
  }
  func.func @transform_11(%arg0: i32) -> (i32, i32, i32) {
    %c0_i32 = arith.constant 0 : i32
    %c0_i32_0 = arith.constant 0 : i32
    %c0_i32_1 = arith.constant 0 : i32
    return %arg0, %c0_i32, %c0_i32_0 : i32, i32, i32
  }
}

module attributes {stable_mosaic.version = 11 : i64} {
  func.func @_block_s1_kernel(%arg0: i32, %arg1: memref<1x4x64xf32, #tpu.memory_space<vmem>>, %arg2: memref<64x32xbf16, #tpu.memory_space<vmem>>, %arg3: memref<1x32xf32, #tpu.memory_space<vmem>>, %arg4: memref<9x32xf32, #tpu.memory_space<vmem>>, %arg5: memref<1x32xf32, #tpu.memory_space<vmem>>, %arg6: memref<32x64xbf16, #tpu.memory_space<vmem>>, %arg7: memref<1x64xf32, #tpu.memory_space<vmem>>, %arg8: memref<1x4x64xf32, #tpu.memory_space<vmem>>, %arg9: memref<4x32xf32, #tpu.memory_space<vmem>>, %arg10: memref<4x4x32xf32, #tpu.memory_space<vmem>>, %arg11: memref<4x32xf32, #tpu.memory_space<vmem>>) attributes {dimension_semantics = [#tpu.dimension_semantics<parallel>], iteration_bounds = array<i64: 2>, scalar_prefetch = 0 : i64, scratch_operands = 3 : i64, tpu.core_type = #tpu.core_type<tc>, window_params = [{transform_indices = @transform_0, window_bounds = array<i64: 1, 4, 64>}, {pipeline_mode = #tpu.pipeline_mode<synchronous>, transform_indices = @transform_1, window_bounds = array<i64: 64, 32>}, {pipeline_mode = #tpu.pipeline_mode<synchronous>, transform_indices = @transform_2, window_bounds = array<i64: 1, 32>}, {pipeline_mode = #tpu.pipeline_mode<synchronous>, transform_indices = @transform_3, window_bounds = array<i64: 9, 32>}, {pipeline_mode = #tpu.pipeline_mode<synchronous>, transform_indices = @transform_4, window_bounds = array<i64: 1, 32>}, {pipeline_mode = #tpu.pipeline_mode<synchronous>, transform_indices = @transform_5, window_bounds = array<i64: 32, 64>}, {pipeline_mode = #tpu.pipeline_mode<synchronous>, transform_indices = @transform_6, window_bounds = array<i64: 1, 64>}, {transform_indices = @transform_7, window_bounds = array<i64: 1, 4, 64>}]} {
    %c0 = arith.constant 0 : index
    %c0_0 = arith.constant 0 : index
    %c0_1 = arith.constant 0 : index
    %0 = vector.load %arg1[%c0, %c0_0, %c0_1] : memref<1x4x64xf32, #tpu.memory_space<vmem>>, vector<1x4x64xf32>
    %1 = vector.shape_cast %0 : vector<1x4x64xf32> to vector<4x64xf32>
    %2 = arith.truncf %1 : vector<4x64xf32> to vector<4x64xbf16>
    %c0_2 = arith.constant 0 : index
    %c0_3 = arith.constant 0 : index
    %3 = vector.load %arg2[%c0_2, %c0_3] : memref<64x32xbf16, #tpu.memory_space<vmem>>, vector<64x32xbf16>
    %cst = arith.constant dense<0.000000e+00> : vector<4x32xf32>
    %4 = tpu.matmul %2, %3, %cst {dimension_numbers = #tpu.dot_dimension_numbers<[1], [0], [0], [1], [0, 0, 1, 1], [], []>} : vector<4x64xbf16>, vector<64x32xbf16>, vector<4x32xf32> -> vector<4x32xf32>
    %c0_4 = arith.constant 0 : index
    %c0_5 = arith.constant 0 : index
    %5 = vector.load %arg3[%c0_4, %c0_5] : memref<1x32xf32, #tpu.memory_space<vmem>>, vector<1x32xf32>
    %6 = vector.broadcast %5 : vector<1x32xf32> to vector<4x32xf32>
    %7 = arith.addf %4, %6 : vector<4x32xf32>
    %cst_6 = arith.constant 0.000000e+00 : f32
    %8 = vector.broadcast %cst_6 : f32 to vector<4x32xf32>
    %9 = arith.maximumf %7, %8 : vector<4x32xf32>
    %c0_7 = arith.constant 0 : index
    %c0_8 = arith.constant 0 : index
    %10 = vector.load %arg9[%c0_7, %c0_8] : memref<4x32xf32, #tpu.memory_space<vmem>>, vector<4x32xf32>
    tpu.vector_store %arg9[%c0_7, %c0_8], %9 {strides = array<i32>} : memref<4x32xf32, #tpu.memory_space<vmem>>, vector<4x32xf32>,
    %cst_9 = arith.constant 0.000000e+00 : f32
    %11 = vector.broadcast %cst_9 : f32 to vector<4x4x32xf32>
    %c0_10 = arith.constant 0 : index
    %c0_11 = arith.constant 0 : index
    %c0_12 = arith.constant 0 : index
    %12 = vector.load %arg10[%c0_10, %c0_11, %c0_12] : memref<4x4x32xf32, #tpu.memory_space<vmem>>, vector<4x4x32xf32>
    tpu.vector_store %arg10[%c0_10, %c0_11, %c0_12], %11 {strides = array<i32>} : memref<4x4x32xf32, #tpu.memory_space<vmem>>, vector<4x4x32xf32>,
    %c0_13 = arith.constant 0 : index
    %c0_14 = arith.constant 0 : index
    %13 = vector.load %arg9[%c0_13, %c0_14] : memref<4x32xf32, #tpu.memory_space<vmem>>, vector<2x32xf32>
    %c1 = arith.constant 1 : index
    %c1_15 = arith.constant 1 : index
    %c0_16 = arith.constant 0 : index
    %14 = vector.load %arg10[%c1, %c1_15, %c0_16] : memref<4x4x32xf32, #tpu.memory_space<vmem>>, vector<1x2x32xf32>
    %15 = vector.shape_cast %14 : vector<1x2x32xf32> to vector<2x32xf32>
    %16 = vector.shape_cast %13 : vector<2x32xf32> to vector<1x2x32xf32>
    tpu.vector_store %arg10[%c1, %c1_15, %c0_16], %16 {strides = array<i32>} : memref<4x4x32xf32, #tpu.memory_space<vmem>>, vector<1x2x32xf32>,
    %c2 = arith.constant 2 : index
    %c0_17 = arith.constant 0 : index
    %17 = vector.load %arg9[%c2, %c0_17] : memref<4x32xf32, #tpu.memory_space<vmem>>, vector<2x32xf32>
    %c2_18 = arith.constant 2 : index
    %c1_19 = arith.constant 1 : index
    %c0_20 = arith.constant 0 : index
    %18 = vector.load %arg10[%c2_18, %c1_19, %c0_20] : memref<4x4x32xf32, #tpu.memory_space<vmem>>, vector<1x2x32xf32>
    %19 = vector.shape_cast %18 : vector<1x2x32xf32> to vector<2x32xf32>
    %20 = vector.shape_cast %17 : vector<2x32xf32> to vector<1x2x32xf32>
    tpu.vector_store %arg10[%c2_18, %c1_19, %c0_20], %20 {strides = array<i32>} : memref<4x4x32xf32, #tpu.memory_space<vmem>>, vector<1x2x32xf32>,
    %c0_21 = arith.constant 0 : index
    %c0_22 = arith.constant 0 : index
    %c0_23 = arith.constant 0 : index
    %21 = vector.load %arg10[%c0_21, %c0_22, %c0_23] : memref<4x4x32xf32, #tpu.memory_space<vmem>>, vector<1x2x32xf32>
    %22 = vector.shape_cast %21 : vector<1x2x32xf32> to vector<2x32xf32>
    %c0_24 = arith.constant 0 : index
    %c0_25 = arith.constant 0 : index
    %23 = vector.load %arg4[%c0_24, %c0_25] : memref<9x32xf32, #tpu.memory_space<vmem>>, vector<1x32xf32>
    %24 = vector.broadcast %23 : vector<1x32xf32> to vector<2x32xf32>
    %25 = arith.mulf %22, %24 : vector<2x32xf32>
    %c0_26 = arith.constant 0 : index
    %c1_27 = arith.constant 1 : index
    %c0_28 = arith.constant 0 : index
    %26 = vector.load %arg10[%c0_26, %c1_27, %c0_28] : memref<4x4x32xf32, #tpu.memory_space<vmem>>, vector<1x2x32xf32>
    %27 = vector.shape_cast %26 : vector<1x2x32xf32> to vector<2x32xf32>
    %c1_29 = arith.constant 1 : index
    %c0_30 = arith.constant 0 : index
    %28 = vector.load %arg4[%c1_29, %c0_30] : memref<9x32xf32, #tpu.memory_space<vmem>>, vector<1x32xf32>
    %29 = vector.broadcast %28 : vector<1x32xf32> to vector<2x32xf32>
    %30 = arith.mulf %27, %29 : vector<2x32xf32>
    %31 = arith.addf %25, %30 : vector<2x32xf32>
    %c0_31 = arith.constant 0 : index
    %c2_32 = arith.constant 2 : index
    %c0_33 = arith.constant 0 : index
    %32 = vector.load %arg10[%c0_31, %c2_32, %c0_33] : memref<4x4x32xf32, #tpu.memory_space<vmem>>, vector<1x2x32xf32>
    %33 = vector.shape_cast %32 : vector<1x2x32xf32> to vector<2x32xf32>
    %c2_34 = arith.constant 2 : index
    %c0_35 = arith.constant 0 : index
    %34 = vector.load %arg4[%c2_34, %c0_35] : memref<9x32xf32, #tpu.memory_space<vmem>>, vector<1x32xf32>
    %35 = vector.broadcast %34 : vector<1x32xf32> to vector<2x32xf32>
    %36 = arith.mulf %33, %35 : vector<2x32xf32>
    %37 = arith.addf %31, %36 : vector<2x32xf32>
    %c1_36 = arith.constant 1 : index
    %c0_37 = arith.constant 0 : index
    %c0_38 = arith.constant 0 : index
    %38 = vector.load %arg10[%c1_36, %c0_37, %c0_38] : memref<4x4x32xf32, #tpu.memory_space<vmem>>, vector<1x2x32xf32>
    %39 = vector.shape_cast %38 : vector<1x2x32xf32> to vector<2x32xf32>
    %c3 = arith.constant 3 : index
    %c0_39 = arith.constant 0 : index
    %40 = vector.load %arg4[%c3, %c0_39] : memref<9x32xf32, #tpu.memory_space<vmem>>, vector<1x32xf32>
    %41 = vector.broadcast %40 : vector<1x32xf32> to vector<2x32xf32>
    %42 = arith.mulf %39, %41 : vector<2x32xf32>
    %43 = arith.addf %37, %42 : vector<2x32xf32>
    %c1_40 = arith.constant 1 : index
    %c1_41 = arith.constant 1 : index
    %c0_42 = arith.constant 0 : index
    %44 = vector.load %arg10[%c1_40, %c1_41, %c0_42] : memref<4x4x32xf32, #tpu.memory_space<vmem>>, vector<1x2x32xf32>
    %45 = vector.shape_cast %44 : vector<1x2x32xf32> to vector<2x32xf32>
    %c4 = arith.constant 4 : index
    %c0_43 = arith.constant 0 : index
    %46 = vector.load %arg4[%c4, %c0_43] : memref<9x32xf32, #tpu.memory_space<vmem>>, vector<1x32xf32>
    %47 = vector.broadcast %46 : vector<1x32xf32> to vector<2x32xf32>
    %48 = arith.mulf %45, %47 : vector<2x32xf32>
    %49 = arith.addf %43, %48 : vector<2x32xf32>
    %c1_44 = arith.constant 1 : index
    %c2_45 = arith.constant 2 : index
    %c0_46 = arith.constant 0 : index
    %50 = vector.load %arg10[%c1_44, %c2_45, %c0_46] : memref<4x4x32xf32, #tpu.memory_space<vmem>>, vector<1x2x32xf32>
    %51 = vector.shape_cast %50 : vector<1x2x32xf32> to vector<2x32xf32>
    %c5 = arith.constant 5 : index
    %c0_47 = arith.constant 0 : index
    %52 = vector.load %arg4[%c5, %c0_47] : memref<9x32xf32, #tpu.memory_space<vmem>>, vector<1x32xf32>
    %53 = vector.broadcast %52 : vector<1x32xf32> to vector<2x32xf32>
    %54 = arith.mulf %51, %53 : vector<2x32xf32>
    %55 = arith.addf %49, %54 : vector<2x32xf32>
    %c2_48 = arith.constant 2 : index
    %c0_49 = arith.constant 0 : index
    %c0_50 = arith.constant 0 : index
    %56 = vector.load %arg10[%c2_48, %c0_49, %c0_50] : memref<4x4x32xf32, #tpu.memory_space<vmem>>, vector<1x2x32xf32>
    %57 = vector.shape_cast %56 : vector<1x2x32xf32> to vector<2x32xf32>
    %c6 = arith.constant 6 : index
    %c0_51 = arith.constant 0 : index
    %58 = vector.load %arg4[%c6, %c0_51] : memref<9x32xf32, #tpu.memory_space<vmem>>, vector<1x32xf32>
    %59 = vector.broadcast %58 : vector<1x32xf32> to vector<2x32xf32>
    %60 = arith.mulf %57, %59 : vector<2x32xf32>
    %61 = arith.addf %55, %60 : vector<2x32xf32>
    %c2_52 = arith.constant 2 : index
    %c1_53 = arith.constant 1 : index
    %c0_54 = arith.constant 0 : index
    %62 = vector.load %arg10[%c2_52, %c1_53, %c0_54] : memref<4x4x32xf32, #tpu.memory_space<vmem>>, vector<1x2x32xf32>
    %63 = vector.shape_cast %62 : vector<1x2x32xf32> to vector<2x32xf32>
    %c7 = arith.constant 7 : index
    %c0_55 = arith.constant 0 : index
    %64 = vector.load %arg4[%c7, %c0_55] : memref<9x32xf32, #tpu.memory_space<vmem>>, vector<1x32xf32>
    %65 = vector.broadcast %64 : vector<1x32xf32> to vector<2x32xf32>
    %66 = arith.mulf %63, %65 : vector<2x32xf32>
    %67 = arith.addf %61, %66 : vector<2x32xf32>
    %c2_56 = arith.constant 2 : index
    %c2_57 = arith.constant 2 : index
    %c0_58 = arith.constant 0 : index
    %68 = vector.load %arg10[%c2_56, %c2_57, %c0_58] : memref<4x4x32xf32, #tpu.memory_space<vmem>>, vector<1x2x32xf32>
    %69 = vector.shape_cast %68 : vector<1x2x32xf32> to vector<2x32xf32>
    %c8 = arith.constant 8 : index
    %c0_59 = arith.constant 0 : index
    %70 = vector.load %arg4[%c8, %c0_59] : memref<9x32xf32, #tpu.memory_space<vmem>>, vector<1x32xf32>
    %71 = vector.broadcast %70 : vector<1x32xf32> to vector<2x32xf32>
    %72 = arith.mulf %69, %71 : vector<2x32xf32>
    %73 = arith.addf %67, %72 : vector<2x32xf32>
    %c0_60 = arith.constant 0 : index
    %c0_61 = arith.constant 0 : index
    %74 = vector.load %arg11[%c0_60, %c0_61] : memref<4x32xf32, #tpu.memory_space<vmem>>, vector<2x32xf32>
    tpu.vector_store %arg11[%c0_60, %c0_61], %73 {strides = array<i32>} : memref<4x32xf32, #tpu.memory_space<vmem>>, vector<2x32xf32>,
    %c1_62 = arith.constant 1 : index
    %c0_63 = arith.constant 0 : index
    %c0_64 = arith.constant 0 : index
    %75 = vector.load %arg10[%c1_62, %c0_63, %c0_64] : memref<4x4x32xf32, #tpu.memory_space<vmem>>, vector<1x2x32xf32>
    %76 = vector.shape_cast %75 : vector<1x2x32xf32> to vector<2x32xf32>
    %c0_65 = arith.constant 0 : index
    %c0_66 = arith.constant 0 : index
    %77 = vector.load %arg4[%c0_65, %c0_66] : memref<9x32xf32, #tpu.memory_space<vmem>>, vector<1x32xf32>
    %78 = vector.broadcast %77 : vector<1x32xf32> to vector<2x32xf32>
    %79 = arith.mulf %76, %78 : vector<2x32xf32>
    %c1_67 = arith.constant 1 : index
    %c1_68 = arith.constant 1 : index
    %c0_69 = arith.constant 0 : index
    %80 = vector.load %arg10[%c1_67, %c1_68, %c0_69] : memref<4x4x32xf32, #tpu.memory_space<vmem>>, vector<1x2x32xf32>
    %81 = vector.shape_cast %80 : vector<1x2x32xf32> to vector<2x32xf32>
    %c1_70 = arith.constant 1 : index
    %c0_71 = arith.constant 0 : index
    %82 = vector.load %arg4[%c1_70, %c0_71] : memref<9x32xf32, #tpu.memory_space<vmem>>, vector<1x32xf32>
    %83 = vector.broadcast %82 : vector<1x32xf32> to vector<2x32xf32>
    %84 = arith.mulf %81, %83 : vector<2x32xf32>
    %85 = arith.addf %79, %84 : vector<2x32xf32>
    %c1_72 = arith.constant 1 : index
    %c2_73 = arith.constant 2 : index
    %c0_74 = arith.constant 0 : index
    %86 = vector.load %arg10[%c1_72, %c2_73, %c0_74] : memref<4x4x32xf32, #tpu.memory_space<vmem>>, vector<1x2x32xf32>
    %87 = vector.shape_cast %86 : vector<1x2x32xf32> to vector<2x32xf32>
    %c2_75 = arith.constant 2 : index
    %c0_76 = arith.constant 0 : index
    %88 = vector.load %arg4[%c2_75, %c0_76] : memref<9x32xf32, #tpu.memory_space<vmem>>, vector<1x32xf32>
    %89 = vector.broadcast %88 : vector<1x32xf32> to vector<2x32xf32>
    %90 = arith.mulf %87, %89 : vector<2x32xf32>
    %91 = arith.addf %85, %90 : vector<2x32xf32>
    %c2_77 = arith.constant 2 : index
    %c0_78 = arith.constant 0 : index
    %c0_79 = arith.constant 0 : index
    %92 = vector.load %arg10[%c2_77, %c0_78, %c0_79] : memref<4x4x32xf32, #tpu.memory_space<vmem>>, vector<1x2x32xf32>
    %93 = vector.shape_cast %92 : vector<1x2x32xf32> to vector<2x32xf32>
    %c3_80 = arith.constant 3 : index
    %c0_81 = arith.constant 0 : index
    %94 = vector.load %arg4[%c3_80, %c0_81] : memref<9x32xf32, #tpu.memory_space<vmem>>, vector<1x32xf32>
    %95 = vector.broadcast %94 : vector<1x32xf32> to vector<2x32xf32>
    %96 = arith.mulf %93, %95 : vector<2x32xf32>
    %97 = arith.addf %91, %96 : vector<2x32xf32>
    %c2_82 = arith.constant 2 : index
    %c1_83 = arith.constant 1 : index
    %c0_84 = arith.constant 0 : index
    %98 = vector.load %arg10[%c2_82, %c1_83, %c0_84] : memref<4x4x32xf32, #tpu.memory_space<vmem>>, vector<1x2x32xf32>
    %99 = vector.shape_cast %98 : vector<1x2x32xf32> to vector<2x32xf32>
    %c4_85 = arith.constant 4 : index
    %c0_86 = arith.constant 0 : index
    %100 = vector.load %arg4[%c4_85, %c0_86] : memref<9x32xf32, #tpu.memory_space<vmem>>, vector<1x32xf32>
    %101 = vector.broadcast %100 : vector<1x32xf32> to vector<2x32xf32>
    %102 = arith.mulf %99, %101 : vector<2x32xf32>
    %103 = arith.addf %97, %102 : vector<2x32xf32>
    %c2_87 = arith.constant 2 : index
    %c2_88 = arith.constant 2 : index
    %c0_89 = arith.constant 0 : index
    %104 = vector.load %arg10[%c2_87, %c2_88, %c0_89] : memref<4x4x32xf32, #tpu.memory_space<vmem>>, vector<1x2x32xf32>
    %105 = vector.shape_cast %104 : vector<1x2x32xf32> to vector<2x32xf32>
    %c5_90 = arith.constant 5 : index
    %c0_91 = arith.constant 0 : index
    %106 = vector.load %arg4[%c5_90, %c0_91] : memref<9x32xf32, #tpu.memory_space<vmem>>, vector<1x32xf32>
    %107 = vector.broadcast %106 : vector<1x32xf32> to vector<2x32xf32>
    %108 = arith.mulf %105, %107 : vector<2x32xf32>
    %109 = arith.addf %103, %108 : vector<2x32xf32>
    %c3_92 = arith.constant 3 : index
    %c0_93 = arith.constant 0 : index
    %c0_94 = arith.constant 0 : index
    %110 = vector.load %arg10[%c3_92, %c0_93, %c0_94] : memref<4x4x32xf32, #tpu.memory_space<vmem>>, vector<1x2x32xf32>
    %111 = vector.shape_cast %110 : vector<1x2x32xf32> to vector<2x32xf32>
    %c6_95 = arith.constant 6 : index
    %c0_96 = arith.constant 0 : index
    %112 = vector.load %arg4[%c6_95, %c0_96] : memref<9x32xf32, #tpu.memory_space<vmem>>, vector<1x32xf32>
    %113 = vector.broadcast %112 : vector<1x32xf32> to vector<2x32xf32>
    %114 = arith.mulf %111, %113 : vector<2x32xf32>
    %115 = arith.addf %109, %114 : vector<2x32xf32>
    %c3_97 = arith.constant 3 : index
    %c1_98 = arith.constant 1 : index
    %c0_99 = arith.constant 0 : index
    %116 = vector.load %arg10[%c3_97, %c1_98, %c0_99] : memref<4x4x32xf32, #tpu.memory_space<vmem>>, vector<1x2x32xf32>
    %117 = vector.shape_cast %116 : vector<1x2x32xf32> to vector<2x32xf32>
    %c7_100 = arith.constant 7 : index
    %c0_101 = arith.constant 0 : index
    %118 = vector.load %arg4[%c7_100, %c0_101] : memref<9x32xf32, #tpu.memory_space<vmem>>, vector<1x32xf32>
    %119 = vector.broadcast %118 : vector<1x32xf32> to vector<2x32xf32>
    %120 = arith.mulf %117, %119 : vector<2x32xf32>
    %121 = arith.addf %115, %120 : vector<2x32xf32>
    %c3_102 = arith.constant 3 : index
    %c2_103 = arith.constant 2 : index
    %c0_104 = arith.constant 0 : index
    %122 = vector.load %arg10[%c3_102, %c2_103, %c0_104] : memref<4x4x32xf32, #tpu.memory_space<vmem>>, vector<1x2x32xf32>
    %123 = vector.shape_cast %122 : vector<1x2x32xf32> to vector<2x32xf32>
    %c8_105 = arith.constant 8 : index
    %c0_106 = arith.constant 0 : index
    %124 = vector.load %arg4[%c8_105, %c0_106] : memref<9x32xf32, #tpu.memory_space<vmem>>, vector<1x32xf32>
    %125 = vector.broadcast %124 : vector<1x32xf32> to vector<2x32xf32>
    %126 = arith.mulf %123, %125 : vector<2x32xf32>
    %127 = arith.addf %121, %126 : vector<2x32xf32>
    %c2_107 = arith.constant 2 : index
    %c0_108 = arith.constant 0 : index
    %128 = vector.load %arg11[%c2_107, %c0_108] : memref<4x32xf32, #tpu.memory_space<vmem>>, vector<2x32xf32>
    tpu.vector_store %arg11[%c2_107, %c0_108], %127 {strides = array<i32>} : memref<4x32xf32, #tpu.memory_space<vmem>>, vector<2x32xf32>,
    %c0_109 = arith.constant 0 : index
    %c0_110 = arith.constant 0 : index
    %129 = vector.load %arg11[%c0_109, %c0_110] : memref<4x32xf32, #tpu.memory_space<vmem>>, vector<4x32xf32>
    %c0_111 = arith.constant 0 : index
    %c0_112 = arith.constant 0 : index
    %130 = vector.load %arg5[%c0_111, %c0_112] : memref<1x32xf32, #tpu.memory_space<vmem>>, vector<1x32xf32>
    %131 = vector.broadcast %130 : vector<1x32xf32> to vector<4x32xf32>
    %132 = arith.addf %129, %131 : vector<4x32xf32>
    %133 = arith.truncf %132 : vector<4x32xf32> to vector<4x32xbf16>
    %c0_113 = arith.constant 0 : index
    %c0_114 = arith.constant 0 : index
    %134 = vector.load %arg6[%c0_113, %c0_114] : memref<32x64xbf16, #tpu.memory_space<vmem>>, vector<32x64xbf16>
    %cst_115 = arith.constant dense<0.000000e+00> : vector<4x64xf32>
    %135 = tpu.matmul %133, %134, %cst_115 {dimension_numbers = #tpu.dot_dimension_numbers<[1], [0], [0], [1], [0, 0, 1, 1], [], []>} : vector<4x32xbf16>, vector<32x64xbf16>, vector<4x64xf32> -> vector<4x64xf32>
    %c0_116 = arith.constant 0 : index
    %c0_117 = arith.constant 0 : index
    %136 = vector.load %arg7[%c0_116, %c0_117] : memref<1x64xf32, #tpu.memory_space<vmem>>, vector<1x64xf32>
    %137 = vector.broadcast %136 : vector<1x64xf32> to vector<4x64xf32>
    %138 = arith.addf %135, %137 : vector<4x64xf32>
    %cst_118 = arith.constant 0.000000e+00 : f32
    %139 = vector.broadcast %cst_118 : f32 to vector<4x64xf32>
    %140 = arith.maximumf %138, %139 : vector<4x64xf32>
    %141 = tpu.iota {dimensions = array<i32: 1>} : vector<1x64xi32>
    %c32_i32 = arith.constant 32 : i32
    %142 = vector.broadcast %c32_i32 : i32 to vector<1x64xi32>
    %143 = arith.cmpi slt, %141, %142 : vector<1x64xi32>
    %cst_119 = arith.constant 1.000000e+00 : f32
    %cst_120 = arith.constant 0.000000e+00 : f32
    %144 = vector.broadcast %cst_119 : f32 to vector<1x64xf32>
    %145 = vector.broadcast %cst_120 : f32 to vector<1x64xf32>
    %146 = arith.select %143, %144, %145 : vector<1x64xi1>, vector<1x64xf32>
    %147 = vector.broadcast %146 : vector<1x64xf32> to vector<4x64xf32>
    %148 = arith.mulf %1, %147 : vector<4x64xf32>
    %149 = arith.addf %140, %148 : vector<4x64xf32>
    %c0_121 = arith.constant 0 : index
    %c0_122 = arith.constant 0 : index
    %c0_123 = arith.constant 0 : index
    %150 = vector.load %arg8[%c0_121, %c0_122, %c0_123] : memref<1x4x64xf32, #tpu.memory_space<vmem>>, vector<1x4x64xf32>
    %151 = vector.shape_cast %150 : vector<1x4x64xf32> to vector<4x64xf32>
    %152 = vector.shape_cast %149 : vector<4x64xf32> to vector<1x4x64xf32>
    tpu.vector_store %arg8[%c0_121, %c0_122, %c0_123], %152 {strides = array<i32>} : memref<1x4x64xf32, #tpu.memory_space<vmem>>, vector<1x4x64xf32>,
    return
  }
  func.func @transform_0(%arg0: i32) -> (i32, i32, i32) {
    %c0_i32 = arith.constant 0 : i32
    %c0_i32_0 = arith.constant 0 : i32
    %c0_i32_1 = arith.constant 0 : i32
    return %arg0, %c0_i32, %c0_i32_0 : i32, i32, i32
  }
  func.func @transform_1(%arg0: i32) -> (i32, i32) {
    %c0_i32 = arith.constant 0 : i32
    %c0_i32_0 = arith.constant 0 : i32
    %c0_i32_1 = arith.constant 0 : i32
    return %c0_i32, %c0_i32_0 : i32, i32
  }
  func.func @transform_2(%arg0: i32) -> (i32, i32) {
    %c0_i32 = arith.constant 0 : i32
    %c0_i32_0 = arith.constant 0 : i32
    %c0_i32_1 = arith.constant 0 : i32
    return %c0_i32, %c0_i32_0 : i32, i32
  }
  func.func @transform_3(%arg0: i32) -> (i32, i32) {
    %c0_i32 = arith.constant 0 : i32
    %c0_i32_0 = arith.constant 0 : i32
    %c0_i32_1 = arith.constant 0 : i32
    return %c0_i32, %c0_i32_0 : i32, i32
  }
  func.func @transform_4(%arg0: i32) -> (i32, i32) {
    %c0_i32 = arith.constant 0 : i32
    %c0_i32_0 = arith.constant 0 : i32
    %c0_i32_1 = arith.constant 0 : i32
    return %c0_i32, %c0_i32_0 : i32, i32
  }
  func.func @transform_5(%arg0: i32) -> (i32, i32) {
    %c0_i32 = arith.constant 0 : i32
    %c0_i32_0 = arith.constant 0 : i32
    %c0_i32_1 = arith.constant 0 : i32
    return %c0_i32, %c0_i32_0 : i32, i32
  }
  func.func @transform_6(%arg0: i32) -> (i32, i32) {
    %c0_i32 = arith.constant 0 : i32
    %c0_i32_0 = arith.constant 0 : i32
    %c0_i32_1 = arith.constant 0 : i32
    return %c0_i32, %c0_i32_0 : i32, i32
  }
  func.func @transform_7(%arg0: i32) -> (i32, i32, i32) {
    %c0_i32 = arith.constant 0 : i32
    %c0_i32_0 = arith.constant 0 : i32
    %c0_i32_1 = arith.constant 0 : i32
    return %arg0, %c0_i32, %c0_i32_0 : i32, i32, i32
  }
}

</mosaic_0001>

<bundles_post_ra>
// kernel: shufflenetv2_forward.7
= control target key start
LH: loop header
LB: loop body
LE: loop exit
PB: predicated region body
PF: predicated region fallthrough
CT: control target
= control target key end

     0   :  { %s942_s24 = smov 0   ;;  %s1099_s0 = inlined_call_operand.vmem [shape: f32[2,16,32], index: 0, kind: input, shape index: {}]   ;;  %s1100_s1 = inlined_call_operand.vmem [shape: bf16[32,16], index: 1, kind: input, shape index: {}]   ;;  %s1101_s2 = inlined_call_operand.vmem [shape: f32[1,16], index: 2, kind: input, shape index: {}]   ;;  %s1102_s3 = inlined_call_operand.vmem [shape: f32[9,16], index: 3, kind: input, shape index: {}]   ;;  %s1103_s4 = inlined_call_operand.vmem [shape: f32[1,16], index: 4, kind: input, shape index: {}]   ;;  %s1104_s5 = inlined_call_operand.vmem [shape: bf16[16,32], index: 5, kind: input, shape index: {}]   ;;  %s1105_s6 = inlined_call_operand.vmem [shape: f32[1,32], index: 6, kind: input, shape index: {}]   ;;  %s1106_s7 = inlined_call_operand.vmem [shape: f32[2,16,32], index: 7, kind: output, shape index: {}]  }
   0x1 LB: > { %s803_s25 = sadd.s32 4294967295, %s898_s24   ;;  %p807_p0 = scmp.ge.s32.totalorder %s898_s24, 1  ;;  %s898_s24 = sphi %s942_s24, %s17_s24  }
   0x2   : > { %p237_p1 = scmp.lt.s32.totalorder %s898_s24, 3 }
   0x4   : > { %p238_p2 = pnand %p807_p0, %p237_p1 }
   0x5   : > { %v889_v0 = vld [vmem:[%s1100_s1] sm:$0xff] (!%p238_p2)   ;;  %v900_v1 = vmov (!%p238_p2), 0.0   ;;  %v890_v2 = vld [vmem:[%s1100_s1 + $0x8] sm:$0xff] (!%p238_p2)   ;;  %vm901_vm0 = vmmov (!%p238_p2), 0   ;;  %p269_p3 = scmp.lt.s32.totalorder (!%p238_p2), %s803_s25, 1  ;;  %vm306_vm1 = vcmask (!%p238_p2), 261120  }
   0x6   : > { %241 = sbr.rel (%p238_p2) target bundleno = 507 (0x1fb), region = 48  ;;  %865 = vmatprep.subr.bf16.mxu0 (!%p238_p2), %v900_v1  ;;  %873 = vmatprep.subr.bf16.mxu1 (!%p238_p2), %v900_v1  ;;  %vm356_vm2 = vcmask (!%p238_p2), 128000   ;;  %v891_v6 = vld [vmem:[%s1104_s5] sm:$0xff] (!%p238_p2)   ;;  %vm353_vm3 = vcmask (!%p238_p2), 130048   ;;  %vm365_vm4 = vcmask (!%p238_p2), 125952  }
   0x7   : > { %866 = vmatpush3.bf16.msra.mxu0 (!%p238_p2), %v889_v0  ;;  %869 = vmatprep.mubr.msk.bf16.mxu0 (!%p238_p2), %vm901_vm0, %v900_v1  ;;  %357 = vst.msk [vmem:[#allocation3] sm:$0x3f] (!%p238_p2), %vm356_vm2, %v900_v1  ;;  %358 = vst.msk [vmem:[#allocation3 + $0x8] sm:$0x3f] (!%p238_p2), %vm356_vm2, %v900_v1  ;;  %v812_v7 = vld [vmem:[%s1101_s2] ss:$0 sm:$0xff] (!%p238_p2) }
   0x8   : > { %867 = vmatprep.subr.bf16.mxu0 (!%p238_p2), %v900_v1  ;;  %875 = vmatprep.mubr.msk.bf16.mxu1 (!%p238_p2), %vm901_vm0, %v900_v1  ;;  %359 = vst.msk [vmem:[#allocation3 + $0x10] sm:$0x3f] (!%p238_p2), %vm356_vm2, %v900_v1  ;;  %362 = vst.msk [vmem:[#allocation3 + $0x28] sm:$0x3f] (!%p238_p2), %vm356_vm2, %v900_v1  ;;  %v993_v17 = vld [vmem:[%s1102_s3] ss:$0 sm:$0xff] (!%p238_p2) }
   0x9   : > { %360 = vst.msk [vmem:[#allocation3 + $0x18] sm:$0x3f] (!%p238_p2), %vm356_vm2, %v900_v1  ;;  %361 = vst.msk [vmem:[#allocation3 + $0x20] sm:$0x3f] (!%p238_p2), %vm356_vm2, %v900_v1  ;;  %874 = vmatpush3.bf16.msra.mxu1 (!%p238_p2), %v891_v6  ;;  %v998_v19 = vld [vmem:[%s1102_s3 + $0x1] ss:$0 sm:$0xff] (!%p238_p2) }
   0xa   : > { %v1005_v25 = vld [vmem:[%s1102_s3 + $0x2] ss:$0 sm:$0xff] (!%p238_p2)  ;;  %v1015_v30 = vld [vmem:[%s1102_s3 + $0x3] ss:$0 sm:$0xff] (!%p238_p2)  ;;  %v1020_v34 = vld [vmem:[%s1102_s3 + $0x4] ss:$0 sm:$0xff] (!%p238_p2) }
   0xb   : > { %868 = vmatpush3.bf16.msra.mxu0 (!%p238_p2), %v890_v2  ;;  %v1026_v37 = vld [vmem:[%s1102_s3 + $0x5] ss:$0 sm:$0xff] (!%p238_p2)  ;;  %v1032_v43 = vld [vmem:[%s1102_s3 + $0x6] ss:$0 sm:$0xff] (!%p238_p2)  ;;  %v1037_v44 = vld [vmem:[%s1102_s3 + $0x7] ss:$0 sm:$0xff] (!%p238_p2) }
   0xc   : > { %v1049_v63 = vld [vmem:[%s1102_s3 + $0x8] ss:$0 sm:$0xff] (!%p238_p2) }
   0xd   : > { %s1108_s25 = smov (!%p269_p3, %s803_s25), 1 }
   0xe   : > { %s858_s30 = sshll.u32 %s1108_s25, 4  ;;  %v376_v16 = vld [vmem:[#allocation3] sm:$0xf] }
   0xf   : > { %s273_s10 = scalar_lea.vmem %s1099_s0, %s858_s30  ;;  %v383_v18 = vld [vmem:[#allocation3 + $0x1] sm:$0xf]  ;;  %v382_v20 = vmul.f32 %v993_v17, %v376_v16  ;;  %s278_s19 = scalar_lea.vmem %s1106_s7, %s858_s30 }
  0x10   : > { %v969_v3 = vld [vmem:[%s273_s10] sm:$0xff]  ;;  %v971_v4 = vld [vmem:[%s273_s10 + $0x8] sm:$0xff]  ;;  %v389_v21 = vmul.f32 %v998_v19, %v383_v18  ;;  %v391_v22 = vld [vmem:[#allocation3 + $0x2] sm:$0xf] }
  0x11   : > { %v282_v5 = vpack.c.bf16 %v971_v4, %v969_v3  ;;  %v397_v29 = vmul.f32 %v1005_v25, %v391_v22 }
  0x12   : > { %v390_v28 = vadd.f32 %v389_v21, %v382_v20 }
  0x13   : > { %870 = vmatmul.mubr.msk.bf16.vlgmr.msra.gmra.mrb[0].mxu0 %vm306_vm1, %v282_v5 }
  0x14   : > { %v398_v31 = vadd.f32 %v397_v29, %v390_v28 }
  0xe6   : > { %v344_v8 = vpop.f32.mrb[0].mxu0 }
  0xe7   : > { %v345_v9 = vadd.f32 %v812_v7, %v344_v8  ;;  %v871_v10 = vpop.f32.mrb[1].mxu0 }
  0xe8   : > { %v347_v11 = vpop.f32.mrb[2].mxu0 }
  0xe9   : > { %v351_v12 = vmax.f32 %v345_v9, 0.0  ;;  %v348_v13 = vadd.f32 %v812_v7, %v347_v11  ;;  %v872_v14 = vpop.f32.mrb[3].mxu0 }
  0xeb   : > { %354 = vst.msk [vmem:[#allocation2] sm:$0xff] %vm353_vm3, %v351_v12  ;;  %v352_v15 = vmax.f32 %v348_v13, 0.0 }
  0xed   : > { %355 = vst.msk [vmem:[#allocation2 + $0x8] sm:$0xff] %vm353_vm3, %v352_v15 }
  0xf2   : > { %v363_v23 = vld [vmem:[#allocation2] sm:$0xf]  ;;  %v367_v24 = vld [vmem:[#allocation2 + $0x4] sm:$0xf] }
  0xf3   : > { %366 = vst.msk [vmem:[#allocation3 + $0x9] sm:$0xf] %vm365_vm4, %v363_v23  ;;  %369 = vst.msk [vmem:[#allocation3 + $0x11] sm:$0xf] %vm365_vm4, %v367_v24 }
  0xf4   : > { %v370_v26 = vld [vmem:[#allocation2 + $0x8] sm:$0xf]  ;;  %v373_v27 = vld [vmem:[#allocation2 + $0xc] sm:$0xf] }
  0xf5   : > { %372 = vst.msk [vmem:[#allocation3 + $0x19] sm:$0xf] %vm365_vm4, %v370_v26  ;;  %375 = vst.msk [vmem:[#allocation3 + $0x21] sm:$0xf] %vm365_vm4, %v373_v27 }
  0xfa   : > { %v399_v32 = vld [vmem:[#allocation3 + $0x8] sm:$0xf]  ;;  %v423_v47 = vld [vmem:[#allocation3 + $0x10] sm:$0xf] }
  0xfb   : > { %v407_v33 = vld [vmem:[#allocation3 + $0x9] sm:$0xf]  ;;  %v405_v35 = vmul.f32 %v1015_v30, %v399_v32  ;;  %v431_v48 = vld [vmem:[#allocation3 + $0x11] sm:$0xf]  ;;  %v429_v61 = vmul.f32 %v1032_v43, %v423_v47 }
  0xfc   : > { %v415_v36 = vld [vmem:[#allocation3 + $0xa] sm:$0xf]  ;;  %v413_v42 = vmul.f32 %v1020_v34, %v407_v33  ;;  %v471_v49 = vld [vmem:[#allocation3 + $0x10] sm:$0xf]  ;;  %v543_v5 = vld [vmem:[#allocation3 + $0x18] sm:$0xf]  ;;  %v437_v6 = vmul.f32 %v1037_v44, %v431_v48 }
  0xfd   : > { %v448_v38 = vld [vmem:[#allocation3 + $0x8] sm:$0xf]  ;;  %v406_v41 = vadd.f32 %v405_v35, %v398_v31  ;;  %v421_v51 = vmul.f32 %v1026_v37, %v415_v36  ;;  %v520_v54 = vld [vmem:[#allocation3 + $0x10] sm:$0xf]  ;;  %v477_v2 = vmul.f32 %v1015_v30, %v471_v49  ;;  %v592_v10 = vld [vmem:[#allocation3 + $0x18] sm:$0xf]  ;;  %v549_v22 = vmul.f32 %v1015_v30, %v543_v5 }
  0xfe   : > { %v455_v39 = vld [vmem:[#allocation3 + $0x9] sm:$0xf]  ;;  %v454_v45 = vmul.f32 %v993_v17, %v448_v38  ;;  %v527_v55 = vld [vmem:[#allocation3 + $0x11] sm:$0xf]  ;;  %v526_v58 = vmul.f32 %v993_v17, %v520_v54  ;;  %v599_v11 = vld [vmem:[#allocation3 + $0x19] sm:$0xf]  ;;  %v598_v16 = vmul.f32 %v993_v17, %v592_v10 }
  0xff   : > { %v463_v40 = vld [vmem:[#allocation3 + $0xa] sm:$0xf]  ;;  %v461_v46 = vmul.f32 %v998_v19, %v455_v39  ;;  %v414_v50 = vadd.f32 %v413_v42, %v406_v41  ;;  %v535_v56 = vld [vmem:[#allocation3 + $0x12] sm:$0xf]  ;;  %v533_v59 = vmul.f32 %v998_v19, %v527_v55  ;;  %v551_v15 = vld [vmem:[#allocation3 + $0x19] sm:$0xf]  ;;  %v605_v23 = vmul.f32 %v998_v19, %v599_v11 }
 0x100   : > { %v469_v53 = vmul.f32 %v1005_v25, %v463_v40  ;;  %v479_v57 = vld [vmem:[#allocation3 + $0x11] sm:$0xf]  ;;  %v541_v9 = vmul.f32 %v1005_v25, %v535_v56  ;;  %v607_v18 = vld [vmem:[#allocation3 + $0x1a] sm:$0xf]  ;;  %v615_v31 = vld [vmem:[#allocation3 + $0x20] sm:$0xf]  ;;  %v557_v35 = vmul.f32 %v1020_v34, %v551_v15 }
 0x101   : > { %v462_v52 = vadd.f32 %v461_v46, %v454_v45  ;;  %v422_v60 = vadd.f32 %v421_v51, %v414_v50  ;;  %v439_v62 = vld [vmem:[#allocation3 + $0x12] sm:$0xf]  ;;  %v534_v8 = vadd.f32 %v533_v59, %v526_v58  ;;  %v485_v14 = vmul.f32 %v1020_v34, %v479_v57  ;;  %v495_v20 = vld [vmem:[#allocation3 + $0x18] sm:$0xf]  ;;  %v567_v19 = vld [vmem:[#allocation3 + $0x20] sm:$0xf] }
 0x102   : > { %v487_v7 = vld [vmem:[#allocation3 + $0x12] sm:$0xf]  ;;  %v445_v26 = vmul.f32 %v1049_v63, %v439_v62  ;;  %v559_v29 = vld [vmem:[#allocation3 + $0x1a] sm:$0xf]  ;;  %v606_v17 = vadd.f32 %v605_v23, %v598_v16  ;;  %v613_v36 = vmul.f32 %v1005_v25, %v607_v18  ;;  %v501_v40 = vmul.f32 %v1032_v43, %v495_v20  ;;  %v623_v41 = vld [vmem:[#allocation3 + $0x21] sm:$0xf] }
 0x103   : > { %v470_v0 = vadd.f32 %v469_v53, %v462_v52  ;;  %v430_v12 = vadd.f32 %v429_v61, %v422_v60  ;;  %v542_v21 = vadd.f32 %v541_v9, %v534_v8  ;;  %v493_v28 = vmul.f32 %v1026_v37, %v487_v7  ;;  %v503_v32 = vld [vmem:[#allocation3 + $0x19] sm:$0xf]  ;;  %v640_v49 = vld [vmem:[#allocation3 + $0x28] sm:$0xf]  ;;  %v575_v25 = vld [vmem:[#allocation3 + $0x21] sm:$0xf] }
 0x104   : > { %v511_v42 = vld [vmem:[#allocation3 + $0x1a] sm:$0xf]  ;;  %v565_v46 = vmul.f32 %v1026_v37, %v559_v29  ;;  %v614_v47 = vadd.f32 %v613_v36, %v606_v17  ;;  %v621_v48 = vmul.f32 %v1015_v30, %v615_v31  ;;  %v509_v51 = vmul.f32 %v1037_v44, %v503_v32  ;;  %v631_v52 = vld [vmem:[#allocation3 + $0x22] sm:$0xf]  ;;  %v648_v60 = vld [vmem:[#allocation3 + $0x29] sm:$0xf] }
 0x105   : > { %v478_v13 = vadd.f32 %v477_v2, %v470_v0  ;;  %v438_v24 = vadd.f32 %v437_v6, %v430_v12  ;;  %v550_v33 = vadd.f32 %v549_v22, %v542_v21  ;;  %v573_v54 = vmul.f32 %v1032_v43, %v567_v19  ;;  %v583_v59 = vld [vmem:[#allocation3 + $0x22] sm:$0xf]  ;;  %v656_v6 = vld [vmem:[#allocation3 + $0x2a] sm:$0xf]  ;;  %v853_v21 = vld [vmem:[%s1105_s6] ss:$0 sm:$0xff] }
 0x106   : > { %v622_v55 = vadd.f32 %v621_v48, %v614_v47  ;;  %v629_v56 = vmul.f32 %v1020_v34, %v623_v41  ;;  %v517_v58 = vmul.f32 %v1049_v63, %v511_v42  ;;  %v646_v30 = vmul.f32 %v1032_v43, %v640_v49 }
 0x107   : > { %v486_v27 = vadd.f32 %v485_v14, %v478_v13  ;;  %v446_v38 = vadd.f32 %v445_v26, %v438_v24  ;;  %v558_v45 = vadd.f32 %v557_v35, %v550_v33  ;;  %v581_v62 = vmul.f32 %v1037_v44, %v575_v25  ;;  %v852_v14 = vld [vmem:[%s1103_s4] ss:$0 sm:$0xff] }
 0x108   : > { %v630_v0 = vadd.f32 %v629_v56, %v622_v55  ;;  %v637_v2 = vmul.f32 %v1026_v37, %v631_v52  ;;  %v589_v8 = vmul.f32 %v1049_v63, %v583_v59  ;;  %v654_v34 = vmul.f32 %v1037_v44, %v648_v60 }
 0x109   : > { %v494_v39 = vadd.f32 %v493_v28, %v486_v27  ;;  %447 = vst.msk [vmem:[#allocation4] sm:$0xf] %vm365_vm4, %v446_v38  ;;  %v566_v53 = vadd.f32 %v565_v46, %v558_v45  ;;  %v662_v43 = vmul.f32 %v1049_v63, %v656_v6  ;;  %v738_v20 = vlaneseq }
 0x10a   : > { %v638_v9 = vadd.f32 %v637_v2, %v630_v0 }
 0x10b   : > { %v502_v50 = vadd.f32 %v501_v40, %v494_v39  ;;  %v574_v61 = vadd.f32 %v573_v54, %v566_v53  ;;  %v739_v63 = vand.u32 127, %v738_v20 }
 0x10c   : > { %v647_v11 = vadd.f32 %v646_v30, %v638_v9 }
 0x10d   : > { %v510_v57 = vadd.f32 %v509_v51, %v502_v50  ;;  %v582_v7 = vadd.f32 %v581_v62, %v574_v61  ;;  %vm740_vm5 = vcmp.lt.s32.totalorder %v739_v63, 16 }
 0x10e   : > { %v655_v12 = vadd.f32 %v654_v34, %v647_v11  ;;  %v741_v22 = vsel %vm740_vm5, 1.0, %v900_v1 }
 0x10f   : > { %v518_v5 = vadd.f32 %v517_v58, %v510_v57  ;;  %v590_v10 = vadd.f32 %v589_v8, %v582_v7  ;;  %v742_v26 = vmul.f32 %v741_v22, %v969_v3  ;;  %v743_v32 = vmul.f32 %v741_v22, %v971_v4 }
 0x110   : > { %v663_v13 = vadd.f32 %v662_v43, %v655_v12 }
 0x111   : > { %519 = vst.msk [vmem:[#allocation4 + $0x4] sm:$0xf] %vm365_vm4, %v518_v5  ;;  %591 = vst.msk [vmem:[#allocation4 + $0x8] sm:$0xf] %vm365_vm4, %v590_v10 }
 0x112   : > { %664 = vst.msk [vmem:[#allocation4 + $0xc] sm:$0xf] %vm365_vm4, %v663_v13 }
 0x118   : > { %v665_v37 = vld [vmem:[#allocation4] sm:$0xff] }
 0x119   : > { %v666_v15 = vld [vmem:[#allocation4 + $0x8] sm:$0xff]  ;;  %v674_v16 = vadd.f32 %v852_v14, %v665_v37 }
 0x11a   : > { %v675_v44 = vadd.f32 %v852_v14, %v666_v15 }
 0x11c   : > { %v676_v18 = vpack.c.bf16 %v675_v44, %v674_v16 }
 0x11e   : > { %876 = vmatmul.mubr.msk.bf16.vlgmr.msra.gmra.mrb[0].mxu1 %vm353_vm3, %v676_v18 }
 0x1f1   : > { %v729_v23 = vpop.f32.mrb[0].mxu1 }
 0x1f2   : > { %v730_v24 = vadd.f32 %v853_v21, %v729_v23  ;;  %v877_v27 = vpop.f32.mrb[1].mxu1 }
 0x1f3   : > { %v732_v28 = vpop.f32.mrb[2].mxu1 }
 0x1f4   : > { %v736_v29 = vmax.f32 %v730_v24, 0.0  ;;  %v733_v31 = vadd.f32 %v853_v21, %v732_v28  ;;  %v878_v33 = vpop.f32.mrb[3].mxu1 }
 0x1f6   : > { %v744_v35 = vadd.f32 %v742_v26, %v736_v29  ;;  %v737_v17 = vmax.f32 %v733_v31, 0.0 }
 0x1f8   : > { %746 = vst.msk [vmem:[%s278_s19] sm:$0xff] %vm306_vm1, %v744_v35  ;;  %v745_v1 = vadd.f32 %v743_v32, %v737_v17 }
 0x1fa   : > { %747 = vst.msk [vmem:[%s278_s19 + $0x8] sm:$0xff] %vm306_vm1, %v745_v1 }
 0x1fb PF: > { %s17_s24 = sadd.s32 1, %s898_s24  }
 0x1fc   : > { %p14_p4 = scmp.ge.s32.totalorder %s17_s24, 4  }
 0x1fe   :  { %16 = sbr.rel (!%p14_p4) target bundleno = 1 (0x1), region = 83 }

// kernel: shufflenetv2_forward.5
= control target key start
LH: loop header
LB: loop body
LE: loop exit
PB: predicated region body
PF: predicated region fallthrough
CT: control target
= control target key end

     0   :  { %s5540_s12 = smov 0   ;;  %s6381_s0 = inlined_call_operand.vmem [shape: f32[2,256,27], index: 0, kind: input, shape index: {}]   ;;  %s6382_s1 = inlined_call_operand.vmem [shape: bf16[27,16], index: 1, kind: input, shape index: {}]   ;;  %s6383_s2 = inlined_call_operand.vmem [shape: f32[1,16], index: 2, kind: input, shape index: {}]   ;;  %s6384_s3 = inlined_call_operand.vmem [shape: f32[2,64,16], index: 3, kind: output, shape index: {}]  }
   0x1 LB: > { %s4676_s13 = sadd.s32 4294967295, %s5514_s12   ;;  %p4680_p0 = scmp.ge.s32.totalorder %s5514_s12, 1  ;;  %s5514_s12 = sphi %s5540_s12, %s13_s12  }
   0x2   : > { %p137_p1 = scmp.lt.s32.totalorder %s5514_s12, 3 }
   0x4   : > { %p138_p2 = pnand %p4680_p0, %p137_p1 }
   0x5   : > { %v5506_v0 = vld [vmem:[%s6382_s1] sm:$0xff] (!%p138_p2)   ;;  %vm291_vm0 = vcmask (!%p138_p2), 1044480   ;;  %v5507_v1 = vld [vmem:[%s6382_s1 + $0x8] sm:$0x3f] (!%p138_p2)   ;;  %vm292_vm1 = vcmask (!%p138_p2), 1045504   ;;  %p161_p3 = scmp.lt.s32.totalorder (!%p138_p2), %s4676_s13, 1 }
   0x6   : > { %141 = sbr.rel (%p138_p2) target bundleno = 703 (0x2bf), region = 32  ;;  %4894 = vmatprep.subr.bf16.mxu0 (!%p138_p2), %v5506_v0  ;;  %5410 = vmatprep.subr.bf16.mxu1 (!%p138_p2), %v5506_v0  ;;  %v5516_v2 = vmov (!%p138_p2), 65535   ;;  %vm242_vm2 = vcmask (!%p138_p2), 220160   ;;  %vm491_vm3 = vcmask (!%p138_p2), 130048   ;;  %v5517_v54 = vmov (!%p138_p2), 0.0  }
   0x7   : > { %4895 = vmatpush3.bf16.msra.mxu0 (!%p138_p2), %v5506_v0  ;;  %v293_v3 = vsel (!%p138_p2), %vm291_vm0, 4294967295, %v5516_v2  ;;  %5412 = vmatpush3.bf16.msra.mxu1 (!%p138_p2), %v5506_v0  ;;  %531 = vst.msk [vmem:[#allocation3 + $0x30] sm:$0xff] (!%p138_p2), %vm491_vm3, %v5517_v54  ;;  %532 = vst.msk [vmem:[#allocation3 + $0x38] sm:$0xff] (!%p138_p2), %vm491_vm3, %v5517_v54  ;;  %vm526_vm4 = vcmask (!%p138_p2), 123904   ;;  %v5518_v55 = vmov (!%p138_p2), 0.0|0.0   ;;  %vm5519_vm5 = vmmov (!%p138_p2), 0  }
   0x8   : > { %v294_v4 = vsel (!%p138_p2), %vm292_vm1, %v293_v3, 0  ;;  %524 = vst.msk [vmem:[#allocation3] sm:$0xff] (!%p138_p2), %vm491_vm3, %v5517_v54  ;;  %525 = vst.msk [vmem:[#allocation3 + $0x8] sm:$0xff] (!%p138_p2), %vm491_vm3, %v5517_v54  ;;  %v5721_v56 = vld [vmem:[%s6383_s2] ss:$0 sm:$0xff] (!%p138_p2) }
   0x9   : > { %v296_v5 = vand.u32 (!%p138_p2), %v5507_v1, %v294_v4  ;;  %528 = vst.msk [vmem:[#allocation3 + $0x18] sm:$0xff] (!%p138_p2), %vm491_vm3, %v5517_v54  ;;  %529 = vst.msk [vmem:[#allocation3 + $0x20] sm:$0xff] (!%p138_p2), %vm491_vm3, %v5517_v54  ;;  %v659_v1 = vlaneseq (!%p138_p2) }
   0xa   : > { %534 = vst.msk [vmem:[#allocation3 + $0x48] sm:$0xff] (!%p138_p2), %vm491_vm3, %v5517_v54  ;;  %535 = vst.msk [vmem:[#allocation3 + $0x50] sm:$0xff] (!%p138_p2), %vm491_vm3, %v5517_v54 }
   0xb   : > { %4896 = vmatprep.subr.bf16.mxu0 (!%p138_p2), %v296_v5  ;;  %5411 = vmatprep.subr.bf16.mxu1 (!%p138_p2), %v296_v5  ;;  %537 = vst.msk [vmem:[#allocation3 + $0x60] sm:$0xff] (!%p138_p2), %vm491_vm3, %v5517_v54  ;;  %538 = vst.msk [vmem:[#allocation3 + $0x68] sm:$0xff] (!%p138_p2), %vm491_vm3, %v5517_v54 }
   0xc   : > { %4897 = vmatpush3.bf16.msra.mxu0 (!%p138_p2), %v296_v5  ;;  %5413 = vmatpush3.bf16.msra.mxu1 (!%p138_p2), %v296_v5  ;;  %540 = vst.msk [vmem:[#allocation3 + $0x78] sm:$0xff] (!%p138_p2), %vm491_vm3, %v5517_v54  ;;  %541 = vst.msk [vmem:[#allocation3 + $0x80] sm:$0xff] (!%p138_p2), %vm491_vm3, %v5517_v54 }
   0xd   : > { %s6386_s13 = smov (!%p161_p3, %s4676_s13), 1  ;;  %543 = vst.msk [vmem:[#allocation3 + $0x90] sm:$0xff] %vm491_vm3, %v5517_v54  ;;  %544 = vst.msk [vmem:[#allocation3 + $0x98] sm:$0xff] %vm491_vm3, %v5517_v54  ;;  %5266 = vmatprep.subr.bf16.mxu1 %v5518_v55  ;;  %5320 = vmatprep.subr.bf16.mxu0 %v5518_v55 }
   0xe   : > { %s4730_s18 = sshll.u32 %s6386_s13, 8  ;;  %546 = vst.msk [vmem:[#allocation3 + $0xa8] sm:$0xff] %vm491_vm3, %v5517_v54  ;;  %547 = vst.msk [vmem:[#allocation3 + $0xb0] sm:$0xff] %vm491_vm3, %v5517_v54  ;;  %s4731_s24 = sshll.u32 %s6386_s13, 6 }
   0xf   : > { %s5560_s21 = scalar_lea.vmem %s6381_s0, %s4730_s18  ;;  %549 = vst.msk [vmem:[#allocation3 + $0xc0] sm:$0xff] %vm491_vm3, %v5517_v54  ;;  %550 = vst.msk [vmem:[#allocation3 + $0xc8] sm:$0xff] %vm491_vm3, %v5517_v54  ;;  %s170_s27 = scalar_lea.vmem %s6384_s3, %s4731_s24 }
  0x10   : > { %v172_v6 = vld [vmem:[%s5560_s21] sm:$0xff]  ;;  %v173_v7 = vld [vmem:[%s5560_s21 + $0x8] sm:$0xff]  ;;  %v174_v8 = vld [vmem:[%s5560_s21 + $0x10] sm:$0xff]  ;;  %552 = vst.msk [vmem:[#allocation3 + $0xd8] sm:$0xff] %vm491_vm3, %v5517_v54 }
  0x11   : > { %v204_v9 = vpack.c.bf16 %v173_v7, %v172_v6  ;;  %v175_v10 = vld [vmem:[%s5560_s21 + $0x18] sm:$0xff]  ;;  %v176_v11 = vld [vmem:[%s5560_s21 + $0x20] sm:$0xff]  ;;  %v177_v12 = vld [vmem:[%s5560_s21 + $0x28] sm:$0xff]  ;;  %553 = vst.msk [vmem:[#allocation3 + $0xe0] sm:$0xff] %vm491_vm3, %v5517_v54  ;;  %v660_v6 = vshrl.u32 %v659_v1, 7 }
  0x12   : > { %v205_v13 = vpack.c.bf16 %v175_v10, %v174_v8  ;;  %v206_v14 = vpack.c.bf16 %v177_v12, %v176_v11  ;;  %v178_v15 = vld [vmem:[%s5560_s21 + $0x30] sm:$0xff]  ;;  %v179_v16 = vld [vmem:[%s5560_s21 + $0x38] sm:$0xff]  ;;  %v180_v17 = vld [vmem:[%s5560_s21 + $0x40] sm:$0xff]  ;;  %555 = vst.msk [vmem:[#allocation3 + $0xf0] sm:$0xff] %vm491_vm3, %v5517_v54 }
  0x13   : > { %4898 = vmatprep.mubr.msk.bf16.mxu0 %vm242_vm2, %v204_v9  ;;  %v181_v18 = vld [vmem:[%s5560_s21 + $0x48] sm:$0xff]  ;;  %v207_v19 = vpack.c.bf16 %v179_v16, %v178_v15  ;;  %v200_v21 = vld [vmem:[%s5560_s21 + $0xe0] sm:$0xff]  ;;  %v202_v24 = vld [vmem:[%s5560_s21 + $0xf0] sm:$0xff]  ;;  %556 = vst.msk [vmem:[#allocation3 + $0xf8] sm:$0xff] %vm491_vm3, %v5517_v54 }
  0x14   : > { %4899 = vmatmul.mubr.msk.bf16.vlgmr.msra.gmra.mrb[0].mxu0 %vm242_vm2, %v205_v13  ;;  %v208_v20 = vpack.c.bf16 %v181_v18, %v180_v17  ;;  %v201_v22 = vld [vmem:[%s5560_s21 + $0xe8] sm:$0xff]  ;;  %v203_v25 = vld [vmem:[%s5560_s21 + $0xf8] sm:$0xff]  ;;  %v182_v27 = vld [vmem:[%s5560_s21 + $0x50] sm:$0xff]  ;;  %558 = vst.msk [vmem:[#allocation3 + $0x108] sm:$0xff] %vm491_vm3, %v5517_v54  ;;  %v662_v13 = vand.u32 127, %v659_v1 }
  0x15   : > { %4902 = vmatprep.mubr.msk.bf16.mxu0 %vm242_vm2, %v206_v14  ;;  %v218_v23 = vpack.c.bf16 %v201_v22, %v200_v21  ;;  %v219_v26 = vpack.c.bf16 %v203_v25, %v202_v24  ;;  %v183_v28 = vld [vmem:[%s5560_s21 + $0x58] sm:$0xff]  ;;  %v184_v29 = vld [vmem:[%s5560_s21 + $0x60] sm:$0xff]  ;;  %v185_v30 = vld [vmem:[%s5560_s21 + $0x68] sm:$0xff]  ;;  %559 = vst.msk [vmem:[#allocation3 + $0x110] sm:$0xff] %vm491_vm3, %v5517_v54  ;;  %v663_v21 = vmul.u32 2, %v660_v6 }
  0x16   : > { %v209_v31 = vpack.c.bf16 %v183_v28, %v182_v27  ;;  %v210_v32 = vpack.c.bf16 %v185_v30, %v184_v29  ;;  %v186_v33 = vld [vmem:[%s5560_s21 + $0x70] sm:$0xff]  ;;  %v187_v34 = vld [vmem:[%s5560_s21 + $0x78] sm:$0xff]  ;;  %v188_v35 = vld [vmem:[%s5560_s21 + $0x80] sm:$0xff]  ;;  %561 = vst.msk [vmem:[#allocation3 + $0x120] sm:$0xff] %vm491_vm3, %v5517_v54 }
  0x17   : > { %4926 = vmatprep.mubr.msk.bf16.mxu1 %vm242_vm2, %v218_v23  ;;  %v189_v36 = vld [vmem:[%s5560_s21 + $0x88] sm:$0xff]  ;;  %v211_v37 = vpack.c.bf16 %v187_v34, %v186_v33  ;;  %v190_v39 = vld [vmem:[%s5560_s21 + $0x90] sm:$0xff]  ;;  %v191_v40 = vld [vmem:[%s5560_s21 + $0x98] sm:$0xff]  ;;  %562 = vst.msk [vmem:[#allocation3 + $0x128] sm:$0xff] %vm491_vm3, %v5517_v54  ;;  %vm664_vm6 = vcmp.eq.s32.totalorder %v662_v13, %v663_v21 }
  0x18   : > { %4927 = vmatmul.mubr.msk.bf16.vlgmr.msra.gmra.mrb[0].mxu1 %vm242_vm2, %v219_v26  ;;  %v212_v38 = vpack.c.bf16 %v189_v36, %v188_v35  ;;  %v192_v41 = vld [vmem:[%s5560_s21 + $0xa0] sm:$0xff]  ;;  %v193_v42 = vld [vmem:[%s5560_s21 + $0xa8] sm:$0xff]  ;;  %v213_v43 = vpack.c.bf16 %v191_v40, %v190_v39  ;;  %v194_v45 = vld [vmem:[%s5560_s21 + $0xb0] sm:$0xff]  ;;  %564 = vst.msk [vmem:[#allocation3 + $0x138] sm:$0xff] %vm491_vm3, %v5517_v54 }
  0x19   : > { %v214_v44 = vpack.c.bf16 %v193_v42, %v192_v41  ;;  %v195_v46 = vld [vmem:[%s5560_s21 + $0xb8] sm:$0xff]  ;;  %v196_v47 = vld [vmem:[%s5560_s21 + $0xc0] sm:$0xff]  ;;  %v197_v48 = vld [vmem:[%s5560_s21 + $0xc8] sm:$0xff]  ;;  %565 = vst.msk [vmem:[#allocation3 + $0x140] sm:$0xff] %vm491_vm3, %v5517_v54  ;;  %4934 = vmatprep.mubr.msk.f32.mxu1 %vm5519_vm5, %v5517_v54 }
  0x1a   : > { %v215_v49 = vpack.c.bf16 %v195_v46, %v194_v45  ;;  %v216_v50 = vpack.c.bf16 %v197_v48, %v196_v47  ;;  %v198_v51 = vld [vmem:[%s5560_s21 + $0xd0] sm:$0xff]  ;;  %v199_v52 = vld [vmem:[%s5560_s21 + $0xd8] sm:$0xff]  ;;  %567 = vst.msk [vmem:[#allocation3 + $0x150] sm:$0xff] %vm491_vm3, %v5517_v54  ;;  %568 = vst.msk [vmem:[#allocation3 + $0x158] sm:$0xff] %vm491_vm3, %v5517_v54 }
  0x1b   : > { %v217_v53 = vpack.c.bf16 %v199_v52, %v198_v51  ;;  %570 = vst.msk [vmem:[#allocation3 + $0x168] sm:$0xff] %vm491_vm3, %v5517_v54  ;;  %571 = vst.msk [vmem:[#allocation3 + $0x170] sm:$0xff] %vm491_vm3, %v5517_v54  ;;  %v672_v41 = vld [vmem:[#allocation3 + $0x2] sm:$0xff] }
  0x1c   : > { %4903 = vmatmul.mubr.msk.bf16.gmra.mrb[4].mxu0 %vm242_vm2, %v207_v19  ;;  %573 = vst.msk [vmem:[#allocation3 + $0x180] sm:$0xff] %vm491_vm3, %v5517_v54  ;;  %574 = vst.msk [vmem:[#allocation3 + $0x188] sm:$0xff] %vm491_vm3, %v5517_v54  ;;  %v666_v19 = vld [vmem:[#allocation3] sm:$0xff] }
  0x1d   : > { %4906 = vmatprep.mubr.msk.bf16.mxu0 %vm242_vm2, %v208_v20  ;;  %533 = vst.msk [vmem:[#allocation3 + $0x40] sm:$0x3] %vm526_vm4, %v5517_v54  ;;  %527 = vst.msk [vmem:[#allocation3 + $0x10] sm:$0x3] %vm526_vm4, %v5517_v54  ;;  %v668_v20 = vld [vmem:[#allocation3 + $0x1] sm:$0xff] }
  0x1e   : > { %530 = vst.msk [vmem:[#allocation3 + $0x28] sm:$0x3] %vm526_vm4, %v5517_v54  ;;  %536 = vst.msk [vmem:[#allocation3 + $0x58] sm:$0x3] %vm526_vm4, %v5517_v54 }
  0x1f   : > { %539 = vst.msk [vmem:[#allocation3 + $0x70] sm:$0x3] %vm526_vm4, %v5517_v54  ;;  %542 = vst.msk [vmem:[#allocation3 + $0x88] sm:$0x3] %vm526_vm4, %v5517_v54 }
  0x20   : > { %545 = vst.msk [vmem:[#allocation3 + $0xa0] sm:$0x3] %vm526_vm4, %v5517_v54  ;;  %548 = vst.msk [vmem:[#allocation3 + $0xb8] sm:$0x3] %vm526_vm4, %v5517_v54 }
  0x21   : > { %551 = vst.msk [vmem:[#allocation3 + $0xd0] sm:$0x3] %vm526_vm4, %v5517_v54  ;;  %554 = vst.msk [vmem:[#allocation3 + $0xe8] sm:$0x3] %vm526_vm4, %v5517_v54 }
  0x22   : > { %557 = vst.msk [vmem:[#allocation3 + $0x100] sm:$0x3] %vm526_vm4, %v5517_v54  ;;  %560 = vst.msk [vmem:[#allocation3 + $0x118] sm:$0x3] %vm526_vm4, %v5517_v54 }
  0x23   : > { %563 = vst.msk [vmem:[#allocation3 + $0x130] sm:$0x3] %vm526_vm4, %v5517_v54  ;;  %566 = vst.msk [vmem:[#allocation3 + $0x148] sm:$0x3] %vm526_vm4, %v5517_v54 }
  0x24   : > { %4907 = vmatmul.mubr.msk.bf16.gmra.mrb[8].mxu0 %vm242_vm2, %v209_v31  ;;  %569 = vst.msk [vmem:[#allocation3 + $0x160] sm:$0x3] %vm526_vm4, %v5517_v54  ;;  %572 = vst.msk [vmem:[#allocation3 + $0x178] sm:$0x3] %vm526_vm4, %v5517_v54  ;;  %v669_v33 = vld [vmem:[#allocation3 + $0x9] sm:$0xff] }
  0x25   : > { %4910 = vmatprep.mubr.msk.bf16.mxu0 %vm242_vm2, %v210_v32  ;;  %575 = vst.msk [vmem:[#allocation3 + $0x190] sm:$0x3] %vm526_vm4, %v5517_v54  ;;  %v667_v32 = vld [vmem:[#allocation3 + $0x8] sm:$0xff] }
  0x26   : > { %v673_v47 = vld [vmem:[#allocation3 + $0xa] sm:$0xff] }
  0x2c   : > { %4911 = vmatmul.mubr.msk.bf16.gmra.mrb[12].mxu0 %vm242_vm2, %v211_v37 }
  0x2d   : > { %4914 = vmatprep.mubr.msk.bf16.mxu0 %vm242_vm2, %v212_v38  ;;  %v670_v38 = vmax.f32 %v666_v19, %v668_v20 }
  0x34   : > { %4915 = vmatmul.mubr.msk.bf16.gmra.mrb[16].mxu0 %vm242_vm2, %v213_v43 }
  0x35   : > { %4918 = vmatprep.mubr.msk.bf16.mxu0 %vm242_vm2, %v214_v44  ;;  %v671_v44 = vmax.f32 %v667_v32, %v669_v33 }
  0x3c   : > { %4919 = vmatmul.mubr.msk.bf16.gmra.mrb[20].mxu0 %vm242_vm2, %v215_v49 }
  0x3d   : > { %4922 = vmatprep.mubr.msk.bf16.mxu0 %vm242_vm2, %v216_v50  ;;  %v674_v50 = vmax.f32 %v670_v38, %v672_v41 }
  0x44   : > { %4923 = vmatmul.mubr.msk.bf16.gmra.mrb[24].mxu0 %vm242_vm2, %v217_v53 }
  0x45   : > { %5060 = vmatprep.mubr.msk.f32.mxu0 %vm5519_vm5, %v5517_v54 }
  0xe7   : > { %v4900_v57 = vpop.f32.mrb[0].mxu0 }
  0xe8   : > { %v341_v58 = vadd.f32 %v4900_v57, %v5721_v56  ;;  %v332_v59 = vpop.f32.mrb[1].mxu0  ;;  %v5755_v57 = vsel %vm664_vm6, 1.0, %v5517_v54 }
  0xe9   : > { %v333_v60 = vadd.f32 %v5721_v56, %v332_v59  ;;  %v4901_v61 = vpop.f32.mrb[2].mxu0 }
  0xea   : > { %v461_v62 = vmax.f32 %v341_v58, 0.0  ;;  %v344_v63 = vadd.f32 %v4901_v61, %v5721_v56  ;;  %v335_v0 = vpop.f32.mrb[3].mxu0  ;;  %v675_v61 = vmax.f32 %v671_v44, %v673_v47 }
  0xeb   : > { %v459_v2 = vmax.f32 %v333_v60, 0.0  ;;  %v336_v3 = vadd.f32 %v5721_v56, %v335_v0  ;;  %v4928_v10 = vpop.f32.mrb[0].mxu1 }
  0xec   : > { %494 = vst.msk [vmem:[#allocation2 + $0x10] sm:$0xff] %vm491_vm3, %v461_v62  ;;  %v462_v4 = vmax.f32 %v344_v63, 0.0  ;;  %v453_v14 = vadd.f32 %v4928_v10, %v5721_v56  ;;  %v444_v15 = vpop.f32.mrb[1].mxu1 }
  0xed   : > { %492 = vst.msk [vmem:[#allocation2] sm:$0xff] %vm491_vm3, %v459_v2  ;;  %v460_v5 = vmax.f32 %v336_v3, 0.0  ;;  %v445_v22 = vadd.f32 %v5721_v56, %v444_v15  ;;  %v4929_v23 = vpop.f32.mrb[2].mxu1 }
  0xee   : > { %495 = vst.msk [vmem:[#allocation2 + $0x18] sm:$0xff] %vm491_vm3, %v462_v4  ;;  %v489_v27 = vmax.f32 %v453_v14, 0.0  ;;  %v456_v28 = vadd.f32 %v4929_v23, %v5721_v56  ;;  %v447_v29 = vpop.f32.mrb[3].mxu1  ;;  %v701_v4 = vsel %vm491_vm3, %v5755_v57, 0 }
  0xef   : > { %493 = vst.msk [vmem:[#allocation2 + $0x8] sm:$0xff] %vm491_vm3, %v460_v5  ;;  %v4904_v7 = vpop.f32.mrb[4].mxu0  ;;  %v487_v34 = vmax.f32 %v445_v22, 0.0  ;;  %v448_v35 = vadd.f32 %v5721_v56, %v447_v29  ;;  %v5769_v15 = vsub.f32 %v701_v4, %v701_v4 }
  0xf0   : > { %v357_v8 = vadd.f32 %v4904_v7, %v5721_v56  ;;  %v348_v9 = vpop.f32.mrb[5].mxu0  ;;  %522 = vst.msk [vmem:[#allocation2 + $0xf0] sm:$0xff] %vm491_vm3, %v489_v27  ;;  %v490_v39 = vmax.f32 %v456_v28, 0.0 }
  0xf1   : > { %v349_v11 = vadd.f32 %v5721_v56, %v348_v9  ;;  %v4905_v12 = vpop.f32.mrb[6].mxu0  ;;  %520 = vst.msk [vmem:[#allocation2 + $0xe0] sm:$0xff] %vm491_vm3, %v487_v34  ;;  %v488_v42 = vmax.f32 %v448_v35, 0.0 }
  0xf2   : > { %v465_v16 = vmax.f32 %v357_v8, 0.0  ;;  %v360_v17 = vadd.f32 %v4905_v12, %v5721_v56  ;;  %v351_v18 = vpop.f32.mrb[7].mxu0  ;;  %523 = vst.msk [vmem:[#allocation2 + $0xf8] sm:$0xff] %vm491_vm3, %v490_v39  ;;  %v5786_v39 = vand.u32 4294901760, %v5769_v15 }
  0xf3   : > { %v584_v24 = vld [vmem:[#allocation2 + $0x10] sm:$0xff]  ;;  %v463_v25 = vmax.f32 %v349_v11, 0.0  ;;  %v352_v26 = vadd.f32 %v5721_v56, %v351_v18  ;;  %521 = vst.msk [vmem:[#allocation2 + $0xe8] sm:$0xff] %vm491_vm3, %v488_v42 }
  0xf4   : > { %587 = vst.msk [vmem:[#allocation3 + $0x31] sm:$0xff] %vm491_vm3, %v584_v24  ;;  %v579_v30 = vld [vmem:[#allocation2] sm:$0xff]  ;;  %498 = vst.msk [vmem:[#allocation2 + $0x30] sm:$0xff] %vm491_vm3, %v465_v16  ;;  %v466_v31 = vmax.f32 %v360_v17, 0.0 }
  0xf5   : > { %582 = vst.msk [vmem:[#allocation3 + $0x19] sm:$0xff] %vm491_vm3, %v579_v30  ;;  %v585_v36 = vld [vmem:[#allocation2 + $0x18] sm:$0xff]  ;;  %496 = vst.msk [vmem:[#allocation2 + $0x20] sm:$0xff] %vm491_vm3, %v463_v25  ;;  %v464_v37 = vmax.f32 %v352_v26, 0.0 }
  0xf6   : > { %588 = vst.msk [vmem:[#allocation3 + $0x39] sm:$0xff] %vm491_vm3, %v585_v36  ;;  %v580_v40 = vld [vmem:[#allocation2 + $0x8] sm:$0xff]  ;;  %499 = vst.msk [vmem:[#allocation2 + $0x38] sm:$0xff] %vm491_vm3, %v466_v31 }
  0xf7   : > { %583 = vst.msk [vmem:[#allocation3 + $0x21] sm:$0xff] %vm491_vm3, %v580_v40  ;;  %497 = vst.msk [vmem:[#allocation2 + $0x28] sm:$0xff] %vm491_vm3, %v464_v37  ;;  %v4908_v43 = vpop.f32.mrb[8].mxu0  ;;  %v654_v16 = vld [vmem:[#allocation2 + $0xf0] sm:$0xff] }
  0xf8   : > { %v373_v45 = vadd.f32 %v4908_v43, %v5721_v56  ;;  %v364_v46 = vpop.f32.mrb[9].mxu0  ;;  %v649_v17 = vld [vmem:[#allocation2 + $0xe0] sm:$0xff]  ;;  %657 = vst.msk [vmem:[#allocation3 + $0x181] sm:$0xff] %vm491_vm3, %v654_v16 }
  0xf9   : > { %v365_v48 = vadd.f32 %v5721_v56, %v364_v46  ;;  %v4909_v49 = vpop.f32.mrb[10].mxu0  ;;  %652 = vst.msk [vmem:[#allocation3 + $0x169] sm:$0xff] %vm491_vm3, %v649_v17  ;;  %v655_v22 = vld [vmem:[#allocation2 + $0xf8] sm:$0xff] }
  0xfa   : > { %v469_v51 = vmax.f32 %v373_v45, 0.0  ;;  %v376_v52 = vadd.f32 %v4909_v49, %v5721_v56  ;;  %v367_v53 = vpop.f32.mrb[11].mxu0  ;;  %v650_v23 = vld [vmem:[#allocation2 + $0xe8] sm:$0xff]  ;;  %658 = vst.msk [vmem:[#allocation3 + $0x189] sm:$0xff] %vm491_vm3, %v655_v22 }
  0xfb   : > { %v594_v58 = vld [vmem:[#allocation2 + $0x30] sm:$0xff]  ;;  %v467_v59 = vmax.f32 %v365_v48, 0.0  ;;  %v368_v60 = vadd.f32 %v5721_v56, %v367_v53  ;;  %653 = vst.msk [vmem:[#allocation3 + $0x171] sm:$0xff] %vm491_vm3, %v650_v23 }
  0xfc   : > { %597 = vst.msk [vmem:[#allocation3 + $0x61] sm:$0xff] %vm491_vm3, %v594_v58  ;;  %v589_v62 = vld [vmem:[#allocation2 + $0x20] sm:$0xff]  ;;  %502 = vst.msk [vmem:[#allocation2 + $0x50] sm:$0xff] %vm491_vm3, %v469_v51  ;;  %v470_v63 = vmax.f32 %v376_v52, 0.0  ;;  %v676_v0 = vld [vmem:[#allocation3 + $0x18] sm:$0xff] }
  0xfd   : > { %592 = vst.msk [vmem:[#allocation3 + $0x49] sm:$0xff] %vm491_vm3, %v589_v62  ;;  %v595_v1 = vld [vmem:[#allocation2 + $0x38] sm:$0xff]  ;;  %500 = vst.msk [vmem:[#allocation2 + $0x40] sm:$0xff] %vm491_vm3, %v467_v59  ;;  %v468_v2 = vmax.f32 %v368_v60, 0.0  ;;  %v678_v3 = vmax.f32 %v674_v50, %v676_v0  ;;  %v5775_v28 = vld [vmem:[#allocation3 + $0x30] sm:$0xff]  ;;  %v773_v59 = vsub.f32 %v5769_v15, %v5786_v39 }
  0xfe   : > { %598 = vst.msk [vmem:[#allocation3 + $0x69] sm:$0xff] %vm491_vm3, %v595_v1  ;;  %v590_v5 = vld [vmem:[#allocation2 + $0x28] sm:$0xff]  ;;  %503 = vst.msk [vmem:[#allocation2 + $0x58] sm:$0xff] %vm491_vm3, %v470_v63  ;;  %v677_v6 = vld [vmem:[#allocation3 + $0x20] sm:$0xff] }
  0xff   : > { %v680_v7 = vld [vmem:[#allocation3 + $0x19] sm:$0xff]  ;;  %593 = vst.msk [vmem:[#allocation3 + $0x51] sm:$0xff] %vm491_vm3, %v590_v5  ;;  %501 = vst.msk [vmem:[#allocation2 + $0x48] sm:$0xff] %vm491_vm3, %v468_v2  ;;  %v4912_v8 = vpop.f32.mrb[12].mxu0  ;;  %v679_v9 = vmax.f32 %v675_v61, %v677_v6  ;;  %v681_v10 = vld [vmem:[#allocation3 + $0x21] sm:$0xff] }
 0x100   : > { %v682_v11 = vmax.f32 %v678_v3, %v680_v7  ;;  %v389_v12 = vadd.f32 %v4912_v8, %v5721_v56  ;;  %v380_v13 = vpop.f32.mrb[13].mxu0  ;;  %v684_v14 = vld [vmem:[#allocation3 + $0x1a] sm:$0xff]  ;;  %v685_v27 = vld [vmem:[#allocation3 + $0x22] sm:$0xff]  ;;  %v5783_v38 = vld [vmem:[#allocation3 + $0x31] sm:$0xff] }
 0x101   : > { %v381_v18 = vadd.f32 %v5721_v56, %v380_v13  ;;  %v4913_v19 = vpop.f32.mrb[14].mxu0  ;;  %v683_v20 = vmax.f32 %v679_v9, %v681_v10  ;;  %v689_v33 = vld [vmem:[#allocation3 + $0x38] sm:$0xff]  ;;  %v1167_v1 = vmax.f32 %v5775_v28, %v5783_v38 }
 0x102   : > { %v686_v21 = vmax.f32 %v682_v11, %v684_v14  ;;  %v473_v24 = vmax.f32 %v389_v12, 0.0  ;;  %v392_v25 = vadd.f32 %v4913_v19, %v5721_v56  ;;  %v383_v26 = vpop.f32.mrb[15].mxu0  ;;  %v693_v35 = vld [vmem:[#allocation3 + $0x39] sm:$0xff] }
 0x103   : > { %v604_v29 = vld [vmem:[#allocation2 + $0x50] sm:$0xff]  ;;  %v471_v30 = vmax.f32 %v381_v18, 0.0  ;;  %v384_v31 = vadd.f32 %v5721_v56, %v383_v26  ;;  %v687_v32 = vmax.f32 %v683_v20, %v685_v27  ;;  %v1168_v46 = vmax.f32 %v689_v33, %v693_v35  ;;  %v5795_v50 = vld [vmem:[#allocation3 + $0x60] sm:$0xff] }
 0x104   : > { %v690_v34 = vmax.f32 %v686_v21, %v5775_v28  ;;  %607 = vst.msk [vmem:[#allocation3 + $0x91] sm:$0xff] %vm491_vm3, %v604_v29  ;;  %v599_v36 = vld [vmem:[#allocation2 + $0x40] sm:$0xff]  ;;  %506 = vst.msk [vmem:[#allocation2 + $0x70] sm:$0xff] %vm491_vm3, %v473_v24  ;;  %v474_v37 = vmax.f32 %v392_v25, 0.0  ;;  %v696_v45 = vld [vmem:[#allocation3 + $0x32] sm:$0xff] }
 0x105   : > { %602 = vst.msk [vmem:[#allocation3 + $0x79] sm:$0xff] %vm491_vm3, %v599_v36  ;;  %v605_v40 = vld [vmem:[#allocation2 + $0x58] sm:$0xff]  ;;  %504 = vst.msk [vmem:[#allocation2 + $0x60] sm:$0xff] %vm491_vm3, %v471_v30  ;;  %v472_v41 = vmax.f32 %v384_v31, 0.0  ;;  %v691_v42 = vmax.f32 %v687_v32, %v689_v33  ;;  %v5797_v51 = vld [vmem:[#allocation3 + $0x61] sm:$0xff] }
 0x106   : > { %v694_v43 = vmax.f32 %v690_v34, %v5783_v38  ;;  %608 = vst.msk [vmem:[#allocation3 + $0x99] sm:$0xff] %vm491_vm3, %v605_v40  ;;  %v600_v44 = vld [vmem:[#allocation2 + $0x48] sm:$0xff]  ;;  %507 = vst.msk [vmem:[#allocation2 + $0x78] sm:$0xff] %vm491_vm3, %v474_v37  ;;  %v697_v58 = vld [vmem:[#allocation3 + $0x3a] sm:$0xff]  ;;  %v1661_v60 = vmax.f32 %v5795_v50, %v5797_v51  ;;  %v1171_v38 = vmax.f32 %v1167_v1, %v696_v45 }
 0x107   : > { %603 = vst.msk [vmem:[#allocation3 + $0x81] sm:$0xff] %vm491_vm3, %v600_v44  ;;  %505 = vst.msk [vmem:[#allocation2 + $0x68] sm:$0xff] %vm491_vm3, %v472_v41  ;;  %v4916_v47 = vpop.f32.mrb[16].mxu0  ;;  %v695_v48 = vmax.f32 %v691_v42, %v693_v35  ;;  %v1174_v2 = vld [vmem:[#allocation3 + $0x50] sm:$0xff]  ;;  %v5807_v3 = vld [vmem:[#allocation3 + $0x68] sm:$0xff]  ;;  %v1172_v8 = vmax.f32 %v1168_v46, %v697_v58  ;;  %v5847_v35 = vand.u32 4294901760, %v773_v59 }
 0x108   : > { %v698_v49 = vmax.f32 %v694_v43, %v696_v45  ;;  %v405_v52 = vadd.f32 %v4916_v47, %v5721_v56  ;;  %v396_v53 = vpop.f32.mrb[17].mxu0  ;;  %v5809_v4 = vld [vmem:[#allocation3 + $0x69] sm:$0xff]  ;;  %v1178_v24 = vld [vmem:[#allocation3 + $0x51] sm:$0xff] }
 0x109   : > { %v397_v61 = vadd.f32 %v5721_v56, %v396_v53  ;;  %v4917_v62 = vpop.f32.mrb[18].mxu0  ;;  %v699_v63 = vmax.f32 %v695_v48, %v697_v58  ;;  %v5812_v9 = vld [vmem:[#allocation3 + $0x62] sm:$0xff]  ;;  %v1662_v10 = vmax.f32 %v5807_v3, %v5809_v4  ;;  %v1176_v23 = vmax.f32 %v1172_v8, %v1174_v2  ;;  %v5853_v40 = vld [vmem:[#allocation3 + $0x6a] sm:$0xff]  ;;  %v1182_v2 = vld [vmem:[#allocation3 + $0x52] sm:$0xff] }
 0x10a   : > { %v704_v0 = vand.u32 4294901760, %v698_v49  ;;  %v477_v5 = vmax.f32 %v405_v52, 0.0  ;;  %v408_v6 = vadd.f32 %v4917_v62, %v5721_v56  ;;  %v399_v7 = vpop.f32.mrb[19].mxu0  ;;  %v5823_v19 = vld [vmem:[#allocation3 + $0x48] sm:$0xff]  ;;  %v5830_v25 = vmax.f32 %v1661_v60, %v5812_v9 }
 0x10b   : > { %v614_v11 = vld [vmem:[#allocation2 + $0x70] sm:$0xff]  ;;  %v475_v12 = vmax.f32 %v397_v61, 0.0  ;;  %v400_v13 = vadd.f32 %v5721_v56, %v399_v7  ;;  %v707_v14 = vand.u32 4294901760, %v699_v63  ;;  %v1666_v46 = vmax.f32 %v1662_v10, %v5853_v40 }
 0x10c   : > { %v5817_v16 = vsub.f32 %v698_v49, %v704_v0  ;;  %v5819_v17 = vld [vmem:[#allocation3 + $0x90] sm:$0xff]  ;;  %617 = vst.msk [vmem:[#allocation3 + $0xc1] sm:$0xff] %vm491_vm3, %v614_v11  ;;  %v609_v20 = vld [vmem:[#allocation2 + $0x60] sm:$0xff]  ;;  %510 = vst.msk [vmem:[#allocation2 + $0x90] sm:$0xff] %vm491_vm3, %v477_v5  ;;  %v478_v21 = vmax.f32 %v408_v6, 0.0  ;;  %v1175_v45 = vmax.f32 %v1171_v38, %v5823_v19  ;;  %v5874_v60 = vmax.f32 %v1176_v23, %v1178_v24 }
 0x10d   : > { %v5821_v18 = vld [vmem:[#allocation3 + $0x91] sm:$0xff]  ;;  %612 = vst.msk [vmem:[#allocation3 + $0xa9] sm:$0xff] %vm491_vm3, %v609_v20  ;;  %508 = vst.msk [vmem:[#allocation2 + $0x80] sm:$0xff] %vm491_vm3, %v475_v12  ;;  %v476_v28 = vmax.f32 %v400_v13, 0.0  ;;  %v5836_v29 = vpack.c.bf16 %v707_v14, %v704_v0  ;;  %v5838_v30 = vsub.f32 %v699_v63, %v707_v14  ;;  %v5843_v33 = vld [vmem:[#allocation3 + $0x99] sm:$0xff] }
 0x10e   : > { %v2155_v22 = vmax.f32 %v5819_v17, %v5821_v18  ;;  %v5832_v26 = vld [vmem:[#allocation3 + $0x78] sm:$0xff]  ;;  %v783_v31 = vand.u32 4294901760, %v5817_v16  ;;  %v610_v34 = vld [vmem:[#allocation2 + $0x68] sm:$0xff]  ;;  %511 = vst.msk [vmem:[#allocation2 + $0x98] sm:$0xff] %vm491_vm3, %v478_v21  ;;  %v1668_v49 = vld [vmem:[#allocation3 + $0x80] sm:$0xff] }
 0x10f   : > { %v615_v27 = vld [vmem:[#allocation2 + $0x78] sm:$0xff]  ;;  %613 = vst.msk [vmem:[#allocation3 + $0xb1] sm:$0xff] %vm491_vm3, %v610_v34  ;;  %509 = vst.msk [vmem:[#allocation2 + $0x88] sm:$0xff] %vm491_vm3, %v476_v28  ;;  %5268 = vmatpush3.bf16.msra.mxu1 %v5836_v29  ;;  %v790_v42 = vand.u32 4294901760, %v5838_v30  ;;  %v4920_v44 = vpop.f32.mrb[20].mxu0  ;;  %v1669_v52 = vmax.f32 %v5830_v25, %v5832_v26  ;;  %v1177_v59 = vld [vmem:[#allocation3 + $0x49] sm:$0xff]  ;;  %v1670_v19 = vmax.f32 %v1666_v46, %v1668_v49 }
 0x110   : > { %v5841_v32 = vld [vmem:[#allocation3 + $0x98] sm:$0xff]  ;;  %618 = vst.msk [vmem:[#allocation3 + $0xc9] sm:$0xff] %vm491_vm3, %v615_v27  ;;  %v784_v41 = vsub.f32 %v5817_v16, %v783_v31  ;;  %5269 = vmatprep.subr.bf16.mxu1 %v5518_v55  ;;  %v421_v47 = vadd.f32 %v4920_v44, %v5721_v56  ;;  %v412_v48 = vpop.f32.mrb[21].mxu0  ;;  %v1672_v8 = vld [vmem:[#allocation3 + $0x81] sm:$0xff]  ;;  %v5882_v12 = vld [vmem:[#allocation3 + $0x4a] sm:$0xff]  ;;  %v1179_v25 = vmax.f32 %v1175_v45, %v1177_v59 }
 0x111   : > { %v2156_v36 = vmax.f32 %v5841_v32, %v5843_v33  ;;  %v5851_v37 = vld [vmem:[#allocation3 + $0x92] sm:$0xff]  ;;  %v5862_v43 = vld [vmem:[#allocation3 + $0x9a] sm:$0xff]  ;;  %v791_v53 = vsub.f32 %v5838_v30, %v790_v42  ;;  %v413_v61 = vadd.f32 %v5721_v56, %v412_v48  ;;  %v4921_v62 = vpop.f32.mrb[22].mxu0  ;;  %v5885_v21 = vld [vmem:[#allocation3 + $0x82] sm:$0xff]  ;;  %v1674_v46 = vmax.f32 %v1670_v19, %v1672_v8 }
 0x112   : > { %v2159_v58 = vmax.f32 %v2155_v22, %v5851_v37  ;;  %v1671_v63 = vld [vmem:[#allocation3 + $0x79] sm:$0xff]  ;;  %4935 = vmatmul.mubr.f32.vlgmr.msra.gmra.mrb[4].mxu1 %v5847_v35  ;;  %v785_v0 = vand.u32 4294901760, %v784_v41  ;;  %v481_v5 = vmax.f32 %v421_v47, 0.0  ;;  %v424_v6 = vadd.f32 %v4921_v62, %v5721_v56  ;;  %v415_v7 = vpop.f32.mrb[23].mxu0 }
 0x113   : > { %v2160_v1 = vmax.f32 %v2156_v36, %v5862_v43  ;;  %v624_v10 = vld [vmem:[#allocation2 + $0x90] sm:$0xff]  ;;  %v792_v11 = vand.u32 4294901760, %v791_v53  ;;  %4941 = vmatprep.mubr.msk.f32.mxu1 %vm5519_vm5, %v5517_v54  ;;  %v479_v13 = vmax.f32 %v413_v61, 0.0  ;;  %v416_v14 = vadd.f32 %v5721_v56, %v415_v7  ;;  %v1675_v20 = vld [vmem:[#allocation3 + $0x7a] sm:$0xff] }
 0x114   : > { %627 = vst.msk [vmem:[#allocation3 + $0xf1] sm:$0xff] %vm491_vm3, %v624_v10  ;;  %v619_v22 = vld [vmem:[#allocation2 + $0x80] sm:$0xff]  ;;  %v2161_v23 = vld [vmem:[#allocation3 + $0xa8] sm:$0xff]  ;;  %514 = vst.msk [vmem:[#allocation2 + $0xb0] sm:$0xff] %vm491_vm3, %v481_v5  ;;  %v482_v26 = vmax.f32 %v424_v6, 0.0  ;;  %v1673_v27 = vmax.f32 %v1669_v52, %v1671_v63  ;;  %v1184_v49 = vmax.f32 %v5874_v60, %v1182_v2  ;;  %v5273_v60 = vpack.c.bf16 %v5838_v30, %v5817_v16 }
 0x115   : > { %v2165_v24 = vld [vmem:[#allocation3 + $0xa9] sm:$0xff]  ;;  %622 = vst.msk [vmem:[#allocation3 + $0xd9] sm:$0xff] %vm491_vm3, %v619_v22  ;;  %v625_v28 = vld [vmem:[#allocation2 + $0x98] sm:$0xff]  ;;  %v5270_v34 = vpack.c.bf16 %v792_v11, %v785_v0  ;;  %v2163_v36 = vmax.f32 %v2159_v58, %v2161_v23  ;;  %v5890_v38 = vld [vmem:[#allocation3 + $0xc0] sm:$0xff]  ;;  %v480_v44 = vmax.f32 %v416_v14, 0.0  ;;  %v1183_v0 = vmax.f32 %v1179_v25, %v5882_v12 }
 0x116   : > { %v5892_v41 = vld [vmem:[#allocation3 + $0xc1] sm:$0xff]  ;;  %512 = vst.msk [vmem:[#allocation2 + $0xa0] sm:$0xff] %vm491_vm3, %v479_v13  ;;  %628 = vst.msk [vmem:[#allocation3 + $0xf9] sm:$0xff] %vm491_vm3, %v625_v28  ;;  %v2162_v47 = vld [vmem:[#allocation3 + $0xb0] sm:$0xff]  ;;  %v1677_v52 = vmax.f32 %v1673_v27, %v1675_v20  ;;  %v1188_v14 = vmax.f32 %v1184_v49, %v5807_v3 }
 0x117   : > { %v620_v45 = vld [vmem:[#allocation2 + $0x88] sm:$0xff]  ;;  %v2166_v48 = vld [vmem:[#allocation3 + $0xb1] sm:$0xff]  ;;  %515 = vst.msk [vmem:[#allocation2 + $0xb8] sm:$0xff] %vm491_vm3, %v482_v26  ;;  %5271 = vmatpush3.bf16.msra.mxu1 %v5270_v34  ;;  %v2164_v53 = vmax.f32 %v2160_v1, %v2162_v47  ;;  %v2167_v58 = vmax.f32 %v2163_v36, %v2165_v24  ;;  %513 = vst.msk [vmem:[#allocation2 + $0xa8] sm:$0xff] %vm491_vm3, %v480_v44  ;;  %v4924_v61 = vpop.f32.mrb[24].mxu0  ;;  %v2649_v62 = vmax.f32 %v5890_v38, %v5892_v41 }
 0x118   : > { %623 = vst.msk [vmem:[#allocation3 + $0xe1] sm:$0xff] %vm491_vm3, %v620_v45  ;;  %v2169_v59 = vld [vmem:[#allocation3 + $0xaa] sm:$0xff]  ;;  %5272 = vmatprep.subr.bf16.mxu1 %v5518_v55  ;;  %v2170_v63 = vld [vmem:[#allocation3 + $0xb2] sm:$0xff]  ;;  %v437_v2 = vadd.f32 %v4924_v61, %v5721_v56  ;;  %v428_v5 = vpop.f32.mrb[25].mxu0  ;;  %v1678_v1 = vmax.f32 %v1674_v46, %v5885_v21  ;;  %v1681_v11 = vmax.f32 %v1677_v52, %v5819_v17  ;;  %v2181_v23 = vld [vmem:[#allocation3 + $0xc2] sm:$0xff] }
 0x119   : > { %v2168_v6 = vmax.f32 %v2164_v53, %v2166_v48  ;;  %v2171_v7 = vmax.f32 %v2167_v58, %v2169_v59  ;;  %v429_v8 = vadd.f32 %v5721_v56, %v428_v5  ;;  %v4925_v10 = vpop.f32.mrb[26].mxu0  ;;  %v2174_v13 = vld [vmem:[#allocation3 + $0xc8] sm:$0xff]  ;;  %v5919_v26 = vmax.f32 %v1183_v0, %v5795_v50 }
 0x11a   : > { %4942 = vmatmul.mubr.msk.f32.vlgmr.msra.gmra.mrb[4].mxu1 %vm491_vm3, %v5755_v57  ;;  %v485_v19 = vmax.f32 %v437_v2, 0.0  ;;  %v431_v12 = vpop.f32.mrb[27].mxu0  ;;  %v2178_v22 = vld [vmem:[#allocation3 + $0xc9] sm:$0xff]  ;;  %v440_v17 = vadd.f32 %v4925_v10, %v5721_v56  ;;  %v1682_v34 = vmax.f32 %v1678_v1, %v5841_v32  ;;  %v1685_v36 = vmax.f32 %v1681_v11, %v5821_v18 }
 0x11b   : > { %5274 = vmatpush3.bf16.msra.mxu1 %v5273_v60  ;;  %4948 = vmatprep.mubr.msk.f32.mxu1 %vm5519_vm5, %v5517_v54  ;;  %v2172_v20 = vmax.f32 %v2168_v6, %v2170_v63  ;;  %v2175_v21 = vmax.f32 %v2171_v7, %v5890_v38  ;;  %v634_v24 = vld [vmem:[#allocation2 + $0xb0] sm:$0xff]  ;;  %v483_v25 = vmax.f32 %v429_v8, 0.0  ;;  %v432_v49 = vadd.f32 %v5721_v56, %v431_v12 }
 0x11c   : > { %5275 = vmatprep.subr.bf16.mxu1 %v5518_v55  ;;  %637 = vst.msk [vmem:[#allocation3 + $0x121] sm:$0xff] %vm491_vm3, %v634_v24  ;;  %v5922_v27 = vld [vmem:[#allocation3 + $0xf0] sm:$0xff]  ;;  %518 = vst.msk [vmem:[#allocation2 + $0xd0] sm:$0xff] %vm491_vm3, %v485_v19  ;;  %v486_v48 = vmax.f32 %v440_v17, 0.0  ;;  %v1192_v32 = vmax.f32 %v1188_v14, %v5809_v4  ;;  %v1686_v53 = vmax.f32 %v1682_v34, %v5843_v33 }
 0x11d   : > { %v629_v3 = vld [vmem:[#allocation2 + $0xa0] sm:$0xff]  ;;  %v5924_v28 = vld [vmem:[#allocation3 + $0xf1] sm:$0xff]  ;;  %v2176_v44 = vmax.f32 %v2172_v20, %v2174_v13  ;;  %v2179_v46 = vmax.f32 %v2175_v21, %v5892_v41  ;;  %516 = vst.msk [vmem:[#allocation2 + $0xc0] sm:$0xff] %vm491_vm3, %v483_v25  ;;  %v1689_v58 = vmax.f32 %v1685_v36, %v5851_v37  ;;  %v484_v56 = vmax.f32 %v432_v49, 0.0 }
 0x11e   : > { %632 = vst.msk [vmem:[#allocation3 + $0x109] sm:$0xff] %vm491_vm3, %v629_v3  ;;  %v635_v50 = vld [vmem:[#allocation2 + $0xb8] sm:$0xff]  ;;  %v2182_v52 = vld [vmem:[#allocation3 + $0xca] sm:$0xff]  ;;  %v3143_v60 = vmax.f32 %v5922_v27, %v5924_v28  ;;  %519 = vst.msk [vmem:[#allocation2 + $0xd8] sm:$0xff] %vm491_vm3, %v486_v48  ;;  %v1690_v0 = vmax.f32 %v1686_v53, %v5862_v43  ;;  %v2650_v2 = vmax.f32 %v2174_v13, %v2178_v22 }
 0x11f   : > { %v5931_v45 = vld [vmem:[#allocation3 + $0xf8] sm:$0xff]  ;;  %638 = vst.msk [vmem:[#allocation3 + $0x129] sm:$0xff] %vm491_vm3, %v635_v50  ;;  %v630_v18 = vld [vmem:[#allocation2 + $0xa8] sm:$0xff]  ;;  %v2180_v59 = vmax.f32 %v2176_v44, %v2178_v22  ;;  %v2183_v61 = vmax.f32 %v2179_v46, %v2181_v23  ;;  %v1692_v33 = vand.u32 4294901760, %v1689_v58  ;;  %v1191_v6 = vmax.f32 %v5919_v26, %v5797_v51  ;;  %517 = vst.msk [vmem:[#allocation2 + $0xc8] sm:$0xff] %vm491_vm3, %v484_v56 }
 0x120   : > { %v5933_v47 = vld [vmem:[#allocation3 + $0xf9] sm:$0xff]  ;;  %633 = vst.msk [vmem:[#allocation3 + $0x111] sm:$0xff] %vm491_vm3, %v630_v18  ;;  %v2653_v8 = vmax.f32 %v2649_v62, %v2181_v23  ;;  %v5960_v43 = vmax.f32 %v1192_v32, %v5853_v40  ;;  %v1695_v10 = vand.u32 4294901760, %v1690_v0  ;;  %v2654_v13 = vmax.f32 %v2650_v2, %v2182_v52  ;;  %v2660_v53 = vld [vmem:[#allocation3 + $0xe1] sm:$0xff] }
 0x121   : > { %v3144_v4 = vmax.f32 %v5931_v45, %v5933_v47  ;;  %v5947_v63 = vld [vmem:[#allocation3 + $0xf2] sm:$0xff]  ;;  %v2184_v5 = vmax.f32 %v2180_v59, %v2182_v52  ;;  %v2186_v1 = vand.u32 4294901760, %v2183_v61  ;;  %v5952_v7 = vld [vmem:[#allocation3 + $0xfa] sm:$0xff]  ;;  %v5962_v11 = vsub.f32 %v1689_v58, %v1692_v33 }
 0x122   : > { %v2655_v37 = vld [vmem:[#allocation3 + $0xd8] sm:$0xff]  ;;  %4949 = vmatmul.mubr.f32.vlgmr.msra.gmra.mrb[4].mxu1 %v5769_v15  ;;  %v2656_v14 = vld [vmem:[#allocation3 + $0xe0] sm:$0xff]  ;;  %v5970_v38 = vmax.f32 %v3143_v60, %v5947_v63  ;;  %v5975_v22 = vpack.c.bf16 %v1695_v10, %v1692_v33  ;;  %v5977_v23 = vsub.f32 %v1690_v0, %v1695_v10  ;;  %v5996_v52 = vmax.f32 %v1191_v6, %v5812_v9 }
 0x123   : > { %5277 = vmatpush3.bf16.msra.mxu1 %v5836_v29  ;;  %v2189_v51 = vand.u32 4294901760, %v2184_v5  ;;  %v5965_v19 = vsub.f32 %v2183_v61, %v2186_v1  ;;  %4955 = vmatprep.mubr.msk.f32.mxu1 %vm5519_vm5, %v5517_v54  ;;  %v644_v41 = vld [vmem:[#allocation2 + $0xd0] sm:$0xff]  ;;  %v2657_v62 = vmax.f32 %v2653_v8, %v2655_v37  ;;  %v2659_v40 = vld [vmem:[#allocation3 + $0xd9] sm:$0xff]  ;;  %v3148_v12 = vmax.f32 %v3144_v4, %v5952_v7  ;;  %v2664_v0 = vld [vmem:[#allocation3 + $0xe2] sm:$0xff] }
 0x124   : > { %5278 = vmatprep.subr.bf16.mxu1 %v5518_v55  ;;  %647 = vst.msk [vmem:[#allocation3 + $0x151] sm:$0xff] %vm491_vm3, %v644_v41  ;;  %v639_v21 = vld [vmem:[#allocation2 + $0xc0] sm:$0xff]  ;;  %v1771_v24 = vand.u32 4294901760, %v5962_v11  ;;  %v2658_v3 = vmax.f32 %v2654_v13, %v2656_v14  ;;  %v1778_v44 = vand.u32 4294901760, %v5977_v23  ;;  %v5309_v46 = vpack.c.bf16 %v5977_v23, %v5962_v11 }
 0x125   : > { %v3149_v20 = vld [vmem:[#allocation3 + $0x108] sm:$0xff]  ;;  %v5980_v25 = vpack.c.bf16 %v2189_v51, %v2186_v1  ;;  %v5982_v17 = vsub.f32 %v2184_v5, %v2189_v51  ;;  %v2265_v26 = vand.u32 4294901760, %v5965_v19  ;;  %642 = vst.msk [vmem:[#allocation3 + $0x139] sm:$0xff] %vm491_vm3, %v639_v21  ;;  %v2661_v50 = vmax.f32 %v2657_v62, %v2659_v40  ;;  %v645_v18 = vld [vmem:[#allocation2 + $0xd8] sm:$0xff]  ;;  %v3161_v6 = vld [vmem:[#allocation3 + $0x120] sm:$0xff] }
 0x126   : > { %v1772_v36 = vsub.f32 %v5962_v11, %v1771_v24  ;;  %v3151_v32 = vmax.f32 %v5970_v38, %v3149_v20  ;;  %v2663_v58 = vld [vmem:[#allocation3 + $0xda] sm:$0xff]  ;;  %648 = vst.msk [vmem:[#allocation3 + $0x159] sm:$0xff] %vm491_vm3, %v645_v18  ;;  %v640_v61 = vld [vmem:[#allocation2 + $0xc8] sm:$0xff]  ;;  %v1779_v56 = vsub.f32 %v5977_v23, %v1778_v44  ;;  %v6002_v4 = vpack.c.bf16 %v1778_v44, %v1771_v24 }
 0x127   : > { %v3150_v34 = vld [vmem:[#allocation3 + $0x110] sm:$0xff]  ;;  %5322 = vmatpush3.bf16.msra.mxu0 %v5980_v25  ;;  %v2266_v48 = vsub.f32 %v5965_v19, %v2265_v26  ;;  %v2272_v49 = vand.u32 4294901760, %v5982_v17  ;;  %v5279_v9 = vpack.c.bf16 %v790_v42, %v783_v31  ;;  %v1201_v37 = vand.u32 4294901760, %v5960_v43  ;;  %643 = vst.msk [vmem:[#allocation3 + $0x141] sm:$0xff] %vm491_vm3, %v640_v61  ;;  %v3162_v16 = vld [vmem:[#allocation3 + $0x128] sm:$0xff] }
 0x128   : > { %5323 = vmatprep.subr.bf16.mxu0 %v5518_v55  ;;  %v3152_v59 = vmax.f32 %v3148_v12, %v3150_v34  ;;  %v1773_v60 = vand.u32 4294901760, %v1772_v36  ;;  %v3153_v5 = vld [vmem:[#allocation3 + $0x109] sm:$0xff]  ;;  %v3154_v1 = vld [vmem:[#allocation3 + $0x111] sm:$0xff]  ;;  %v6015_v8 = vld [vmem:[#allocation3 + $0x121] sm:$0xff]  ;;  %v1780_v31 = vand.u32 4294901760, %v1779_v56  ;;  %v2662_v42 = vmax.f32 %v2658_v3, %v2660_v53 }
 0x129   : > { %v2267_v33 = vand.u32 4294901760, %v2266_v48  ;;  %v2273_v2 = vsub.f32 %v5982_v17, %v2272_v49  ;;  %v6017_v30 = vld [vmem:[#allocation3 + $0x129] sm:$0xff]  ;;  %v2665_v10 = vmax.f32 %v2661_v50, %v2663_v58  ;;  %v1198_v14 = vand.u32 4294901760, %v5996_v52  ;;  %v3158_v3 = vld [vmem:[#allocation3 + $0x112] sm:$0xff] }
 0x12a   : > { %4956 = vmatmul.mubr.f32.vlgmr.msra.gmra.mrb[4].mxu1 %v5786_v39  ;;  %5061 = vmatmul.mubr.f32.vlgmr.msra.gmra.mrb[28].mxu0 %v5847_v35  ;;  %v3637_v51 = vmax.f32 %v3161_v6, %v6015_v8  ;;  %v3638_v38 = vmax.f32 %v3162_v16, %v6017_v30  ;;  %v3155_v41 = vmax.f32 %v3151_v32, %v3153_v5  ;;  %v3157_v40 = vld [vmem:[#allocation3 + $0x10a] sm:$0xff]  ;;  %v6027_v12 = vld [vmem:[#allocation3 + $0x122] sm:$0xff] }
 0x12b   : > { %5280 = vmatpush3.bf16.msra.mxu1 %v5279_v9  ;;  %v2274_v13 = vand.u32 4294901760, %v2273_v2  ;;  %4962 = vmatprep.mubr.msk.f32.mxu1 %vm5519_vm5, %v5517_v54  ;;  %v3156_v62 = vmax.f32 %v3152_v59, %v3154_v1  ;;  %v6029_v20 = vpack.c.bf16 %v1780_v31, %v1773_v60  ;;  %v6034_v24 = vsub.f32 %v5960_v43, %v1201_v37  ;;  %v6036_v34 = vld [vmem:[#allocation3 + $0x12a] sm:$0xff] }
 0x12c   : > { %5281 = vmatprep.subr.bf16.mxu1 %v5518_v55  ;;  %5067 = vmatprep.mubr.msk.f32.mxu0 %vm5519_vm5, %v5517_v54  ;;  %v2666_v36 = vmax.f32 %v2662_v42, %v2664_v0  ;;  %v2669_v44 = vmax.f32 %v2665_v10, %v5922_v27  ;;  %v3643_v50 = vld [vmem:[#allocation3 + $0x138] sm:$0xff]  ;;  %v3641_v48 = vmax.f32 %v3637_v51, %v6027_v12 }
 0x12d   : > { %v5324_v21 = vpack.c.bf16 %v2274_v13, %v2267_v33  ;;  %v3642_v32 = vmax.f32 %v3638_v38, %v6036_v34  ;;  %v5327_v18 = vpack.c.bf16 %v5982_v17, %v5965_v19  ;;  %v6044_v53 = vsub.f32 %v5996_v52, %v1198_v14  ;;  %v3647_v2 = vld [vmem:[#allocation3 + $0x139] sm:$0xff] }
 0x12e   : > { %v2670_v58 = vmax.f32 %v2666_v36, %v5931_v45  ;;  %v2673_v59 = vmax.f32 %v2669_v44, %v5924_v28  ;;  %v3159_v61 = vmax.f32 %v3155_v41, %v3157_v40  ;;  %v3160_v27 = vmax.f32 %v3156_v62, %v3158_v3  ;;  %v3644_v60 = vld [vmem:[#allocation3 + $0x140] sm:$0xff] }
 0x12f   : > { %5325 = vmatpush3.bf16.msra.mxu0 %v5324_v21  ;;  %v3645_v56 = vmax.f32 %v3641_v48, %v3643_v50  ;;  %v1284_v0 = vand.u32 4294901760, %v6034_v24  ;;  %v1277_v28 = vand.u32 4294901760, %v6044_v53  ;;  %v3646_v5 = vmax.f32 %v3642_v32, %v3644_v60  ;;  %v3648_v1 = vld [vmem:[#allocation3 + $0x141] sm:$0xff]  ;;  %v4129_v60 = vld [vmem:[#allocation3 + $0x151] sm:$0xff] }
 0x130   : > { %5326 = vmatprep.subr.bf16.mxu0 %v5518_v55  ;;  %v2674_v9 = vmax.f32 %v2670_v58, %v5933_v47  ;;  %v2677_v33 = vmax.f32 %v2673_v59, %v5947_v63  ;;  %v3163_v47 = vmax.f32 %v3159_v61, %v3161_v6  ;;  %v3164_v63 = vmax.f32 %v3160_v27, %v3162_v16  ;;  %v3651_v10 = vld [vmem:[#allocation3 + $0x13a] sm:$0xff]  ;;  %v3652_v40 = vld [vmem:[#allocation3 + $0x142] sm:$0xff] }
 0x131   : > { %v3649_v31 = vmax.f32 %v3645_v56, %v3647_v2  ;;  %v1278_v6 = vsub.f32 %v6044_v53, %v1277_v28  ;;  %v3650_v51 = vmax.f32 %v3646_v5, %v3648_v1  ;;  %v6082_v3 = vpack.c.bf16 %v1201_v37, %v1198_v14  ;;  %v6093_v37 = vld [vmem:[#allocation3 + $0x150] sm:$0xff]  ;;  %v6107_v58 = vld [vmem:[#allocation3 + $0x158] sm:$0xff] }
 0x132   : > { %4963 = vmatmul.mubr.msk.f32.vlgmr.msra.gmra.mrb[4].mxu1 %vm491_vm3, %v5755_v57  ;;  %5068 = vmatmul.mubr.msk.f32.vlgmr.msra.gmra.mrb[28].mxu0 %vm491_vm3, %v5755_v57  ;;  %v2678_v45 = vmax.f32 %v2674_v9, %v5952_v7  ;;  %v2680_v52 = vand.u32 4294901760, %v2677_v33  ;;  %v3167_v38 = vmax.f32 %v3163_v47, %v6015_v8  ;;  %v3168_v41 = vmax.f32 %v3164_v63, %v6017_v30  ;;  %v4133_v2 = vld [vmem:[#allocation3 + $0x152] sm:$0xff]  ;;  %v4134_v63 = vld [vmem:[#allocation3 + $0x15a] sm:$0xff] }
 0x133   : > { %5283 = vmatpush3.bf16.msra.mxu1 %v5836_v29  ;;  %5328 = vmatpush3.bf16.msra.mxu0 %v5327_v18  ;;  %v1285_v29 = vsub.f32 %v6034_v24, %v1284_v0  ;;  %v3653_v21 = vmax.f32 %v3649_v31, %v3651_v10  ;;  %v1279_v43 = vand.u32 4294901760, %v1278_v6  ;;  %v3654_v48 = vmax.f32 %v3650_v51, %v3652_v40 }
 0x134   : > { %4969 = vmatprep.mubr.msk.f32.mxu1 %vm5519_vm5, %v5517_v54  ;;  %5284 = vmatprep.subr.bf16.mxu1 %v5518_v55  ;;  %v2683_v7 = vand.u32 4294901760, %v2678_v45  ;;  %v6068_v42 = vsub.f32 %v2677_v33, %v2680_v52  ;;  %v6102_v32 = vmax.f32 %v3167_v38, %v6027_v12  ;;  %v6105_v18 = vmax.f32 %v3168_v41, %v6036_v34  ;;  %v4130_v12 = vld [vmem:[#allocation3 + $0x159] sm:$0xff] }
 0x135   : > { %5074 = vmatprep.mubr.msk.f32.mxu0 %vm5519_vm5, %v5517_v54  ;;  %5329 = vmatprep.subr.bf16.mxu0 %v5518_v55  ;;  %v1286_v36 = vand.u32 4294901760, %v1285_v29  ;;  %v3657_v61 = vmax.f32 %v3653_v21, %v6093_v37  ;;  %v3658_v9 = vmax.f32 %v3654_v48, %v6107_v58  ;;  %v5333_v33 = vpack.c.bf16 %v2272_v49, %v2265_v26 }
 0x136   : > { %v6073_v16 = vpack.c.bf16 %v2683_v7, %v2680_v52  ;;  %v6075_v13 = vsub.f32 %v2678_v45, %v2683_v7  ;;  %v2759_v62 = vand.u32 4294901760, %v6068_v42  ;;  %v3174_v5 = vand.u32 4294901760, %v6102_v32 }
 0x137   : > { %v5288_v27 = vpack.c.bf16 %v1286_v36, %v1279_v43  ;;  %v3661_v34 = vmax.f32 %v3657_v61, %v4129_v60  ;;  %v3662_v52 = vmax.f32 %v3658_v9, %v4130_v12  ;;  %v3177_v47 = vand.u32 4294901760, %v6105_v18 }
 0x138   : > { %v2766_v44 = vand.u32 4294901760, %v6075_v13  ;;  %v5345_v50 = vpack.c.bf16 %v6075_v13, %v6068_v42  ;;  %v2760_v8 = vsub.f32 %v6068_v42, %v2759_v62  ;;  %v6131_v26 = vsub.f32 %v6102_v32, %v3174_v5 }
 0x139   : > { %v3665_v1 = vmax.f32 %v3661_v34, %v4133_v2  ;;  %v3666_v31 = vmax.f32 %v3662_v52, %v4134_v63  ;;  %v6134_v49 = vsub.f32 %v6105_v18, %v3177_v47  ;;  %v5291_v7 = vpack.c.bf16 %v6034_v24, %v6044_v53  ;;  %v4142_v52 = vld [vmem:[#allocation3 + $0x171] sm:$0xff] }
 0x13a   : > { %4970 = vmatmul.mubr.msk.f32.vlgmr.msra.gmra.mrb[4].mxu1 %vm491_vm3, %v5755_v57  ;;  %5075 = vmatmul.mubr.f32.vlgmr.msra.gmra.mrb[28].mxu0 %v5769_v15  ;;  %v2767_v30 = vsub.f32 %v6075_v13, %v2766_v44  ;;  %v6096_v14 = vpack.c.bf16 %v2766_v44, %v2759_v62  ;;  %v2761_v59 = vand.u32 4294901760, %v2760_v8  ;;  %v3253_v62 = vand.u32 4294901760, %v6131_v26  ;;  %v4145_v24 = vld [vmem:[#allocation3 + $0x16a] sm:$0xff]  ;;  %v4146_v53 = vld [vmem:[#allocation3 + $0x172] sm:$0xff] }
 0x13b   : > { %5286 = vmatpush3.bf16.msra.mxu1 %v6082_v3  ;;  %5331 = vmatpush3.bf16.msra.mxu0 %v5980_v25  ;;  %v3668_v19 = vand.u32 4294901760, %v3665_v1  ;;  %v3671_v17 = vand.u32 4294901760, %v3666_v31  ;;  %v3260_v40 = vand.u32 4294901760, %v6134_v49  ;;  %v4131_v32 = vmax.f32 %v6093_v37, %v4129_v60  ;;  %v4137_v37 = vld [vmem:[#allocation3 + $0x168] sm:$0xff]  ;;  %v4138_v60 = vld [vmem:[#allocation3 + $0x170] sm:$0xff] }
 0x13c   : > { %4976 = vmatprep.mubr.msk.f32.mxu1 %vm5519_vm5, %v5517_v54  ;;  %5287 = vmatprep.subr.bf16.mxu1 %v5518_v55  ;;  %v2768_v56 = vand.u32 4294901760, %v2767_v30  ;;  %v3254_v30 = vsub.f32 %v6131_v26, %v3253_v62  ;;  %v4132_v18 = vmax.f32 %v6107_v58, %v4130_v12 }
 0x13d   : > { %5081 = vmatprep.mubr.msk.f32.mxu0 %vm5519_vm5, %v5517_v54  ;;  %5332 = vmatprep.subr.bf16.mxu0 %v5518_v55  ;;  %v6136_v29 = vsub.f32 %v3665_v1, %v3668_v19  ;;  %v6140_v10 = vpack.c.bf16 %v3671_v17, %v3668_v19  ;;  %v6142_v6 = vsub.f32 %v3666_v31, %v3671_v17  ;;  %v4149_v1 = vld [vmem:[#allocation3 + $0x180] sm:$0xff]  ;;  %v4150_v31 = vld [vmem:[#allocation3 + $0x188] sm:$0xff] }
 0x13e   : > { %4977 = vmatmul.mubr.f32.vlgmr.msra.gmra.mrb[6].mxu1 %v5847_v35  ;;  %v6121_v45 = vpack.c.bf16 %v2768_v56, %v2761_v59  ;;  %v3261_v48 = vsub.f32 %v6134_v49, %v3260_v40  ;;  %v3255_v61 = vand.u32 4294901760, %v3254_v30  ;;  %v4135_v56 = vmax.f32 %v4131_v32, %v4133_v2  ;;  %v4141_v2 = vld [vmem:[#allocation3 + $0x169] sm:$0xff] }
 0x13f   : > { %5289 = vmatpush3.bf16.msra.mxu1 %v5288_v27  ;;  %4983 = vmatprep.mubr.msk.f32.mxu1 %vm5519_vm5, %v5517_v54  ;;  %v3747_v51 = vand.u32 4294901760, %v6136_v29  ;;  %v3754_v38 = vand.u32 4294901760, %v6142_v6  ;;  %v5381_v41 = vpack.c.bf16 %v6142_v6, %v6136_v29  ;;  %v4136_v9 = vmax.f32 %v4132_v18, %v4134_v63 }
 0x140   : > { %5290 = vmatprep.subr.bf16.mxu1 %v5518_v55  ;;  %v3262_v27 = vand.u32 4294901760, %v3261_v48  ;;  %v4139_v12 = vmax.f32 %v4135_v56, %v4137_v37  ;;  %v5369_v30 = vpack.c.bf16 %v3260_v40, %v3253_v62 }
 0x141   : > { %v3748_v21 = vsub.f32 %v6136_v29, %v3747_v51  ;;  %v3755_v36 = vsub.f32 %v6142_v6, %v3754_v38  ;;  %v6157_v44 = vpack.c.bf16 %v3754_v38, %v3747_v51  ;;  %v4140_v34 = vmax.f32 %v4136_v9, %v4138_v60  ;;  %v4154_v51 = vld [vmem:[#allocation3 + $0x189] sm:$0xff] }
 0x142   : > { %5082 = vmatmul.mubr.f32.vlgmr.msra.gmra.mrb[28].mxu0 %v5786_v39  ;;  %v5360_v58 = vpack.c.bf16 %v3262_v27, %v3255_v61 }
 0x143   : > { %5334 = vmatpush3.bf16.msra.mxu0 %v5333_v33  ;;  %5088 = vmatprep.mubr.msk.f32.mxu0 %vm5519_vm5, %v5517_v54  ;;  %v3749_v8 = vand.u32 4294901760, %v3748_v21  ;;  %v3756_v43 = vand.u32 4294901760, %v3755_v36  ;;  %v5297_v33 = vpack.c.bf16 %v1284_v0, %v1277_v28  ;;  %v5363_v0 = vpack.c.bf16 %v6134_v49, %v6131_v26  ;;  %v4157_v36 = vld [vmem:[#allocation3 + $0x182] sm:$0xff] }
 0x144   : > { %5335 = vmatprep.subr.bf16.mxu0 %v5518_v55 }
 0x145   : > { %v6173_v59 = vpack.c.bf16 %v3756_v43, %v3749_v8  ;;  %v4158_v8 = vld [vmem:[#allocation3 + $0x18a] sm:$0xff] }
 0x146   : > { %4984 = vmatmul.mubr.msk.f32.vlgmr.msra.gmra.mrb[6].mxu1 %vm491_vm3, %v5755_v57 }
 0x147   : > { %5292 = vmatpush3.bf16.msra.mxu1 %v5291_v7  ;;  %4990 = vmatprep.mubr.msk.f32.mxu1 %vm5519_vm5, %v5517_v54  ;;  %v4153_v7 = vld [vmem:[#allocation3 + $0x181] sm:$0xff] }
 0x148   : > { %5293 = vmatprep.subr.bf16.mxu1 %v5518_v55 }
 0x14a   : > { %5089 = vmatmul.mubr.msk.f32.vlgmr.msra.gmra.mrb[28].mxu0 %vm491_vm3, %v5755_v57 }
 0x14b   : > { %5337 = vmatpush3.bf16.msra.mxu0 %v5980_v25  ;;  %5095 = vmatprep.mubr.msk.f32.mxu0 %vm5519_vm5, %v5517_v54  ;;  %v6179_v25 = vpack.c.bf16 %v3177_v47, %v3174_v5  ;;  %v4143_v5 = vmax.f32 %v4139_v12, %v4141_v2  ;;  %v4144_v47 = vmax.f32 %v4140_v34, %v4142_v52 }
 0x14c   : > { %5356 = vmatprep.subr.bf16.mxu0 %v5518_v55 }
 0x14d   : > { %v4147_v28 = vmax.f32 %v4143_v5, %v4145_v24  ;;  %v4148_v63 = vmax.f32 %v4144_v47, %v4146_v53 }
 0x14e   : > { %4991 = vmatmul.mubr.f32.vlgmr.msra.gmra.mrb[6].mxu1 %v5769_v15 }
 0x14f   : > { %5295 = vmatpush3.bf16.msra.mxu1 %v6082_v3  ;;  %4997 = vmatprep.mubr.msk.f32.mxu1 %vm5519_vm5, %v5517_v54  ;;  %v4151_v19 = vmax.f32 %v4147_v28, %v4149_v1  ;;  %v4152_v17 = vmax.f32 %v4148_v63, %v4150_v31 }
 0x150   : > { %5296 = vmatprep.subr.bf16.mxu1 %v5518_v55 }
 0x151   : > { %v4155_v38 = vmax.f32 %v4151_v19, %v4153_v7  ;;  %v4156_v21 = vmax.f32 %v4152_v17, %v4154_v51 }
 0x152   : > { %5096 = vmatmul.mubr.msk.f32.vlgmr.msra.gmra.mrb[28].mxu0 %vm491_vm3, %v5755_v57 }
 0x153   : > { %5358 = vmatpush3.bf16.msra.mxu0 %v6179_v25  ;;  %5144 = vmatprep.mubr.msk.f32.mxu0 %vm5519_vm5, %v5517_v54  ;;  %v4160_v43 = vmax.f32 %v4156_v21, %v4158_v8 }
 0x154   : > { %5359 = vmatprep.subr.bf16.mxu0 %v5518_v55 }
 0x155   : > { %v4165_v32 = vand.u32 4294901760, %v4160_v43 }
 0x156   : > { %4998 = vmatmul.mubr.f32.vlgmr.msra.gmra.mrb[6].mxu1 %v5786_v39  ;;  %5145 = vmatmul.mubr.f32.vlgmr.msra.gmra.mrb[30].mxu0 %v5847_v35 }
 0x157   : > { %5298 = vmatpush3.bf16.msra.mxu1 %v5297_v33  ;;  %5004 = vmatprep.mubr.msk.f32.mxu1 %vm5519_vm5, %v5517_v54  ;;  %v4247_v18 = vsub.f32 %v4160_v43, %v4165_v32 }
 0x158   : > { %5299 = vmatprep.subr.bf16.mxu1 %v5518_v55  ;;  %5361 = vmatpush3.bf16.msra.mxu0 %v5360_v58 }
 0x159   : > { %5151 = vmatprep.mubr.msk.f32.mxu0 %vm5519_vm5, %v5517_v54  ;;  %5362 = vmatprep.subr.bf16.mxu0 %v5518_v55  ;;  %v4248_v49 = vand.u32 4294901760, %v4247_v18 }
 0x15b   : > { %v4249_v11 = vsub.f32 %v4247_v18, %v4248_v49 }
 0x15d   : > { %v4250_v40 = vand.u32 4294901760, %v4249_v11 }
 0x15e   : > { %5005 = vmatmul.mubr.msk.f32.vlgmr.msra.gmra.mrb[6].mxu1 %vm491_vm3, %v5755_v57  ;;  %5152 = vmatmul.mubr.msk.f32.vlgmr.msra.gmra.mrb[30].mxu0 %vm491_vm3, %v5755_v57 }
 0x15f   : > { %5301 = vmatpush3.bf16.msra.mxu1 %v6082_v3  ;;  %5011 = vmatprep.mubr.msk.f32.mxu1 %vm5519_vm5, %v5517_v54  ;;  %v4159_v3 = vmax.f32 %v4155_v38, %v4157_v36 }
 0x160   : > { %5302 = vmatprep.subr.bf16.mxu1 %v5518_v55  ;;  %5364 = vmatpush3.bf16.msra.mxu0 %v5363_v0 }
 0x161   : > { %5158 = vmatprep.mubr.msk.f32.mxu0 %vm5519_vm5, %v5517_v54  ;;  %5365 = vmatprep.subr.bf16.mxu0 %v5518_v55  ;;  %v4162_v48 = vand.u32 4294901760, %v4159_v3 }
 0x163   : > { %v5393_v23 = vpack.c.bf16 %v4165_v32, %v4162_v48 }
 0x166   : > { %5012 = vmatmul.mubr.msk.f32.vlgmr.msra.gmra.mrb[6].mxu1 %vm491_vm3, %v5755_v57  ;;  %5159 = vmatmul.mubr.f32.vlgmr.msra.gmra.mrb[30].mxu0 %v5769_v15 }
 0x167   : > { %5304 = vmatpush3.bf16.msra.mxu1 %v5975_v22  ;;  %5018 = vmatprep.mubr.msk.f32.mxu1 %vm5519_vm5, %v5517_v54 }
 0x168   : > { %5305 = vmatprep.subr.bf16.mxu1 %v5518_v55  ;;  %5367 = vmatpush3.bf16.msra.mxu0 %v6179_v25 }
 0x169   : > { %5165 = vmatprep.mubr.msk.f32.mxu0 %vm5519_vm5, %v5517_v54  ;;  %5368 = vmatprep.subr.bf16.mxu0 %v5518_v55 }
 0x16a   : > { %5019 = vmatmul.mubr.f32.vlgmr.msra.gmra.mrb[8].mxu1 %v5847_v35 }
 0x16b   : > { %5307 = vmatpush3.bf16.msra.mxu1 %v6029_v20  ;;  %5025 = vmatprep.mubr.msk.f32.mxu1 %vm5519_vm5, %v5517_v54  ;;  %v4240_v20 = vsub.f32 %v4159_v3, %v4162_v48 }
 0x16c   : > { %5308 = vmatprep.subr.bf16.mxu1 %v5518_v55 }
 0x16d   : > { %v4241_v26 = vand.u32 4294901760, %v4240_v20  ;;  %v5399_v61 = vpack.c.bf16 %v4247_v18, %v4240_v20 }
 0x16e   : > { %5166 = vmatmul.mubr.f32.vlgmr.msra.gmra.mrb[30].mxu0 %v5786_v39 }
 0x16f   : > { %5370 = vmatpush3.bf16.msra.mxu0 %v5369_v30  ;;  %5172 = vmatprep.mubr.msk.f32.mxu0 %vm5519_vm5, %v5517_v54  ;;  %v4242_v62 = vsub.f32 %v4240_v20, %v4241_v26 }
 0x170   : > { %5371 = vmatprep.subr.bf16.mxu0 %v5518_v55 }
 0x172   : > { %5026 = vmatmul.mubr.msk.f32.vlgmr.msra.gmra.mrb[8].mxu1 %vm491_vm3, %v5755_v57 }
 0x173   : > { %5310 = vmatpush3.bf16.msra.mxu1 %v5309_v46  ;;  %5032 = vmatprep.mubr.msk.f32.mxu1 %vm5519_vm5, %v5517_v54  ;;  %v4243_v46 = vand.u32 4294901760, %v4242_v62 }
 0x174   : > { %5311 = vmatprep.subr.bf16.mxu1 %v5518_v55 }
 0x176   : > { %5173 = vmatmul.mubr.msk.f32.vlgmr.msra.gmra.mrb[30].mxu0 %vm491_vm3, %v5755_v57 }
 0x177   : > { %5373 = vmatpush3.bf16.msra.mxu0 %v6179_v25  ;;  %5179 = vmatprep.mubr.msk.f32.mxu0 %vm5519_vm5, %v5517_v54  ;;  %v5396_v25 = vpack.c.bf16 %v4250_v40, %v4243_v46 }
 0x178   : > { %5392 = vmatprep.subr.bf16.mxu0 %v5518_v55 }
 0x17a   : > { %5033 = vmatmul.mubr.f32.vlgmr.msra.gmra.mrb[8].mxu1 %v5769_v15 }
 0x17b   : > { %5313 = vmatpush3.bf16.msra.mxu1 %v5975_v22  ;;  %5039 = vmatprep.mubr.msk.f32.mxu1 %vm5519_vm5, %v5517_v54 }
 0x17c   : > { %5314 = vmatprep.subr.bf16.mxu1 %v5518_v55 }
 0x17e   : > { %5180 = vmatmul.mubr.msk.f32.vlgmr.msra.gmra.mrb[30].mxu0 %vm491_vm3, %v5755_v57 }
 0x17f   : > { %5394 = vmatpush3.bf16.msra.mxu0 %v5393_v23  ;;  %5228 = vmatprep.mubr.msk.f32.mxu0 %vm5519_vm5, %v5517_v54 }
 0x180   : > { %5395 = vmatprep.subr.bf16.mxu0 %v5518_v55 }
 0x182   : > { %5040 = vmatmul.mubr.f32.vlgmr.msra.gmra.mrb[8].mxu1 %v5786_v39  ;;  %5229 = vmatmul.mubr.f32.vlgmr.msra.gmra.mrb[32].mxu0 %v5847_v35 }
 0x183   : > { %5316 = vmatpush3.bf16.msra.mxu1 %v6002_v4  ;;  %5046 = vmatprep.mubr.msk.f32.mxu1 %vm5519_vm5, %v5517_v54 }
 0x184   : > { %5317 = vmatprep.subr.bf16.mxu1 %v5518_v55  ;;  %5397 = vmatpush3.bf16.msra.mxu0 %v5396_v25 }
 0x185   : > { %5235 = vmatprep.mubr.msk.f32.mxu0 %vm5519_vm5, %v5517_v54  ;;  %5398 = vmatprep.subr.bf16.mxu0 %v5518_v55 }
 0x18a   : > { %5047 = vmatmul.mubr.msk.f32.vlgmr.msra.gmra.mrb[8].mxu1 %vm491_vm3, %v5755_v57  ;;  %5236 = vmatmul.mubr.msk.f32.vlgmr.msra.gmra.mrb[32].mxu0 %vm491_vm3, %v5755_v57 }
 0x18b   : > { %5319 = vmatpush3.bf16.msra.mxu1 %v5975_v22  ;;  %5053 = vmatprep.mubr.msk.f32.mxu1 %vm5519_vm5, %v5517_v54  ;;  %v5405_v22 = vpack.c.bf16 %v4248_v49, %v4241_v26 }
 0x18c   : > { %5338 = vmatprep.subr.bf16.mxu1 %v5518_v55  ;;  %5400 = vmatpush3.bf16.msra.mxu0 %v5399_v61 }
 0x18d   : > { %5242 = vmatprep.mubr.msk.f32.mxu0 %vm5519_vm5, %v5517_v54  ;;  %5401 = vmatprep.subr.bf16.mxu0 %v5518_v55 }
 0x192   : > { %5054 = vmatmul.mubr.msk.f32.vlgmr.msra.gmra.mrb[8].mxu1 %vm491_vm3, %v5755_v57  ;;  %5243 = vmatmul.mubr.f32.vlgmr.msra.gmra.mrb[32].mxu0 %v5769_v15 }
 0x193   : > { %5340 = vmatpush3.bf16.msra.mxu1 %v6073_v16  ;;  %5102 = vmatprep.mubr.msk.f32.mxu1 %vm5519_vm5, %v5517_v54 }
 0x194   : > { %5341 = vmatprep.subr.bf16.mxu1 %v5518_v55  ;;  %5403 = vmatpush3.bf16.msra.mxu0 %v5393_v23 }
 0x195   : > { %5249 = vmatprep.mubr.msk.f32.mxu0 %vm5519_vm5, %v5517_v54  ;;  %5404 = vmatprep.subr.bf16.mxu0 %v5518_v55 }
 0x196   : > { %5103 = vmatmul.mubr.f32.vlgmr.msra.gmra.mrb[10].mxu1 %v5847_v35 }
 0x197   : > { %5343 = vmatpush3.bf16.msra.mxu1 %v6121_v45  ;;  %5109 = vmatprep.mubr.msk.f32.mxu1 %vm5519_vm5, %v5517_v54 }
 0x198   : > { %5344 = vmatprep.subr.bf16.mxu1 %v5518_v55 }
 0x19a   : > { %5250 = vmatmul.mubr.f32.vlgmr.msra.gmra.mrb[32].mxu0 %v5786_v39 }
 0x19b   : > { %5406 = vmatpush3.bf16.msra.mxu0 %v5405_v22  ;;  %5256 = vmatprep.mubr.msk.f32.mxu0 %vm5519_vm5, %v5517_v54 }
 0x19c   : > { %5407 = vmatprep.subr.bf16.mxu0 %v5518_v55 }
 0x19e   : > { %5110 = vmatmul.mubr.msk.f32.vlgmr.msra.gmra.mrb[10].mxu1 %vm491_vm3, %v5755_v57 }
 0x19f   : > { %5346 = vmatpush3.bf16.msra.mxu1 %v5345_v50  ;;  %5116 = vmatprep.mubr.msk.f32.mxu1 %vm5519_vm5, %v5517_v54 }
 0x1a0   : > { %5347 = vmatprep.subr.bf16.mxu1 %v5518_v55 }
 0x1a2   : > { %5257 = vmatmul.mubr.msk.f32.vlgmr.msra.gmra.mrb[32].mxu0 %vm491_vm3, %v5755_v57 }
 0x1a3   : > { %5409 = vmatpush3.bf16.msra.mxu0 %v5393_v23  ;;  %5263 = vmatprep.mubr.msk.f32.mxu0 %vm5519_vm5, %v5517_v54 }
 0x1a6   : > { %5117 = vmatmul.mubr.f32.vlgmr.msra.gmra.mrb[10].mxu1 %v5769_v15 }
 0x1a7   : > { %5349 = vmatpush3.bf16.msra.mxu1 %v6073_v16  ;;  %5123 = vmatprep.mubr.msk.f32.mxu1 %vm5519_vm5, %v5517_v54 }
 0x1a8   : > { %5350 = vmatprep.subr.bf16.mxu1 %v5518_v55 }
 0x1aa   : > { %5264 = vmatmul.mubr.msk.f32.vlgmr.msra.gmra.mrb[32].mxu0 %vm491_vm3, %v5755_v57 }
 0x1ae   : > { %5124 = vmatmul.mubr.f32.vlgmr.msra.gmra.mrb[10].mxu1 %v5786_v39 }
 0x1af   : > { %5352 = vmatpush3.bf16.msra.mxu1 %v6096_v14  ;;  %5130 = vmatprep.mubr.msk.f32.mxu1 %vm5519_vm5, %v5517_v54 }
 0x1b0   : > { %5353 = vmatprep.subr.bf16.mxu1 %v5518_v55 }
 0x1b6   : > { %5131 = vmatmul.mubr.msk.f32.vlgmr.msra.gmra.mrb[10].mxu1 %vm491_vm3, %v5755_v57 }
 0x1b7   : > { %5355 = vmatpush3.bf16.msra.mxu1 %v6073_v16  ;;  %5137 = vmatprep.mubr.msk.f32.mxu1 %vm5519_vm5, %v5517_v54 }
 0x1b8   : > { %5374 = vmatprep.subr.bf16.mxu1 %v5518_v55 }
 0x1be   : > { %5138 = vmatmul.mubr.msk.f32.vlgmr.msra.gmra.mrb[10].mxu1 %vm491_vm3, %v5755_v57 }
 0x1bf   : > { %5376 = vmatpush3.bf16.msra.mxu1 %v6140_v10  ;;  %5186 = vmatprep.mubr.msk.f32.mxu1 %vm5519_vm5, %v5517_v54 }
 0x1c0   : > { %5377 = vmatprep.subr.bf16.mxu1 %v5518_v55 }
 0x1c2   : > { %5187 = vmatmul.mubr.f32.vlgmr.msra.gmra.mrb[12].mxu1 %v5847_v35 }
 0x1c3   : > { %5379 = vmatpush3.bf16.msra.mxu1 %v6173_v59  ;;  %5193 = vmatprep.mubr.msk.f32.mxu1 %vm5519_vm5, %v5517_v54 }
 0x1c4   : > { %5380 = vmatprep.subr.bf16.mxu1 %v5518_v55 }
 0x1ca   : > { %5194 = vmatmul.mubr.msk.f32.vlgmr.msra.gmra.mrb[12].mxu1 %vm491_vm3, %v5755_v57 }
 0x1cb   : > { %5382 = vmatpush3.bf16.msra.mxu1 %v5381_v41  ;;  %5200 = vmatprep.mubr.msk.f32.mxu1 %vm5519_vm5, %v5517_v54 }
 0x1cc   : > { %5383 = vmatprep.subr.bf16.mxu1 %v5518_v55 }
 0x1d2   : > { %5201 = vmatmul.mubr.f32.vlgmr.msra.gmra.mrb[12].mxu1 %v5769_v15 }
 0x1d3   : > { %5385 = vmatpush3.bf16.msra.mxu1 %v6140_v10  ;;  %5207 = vmatprep.mubr.msk.f32.mxu1 %vm5519_vm5, %v5517_v54 }
 0x1d4   : > { %5386 = vmatprep.subr.bf16.mxu1 %v5518_v55 }
 0x1da   : > { %5208 = vmatmul.mubr.f32.vlgmr.msra.gmra.mrb[12].mxu1 %v5786_v39 }
 0x1db   : > { %5388 = vmatpush3.bf16.msra.mxu1 %v6157_v44  ;;  %5214 = vmatprep.mubr.msk.f32.mxu1 %vm5519_vm5, %v5517_v54 }
 0x1dc   : > { %5389 = vmatprep.subr.bf16.mxu1 %v5518_v55 }
 0x1e2   : > { %5215 = vmatmul.mubr.msk.f32.vlgmr.msra.gmra.mrb[12].mxu1 %vm491_vm3, %v5755_v57 }
 0x1e3   : > { %5391 = vmatpush3.bf16.msra.mxu1 %v6140_v10  ;;  %5221 = vmatprep.mubr.msk.f32.mxu1 %vm5519_vm5, %v5517_v54 }
 0x1ea   : > { %5222 = vmatmul.mubr.msk.f32.vlgmr.msra.gmra.mrb[12].mxu1 %vm491_vm3, %v5755_v57 }
 0x20d   : > { %v1158_v15 = vpop.f32.mrb[4].mxu1 }
 0x20e   : > { %1162 = vst.msk [vmem:[%s170_s27] sm:$0xff] %vm491_vm3, %v1158_v15  ;;  %v4971_v55 = vpop.f32.mrb[5].mxu1 }
 0x225   : > { %v2640_v39 = vpop.f32.mrb[28].mxu0 }
 0x226   : > { %2644 = vst.msk [vmem:[%s170_s27 + $0x18] sm:$0xff] %vm491_vm3, %v2640_v39  ;;  %v5097_v35 = vpop.f32.mrb[29].mxu0 }
 0x239   : > { %v1652_v4 = vpop.f32.mrb[6].mxu1 }
 0x23a   : > { %1656 = vst.msk [vmem:[%s170_s27 + $0x8] sm:$0xff] %vm491_vm3, %v1652_v4  ;;  %v5013_v54 = vpop.f32.mrb[7].mxu1 }
 0x251   : > { %v3628_v42 = vpop.f32.mrb[30].mxu0 }
 0x252   : > { %3632 = vst.msk [vmem:[%s170_s27 + $0x28] sm:$0xff] %vm491_vm3, %v3628_v42  ;;  %v5181_v57 = vpop.f32.mrb[31].mxu0 }
 0x265   : > { %v2146_v16 = vpop.f32.mrb[8].mxu1 }
 0x266   : > { %2150 = vst.msk [vmem:[%s170_s27 + $0x10] sm:$0xff] %vm491_vm3, %v2146_v16  ;;  %v5055_v13 = vpop.f32.mrb[9].mxu1 }
 0x27d   : > { %v4616_v50 = vpop.f32.mrb[32].mxu0 }
 0x27e   : > { %4620 = vst.msk [vmem:[%s170_s27 + $0x38] sm:$0xff] %vm491_vm3, %v4616_v50  ;;  %v5265_v14 = vpop.f32.mrb[33].mxu0 }
 0x291   : > { %v3134_v45 = vpop.f32.mrb[10].mxu1 }
 0x292   : > { %3138 = vst.msk [vmem:[%s170_s27 + $0x20] sm:$0xff] %vm491_vm3, %v3134_v45  ;;  %v5139_v29 = vpop.f32.mrb[11].mxu1 }
 0x2bd   : > { %v4122_v10 = vpop.f32.mrb[12].mxu1 }
 0x2be   : > { %4126 = vst.msk [vmem:[%s170_s27 + $0x30] sm:$0xff] %vm491_vm3, %v4122_v10  ;;  %v5223_v6 = vpop.f32.mrb[13].mxu1 }
 0x2bf PF: > { %s13_s12 = sadd.s32 1, %s5514_s12  }
 0x2c0   : > { %p10_p4 = scmp.ge.s32.totalorder %s13_s12, 4  }
 0x2c2   :  { %12 = sbr.rel (!%p10_p4) target bundleno = 1 (0x1), region = 78 }

// kernel: shufflenetv2_forward.6
= control target key start
LH: loop header
LB: loop body
LE: loop exit
PB: predicated region body
PF: predicated region fallthrough
CT: control target
= control target key end

     0   :  { %s5613_s17 = smov 0   ;;  %s6198_s0 = inlined_call_operand.vmem [shape: f32[2,64,16], index: 0, kind: input, shape index: {}]   ;;  %s6199_s1 = inlined_call_operand.vmem [shape: bf16[16,16], index: 1, kind: input, shape index: {}]   ;;  %s6200_s2 = inlined_call_operand.vmem [shape: f32[1,16], index: 2, kind: input, shape index: {}]   ;;  %s6201_s3 = inlined_call_operand.vmem [shape: f32[9,16], index: 3, kind: input, shape index: {}]   ;;  %s6202_s4 = inlined_call_operand.vmem [shape: f32[1,16], index: 4, kind: input, shape index: {}]   ;;  %s6203_s5 = inlined_call_operand.vmem [shape: bf16[16,32], index: 5, kind: input, shape index: {}]   ;;  %s6204_s6 = inlined_call_operand.vmem [shape: f32[1,32], index: 6, kind: input, shape index: {}]   ;;  %s6205_s7 = inlined_call_operand.vmem [shape: f32[9,16], index: 7, kind: input, shape index: {}]   ;;  %s6206_s8 = inlined_call_operand.vmem [shape: f32[1,16], index: 8, kind: input, shape index: {}]   ;;  %s6207_s9 = inlined_call_operand.vmem [shape: bf16[16,32], index: 9, kind: input, shape index: {}]   ;;  %s6208_s10 = inlined_call_operand.vmem [shape: f32[1,32], index: 10, kind: input, shape index: {}]   ;;  %s6209_s11 = inlined_call_operand.vmem [shape: f32[2,16,32], index: 11, kind: output, shape index: {}]  }
   0x1 LB: > { %s4960_s18 = sadd.s32 4294967295, %s5549_s17   ;;  %p4964_p0 = scmp.ge.s32.totalorder %s5549_s17, 1  ;;  %s5549_s17 = sphi %s5613_s17, %s21_s17  }
   0x2   : > { %p337_p1 = scmp.lt.s32.totalorder %s5549_s17, 3 }
   0x4   : > { %p338_p2 = pnand %p4964_p0, %p337_p1 }
   0x5   : > { %v5540_v0 = vld [vmem:[%s6199_s1] sm:$0xff] (!%p338_p2)   ;;  %p377_p3 = scmp.lt.s32.totalorder (!%p338_p2), %s4960_s18, 1  ;;  %v598_v1 = vlaneseq (!%p338_p2)  ;;  %vm415_vm0 = vcmask (!%p338_p2), 130048   ;;  %vm510_vm1 = vcmask (!%p338_p2), 123904   ;;  %v5551_v2 = vmov (!%p338_p2), 0.0  }
   0x6   : > { %341 = sbr.rel (%p338_p2) target bundleno = 895 (0x37f), region = 64  ;;  %5188 = vmatprep.subr.bf16.mxu0 (!%p338_p2), %v5540_v0  ;;  %509 = vst.msk [vmem:[#allocation3] sm:$0xff] (!%p338_p2), %vm415_vm0, %v5551_v2  ;;  %512 = vst.msk [vmem:[#allocation3 + $0x10] sm:$0xff] (!%p338_p2), %vm415_vm0, %v5551_v2  ;;  %5198 = vmatprep.subr.mxu1 (!%p338_p2), %v5551_v2  ;;  %vm5552_vm2 = vmmov (!%p338_p2), 0   ;;  %v5709_v5 = vld [vmem:[%s6205_s7] ss:$0 sm:$0xff] (!%p338_p2) }
   0x7   : > { %514 = vst.msk [vmem:[#allocation3 + $0x20] sm:$0xff] (!%p338_p2), %vm415_vm0, %v5551_v2  ;;  %516 = vst.msk [vmem:[#allocation3 + $0x30] sm:$0xff] (!%p338_p2), %vm415_vm0, %v5551_v2  ;;  %v599_v3 = vshrl.u32 (!%p338_p2), %v598_v1, 7  ;;  %5189 = vmatpush3.bf16.msra.mxu0 (!%p338_p2), %v5540_v0  ;;  %5200 = vmatprep.mubr.msk.f32.mxu1 (!%p338_p2), %vm5552_vm2, %v5551_v2  ;;  %v601_v4 = vand.u32 (!%p338_p2), 127, %v598_v1  ;;  %v5714_v6 = vld [vmem:[%s6205_s7 + $0x1] ss:$0 sm:$0xff] (!%p338_p2) }
   0x8   : > { %518 = vst.msk [vmem:[#allocation3 + $0x40] sm:$0xff] (!%p338_p2), %vm415_vm0, %v5551_v2  ;;  %520 = vst.msk [vmem:[#allocation3 + $0x50] sm:$0xff] (!%p338_p2), %vm415_vm0, %v5551_v2  ;;  %5228 = vmatprep.subr.mxu0 (!%p338_p2), %v5551_v2  ;;  %v5719_v7 = vld [vmem:[%s6205_s7 + $0x2] ss:$0 sm:$0xff] (!%p338_p2)  ;;  %vm747_vm4 = vcmask (!%p338_p2), 64512   ;;  %vm1197_vm5 = vcmask (!%p338_p2), 125952  }
   0x9   : > { %522 = vst.msk [vmem:[#allocation3 + $0x60] sm:$0xff] (!%p338_p2), %vm415_vm0, %v5551_v2  ;;  %524 = vst.msk [vmem:[#allocation3 + $0x70] sm:$0xff] (!%p338_p2), %vm415_vm0, %v5551_v2  ;;  %v602_v8 = vmul.u32 (!%p338_p2), 2, %v599_v3  ;;  %v5747_v29 = vld [vmem:[%s6205_s7 + $0x3] ss:$0 sm:$0xff] (!%p338_p2)  ;;  %vm4902_vm6 = vcmask (!%p338_p2), 261120  }
   0xa   : > { %526 = vst.msk [vmem:[#allocation3 + $0x80] sm:$0xff] (!%p338_p2), %vm415_vm0, %v5551_v2  ;;  %530 = vst.msk [vmem:[#allocation4] sm:$0xff] (!%p338_p2), %vm415_vm0, %v5551_v2  ;;  %v5752_v30 = vld [vmem:[%s6205_s7 + $0x4] ss:$0 sm:$0xff] (!%p338_p2)  ;;  %v5757_v31 = vld [vmem:[%s6205_s7 + $0x5] ss:$0 sm:$0xff] (!%p338_p2) }
   0xb   : > { %532 = vst.msk [vmem:[#allocation4 + $0x10] sm:$0xff] (!%p338_p2), %vm415_vm0, %v5551_v2  ;;  %534 = vst.msk [vmem:[#allocation4 + $0x20] sm:$0xff] (!%p338_p2), %vm415_vm0, %v5551_v2  ;;  %vm5723_vm3 = vcmp.eq.s32.totalorder (!%p338_p2), %v601_v4, %v602_v8  ;;  %v5766_v41 = vld [vmem:[%s6205_s7 + $0x6] ss:$0 sm:$0xff] (!%p338_p2)  ;;  %v5775_v46 = vld [vmem:[%s6205_s7 + $0x7] ss:$0 sm:$0xff] (!%p338_p2) }
   0xc   : > { %536 = vst.msk [vmem:[#allocation4 + $0x30] sm:$0xff] (!%p338_p2), %vm415_vm0, %v5551_v2  ;;  %538 = vst.msk [vmem:[#allocation4 + $0x40] sm:$0xff] (!%p338_p2), %vm415_vm0, %v5551_v2  ;;  %v5741_v27 = vsel (!%p338_p2), %vm5723_vm3, 1.0, %v5551_v2  ;;  %v5783_v50 = vld [vmem:[%s6205_s7 + $0x8] ss:$0 sm:$0xff] (!%p338_p2) }
   0xd   : > { %s6213_s18 = smov (!%p377_p3, %s4960_s18), 1  ;;  %540 = vst.msk [vmem:[#allocation4 + $0x50] sm:$0xff] %vm415_vm0, %v5551_v2  ;;  %542 = vst.msk [vmem:[#allocation4 + $0x60] sm:$0xff] %vm415_vm0, %v5551_v2  ;;  %v612_v21 = vld [vmem:[#allocation3] sm:$0xff]  ;;  %v749_v32 = vsel %vm747_vm4, %v5741_v27, 0 }
   0xe   : > { %544 = vst.msk [vmem:[#allocation4 + $0x70] sm:$0xff] %vm415_vm0, %v5551_v2  ;;  %546 = vst.msk [vmem:[#allocation4 + $0x80] sm:$0xff] %vm415_vm0, %v5551_v2  ;;  %s5081_s21 = sshll.u32 %s6213_s18, 6  ;;  %v618_v24 = vmul.f32 %v5709_v5, %v612_v21  ;;  %v5768_v42 = vsub.f32 %v749_v32, %v749_v32 }
   0xf   : > { %511 = vst.msk [vmem:[#allocation3 + $0x8] sm:$0x3] %vm510_vm1, %v5551_v2  ;;  %513 = vst.msk [vmem:[#allocation3 + $0x18] sm:$0x3] %vm510_vm1, %v5551_v2  ;;  %s381_s24 = scalar_lea.vmem %s6198_s0, %s5081_s21 }
  0x10   : > { %515 = vst.msk [vmem:[#allocation3 + $0x28] sm:$0x3] %vm510_vm1, %v5551_v2  ;;  %517 = vst.msk [vmem:[#allocation3 + $0x38] sm:$0x3] %vm510_vm1, %v5551_v2  ;;  %v388_v9 = vld [vmem:[%s381_s24] sm:$0xff]  ;;  %v389_v10 = vld [vmem:[%s381_s24 + $0x8] sm:$0xff] }
  0x11   : > { %519 = vst.msk [vmem:[#allocation3 + $0x48] sm:$0x3] %vm510_vm1, %v5551_v2  ;;  %521 = vst.msk [vmem:[#allocation3 + $0x58] sm:$0x3] %vm510_vm1, %v5551_v2  ;;  %v390_v11 = vld [vmem:[%s381_s24 + $0x10] sm:$0xff]  ;;  %v396_v12 = vpack.c.bf16 %v389_v10, %v388_v9  ;;  %v391_v13 = vld [vmem:[%s381_s24 + $0x18] sm:$0xff] }
  0x12   : > { %523 = vst.msk [vmem:[#allocation3 + $0x68] sm:$0x3] %vm510_vm1, %v5551_v2  ;;  %525 = vst.msk [vmem:[#allocation3 + $0x78] sm:$0x3] %vm510_vm1, %v5551_v2  ;;  %v392_v14 = vld [vmem:[%s381_s24 + $0x20] sm:$0xff]  ;;  %v393_v15 = vld [vmem:[%s381_s24 + $0x28] sm:$0xff]  ;;  %v397_v17 = vpack.c.bf16 %v391_v13, %v390_v11 }
  0x13   : > { %527 = vst.msk [vmem:[#allocation3 + $0x88] sm:$0x3] %vm510_vm1, %v5551_v2  ;;  %531 = vst.msk [vmem:[#allocation4 + $0x8] sm:$0x3] %vm510_vm1, %v5551_v2  ;;  %v398_v18 = vpack.c.bf16 %v393_v15, %v392_v14  ;;  %v394_v19 = vld [vmem:[%s381_s24 + $0x30] sm:$0xff]  ;;  %v395_v20 = vld [vmem:[%s381_s24 + $0x38] sm:$0xff]  ;;  %5190 = vmatprep.mubr.msk.bf16.mxu0 %vm415_vm0, %v396_v12 }
  0x14   : > { %533 = vst.msk [vmem:[#allocation4 + $0x18] sm:$0x3] %vm510_vm1, %v5551_v2  ;;  %535 = vst.msk [vmem:[#allocation4 + $0x28] sm:$0x3] %vm510_vm1, %v5551_v2  ;;  %5191 = vmatmul.mubr.msk.bf16.vlgmr.msra.gmra.mrb[0].mxu0 %vm415_vm0, %v397_v17  ;;  %v399_v33 = vpack.c.bf16 %v395_v20, %v394_v19  ;;  %v5786_v51 = vand.u32 4294901760, %v5768_v42  ;;  %s5082_s24 = sshll.u32 %s6213_s18, 4 }
  0x15   : > { %537 = vst.msk [vmem:[#allocation4 + $0x38] sm:$0x3] %vm510_vm1, %v5551_v2  ;;  %539 = vst.msk [vmem:[#allocation4 + $0x48] sm:$0x3] %vm510_vm1, %v5551_v2  ;;  %5194 = vmatprep.mubr.msk.bf16.mxu0 %vm415_vm0, %v398_v18  ;;  %s386_s27 = scalar_lea.vmem %s6209_s11, %s5082_s24 }
  0x16   : > { %541 = vst.msk [vmem:[#allocation4 + $0x58] sm:$0x3] %vm510_vm1, %v5551_v2  ;;  %543 = vst.msk [vmem:[#allocation4 + $0x68] sm:$0x3] %vm510_vm1, %v5551_v2  ;;  %v627_v22 = vld [vmem:[#allocation3 + $0x1] sm:$0xff]  ;;  %v820_v58 = vsub.f32 %v5768_v42, %v5786_v51 }
  0x17   : > { %545 = vst.msk [vmem:[#allocation4 + $0x78] sm:$0x3] %vm510_vm1, %v5551_v2  ;;  %547 = vst.msk [vmem:[#allocation4 + $0x88] sm:$0x3] %vm510_vm1, %v5551_v2  ;;  %v643_v23 = vld [vmem:[#allocation3 + $0x2] sm:$0xff]  ;;  %v633_v25 = vmul.f32 %v5714_v6, %v627_v22 }
  0x18   : > { %552 = vst.msk [vmem:[#allocation3 + $0x11] sm:$0xff] %vm415_vm0, %v388_v9  ;;  %558 = vst.msk [vmem:[#allocation3 + $0x21] sm:$0xff] %vm415_vm0, %v389_v10  ;;  %v649_v26 = vmul.f32 %v5719_v7, %v643_v23  ;;  %v5795_v0 = vand.u32 4294901760, %v820_v58 }
  0x19   : > { %564 = vst.msk [vmem:[#allocation3 + $0x31] sm:$0xff] %vm415_vm0, %v390_v11  ;;  %570 = vst.msk [vmem:[#allocation3 + $0x41] sm:$0xff] %vm415_vm0, %v391_v13  ;;  %v634_v28 = vadd.f32 %v633_v25, %v618_v24 }
  0x1a   : > { %576 = vst.msk [vmem:[#allocation3 + $0x51] sm:$0xff] %vm415_vm0, %v392_v14  ;;  %582 = vst.msk [vmem:[#allocation3 + $0x61] sm:$0xff] %vm415_vm0, %v393_v15 }
  0x1b   : > { %588 = vst.msk [vmem:[#allocation3 + $0x71] sm:$0xff] %vm415_vm0, %v394_v19  ;;  %594 = vst.msk [vmem:[#allocation3 + $0x81] sm:$0xff] %vm415_vm0, %v395_v20  ;;  %v650_v34 = vadd.f32 %v649_v26, %v634_v28 }
  0x1c   : > { %5195 = vmatmul.mubr.msk.bf16.gmra.mrb[4].mxu0 %vm415_vm0, %v399_v33 }
  0x1d   : > { %5230 = vmatprep.mubr.msk.f32.mxu0 %vm5552_vm2, %v5551_v2 }
  0x1f   : > { %v659_v35 = vld [vmem:[#allocation3 + $0x10] sm:$0xff]  ;;  %v707_v40 = vld [vmem:[#allocation3 + $0x20] sm:$0xff] }
  0x20   : > { %v675_v36 = vld [vmem:[#allocation3 + $0x11] sm:$0xff]  ;;  %v665_v38 = vmul.f32 %v5747_v29, %v659_v35  ;;  %v723_v45 = vld [vmem:[#allocation3 + $0x21] sm:$0xff]  ;;  %v713_v48 = vmul.f32 %v5766_v41, %v707_v40  ;;  %v1659_v54 = vmul.f32 %v5709_v5, %v707_v40 }
  0x21   : > { %v691_v37 = vld [vmem:[#allocation3 + $0x12] sm:$0xff]  ;;  %v681_v39 = vmul.f32 %v5752_v30, %v675_v36  ;;  %v739_v49 = vld [vmem:[#allocation3 + $0x22] sm:$0xff]  ;;  %v729_v53 = vmul.f32 %v5775_v46, %v723_v45  ;;  %v1674_v55 = vmul.f32 %v5714_v6, %v723_v45 }
  0x22   : > { %v666_v43 = vadd.f32 %v665_v38, %v650_v34  ;;  %v697_v44 = vmul.f32 %v5757_v31, %v691_v37  ;;  %v745_v57 = vmul.f32 %v5783_v50, %v739_v49  ;;  %v1690_v61 = vmul.f32 %v5719_v7, %v739_v49  ;;  %v1700_v62 = vld [vmem:[#allocation3 + $0x30] sm:$0xff]  ;;  %v1748_v18 = vld [vmem:[#allocation3 + $0x40] sm:$0xff] }
  0x23   : > { %v1675_v60 = vadd.f32 %v1674_v55, %v1659_v54  ;;  %v1706_v4 = vmul.f32 %v5747_v29, %v1700_v62  ;;  %v1716_v8 = vld [vmem:[#allocation3 + $0x31] sm:$0xff]  ;;  %v1754_v20 = vmul.f32 %v5766_v41, %v1748_v18  ;;  %v1764_v21 = vld [vmem:[#allocation3 + $0x41] sm:$0xff]  ;;  %v2695_v35 = vmul.f32 %v5709_v5, %v1748_v18 }
  0x24   : > { %v682_v47 = vadd.f32 %v681_v39, %v666_v43  ;;  %v1722_v12 = vmul.f32 %v5752_v30, %v1716_v8  ;;  %v1732_v13 = vld [vmem:[#allocation3 + $0x32] sm:$0xff]  ;;  %v1770_v23 = vmul.f32 %v5775_v46, %v1764_v21  ;;  %v1780_v24 = vld [vmem:[#allocation3 + $0x42] sm:$0xff]  ;;  %v2710_v36 = vmul.f32 %v5714_v6, %v1764_v21 }
  0x25   : > { %v1691_v3 = vadd.f32 %v1690_v61, %v1675_v60  ;;  %v1738_v17 = vmul.f32 %v5757_v31, %v1732_v13  ;;  %v1786_v26 = vmul.f32 %v5783_v50, %v1780_v24  ;;  %v2726_v39 = vmul.f32 %v5719_v7, %v1780_v24  ;;  %v2736_v40 = vld [vmem:[#allocation3 + $0x50] sm:$0xff]  ;;  %v2784_v55 = vld [vmem:[#allocation3 + $0x60] sm:$0xff] }
  0x26   : > { %v698_v52 = vadd.f32 %v697_v44, %v682_v47  ;;  %v2711_v38 = vadd.f32 %v2710_v36, %v2695_v35  ;;  %v2742_v45 = vmul.f32 %v5747_v29, %v2736_v40  ;;  %v2752_v47 = vld [vmem:[#allocation3 + $0x51] sm:$0xff]  ;;  %v2800_v58 = vld [vmem:[#allocation3 + $0x61] sm:$0xff] }
  0x27   : > { %v1707_v11 = vadd.f32 %v1706_v4, %v1691_v3  ;;  %v2758_v49 = vmul.f32 %v5752_v30, %v2752_v47  ;;  %v2806_v60 = vmul.f32 %v5775_v46, %v2800_v58  ;;  %v2816_v61 = vld [vmem:[#allocation3 + $0x62] sm:$0xff]  ;;  %v3804_v18 = vld [vmem:[#allocation3 + $0x72] sm:$0xff] }
  0x28   : > { %v714_v56 = vadd.f32 %v713_v48, %v698_v52  ;;  %v2727_v44 = vadd.f32 %v2726_v39, %v2711_v38  ;;  %v2768_v52 = vld [vmem:[#allocation3 + $0x52] sm:$0xff]  ;;  %v3762_v13 = vmul.f32 %v5719_v7, %v2816_v61  ;;  %v3820_v21 = vld [vmem:[#allocation3 + $0x80] sm:$0xff] }
  0x29   : > { %v1723_v16 = vadd.f32 %v1722_v12, %v1707_v11  ;;  %v2774_v54 = vmul.f32 %v5757_v31, %v2768_v52 }
  0x2a   : > { %v730_v59 = vadd.f32 %v729_v53, %v714_v56  ;;  %v2743_v48 = vadd.f32 %v2742_v45, %v2727_v44 }
  0x2b   : > { %v1739_v19 = vadd.f32 %v1738_v17, %v1723_v16 }
  0x2c   : > { %v746_v63 = vadd.f32 %v745_v57, %v730_v59  ;;  %v2759_v53 = vadd.f32 %v2758_v49, %v2743_v48  ;;  %v2790_v57 = vmul.f32 %v5766_v41, %v2784_v55 }
  0x2d   : > { %v1755_v22 = vadd.f32 %v1754_v20, %v1739_v19  ;;  %v3810_v20 = vmul.f32 %v5757_v31, %v3804_v18 }
  0x2e   : > { %v1200_v1 = vand.u32 4294901760, %v746_v63  ;;  %v2775_v56 = vadd.f32 %v2774_v54, %v2759_v53  ;;  %v605_v53 = vld [vmem:[#allocation4] sm:$0xff] }
  0x2f   : > { %v1771_v25 = vadd.f32 %v1770_v23, %v1755_v22  ;;  %v3826_v22 = vmul.f32 %v5766_v41, %v3820_v21 }
  0x30   : > { %5229 = vmatpush3.msra.mxu0 %v1200_v1  ;;  %v1277_v9 = vsub.f32 %v746_v63, %v1200_v1  ;;  %v2791_v59 = vadd.f32 %v2790_v57, %v2775_v56  ;;  %v2822_v63 = vmul.f32 %v5783_v50, %v2816_v61  ;;  %v5936_v56 = vld [vmem:[%s6201_s3] ss:$0 sm:$0xff]  ;;  %v619_v57 = vld [vmem:[#allocation4 + $0x1] sm:$0xff] }
  0x31   : > { %5231 = vmatmul.mubr.f32.vlgmr.msra.gmra.mrb[8].mxu0 %v5795_v0  ;;  %5233 = vmatprep.subr.mxu0 %v5551_v2  ;;  %v1787_v28 = vadd.f32 %v1786_v26, %v1771_v25  ;;  %v3852_v25 = vld [vmem:[#allocation3 + $0x82] sm:$0xff] }
  0x32   : > { %v1278_v10 = vand.u32 4294901760, %v1277_v9  ;;  %5235 = vmatprep.mubr.msk.f32.mxu0 %vm5552_vm2, %v5551_v2  ;;  %v2807_v62 = vadd.f32 %v2806_v60, %v2791_v59  ;;  %v3858_v26 = vmul.f32 %v5783_v50, %v3852_v25  ;;  %v5976_v25 = vld [vmem:[%s6201_s3 + $0x5] ss:$0 sm:$0xff] }
  0x33   : > { %v2236_v32 = vand.u32 4294901760, %v1787_v28 }
  0x34   : > { %v1279_v14 = vsub.f32 %v1277_v9, %v1278_v10 }
  0x35   : > { %v2313_v33 = vsub.f32 %v1787_v28, %v2236_v32 }
  0x36   : > { %v1280_v15 = vand.u32 4294901760, %v1279_v14  ;;  %v3772_v14 = vld [vmem:[#allocation3 + $0x70] sm:$0xff] }
  0x37   : > { %v2314_v34 = vand.u32 4294901760, %v2313_v33 }
  0x38   : > { %5234 = vmatpush3.msra.mxu0 %v1280_v15 }
  0x39   : > { %5236 = vmatmul.mubr.msk.f32.vlgmr.msra.gmra.mrb[8].mxu0 %vm747_vm4, %v5741_v27  ;;  %5238 = vmatprep.subr.mxu0 %v5551_v2  ;;  %v2315_v37 = vsub.f32 %v2313_v33, %v2314_v34 }
  0x3a   : > { %5239 = vmatpush3.msra.mxu0 %v1277_v9  ;;  %5240 = vmatprep.mubr.msk.f32.mxu0 %vm5552_vm2, %v5551_v2  ;;  %v3731_v9 = vmul.f32 %v5709_v5, %v2784_v55  ;;  %v3778_v5 = vmul.f32 %v5747_v29, %v3772_v14 }
  0x3b   : > { %5243 = vmatprep.subr.mxu0 %v5551_v2  ;;  %v2316_v43 = vand.u32 4294901760, %v2315_v37 }
  0x41   : > { %5241 = vmatmul.mubr.f32.vlgmr.msra.gmra.mrb[8].mxu0 %v5768_v42 }
  0x42   : > { %5244 = vmatpush3.msra.mxu0 %v1200_v1  ;;  %5245 = vmatprep.mubr.msk.f32.mxu0 %vm5552_vm2, %v5551_v2 }
  0x43   : > { %5248 = vmatprep.subr.mxu0 %v5551_v2 }
  0x49   : > { %5246 = vmatmul.mubr.f32.vlgmr.msra.gmra.mrb[8].mxu0 %v5786_v51 }
  0x4a   : > { %5249 = vmatpush3.msra.mxu0 %v1278_v10  ;;  %5250 = vmatprep.mubr.msk.f32.mxu0 %vm5552_vm2, %v5551_v2  ;;  %v3746_v10 = vmul.f32 %v5714_v6, %v2800_v58  ;;  %v3788_v6 = vld [vmem:[#allocation3 + $0x71] sm:$0xff]  ;;  %v5941_v58 = vld [vmem:[%s6201_s3 + $0x1] ss:$0 sm:$0xff] }
  0x4b   : > { %5253 = vmatprep.subr.mxu0 %v5551_v2  ;;  %v3794_v17 = vmul.f32 %v5752_v30, %v3788_v6  ;;  %v3836_v30 = vld [vmem:[#allocation3 + $0x81] sm:$0xff] }
  0x4c   : > { %v3747_v12 = vadd.f32 %v3746_v10, %v3731_v9  ;;  %v3842_v24 = vmul.f32 %v5775_v46, %v3836_v30  ;;  %v625_v9 = vmul.f32 %v5941_v58, %v619_v57 }
  0x4e   : > { %v3763_v16 = vadd.f32 %v3762_v13, %v3747_v12  ;;  %v635_v12 = vld [vmem:[#allocation4 + $0x2] sm:$0xff] }
  0x4f   : > { %v5950_v13 = vld [vmem:[%s6201_s3 + $0x2] ss:$0 sm:$0xff] }
  0x50   : > { %v3779_v7 = vadd.f32 %v3778_v5, %v3763_v16  ;;  %v641_v6 = vmul.f32 %v5950_v13, %v635_v12 }
  0x51   : > { %5251 = vmatmul.mubr.msk.f32.vlgmr.msra.gmra.mrb[8].mxu0 %vm747_vm4, %v5741_v27 }
  0x52   : > { %5254 = vmatpush3.msra.mxu0 %v1200_v1  ;;  %5255 = vmatprep.mubr.msk.f32.mxu0 %vm5552_vm2, %v5551_v2  ;;  %v2823_v1 = vadd.f32 %v2822_v63, %v2807_v62  ;;  %v3795_v19 = vadd.f32 %v3794_v17, %v3779_v7  ;;  %v5962_v7 = vld [vmem:[%s6201_s3 + $0x3] ss:$0 sm:$0xff] }
  0x53   : > { %5288 = vmatprep.subr.mxu0 %v5551_v2 }
  0x54   : > { %v3272_v3 = vand.u32 4294901760, %v2823_v1  ;;  %v3811_v29 = vadd.f32 %v3810_v20, %v3795_v19  ;;  %v5967_v19 = vld [vmem:[%s6201_s3 + $0x4] ss:$0 sm:$0xff] }
  0x56   : > { %v3349_v4 = vsub.f32 %v2823_v1, %v3272_v3  ;;  %v3827_v23 = vadd.f32 %v3826_v22, %v3811_v29 }
  0x58   : > { %v3350_v8 = vand.u32 4294901760, %v3349_v4  ;;  %v3843_v31 = vadd.f32 %v3842_v24, %v3827_v23 }
  0x59   : > { %5256 = vmatmul.mubr.msk.f32.vlgmr.msra.gmra.mrb[8].mxu0 %vm747_vm4, %v5741_v27 }
  0x5a   : > { %5289 = vmatpush3.msra.mxu0 %v2236_v32  ;;  %5290 = vmatprep.mubr.msk.f32.mxu0 %vm5552_vm2, %v5551_v2  ;;  %v3351_v11 = vsub.f32 %v3349_v4, %v3350_v8  ;;  %v3859_v28 = vadd.f32 %v3858_v26, %v3843_v31 }
  0x5b   : > { %5293 = vmatprep.subr.mxu0 %v5551_v2 }
  0x5c   : > { %v3352_v15 = vand.u32 4294901760, %v3351_v11  ;;  %v4308_v41 = vand.u32 4294901760, %v3859_v28 }
  0x5d   : > { %5291 = vmatmul.mubr.f32.vlgmr.msra.gmra.mrb[10].mxu0 %v5795_v0 }
  0x5e   : > { %5294 = vmatpush3.msra.mxu0 %v2316_v43  ;;  %5295 = vmatprep.mubr.msk.f32.mxu0 %vm5552_vm2, %v5551_v2  ;;  %v4385_v46 = vsub.f32 %v3859_v28, %v4308_v41 }
  0x5f   : > { %5298 = vmatprep.subr.mxu0 %v5551_v2 }
  0x60   : > { %v4386_v50 = vand.u32 4294901760, %v4385_v46 }
  0x65   : > { %5296 = vmatmul.mubr.msk.f32.vlgmr.msra.gmra.mrb[10].mxu0 %vm747_vm4, %v5741_v27 }
  0x66   : > { %5299 = vmatpush3.msra.mxu0 %v2313_v33  ;;  %5300 = vmatprep.mubr.msk.f32.mxu0 %vm5552_vm2, %v5551_v2 }
  0x67   : > { %5303 = vmatprep.subr.mxu0 %v5551_v2 }
  0x6d   : > { %5301 = vmatmul.mubr.f32.vlgmr.msra.gmra.mrb[10].mxu0 %v5768_v42 }
  0x6e   : > { %5304 = vmatpush3.msra.mxu0 %v2236_v32  ;;  %5305 = vmatprep.mubr.msk.f32.mxu0 %vm5552_vm2, %v5551_v2 }
  0x6f   : > { %5308 = vmatprep.subr.mxu0 %v5551_v2 }
  0x75   : > { %5306 = vmatmul.mubr.f32.vlgmr.msra.gmra.mrb[10].mxu0 %v5786_v51 }
  0x76   : > { %5309 = vmatpush3.msra.mxu0 %v2314_v34  ;;  %5310 = vmatprep.mubr.msk.f32.mxu0 %vm5552_vm2, %v5551_v2  ;;  %v4969_v34 = vld [vmem:[%s6200_s2] ss:$0 sm:$0xff] }
  0x77   : > { %5313 = vmatprep.subr.mxu0 %v5551_v2 }
  0x7d   : > { %5311 = vmatmul.mubr.msk.f32.vlgmr.msra.gmra.mrb[10].mxu0 %vm747_vm4, %v5741_v27 }
  0x7e   : > { %5314 = vmatpush3.msra.mxu0 %v2236_v32  ;;  %5315 = vmatprep.mubr.msk.f32.mxu0 %vm5552_vm2, %v5551_v2  ;;  %v4387_v32 = vsub.f32 %v4385_v46, %v4386_v50 }
  0x7f   : > { %5348 = vmatprep.subr.mxu0 %v5551_v2 }
  0x80   : > { %v4388_v33 = vand.u32 4294901760, %v4387_v32 }
  0x85   : > { %5316 = vmatmul.mubr.msk.f32.vlgmr.msra.gmra.mrb[10].mxu0 %vm747_vm4, %v5741_v27 }
  0x86   : > { %5349 = vmatpush3.msra.mxu0 %v3272_v3  ;;  %5350 = vmatprep.mubr.msk.f32.mxu0 %vm5552_vm2, %v5551_v2 }
  0x87   : > { %5353 = vmatprep.subr.mxu0 %v5551_v2 }
  0x89   : > { %5351 = vmatmul.mubr.f32.vlgmr.msra.gmra.mrb[12].mxu0 %v5795_v0 }
  0x8a   : > { %5354 = vmatpush3.msra.mxu0 %v3352_v15  ;;  %5355 = vmatprep.mubr.msk.f32.mxu0 %vm5552_vm2, %v5551_v2 }
  0x8b   : > { %5358 = vmatprep.subr.mxu0 %v5551_v2 }
  0x91   : > { %5356 = vmatmul.mubr.msk.f32.vlgmr.msra.gmra.mrb[12].mxu0 %vm747_vm4, %v5741_v27 }
  0x92   : > { %5359 = vmatpush3.msra.mxu0 %v3349_v4  ;;  %5360 = vmatprep.mubr.msk.f32.mxu0 %vm5552_vm2, %v5551_v2 }
  0x93   : > { %5363 = vmatprep.subr.mxu0 %v5551_v2 }
  0x99   : > { %5361 = vmatmul.mubr.f32.vlgmr.msra.gmra.mrb[12].mxu0 %v5768_v42 }
  0x9a   : > { %5364 = vmatpush3.msra.mxu0 %v3272_v3  ;;  %5365 = vmatprep.mubr.msk.f32.mxu0 %vm5552_vm2, %v5551_v2 }
  0x9b   : > { %5368 = vmatprep.subr.mxu0 %v5551_v2 }
  0xa1   : > { %5366 = vmatmul.mubr.f32.vlgmr.msra.gmra.mrb[12].mxu0 %v5786_v51 }
  0xa2   : > { %5369 = vmatpush3.msra.mxu0 %v3350_v8  ;;  %5370 = vmatprep.mubr.msk.f32.mxu0 %vm5552_vm2, %v5551_v2  ;;  %v611_v8 = vmul.f32 %v5936_v56, %v605_v53 }
  0xa3   : > { %5373 = vmatprep.subr.mxu0 %v5551_v2 }
  0xa4   : > { %v626_v5 = vadd.f32 %v625_v9, %v611_v8 }
  0xa6   : > { %v642_v18 = vadd.f32 %v641_v6, %v626_v5 }
  0xa9   : > { %5371 = vmatmul.mubr.msk.f32.vlgmr.msra.gmra.mrb[12].mxu0 %vm747_vm4, %v5741_v27 }
  0xaa   : > { %5374 = vmatpush3.msra.mxu0 %v3272_v3  ;;  %5375 = vmatprep.mubr.msk.f32.mxu0 %vm5552_vm2, %v5551_v2 }
  0xab   : > { %5408 = vmatprep.subr.mxu0 %v5551_v2 }
  0xb1   : > { %5376 = vmatmul.mubr.msk.f32.vlgmr.msra.gmra.mrb[12].mxu0 %vm747_vm4, %v5741_v27 }
  0xb2   : > { %5409 = vmatpush3.msra.mxu0 %v4308_v41  ;;  %5410 = vmatprep.mubr.msk.f32.mxu0 %vm5552_vm2, %v5551_v2 }
  0xb3   : > { %5413 = vmatprep.subr.mxu0 %v5551_v2 }
  0xb5   : > { %5411 = vmatmul.mubr.f32.vlgmr.msra.gmra.mrb[14].mxu0 %v5795_v0 }
  0xb6   : > { %5414 = vmatpush3.msra.mxu0 %v4388_v33  ;;  %5415 = vmatprep.mubr.msk.f32.mxu0 %vm5552_vm2, %v5551_v2 }
  0xb7   : > { %5418 = vmatprep.subr.mxu0 %v5551_v2 }
  0xbd   : > { %5416 = vmatmul.mubr.msk.f32.vlgmr.msra.gmra.mrb[14].mxu0 %vm747_vm4, %v5741_v27 }
  0xbe   : > { %5419 = vmatpush3.msra.mxu0 %v4385_v46  ;;  %5420 = vmatprep.mubr.msk.f32.mxu0 %vm5552_vm2, %v5551_v2 }
  0xbf   : > { %5423 = vmatprep.subr.mxu0 %v5551_v2 }
  0xc5   : > { %5421 = vmatmul.mubr.f32.vlgmr.msra.gmra.mrb[14].mxu0 %v5768_v42 }
  0xc6   : > { %5424 = vmatpush3.msra.mxu0 %v4308_v41  ;;  %5425 = vmatprep.mubr.msk.f32.mxu0 %vm5552_vm2, %v5551_v2 }
  0xc7   : > { %5428 = vmatprep.subr.mxu0 %v5551_v2 }
  0xcd   : > { %5426 = vmatmul.mubr.f32.vlgmr.msra.gmra.mrb[14].mxu0 %v5786_v51 }
  0xce   : > { %5429 = vmatpush3.msra.mxu0 %v4386_v50  ;;  %5430 = vmatprep.mubr.msk.f32.mxu0 %vm5552_vm2, %v5551_v2  ;;  %v5987_v50 = vld [vmem:[%s6201_s3 + $0x6] ss:$0 sm:$0xff] }
  0xcf   : > { %5433 = vmatprep.subr.mxu0 %v5551_v2 }
  0xd5   : > { %5431 = vmatmul.mubr.msk.f32.vlgmr.msra.gmra.mrb[14].mxu0 %vm747_vm4, %v5741_v27 }
  0xd6   : > { %5434 = vmatpush3.msra.mxu0 %v4308_v41  ;;  %5435 = vmatprep.mubr.msk.f32.mxu0 %vm5552_vm2, %v5551_v2 }
  0xdd   : > { %5436 = vmatmul.mubr.msk.f32.vlgmr.msra.gmra.mrb[14].mxu0 %vm747_vm4, %v5741_v27 }
  0xe7   : > { %v5192_v35 = vpop.f32.mrb[0].mxu0 }
  0xe8   : > { %v471_v36 = vadd.f32 %v5192_v35, %v4969_v34  ;;  %v462_v37 = vpop.f32.mrb[1].mxu0  ;;  %v5993_v35 = vld [vmem:[%s6201_s3 + $0x7] ss:$0 sm:$0xff] }
  0xe9   : > { %v463_v38 = vadd.f32 %v4969_v34, %v462_v37  ;;  %v5193_v39 = vpop.f32.mrb[2].mxu0 }
  0xea   : > { %v495_v40 = vmax.f32 %v471_v36, 0.0  ;;  %v474_v43 = vadd.f32 %v5193_v39, %v4969_v34  ;;  %v465_v44 = vpop.f32.mrb[3].mxu0 }
  0xeb   : > { %v493_v45 = vmax.f32 %v463_v38, 0.0  ;;  %v466_v47 = vadd.f32 %v4969_v34, %v465_v44 }
  0xec   : > { %503 = vst.msk [vmem:[#allocation2 + $0x10] sm:$0xff] %vm415_vm0, %v495_v40  ;;  %v496_v48 = vmax.f32 %v474_v43, 0.0  ;;  %v6005_v43 = vld [vmem:[%s6201_s3 + $0x8] ss:$0 sm:$0xff] }
  0xed   : > { %501 = vst.msk [vmem:[#allocation2] sm:$0xff] %vm415_vm0, %v493_v45  ;;  %v494_v49 = vmax.f32 %v466_v47, 0.0 }
  0xee   : > { %504 = vst.msk [vmem:[#allocation2 + $0x18] sm:$0xff] %vm415_vm0, %v496_v48 }
  0xef   : > { %502 = vst.msk [vmem:[#allocation2 + $0x8] sm:$0xff] %vm415_vm0, %v494_v49  ;;  %v5196_v52 = vpop.f32.mrb[4].mxu0 }
  0xf0   : > { %v487_v54 = vadd.f32 %v5196_v52, %v4969_v34  ;;  %v478_v55 = vpop.f32.mrb[5].mxu0 }
  0xf1   : > { %v479_v59 = vadd.f32 %v4969_v34, %v478_v55  ;;  %v5197_v60 = vpop.f32.mrb[6].mxu0 }
  0xf2   : > { %v499_v61 = vmax.f32 %v487_v54, 0.0  ;;  %v490_v62 = vadd.f32 %v5197_v60, %v4969_v34  ;;  %v481_v63 = vpop.f32.mrb[7].mxu0 }
  0xf3   : > { %v565_v1 = vld [vmem:[#allocation2 + $0x10] sm:$0xff]  ;;  %v497_v3 = vmax.f32 %v479_v59, 0.0  ;;  %v482_v4 = vadd.f32 %v4969_v34, %v481_v63 }
  0xf4   : > { %567 = vst.msk [vmem:[#allocation4 + $0x31] sm:$0xff] %vm415_vm0, %v565_v1  ;;  %v553_v10 = vld [vmem:[#allocation2] sm:$0xff]  ;;  %507 = vst.msk [vmem:[#allocation2 + $0x30] sm:$0xff] %vm415_vm0, %v499_v61  ;;  %v500_v11 = vmax.f32 %v490_v62, 0.0 }
  0xf5   : > { %555 = vst.msk [vmem:[#allocation4 + $0x11] sm:$0xff] %vm415_vm0, %v553_v10  ;;  %v571_v14 = vld [vmem:[#allocation2 + $0x18] sm:$0xff]  ;;  %505 = vst.msk [vmem:[#allocation2 + $0x20] sm:$0xff] %vm415_vm0, %v497_v3  ;;  %v498_v15 = vmax.f32 %v482_v4, 0.0 }
  0xf6   : > { %573 = vst.msk [vmem:[#allocation4 + $0x41] sm:$0xff] %vm415_vm0, %v571_v14  ;;  %v559_v16 = vld [vmem:[#allocation2 + $0x8] sm:$0xff]  ;;  %508 = vst.msk [vmem:[#allocation2 + $0x38] sm:$0xff] %vm415_vm0, %v500_v11 }
  0xf7   : > { %561 = vst.msk [vmem:[#allocation4 + $0x21] sm:$0xff] %vm415_vm0, %v559_v16  ;;  %506 = vst.msk [vmem:[#allocation2 + $0x28] sm:$0xff] %vm415_vm0, %v498_v15 }
  0xfb   : > { %v589_v17 = vld [vmem:[#allocation2 + $0x30] sm:$0xff] }
  0xfc   : > { %591 = vst.msk [vmem:[#allocation4 + $0x71] sm:$0xff] %vm415_vm0, %v589_v17  ;;  %v577_v20 = vld [vmem:[#allocation2 + $0x20] sm:$0xff]  ;;  %v651_v21 = vld [vmem:[#allocation4 + $0x10] sm:$0xff] }
  0xfd   : > { %v667_v29 = vld [vmem:[#allocation4 + $0x11] sm:$0xff]  ;;  %579 = vst.msk [vmem:[#allocation4 + $0x51] sm:$0xff] %vm415_vm0, %v577_v20  ;;  %v657_v30 = vmul.f32 %v5962_v7, %v651_v21  ;;  %v5980_v28 = vld [vmem:[#allocation4 + $0x40] sm:$0xff] }
  0xfe   : > { %v595_v22 = vld [vmem:[#allocation2 + $0x38] sm:$0xff]  ;;  %v583_v23 = vld [vmem:[#allocation2 + $0x28] sm:$0xff]  ;;  %v673_v26 = vmul.f32 %v5967_v19, %v667_v29  ;;  %v699_v46 = vld [vmem:[#allocation4 + $0x20] sm:$0xff]  ;;  %v2688_v37 = vmul.f32 %v5936_v56, %v5980_v28 }
  0xff   : > { %597 = vst.msk [vmem:[#allocation4 + $0x81] sm:$0xff] %vm415_vm0, %v595_v22  ;;  %v683_v24 = vld [vmem:[#allocation4 + $0x12] sm:$0xff]  ;;  %585 = vst.msk [vmem:[#allocation4 + $0x61] sm:$0xff] %vm415_vm0, %v583_v23  ;;  %v658_v31 = vadd.f32 %v657_v30, %v642_v18  ;;  %v5982_v41 = vld [vmem:[#allocation4 + $0x41] sm:$0xff]  ;;  %v705_v40 = vmul.f32 %v5987_v50, %v699_v46  ;;  %v1652_v54 = vmul.f32 %v5936_v56, %v699_v46 }
 0x100   : > { %v689_v33 = vmul.f32 %v5976_v25, %v683_v24  ;;  %v715_v34 = vld [vmem:[#allocation4 + $0x21] sm:$0xff]  ;;  %v2702_v38 = vmul.f32 %v5941_v58, %v5982_v41  ;;  %v1692_v30 = vld [vmem:[#allocation4 + $0x30] sm:$0xff] }
 0x101   : > { %v674_v32 = vadd.f32 %v673_v26, %v658_v31  ;;  %v5995_v36 = vld [vmem:[#allocation4 + $0x42] sm:$0xff]  ;;  %v721_v44 = vmul.f32 %v5993_v35, %v715_v34  ;;  %v1666_v55 = vmul.f32 %v5941_v58, %v715_v34 }
 0x102   : > { %v731_v45 = vld [vmem:[#allocation4 + $0x22] sm:$0xff]  ;;  %v2703_v47 = vadd.f32 %v2702_v38, %v2688_v37  ;;  %v2718_v48 = vmul.f32 %v5950_v13, %v5995_v36  ;;  %v1698_v38 = vmul.f32 %v5962_v7, %v1692_v30 }
 0x103   : > { %v690_v39 = vadd.f32 %v689_v33, %v674_v32  ;;  %v737_v63 = vmul.f32 %v6005_v43, %v731_v45  ;;  %v3764_v4 = vld [vmem:[#allocation4 + $0x70] sm:$0xff]  ;;  %v1667_v15 = vadd.f32 %v1666_v55, %v1652_v54  ;;  %v1682_v22 = vmul.f32 %v5950_v13, %v731_v45 }
 0x104   : > { %v2728_v49 = vld [vmem:[#allocation4 + $0x50] sm:$0xff]  ;;  %v2719_v60 = vadd.f32 %v2718_v48, %v2703_v47  ;;  %v3770_v20 = vmul.f32 %v5962_v7, %v3764_v4  ;;  %v1746_v4 = vmul.f32 %v5987_v50, %v5980_v28 }
 0x105   : > { %v2744_v52 = vld [vmem:[#allocation4 + $0x51] sm:$0xff]  ;;  %v706_v53 = vadd.f32 %v705_v40, %v690_v39  ;;  %v2734_v57 = vmul.f32 %v5962_v7, %v2728_v49  ;;  %v1683_v26 = vadd.f32 %v1682_v22, %v1667_v15 }
 0x106   : > { %v2760_v59 = vld [vmem:[#allocation4 + $0x52] sm:$0xff]  ;;  %v2750_v61 = vmul.f32 %v5967_v19, %v2744_v52  ;;  %v2776_v1 = vld [vmem:[#allocation4 + $0x60] sm:$0xff] }
 0x107   : > { %v722_v62 = vadd.f32 %v721_v44, %v706_v53  ;;  %v2792_v3 = vld [vmem:[#allocation4 + $0x61] sm:$0xff]  ;;  %v2735_v8 = vadd.f32 %v2734_v57, %v2719_v60  ;;  %v2766_v9 = vmul.f32 %v5976_v25, %v2760_v59  ;;  %v3724_v11 = vmul.f32 %v5936_v56, %v2776_v1  ;;  %v3780_v5 = vld [vmem:[#allocation4 + $0x71] sm:$0xff] }
 0x108   : > { %v2808_v10 = vld [vmem:[#allocation4 + $0x62] sm:$0xff]  ;;  %v3738_v12 = vmul.f32 %v5941_v58, %v2792_v3  ;;  %v2782_v17 = vmul.f32 %v5987_v50, %v2776_v1  ;;  %v3796_v21 = vld [vmem:[#allocation4 + $0x72] sm:$0xff]  ;;  %v2798_v58 = vmul.f32 %v5993_v35, %v2792_v3  ;;  %v3786_v24 = vmul.f32 %v5967_v19, %v3780_v5 }
 0x109   : > { %v738_v14 = vadd.f32 %v737_v63, %v722_v62  ;;  %v3754_v16 = vmul.f32 %v5950_v13, %v2808_v10  ;;  %v2751_v6 = vadd.f32 %v2750_v61, %v2735_v8  ;;  %v3802_v46 = vmul.f32 %v5976_v25, %v3796_v21  ;;  %v3812_v32 = vld [vmem:[#allocation4 + $0x80] sm:$0xff]  ;;  %v1708_v40 = vld [vmem:[#allocation4 + $0x31] sm:$0xff] }
 0x10a   : > { %v3739_v18 = vadd.f32 %v3738_v12, %v3724_v11  ;;  %v2814_v33 = vmul.f32 %v6005_v43, %v2808_v10  ;;  %v3828_v39 = vld [vmem:[#allocation4 + $0x81] sm:$0xff]  ;;  %v3818_v47 = vmul.f32 %v5987_v50, %v3812_v32  ;;  %v1699_v49 = vadd.f32 %v1698_v38, %v1683_v26  ;;  %v1724_v60 = vld [vmem:[#allocation4 + $0x32] sm:$0xff] }
 0x10b   : > { %v6021_v29 = vand.u32 4294901760, %v738_v14  ;;  %v2767_v56 = vadd.f32 %v2766_v9, %v2751_v6  ;;  %v3844_v52 = vld [vmem:[#allocation4 + $0x82] sm:$0xff]  ;;  %v3834_v55 = vmul.f32 %v5993_v35, %v3828_v39  ;;  %v1714_v59 = vmul.f32 %v5967_v19, %v1708_v40 }
 0x10c   : > { %v3755_v23 = vadd.f32 %v3754_v16, %v3739_v18  ;;  %v3850_v7 = vmul.f32 %v6005_v43, %v3844_v52  ;;  %v1730_v1 = vmul.f32 %v5976_v25, %v1724_v60  ;;  %v1762_v9 = vmul.f32 %v5993_v35, %v5982_v41  ;;  %v5542_v40 = vld [vmem:[%s6207_s9] sm:$0xff]  }
 0x10d   : > { %5199 = vmatpush3.msra.mxu1 %v6021_v29  ;;  %v829_v31 = vsub.f32 %v738_v14, %v6021_v29  ;;  %v2783_v13 = vadd.f32 %v2782_v17, %v2767_v56  ;;  %v1715_v62 = vadd.f32 %v1714_v59, %v1699_v49  ;;  %v1778_v10 = vmul.f32 %v6005_v43, %v5995_v36  ;;  %v5072_v60 = vld [vmem:[%s6204_s6] ss:$0 sm:$0xff] }
 0x10e   : > { %5201 = vmatmul.mubr.f32.vlgmr.msra.gmra.mrb[0].mxu1 %v5795_v0  ;;  %5203 = vmatprep.subr.mxu1 %v5551_v2  ;;  %v3771_v34 = vadd.f32 %v3770_v20, %v3755_v23 }
 0x10f   : > { %v830_v37 = vand.u32 4294901760, %v829_v31  ;;  %5205 = vmatprep.mubr.msk.f32.mxu1 %vm5552_vm2, %v5551_v2  ;;  %v2799_v44 = vadd.f32 %v2798_v58, %v2783_v13  ;;  %v1731_v3 = vadd.f32 %v1730_v1, %v1715_v62 }
 0x110   : > { %v3787_v45 = vadd.f32 %v3786_v24, %v3771_v34  ;;  %v5541_v24 = vld [vmem:[%s6203_s5] sm:$0xff]  }
 0x111   : > { %v831_v48 = vsub.f32 %v829_v31, %v830_v37  ;;  %v6036_v53 = vadd.f32 %v2814_v33, %v2799_v44  ;;  %v1747_v8 = vadd.f32 %v1746_v4, %v1731_v3  ;;  %v5071_v34 = vld [vmem:[%s6202_s4] ss:$0 sm:$0xff] }
 0x112   : > { %v3803_v54 = vadd.f32 %v3802_v46, %v3787_v45 }
 0x113   : > { %v832_v57 = vand.u32 4294901760, %v831_v48  ;;  %v1763_v25 = vadd.f32 %v1762_v9, %v1747_v8  ;;  %v2825_v16 = vand.u32 4294901760, %v6036_v53  ;;  %v5075_v48 = vld [vmem:[%s6206_s8] ss:$0 sm:$0xff] }
 0x114   : > { %v3819_v61 = vadd.f32 %v3818_v47, %v3803_v54 }
 0x115   : > { %5204 = vmatpush3.msra.mxu1 %v832_v57  ;;  %v1779_v11 = vadd.f32 %v1778_v10, %v1763_v25  ;;  %v2902_v5 = vsub.f32 %v6036_v53, %v2825_v16 }
 0x116   : > { %5206 = vmatmul.mubr.msk.f32.vlgmr.msra.gmra.mrb[0].mxu1 %vm747_vm4, %v5741_v27  ;;  %5208 = vmatprep.subr.mxu1 %v5551_v2  ;;  %v3835_v63 = vadd.f32 %v3834_v55, %v3819_v61  ;;  %v5076_v61 = vld [vmem:[%s6208_s10] ss:$0 sm:$0xff] }
 0x117   : > { %5209 = vmatpush3.msra.mxu1 %v829_v31  ;;  %5210 = vmatprep.mubr.msk.f32.mxu1 %vm5552_vm2, %v5551_v2  ;;  %v1789_v28 = vand.u32 4294901760, %v1779_v11  ;;  %v2903_v6 = vand.u32 4294901760, %v2902_v5 }
 0x118   : > { %5213 = vmatprep.subr.mxu1 %v5551_v2  ;;  %v6048_v19 = vadd.f32 %v3850_v7, %v3835_v63 }
 0x119   : > { %v1866_v50 = vsub.f32 %v1779_v11, %v1789_v28  ;;  %v2904_v17 = vsub.f32 %v2902_v5, %v2903_v6 }
 0x11b   : > { %v1867_v41 = vand.u32 4294901760, %v1866_v50  ;;  %v2905_v18 = vand.u32 4294901760, %v2904_v17 }
 0x11d   : > { %v1868_v35 = vsub.f32 %v1866_v50, %v1867_v41 }
 0x11e   : > { %5211 = vmatmul.mubr.f32.vlgmr.msra.gmra.mrb[0].mxu1 %v5768_v42 }
 0x11f   : > { %5214 = vmatpush3.msra.mxu1 %v6021_v29  ;;  %5215 = vmatprep.mubr.msk.f32.mxu1 %vm5552_vm2, %v5551_v2  ;;  %v1869_v36 = vand.u32 4294901760, %v1868_v35 }
 0x120   : > { %5218 = vmatprep.subr.mxu1 %v5551_v2 }
 0x126   : > { %5216 = vmatmul.mubr.f32.vlgmr.msra.gmra.mrb[0].mxu1 %v5786_v51 }
 0x127   : > { %5219 = vmatpush3.msra.mxu1 %v830_v37  ;;  %5220 = vmatprep.mubr.msk.f32.mxu1 %vm5552_vm2, %v5551_v2 }
 0x128   : > { %5223 = vmatprep.subr.mxu1 %v5551_v2 }
 0x12c   : > { %v1641_v43 = vpop.f32.mrb[8].mxu0 }
 0x12d   : > { %1645 = vst.msk [vmem:[#allocation6] sm:$0xf] %vm1197_vm5, %v1641_v43  ;;  %v5257_v12 = vpop.f32.mrb[9].mxu0 }
 0x12e   : > { %5221 = vmatmul.mubr.msk.f32.vlgmr.msra.gmra.mrb[0].mxu1 %vm747_vm4, %v5741_v27 }
 0x12f   : > { %5224 = vmatpush3.msra.mxu1 %v6021_v29  ;;  %5225 = vmatprep.mubr.msk.f32.mxu1 %vm5552_vm2, %v5551_v2  ;;  %v3861_v29 = vand.u32 4294901760, %v6048_v19 }
 0x130   : > { %5258 = vmatprep.subr.mxu1 %v5551_v2 }
 0x131   : > { %v3938_v22 = vsub.f32 %v6048_v19, %v3861_v29 }
 0x133   : > { %v3939_v30 = vand.u32 4294901760, %v3938_v22 }
 0x135   : > { %v3940_v56 = vsub.f32 %v3938_v22, %v3939_v30 }
 0x136   : > { %5226 = vmatmul.mubr.msk.f32.vlgmr.msra.gmra.mrb[0].mxu1 %vm747_vm4, %v5741_v27 }
 0x137   : > { %5259 = vmatpush3.msra.mxu1 %v1789_v28  ;;  %5260 = vmatprep.mubr.msk.f32.mxu1 %vm5552_vm2, %v5551_v2  ;;  %v3941_v58 = vand.u32 4294901760, %v3940_v56 }
 0x138   : > { %5263 = vmatprep.subr.mxu1 %v5551_v2 }
 0x13a   : > { %5261 = vmatmul.mubr.f32.vlgmr.msra.gmra.mrb[2].mxu1 %v5795_v0 }
 0x13b   : > { %5264 = vmatpush3.msra.mxu1 %v1869_v36  ;;  %5265 = vmatprep.mubr.msk.f32.mxu1 %vm5552_vm2, %v5551_v2 }
 0x13c   : > { %5268 = vmatprep.subr.mxu1 %v5551_v2 }
 0x142   : > { %5266 = vmatmul.mubr.msk.f32.vlgmr.msra.gmra.mrb[2].mxu1 %vm747_vm4, %v5741_v27 }
 0x143   : > { %5269 = vmatpush3.msra.mxu1 %v1866_v50  ;;  %5270 = vmatprep.mubr.msk.f32.mxu1 %vm5552_vm2, %v5551_v2 }
 0x144   : > { %5273 = vmatprep.subr.mxu1 %v5551_v2 }
 0x14a   : > { %5271 = vmatmul.mubr.f32.vlgmr.msra.gmra.mrb[2].mxu1 %v5768_v42 }
 0x14b   : > { %5274 = vmatpush3.msra.mxu1 %v1789_v28  ;;  %5275 = vmatprep.mubr.msk.f32.mxu1 %vm5552_vm2, %v5551_v2 }
 0x14c   : > { %5278 = vmatprep.subr.mxu1 %v5551_v2 }
 0x152   : > { %5276 = vmatmul.mubr.f32.vlgmr.msra.gmra.mrb[2].mxu1 %v5786_v51 }
 0x153   : > { %5279 = vmatpush3.msra.mxu1 %v1867_v41  ;;  %5280 = vmatprep.mubr.msk.f32.mxu1 %vm5552_vm2, %v5551_v2 }
 0x154   : > { %5283 = vmatprep.subr.mxu1 %v5551_v2 }
 0x158   : > { %v2677_v14 = vpop.f32.mrb[10].mxu0 }
 0x159   : > { %2681 = vst.msk [vmem:[#allocation6 + $0x4] sm:$0xf] %vm1197_vm5, %v2677_v14  ;;  %v5317_v15 = vpop.f32.mrb[11].mxu0 }
 0x15a   : > { %5281 = vmatmul.mubr.msk.f32.vlgmr.msra.gmra.mrb[2].mxu1 %vm747_vm4, %v5741_v27 }
 0x15b   : > { %5284 = vmatpush3.msra.mxu1 %v1789_v28  ;;  %5285 = vmatprep.mubr.msk.f32.mxu1 %vm5552_vm2, %v5551_v2 }
 0x15c   : > { %5318 = vmatprep.subr.mxu1 %v5551_v2 }
 0x160   : > { %v4827_v45 = vld [vmem:[#allocation6] sm:$0xff] }
 0x161   : > { %v4836_v49 = vadd.f32 %v5075_v48, %v4827_v45 }
 0x162   : > { %5286 = vmatmul.mubr.msk.f32.vlgmr.msra.gmra.mrb[2].mxu1 %vm747_vm4, %v5741_v27 }
 0x163   : > { %5319 = vmatpush3.msra.mxu1 %v2825_v16  ;;  %5320 = vmatprep.mubr.msk.f32.mxu1 %vm5552_vm2, %v5551_v2 }
 0x164   : > { %5323 = vmatprep.subr.mxu1 %v5551_v2 }
 0x166   : > { %5321 = vmatmul.mubr.f32.vlgmr.msra.gmra.mrb[4].mxu1 %v5795_v0 }
 0x167   : > { %5324 = vmatpush3.msra.mxu1 %v2905_v18  ;;  %5325 = vmatprep.mubr.msk.f32.mxu1 %vm5552_vm2, %v5551_v2 }
 0x168   : > { %5328 = vmatprep.subr.mxu1 %v5551_v2 }
 0x16e   : > { %5326 = vmatmul.mubr.msk.f32.vlgmr.msra.gmra.mrb[4].mxu1 %vm747_vm4, %v5741_v27 }
 0x16f   : > { %5329 = vmatpush3.msra.mxu1 %v2902_v5  ;;  %5330 = vmatprep.mubr.msk.f32.mxu1 %vm5552_vm2, %v5551_v2 }
 0x170   : > { %5333 = vmatprep.subr.mxu1 %v5551_v2 }
 0x176   : > { %5331 = vmatmul.mubr.f32.vlgmr.msra.gmra.mrb[4].mxu1 %v5768_v42 }
 0x177   : > { %5334 = vmatpush3.msra.mxu1 %v2825_v16  ;;  %5335 = vmatprep.mubr.msk.f32.mxu1 %vm5552_vm2, %v5551_v2 }
 0x178   : > { %5338 = vmatprep.subr.mxu1 %v5551_v2 }
 0x17e   : > { %5336 = vmatmul.mubr.f32.vlgmr.msra.gmra.mrb[4].mxu1 %v5786_v51 }
 0x17f   : > { %5339 = vmatpush3.msra.mxu1 %v2903_v6  ;;  %5340 = vmatprep.mubr.msk.f32.mxu1 %vm5552_vm2, %v5551_v2 }
 0x180   : > { %5343 = vmatprep.subr.mxu1 %v5551_v2 }
 0x184   : > { %v3713_v20 = vpop.f32.mrb[12].mxu0 }
 0x185   : > { %3717 = vst.msk [vmem:[#allocation6 + $0x8] sm:$0xf] %vm1197_vm5, %v3713_v20  ;;  %v5377_v21 = vpop.f32.mrb[13].mxu0 }
 0x186   : > { %5341 = vmatmul.mubr.msk.f32.vlgmr.msra.gmra.mrb[4].mxu1 %vm747_vm4, %v5741_v27 }
 0x187   : > { %5344 = vmatpush3.msra.mxu1 %v2825_v16  ;;  %5345 = vmatprep.mubr.msk.f32.mxu1 %vm5552_vm2, %v5551_v2 }
 0x188   : > { %5378 = vmatprep.subr.mxu1 %v5551_v2 }
 0x18e   : > { %5346 = vmatmul.mubr.msk.f32.vlgmr.msra.gmra.mrb[4].mxu1 %vm747_vm4, %v5741_v27 }
 0x18f   : > { %5379 = vmatpush3.msra.mxu1 %v3861_v29  ;;  %5380 = vmatprep.mubr.msk.f32.mxu1 %vm5552_vm2, %v5551_v2 }
 0x190   : > { %5383 = vmatprep.subr.mxu1 %v5551_v2 }
 0x192   : > { %5381 = vmatmul.mubr.f32.vlgmr.msra.gmra.mrb[6].mxu1 %v5795_v0 }
 0x193   : > { %5384 = vmatpush3.msra.mxu1 %v3941_v58  ;;  %5385 = vmatprep.mubr.msk.f32.mxu1 %vm5552_vm2, %v5551_v2 }
 0x194   : > { %5388 = vmatprep.subr.mxu1 %v5551_v2 }
 0x19a   : > { %5386 = vmatmul.mubr.msk.f32.vlgmr.msra.gmra.mrb[6].mxu1 %vm747_vm4, %v5741_v27 }
 0x19b   : > { %5389 = vmatpush3.msra.mxu1 %v3938_v22  ;;  %5390 = vmatprep.mubr.msk.f32.mxu1 %vm5552_vm2, %v5551_v2 }
 0x19c   : > { %5393 = vmatprep.subr.mxu1 %v5551_v2 }
 0x1a2   : > { %5391 = vmatmul.mubr.f32.vlgmr.msra.gmra.mrb[6].mxu1 %v5768_v42 }
 0x1a3   : > { %5394 = vmatpush3.msra.mxu1 %v3861_v29  ;;  %5395 = vmatprep.mubr.msk.f32.mxu1 %vm5552_vm2, %v5551_v2 }
 0x1a4   : > { %5398 = vmatprep.subr.mxu1 %v5551_v2 }
 0x1aa   : > { %5396 = vmatmul.mubr.f32.vlgmr.msra.gmra.mrb[6].mxu1 %v5786_v51 }
 0x1ab   : > { %5399 = vmatpush3.msra.mxu1 %v3939_v30  ;;  %5400 = vmatprep.mubr.msk.f32.mxu1 %vm5552_vm2, %v5551_v2 }
 0x1ac   : > { %5403 = vmatprep.subr.mxu1 %v5551_v2 }
 0x1b0   : > { %v4749_v0 = vpop.f32.mrb[14].mxu0 }
 0x1b1   : > { %4753 = vst.msk [vmem:[#allocation6 + $0xc] sm:$0xf] %vm1197_vm5, %v4749_v0  ;;  %v5437_v23 = vpop.f32.mrb[15].mxu0 }
 0x1b2   : > { %5401 = vmatmul.mubr.msk.f32.vlgmr.msra.gmra.mrb[6].mxu1 %vm747_vm4, %v5741_v27 }
 0x1b3   : > { %5404 = vmatpush3.msra.mxu1 %v3861_v29  ;;  %5405 = vmatprep.mubr.msk.f32.mxu1 %vm5552_vm2, %v5551_v2 }
 0x1b4   : > { %5438 = vmatprep.subr.bf16.mxu1 %v5551_v2 }
 0x1b8   : > { %v4828_v47 = vld [vmem:[#allocation6 + $0x8] sm:$0xff] }
 0x1b9   : > { %v4837_v52 = vadd.f32 %v5075_v48, %v4828_v47 }
 0x1ba   : > { %5406 = vmatmul.mubr.msk.f32.vlgmr.msra.gmra.mrb[6].mxu1 %vm747_vm4, %v5741_v27 }
 0x1bb   : > { %5440 = vmatprep.mubr.msk.bf16.mxu1 %vm5552_vm2, %v5551_v2  ;;  %5439 = vmatpush3.bf16.msra.mxu1 %v5541_v24  ;;  %v4838_v53 = vpack.c.bf16 %v4837_v52, %v4836_v49 }
 0x1bc   : > { %5444 = vmatprep.subr.bf16.mxu1 %v5551_v2 }
 0x209   : > { %v1193_v42 = vpop.f32.mrb[0].mxu1 }
 0x20a   : > { %1198 = vst.msk [vmem:[#allocation5] sm:$0xf] %vm1197_vm5, %v1193_v42  ;;  %v5227_v51 = vpop.f32.mrb[1].mxu1 }
 0x235   : > { %v2230_v31 = vpop.f32.mrb[2].mxu1 }
 0x236   : > { %2234 = vst.msk [vmem:[#allocation5 + $0x4] sm:$0xf] %vm1197_vm5, %v2230_v31  ;;  %v5287_v26 = vpop.f32.mrb[3].mxu1 }
 0x23d   : > { %v4754_v33 = vld [vmem:[#allocation5] sm:$0xff] }
 0x23e   : > { %v4763_v38 = vadd.f32 %v5071_v34, %v4754_v33 }
 0x261   : > { %v3266_v46 = vpop.f32.mrb[4].mxu1 }
 0x262   : > { %3270 = vst.msk [vmem:[#allocation5 + $0x8] sm:$0xf] %vm1197_vm5, %v3266_v46  ;;  %v5347_v27 = vpop.f32.mrb[5].mxu1 }
 0x28d   : > { %v4302_v32 = vpop.f32.mrb[6].mxu1 }
 0x28e   : > { %4306 = vst.msk [vmem:[#allocation5 + $0xc] sm:$0xf] %vm1197_vm5, %v4302_v32  ;;  %v5407_v13 = vpop.f32.mrb[7].mxu1 }
 0x295   : > { %v4755_v37 = vld [vmem:[#allocation5 + $0x8] sm:$0xff] }
 0x296   : > { %v4764_v39 = vadd.f32 %v5071_v34, %v4755_v37 }
 0x298   : > { %v4765_v44 = vpack.c.bf16 %v4764_v39, %v4763_v38 }
 0x29a   : > { %5441 = vmatmul.mubr.msk.bf16.vlgmr.msra.gmra.mrb[8].mxu1 %vm415_vm0, %v4765_v44 }
 0x29b   : > { %5445 = vmatpush3.bf16.msra.mxu1 %v5542_v40  ;;  %5446 = vmatprep.mubr.msk.bf16.mxu1 %vm5552_vm2, %v5551_v2 }
 0x2a2   : > { %5447 = vmatmul.mubr.msk.bf16.vlgmr.msra.gmra.mrb[12].mxu1 %vm415_vm0, %v4838_v53 }
 0x36d   : > { %v4818_v54 = vpop.f32.mrb[8].mxu1 }
 0x36e   : > { %v5442_v55 = vpop.f32.mrb[9].mxu1  ;;  %v4819_v7 = vadd.f32 %v5072_v60, %v4818_v54 }
 0x36f   : > { %v4821_v57 = vpop.f32.mrb[10].mxu1 }
 0x370   : > { %v5443_v59 = vpop.f32.mrb[11].mxu1  ;;  %v4822_v2 = vadd.f32 %v5072_v60, %v4821_v57  ;;  %v4825_v3 = vmax.f32 %v4819_v7, 0.0 }
 0x372   : > { %v4826_v25 = vmax.f32 %v4822_v2, 0.0 }
 0x375   : > { %v4891_v62 = vpop.f32.mrb[12].mxu1 }
 0x376   : > { %v4892_v63 = vadd.f32 %v5076_v61, %v4891_v62  ;;  %v5448_v1 = vpop.f32.mrb[13].mxu1 }
 0x377   : > { %v4894_v19 = vpop.f32.mrb[14].mxu1 }
 0x378   : > { %v4898_v4 = vmax.f32 %v4892_v63, 0.0  ;;  %v4895_v8 = vadd.f32 %v5076_v61, %v4894_v19  ;;  %v5449_v9 = vpop.f32.mrb[15].mxu1 }
 0x37a   : > { %v4900_v10 = vadd.f32 %v4898_v4, %v4825_v3  ;;  %v4899_v11 = vmax.f32 %v4895_v8, 0.0 }
 0x37c   : > { %4903 = vst.msk [vmem:[%s386_s27] sm:$0xff] %vm4902_vm6, %v4900_v10  ;;  %v4901_v28 = vadd.f32 %v4899_v11, %v4826_v25 }
 0x37e   : > { %4904 = vst.msk [vmem:[%s386_s27 + $0x8] sm:$0xff] %vm4902_vm6, %v4901_v28 }
 0x37f PF: > { %s21_s17 = sadd.s32 1, %s5549_s17  }
 0x380   : > { %p18_p4 = scmp.ge.s32.totalorder %s21_s17, 4  }
 0x382   :  { %20 = sbr.rel (!%p18_p4) target bundleno = 1 (0x1), region = 110 }

// kernel: shufflenetv2_forward.9
= control target key start
LH: loop header
LB: loop body
LE: loop exit
PB: predicated region body
PF: predicated region fallthrough
CT: control target
= control target key end

     0   :  { %12 = vsyncpa [#allocation6], 0  ;;  %s1080_s0 = inlined_call_operand.vmem [shape: f32[2,4,64], index: 0, kind: input, shape index: {}]   ;;  %s1081_s1 = inlined_call_operand.vmem [shape: bf16[64,32], index: 1, kind: input, shape index: {}]   ;;  %s1082_s2 = inlined_call_operand.vmem [shape: f32[1,32], index: 2, kind: input, shape index: {}]   ;;  %s1083_s3 = inlined_call_operand.vmem [shape: f32[9,32], index: 3, kind: input, shape index: {}]   ;;  %s1084_s4 = inlined_call_operand.vmem [shape: f32[1,32], index: 4, kind: input, shape index: {}]   ;;  %s1085_s5 = inlined_call_operand.vmem [shape: bf16[32,64], index: 5, kind: input, shape index: {}]   ;;  %s1086_s6 = inlined_call_operand.vmem [shape: f32[1,64], index: 6, kind: input, shape index: {}]   ;;  %s1087_s7 = inlined_call_operand.hbm [shape: f32[2,4,64], index: 7, kind: output, shape index: {}]  }
   0x1   :  { %14 = vsyncpa [#allocation6 + $0x1], 0  ;;  %s899_s24 = smov 0   ;;  %s901_s25 = smov 0  }
   0x2   :  { %s903_s26 = smov 0   ;;  %s905_s27 = smov 0  }
   0x3 LB: > { %s920_s28 = sadd.s32 4294967295, %s854_s27   ;;  %s678_s29 = sadd.s32 4294967294, %s854_s27   ;;  %s854_s27 = sphi %s905_s27, %s1093_s27   ;;  %s850_s26 = sphi %s903_s26, %s1092_s26   ;;  %s846_s25 = sphi %s901_s25, %s1091_s25   ;;  %s842_s24 = sphi %s899_s24, %s1090_s24  }
   0x4   : > { %s924_s30 = sadd.s32 1, %s854_s27   ;;  %s179_s8 = sadd.s32 1, %s850_s26 }
   0x5   : > { %s176_s9 = ssub.s32 %s854_s27, %s924_s30  ;;  %p189_p0 = scmp.ne.s32.totalorder %s850_s26, %s846_s25 }
   0x6   : > { %p177_p1 = scmp.eq.s32.totalorder %s176_s9, 0  ;;  %p190_p2 = scmp.eq.s32.totalorder %s920_s28, 1 }
   0x7   : > { %p195_p3 = scmp.ne.s32.totalorder %s846_s25, %s842_s24  ;;  %p196_p4 = scmp.eq.s32.totalorder %s678_s29, 1 }
   0x8   : > { %s935_s10 = scalar_select %p177_p1, %s850_s26, %s179_s8  }
   0x9   : > { %p937_p5 = por %p190_p2, %p189_p0  ;;  %p941_p6 = por %p196_p4, %p195_p3 }
   0xa   : > { %p681_p7 = scmp.ge.s32.totalorder %s854_s27, 1  ;;  %p239_p8 = scmp.lt.s32.totalorder %s854_s27, 3 }
   0xc   : > { %p240_p9 = pnand %p681_p7, %p239_p8 }
   0xd   : > { %v786_v0 = vld [vmem:[%s1081_s1] sm:$0xff] (!%p240_p9)   ;;  %v856_v1 = vmov (!%p240_p9), 0.0   ;;  %v787_v2 = vld [vmem:[%s1081_s1 + $0x8] sm:$0xff] (!%p240_p9)   ;;  %vm857_vm0 = vmmov (!%p240_p9), 0   ;;  %p270_p10 = scmp.lt.s32.totalorder (!%p240_p9), %s920_s28, 1  ;;  %v788_v3 = vld [vmem:[%s1081_s1 + $0x10] sm:$0xff] (!%p240_p9)  }
   0xe   : > { %243 = sbr.rel (%p240_p9) target bundleno = 527 (0x20f), region = 48  ;;  %725 = vmatprep.subr.bf16.mxu0 (!%p240_p9), %v856_v1  ;;  %737 = vmatprep.subr.bf16.mxu1 (!%p240_p9), %v856_v1  ;;  %v789_v4 = vld [vmem:[%s1081_s1 + $0x18] sm:$0xff] (!%p240_p9)   ;;  %vm316_vm1 = vcmask (!%p240_p9), 523264   ;;  %vm361_vm2 = vcmask (!%p240_p9), 257024   ;;  %v790_v7 = vld [vmem:[%s1085_s5] sm:$0xff] (!%p240_p9)   ;;  %v791_v8 = vld [vmem:[%s1085_s5 + $0x8] sm:$0xff] (!%p240_p9)  }
   0xf   : > { %726 = vmatpush3.bf16.msra.mxu0 (!%p240_p9), %v786_v0  ;;  %733 = vmatprep.mubr.msk.bf16.mxu0 (!%p240_p9), %vm857_vm0, %v856_v1  ;;  %363 = vst.msk [vmem:[#allocation3] sm:$0xf] (!%p240_p9), %vm361_vm2, %v856_v1  ;;  %364 = vst.msk [vmem:[#allocation3 + $0x4] sm:$0xf] (!%p240_p9), %vm361_vm2, %v856_v1  ;;  %v684_v9 = vld [vmem:[%s1082_s2] ss:$0 sm:$0xff] (!%p240_p9) }
  0x10   : > { %727 = vmatprep.subr.bf16.mxu0 (!%p240_p9), %v856_v1  ;;  %741 = vmatprep.mubr.msk.bf16.mxu1 (!%p240_p9), %vm857_vm0, %v856_v1  ;;  %365 = vst.msk [vmem:[#allocation3 + $0x8] sm:$0xf] (!%p240_p9), %vm361_vm2, %v856_v1  ;;  %366 = vst.msk [vmem:[#allocation3 + $0xc] sm:$0xf] (!%p240_p9), %vm361_vm2, %v856_v1  ;;  %v690_v17 = vld [vmem:[%s1083_s3] ss:$0 sm:$0xff] (!%p240_p9) }
  0x11   : > { %738 = vmatpush3.bf16.msra.mxu1 (!%p240_p9), %v790_v7  ;;  %v691_v19 = vld [vmem:[%s1083_s3 + $0x1] ss:$0 sm:$0xff] (!%p240_p9)  ;;  %vm369_vm3 = vcmask (!%p240_p9), 254976   ;;  %v692_v25 = vld [vmem:[%s1083_s3 + $0x2] ss:$0 sm:$0xff] (!%p240_p9)  ;;  %vm552_vm4 = vcmask (!%p240_p9), 261120  }
  0x12   : > { %739 = vmatprep.subr.bf16.mxu1 (!%p240_p9), %v856_v1  ;;  %v693_v28 = vld [vmem:[%s1083_s3 + $0x3] ss:$0 sm:$0xff] (!%p240_p9)  ;;  %v694_v32 = vld [vmem:[%s1083_s3 + $0x4] ss:$0 sm:$0xff] (!%p240_p9)  ;;  %v695_v35 = vld [vmem:[%s1083_s3 + $0x5] ss:$0 sm:$0xff] (!%p240_p9) }
  0x13   : > { %728 = vmatpush3.bf16.msra.mxu0 (!%p240_p9), %v787_v2  ;;  %v696_v44 = vld [vmem:[%s1083_s3 + $0x6] ss:$0 sm:$0xff] (!%p240_p9)  ;;  %v697_v51 = vld [vmem:[%s1083_s3 + $0x7] ss:$0 sm:$0xff] (!%p240_p9)  ;;  %v698_v59 = vld [vmem:[%s1083_s3 + $0x8] ss:$0 sm:$0xff] (!%p240_p9) }
  0x14   : > { %729 = vmatprep.subr.bf16.mxu0 (!%p240_p9), %v856_v1  ;;  %s267_s29 = sand.u32 (!%p240_p9), 1, %s846_s25   ;;  %s714_s14 = sshll.u32 (!%p240_p9), %s920_s28, 6  ;;  %vm603_vm6 = vcmask (!%p240_p9), 519168  }
  0x15   : > { %s271_s17 = scalar_select %p270_p10, %s920_s28, 1  ;;  %740 = vmatpush3.bf16.msra.mxu1 %v791_v8 }
  0x16   : > { %v374_v16 = vld [vmem:[#allocation3] sm:$0x3]  ;;  %v389_v22 = vld [vmem:[#allocation3 + $0x2] sm:$0x3]  ;;  %s682_s8 = sshll.u32 %s267_s29, 2  ;;  %s1038_s19 = scalar_lea.hbm %s1087_s7, %s714_s14 }
  0x17   : > { %s683_s20 = sshll.u32 %s271_s17, 2  ;;  %730 = vmatpush3.bf16.msra.mxu0 %v788_v3  ;;  %v381_v18 = vld [vmem:[#allocation3 + $0x1] sm:$0x3]  ;;  %v380_v20 = vmul.f32 %v690_v17, %v374_v16  ;;  %v395_v27 = vmul.f32 %v692_v25, %v389_v22  ;;  %v494_v57 = vld [vmem:[#allocation3 + $0xc] sm:$0x3]  ;;  %s269_s15 = scalar_lea.vmem [#allocation5], %s682_s8 }
  0x18   : > { %s273_s23 = scalar_lea.vmem %s1080_s0, %s683_s20  ;;  %731 = vmatprep.subr.bf16.mxu0 %v856_v1  ;;  %v387_v21 = vmul.f32 %v691_v19, %v381_v18  ;;  %v500_v2 = vmul.f32 %v696_v44, %v494_v57  ;;  %v502_v3 = vld [vmem:[#allocation3 + $0xd] sm:$0x3]  ;;  %s619_s16 = sshll.u32 %s269_s15, 4  ;;  %s1040_s16 = int_to_ptr.vmem [resolvable:$true] %s619_s16 }
  0x19   : > { %v970_v5 = vld [vmem:[%s273_s23] sm:$0xf]  ;;  %s606_s20 = scalar_lea.sflag [#allocation6], %s267_s29  ;;  %s792_s21 = scalar_lea.vmem %s1040_s16, 64 }
  0x1a   : > { %v276_v6 = vpack.c.bf16 %v970_v5, %v970_v5  ;;  %v388_v26 = vadd.f32 %v387_v21, %v380_v20  ;;  %v597_v21 = vlaneseq  ;;  %p793_p11 = scmp.ne.s32.totalorder %s1040_s16, %s792_s21  ;;  %s858_s28 = smov [#allocation5]  }
  0x1b   : > { %732 = vmatpush3.bf16.msra.mxu0 %v789_v4  ;;  %s796_s22 = sshll.u32 %s858_s28, 4  ;;  %s797_s22 = int_to_ptr.vmem [resolvable:$false] %s796_s22 }
  0x1c   : > { %v396_v29 = vadd.f32 %v395_v27, %v388_v26  ;;  %v598_v22 = vand.u32 127, %v597_v21  ;;  %p794_p12 = pnand %p793_p11, %p937_p5  ;;  %s798_s23 = scalar_lea.vmem %s797_s22, 128 }
  0x1d   : > { %p799_p0 = scmp.lt.s32.totalorder %s1040_s16, %s797_s22  ;;  %p800_p1 = scmp.lt.s32.totalorder %s798_s23, %s792_s21 }
  0x1e   : > { %734 = vmatmul.mubr.msk.bf16.vlgmr.msra.gmra.mrb[0].mxu0 %vm316_vm1, %v276_v6  ;;  %vm599_vm5 = vcmp.lt.s32.totalorder %v598_v22, 32  ;;  %p795_p13 = pneg %p794_p12 }
  0x1f   : > { %p801_p2 = por %p800_p1, %p799_p0 }
  0x21   : > { %p802_p3 = pnand %p801_p2, %p795_p13 }
  0xf1   : > { %v354_v10 = vpop.f32.mrb[0].mxu0 }
  0xf2   : > { %v355_v11 = vadd.f32 %v684_v9, %v354_v10  ;;  %v735_v12 = vpop.f32.mrb[1].mxu0  ;;  %v510_v9 = vld [vmem:[#allocation3 + $0xe] sm:$0x3] }
  0xf3   : > { %v357_v13 = vpop.f32.mrb[2].mxu0  ;;  %v508_v12 = vmul.f32 %v697_v51, %v502_v3 }
  0xf4   : > { %v360_v14 = vmax.f32 %v355_v11, 0.0  ;;  %v736_v15 = vpop.f32.mrb[3].mxu0 }
  0xf6   : > { %362 = vst.msk [vmem:[#allocation2] sm:$0xf] %vm361_vm2, %v360_v14  ;;  %v516_v14 = vmul.f32 %v698_v59, %v510_v9 }
  0xfd   : > { %v367_v23 = vld [vmem:[#allocation2] sm:$0x3]  ;;  %v371_v24 = vld [vmem:[#allocation2 + $0x2] sm:$0x3] }
  0xfe   : > { %370 = vst.msk [vmem:[#allocation3 + $0x5] sm:$0x3] %vm369_vm3, %v367_v23  ;;  %373 = vst.msk [vmem:[#allocation3 + $0x9] sm:$0x3] %vm369_vm3, %v371_v24  ;;  %v709_v23 = vld [vmem:[%s1086_s6] ss:$0 sm:$0xff] }
  0xff   : > { %v600_v24 = vsel %vm599_vm5, 1.0, %v856_v1 }
 0x100   : > { %v601_v27 = vmul.f32 %v600_v24, %v970_v5 }
 0x105   : > { %v397_v30 = vld [vmem:[#allocation3 + $0x4] sm:$0x3]  ;;  %v413_v34 = vld [vmem:[#allocation3 + $0x6] sm:$0x3]  ;;  %v421_v43 = vld [vmem:[#allocation3 + $0x8] sm:$0x3] }
 0x106   : > { %v405_v31 = vld [vmem:[#allocation3 + $0x5] sm:$0x3]  ;;  %v403_v33 = vmul.f32 %v693_v28, %v397_v30  ;;  %v469_v45 = vld [vmem:[#allocation3 + $0x8] sm:$0x3]  ;;  %v419_v47 = vmul.f32 %v695_v35, %v413_v34  ;;  %v427_v54 = vmul.f32 %v696_v44, %v421_v43  ;;  %v437_v58 = vld [vmem:[#allocation3 + $0xa] sm:$0x3] }
 0x107   : > { %v446_v36 = vld [vmem:[#allocation3 + $0x4] sm:$0x3]  ;;  %v461_v38 = vld [vmem:[#allocation3 + $0x6] sm:$0x3]  ;;  %v411_v40 = vmul.f32 %v694_v32, %v405_v31  ;;  %v429_v50 = vld [vmem:[#allocation3 + $0x9] sm:$0x3]  ;;  %v475_v56 = vmul.f32 %v693_v28, %v469_v45  ;;  %v443_v6 = vmul.f32 %v698_v59, %v437_v58 }
 0x108   : > { %v453_v37 = vld [vmem:[#allocation3 + $0x5] sm:$0x3]  ;;  %v404_v39 = vadd.f32 %v403_v33, %v396_v29  ;;  %v452_v41 = vmul.f32 %v690_v17, %v446_v36  ;;  %v467_v49 = vmul.f32 %v692_v25, %v461_v38  ;;  %v477_v52 = vld [vmem:[#allocation3 + $0x9] sm:$0x3]  ;;  %v435_v62 = vmul.f32 %v697_v51, %v429_v50  ;;  %v708_v17 = vld [vmem:[%s1084_s4] ss:$0 sm:$0xff] }
 0x109   : > { %v459_v42 = vmul.f32 %v691_v19, %v453_v37  ;;  %v485_v60 = vld [vmem:[#allocation3 + $0xa] sm:$0x3]  ;;  %v483_v0 = vmul.f32 %v694_v32, %v477_v52 }
 0x10a   : > { %v412_v46 = vadd.f32 %v411_v40, %v404_v39  ;;  %v491_v8 = vmul.f32 %v695_v35, %v485_v60 }
 0x10b   : > { %v460_v48 = vadd.f32 %v459_v42, %v452_v41 }
 0x10c   : > { %v420_v53 = vadd.f32 %v419_v47, %v412_v46 }
 0x10d   : > { %v468_v55 = vadd.f32 %v467_v49, %v460_v48 }
 0x10e   : > { %v428_v61 = vadd.f32 %v427_v54, %v420_v53 }
 0x10f   : > { %v476_v63 = vadd.f32 %v475_v56, %v468_v55 }
 0x110   : > { %v436_v4 = vadd.f32 %v435_v62, %v428_v61 }
 0x111   : > { %v484_v7 = vadd.f32 %v483_v0, %v476_v63 }
 0x112   : > { %v444_v10 = vadd.f32 %v443_v6, %v436_v4 }
 0x113   : > { %v492_v11 = vadd.f32 %v491_v8, %v484_v7 }
 0x114   : > { %445 = vst.msk [vmem:[#allocation4] sm:$0x3] %vm369_vm3, %v444_v10 }
 0x115   : > { %v501_v13 = vadd.f32 %v500_v2, %v492_v11 }
 0x117   : > { %v509_v15 = vadd.f32 %v508_v12, %v501_v13 }
 0x119   : > { %v517_v16 = vadd.f32 %v516_v14, %v509_v15 }
 0x11b   : > { %518 = vst.msk [vmem:[#allocation4 + $0x2] sm:$0x3] %vm369_vm3, %v517_v16 }
 0x122   : > { %v519_v18 = vld [vmem:[#allocation4] sm:$0xf] }
 0x123   : > { %v527_v19 = vadd.f32 %v708_v17, %v519_v18 }
 0x125   : > { %v528_v20 = vpack.c.bf16 %v527_v19, %v527_v19 }
 0x127   : > { %742 = vmatmul.mubr.msk.bf16.vlgmr.msra.gmra.mrb[0].mxu1 %vm552_vm4, %v528_v20 }
 0x1fa   : > { %v590_v25 = vpop.f32.mrb[0].mxu1 }
 0x1fb   : > { %v591_v26 = vadd.f32 %v709_v23, %v590_v25  ;;  %v743_v28 = vpop.f32.mrb[1].mxu1 }
 0x1fc   : > { %v593_v29 = vpop.f32.mrb[2].mxu1 }
 0x1fd   : > { %v596_v30 = vmax.f32 %v591_v26, 0.0  ;;  %v744_v31 = vpop.f32.mrb[3].mxu1 }
 0x1ff   : > { %v602_v32 = vadd.f32 %v601_v27, %v596_v30 }
 0x201   : > { %604 = vst.msk [vmem:[%s269_s15] sm:$0xf] %vm603_vm6, %v602_v32 }
 0x202   : > { %805 = shalt.err (!%p802_p3)
}
 0x203   : > { %s806_s29 = scalar_lea.hbm %s1038_s19, 64  ;;  %s810_s13 = scalar_lea.hbm %s1087_s7, 128 }
 0x204   : > { %p807_p4 = scmp.ne.s32.totalorder %s1038_s19, %s806_s29  ;;  %p811_p9 = scmp.lt.u32.totalorder %s1038_s19, %s1087_s7 }
 0x205   : > { %p812_p10 = scmp.lt.u32.totalorder %s810_s13, %s806_s29  ;;  %p814_p12 = scmp.lt.u32.totalorder %s806_s29, %s1038_s19 }
 0x206   : > { %p808_p7 = pnand %p807_p4, %p937_p5 }
 0x207   : > { %p813_p11 = por %p812_p10, %p811_p9 }
 0x208   : > { %p809_p8 = pneg %p808_p7 }
 0x209   : > { %p815_p13 = por %p814_p12, %p813_p11 }
 0x20b   : > { %p816_p0 = pnand %p815_p13, %p809_p8 }
 0x20d   : > { %819 = shalt.err (!%p816_p0)
}
 0x20e   : > { %745 = dma.vmem_to_hbm [thread:$0]  (%p937_p5), %s1040_s16, 64, %s1038_s19, %s606_s20  }
 0x20f PF: > { %p751_p1 = scmp.ge.s32.totalorder %s854_s27, 2  ;;  %s631_s17 = sand.u32 1, %s842_s24  }
 0x210   : > { %s632_s18 = scalar_lea.sflag [#allocation6], %s631_s17 }
 0x211   : > { %p748_p2 = pnand %p751_p1, %p941_p6 }
 0x213   : > { %837 = dma.done.wait (!%p748_p2), %s632_s18, 64  }
 0x214   : > { %839 = vsyncadd (!%p748_p2), %s632_s18, 4294967232  ;;  %p17_p3 = scmp.ge.s32.totalorder %s924_s30, 4   ;;  %s1090_s24 = smov %s846_s25 }
 0x215   : > { %s1091_s25 = smov %s850_s26  ;;  %s1092_s26 = smov %s935_s10 }
 0x216   : > { %s1093_s27 = smov %s924_s30  ;;  %19 = sbr.rel (!%p17_p3) target bundleno = 3 (0x3), region = 86 }
 0x21d   :  { %637 = vsyncpa [#allocation6], 1 }
 0x21e   :  { %639 = vsyncpa [#allocation6 + $0x1], 1 }

// kernel: shufflenetv2_forward.8
= control target key start
LH: loop header
LB: loop body
LE: loop exit
PB: predicated region body
PF: predicated region fallthrough
CT: control target
= control target key end

     0   :  { %s3205_s17 = smov 0   ;;  %s3574_s0 = inlined_call_operand.vmem [shape: f32[2,16,32], index: 0, kind: input, shape index: {}]   ;;  %s3575_s1 = inlined_call_operand.vmem [shape: bf16[32,32], index: 1, kind: input, shape index: {}]   ;;  %s3576_s2 = inlined_call_operand.vmem [shape: f32[1,32], index: 2, kind: input, shape index: {}]   ;;  %s3577_s3 = inlined_call_operand.vmem [shape: f32[9,32], index: 3, kind: input, shape index: {}]   ;;  %s3578_s4 = inlined_call_operand.vmem [shape: f32[1,32], index: 4, kind: input, shape index: {}]   ;;  %s3579_s5 = inlined_call_operand.vmem [shape: bf16[32,64], index: 5, kind: input, shape index: {}]   ;;  %s3580_s6 = inlined_call_operand.vmem [shape: f32[1,64], index: 6, kind: input, shape index: {}]   ;;  %s3581_s7 = inlined_call_operand.vmem [shape: f32[9,32], index: 7, kind: input, shape index: {}]   ;;  %s3582_s8 = inlined_call_operand.vmem [shape: f32[1,32], index: 8, kind: input, shape index: {}]   ;;  %s3583_s9 = inlined_call_operand.vmem [shape: bf16[32,64], index: 9, kind: input, shape index: {}]   ;;  %s3584_s10 = inlined_call_operand.vmem [shape: f32[1,64], index: 10, kind: input, shape index: {}]   ;;  %s3585_s11 = inlined_call_operand.vmem [shape: f32[2,4,64], index: 11, kind: output, shape index: {}]  }
   0x1 LB: > { %s2806_s18 = sadd.s32 4294967295, %s3141_s17   ;;  %p2810_p0 = scmp.ge.s32.totalorder %s3141_s17, 1  ;;  %s3141_s17 = sphi %s3205_s17, %s21_s17  }
   0x2   : > { %p337_p1 = scmp.lt.s32.totalorder %s3141_s17, 3 }
   0x4   : > { %p338_p2 = pnand %p2810_p0, %p337_p1 }
   0x5   : > { %v3129_v0 = vld [vmem:[%s3575_s1] sm:$0xff] (!%p338_p2)   ;;  %v3143_v1 = vmov (!%p338_p2), 0.0   ;;  %v3130_v2 = vld [vmem:[%s3575_s1 + $0x8] sm:$0xff] (!%p338_p2)   ;;  %vm3144_vm0 = vmmov (!%p338_p2), 0   ;;  %p3223_p3 = scmp.lt.s32.totalorder (!%p338_p2), %s2806_s18, 1  ;;  %vm461_vm1 = vcmask (!%p338_p2), 259072   ;;  %v499_v32 = vlaneseq (!%p338_p2) }
   0x6   : > { %341 = sbr.rel (%p338_p2) target bundleno = 804 (0x324), region = 64  ;;  %2936 = vmatprep.subr.bf16.mxu0 (!%p338_p2), %v3143_v1  ;;  %2949 = vmatprep.subr.mxu1 (!%p338_p2), %v3143_v1  ;;  %463 = vst.msk [vmem:[#allocation3 + $0x8] sm:$0x3f] (!%p338_p2), %vm461_vm1, %v3143_v1  ;;  %464 = vst.msk [vmem:[#allocation3 + $0x10] sm:$0x3f] (!%p338_p2), %vm461_vm1, %v3143_v1  ;;  %vm412_vm2 = vcmask (!%p338_p2), 261120  }
   0x7   : > { %2937 = vmatpush3.bf16.msra.mxu0 (!%p338_p2), %v3129_v0  ;;  %2940 = vmatprep.mubr.msk.bf16.mxu0 (!%p338_p2), %vm3144_vm0, %v3143_v1  ;;  %465 = vst.msk [vmem:[#allocation3 + $0x18] sm:$0x3f] (!%p338_p2), %vm461_vm1, %v3143_v1  ;;  %466 = vst.msk [vmem:[#allocation3 + $0x20] sm:$0x3f] (!%p338_p2), %vm461_vm1, %v3143_v1  ;;  %vm476_vm3 = vcmask (!%p338_p2), 257024   ;;  %v500_v43 = vshrl.u32 (!%p338_p2), %v499_v32, 7 }
   0x8   : > { %2938 = vmatprep.subr.bf16.mxu0 (!%p338_p2), %v3143_v1  ;;  %462 = vst.msk [vmem:[#allocation3] sm:$0x3f] (!%p338_p2), %vm461_vm1, %v3143_v1  ;;  %468 = vst.msk [vmem:[#allocation4] sm:$0x3f] (!%p338_p2), %vm461_vm1, %v3143_v1  ;;  %2951 = vmatprep.mubr.msk.f32.mxu1 (!%p338_p2), %vm3144_vm0, %v3143_v1  ;;  %v3259_v11 = vld [vmem:[%s3581_s7] ss:$0 sm:$0xff] (!%p338_p2) }
   0x9   : > { %469 = vst.msk [vmem:[#allocation4 + $0x8] sm:$0x3f] (!%p338_p2), %vm461_vm1, %v3143_v1  ;;  %470 = vst.msk [vmem:[#allocation4 + $0x10] sm:$0x3f] (!%p338_p2), %vm461_vm1, %v3143_v1  ;;  %v3264_v13 = vld [vmem:[%s3581_s7 + $0x1] ss:$0 sm:$0xff] (!%p338_p2) }
   0xa   : > { %471 = vst.msk [vmem:[#allocation4 + $0x18] sm:$0x3f] (!%p338_p2), %vm461_vm1, %v3143_v1  ;;  %472 = vst.msk [vmem:[#allocation4 + $0x20] sm:$0x3f] (!%p338_p2), %vm461_vm1, %v3143_v1  ;;  %v3271_v17 = vld [vmem:[%s3581_s7 + $0x2] ss:$0 sm:$0xff] (!%p338_p2) }
   0xb   : > { %2939 = vmatpush3.bf16.msra.mxu0 (!%p338_p2), %v3130_v2  ;;  %v3277_v21 = vld [vmem:[%s3581_s7 + $0x3] ss:$0 sm:$0xff] (!%p338_p2)  ;;  %v3283_v25 = vld [vmem:[%s3581_s7 + $0x4] ss:$0 sm:$0xff] (!%p338_p2)  ;;  %v3289_v29 = vld [vmem:[%s3581_s7 + $0x5] ss:$0 sm:$0xff] (!%p338_p2) }
   0xc   : > { %2944 = vmatprep.subr.mxu0 (!%p338_p2), %v3143_v1  ;;  %v2814_v30 = vld [vmem:[%s3576_s2] ss:$0 sm:$0xff] (!%p338_p2)  ;;  %v3298_v38 = vld [vmem:[%s3581_s7 + $0x6] ss:$0 sm:$0xff] (!%p338_p2)  ;;  %v3305_v48 = vld [vmem:[%s3581_s7 + $0x7] ss:$0 sm:$0xff] (!%p338_p2) }
   0xd   : > { %s3588_s18 = smov (!%p3223_p3, %s2806_s18), 1  ;;  %v2818_v50 = vld [vmem:[%s3577_s3] ss:$0 sm:$0xff]  ;;  %v2820_v52 = vld [vmem:[%s3577_s3 + $0x1] ss:$0 sm:$0xff]  ;;  %v502_v53 = vand.u32 127, %v499_v32 }
   0xe   : > { %s2878_s24 = sshll.u32 %s3588_s18, 4  ;;  %v503_v54 = vmul.u32 2, %v500_v43  ;;  %v3318_v58 = vld [vmem:[%s3581_s7 + $0x8] ss:$0 sm:$0xff]  ;;  %v2822_v0 = vld [vmem:[%s3577_s3 + $0x2] ss:$0 sm:$0xff] }
   0xf   : > { %s380_s27 = scalar_lea.vmem %s3574_s0, %s2878_s24  ;;  %v513_v10 = vld [vmem:[#allocation3] sm:$0xf]  ;;  %v506_v49 = vld [vmem:[#allocation4] sm:$0xf]  ;;  %vm648_vm5 = vcmask 31744   ;;  %vm652_vm6 = vcmask 1043456  }
  0x10   : > { %v386_v3 = vld [vmem:[%s380_s27] sm:$0xff]  ;;  %v387_v4 = vld [vmem:[%s380_s27 + $0x8] sm:$0xff]  ;;  %v528_v12 = vld [vmem:[#allocation3 + $0x1] sm:$0xf]  ;;  %v519_v14 = vmul.f32 %v3259_v11, %v513_v10  ;;  %v512_v59 = vmul.f32 %v2818_v50, %v506_v49  ;;  %vm504_vm4 = vcmp.eq.s32.totalorder %v502_v53, %v503_v54  ;;  %vm1102_vm7 = vcmask 254976   ;;  %s2813_s12 = sshll.u32 %s3588_s18, 2 }
  0x11   : > { %v474_v5 = vld [vmem:[%s380_s27] sm:$0xf]  ;;  %v388_v6 = vpack.c.bf16 %v387_v4, %v386_v3  ;;  %v481_v7 = vld [vmem:[%s380_s27 + $0x4] sm:$0xf]  ;;  %v487_v8 = vld [vmem:[%s380_s27 + $0x8] sm:$0xf]  ;;  %v534_v15 = vmul.f32 %v3264_v13, %v528_v12  ;;  %s384_s15 = scalar_lea.vmem %s3585_s11, %s2813_s12 }
  0x12   : > { %477 = vst.msk [vmem:[#allocation3 + $0x9] sm:$0xf] %vm476_vm3, %v474_v5  ;;  %v493_v9 = vld [vmem:[%s380_s27 + $0xc] sm:$0xf]  ;;  %483 = vst.msk [vmem:[#allocation3 + $0x11] sm:$0xf] %vm476_vm3, %v481_v7 }
  0x13   : > { %489 = vst.msk [vmem:[#allocation3 + $0x19] sm:$0xf] %vm476_vm3, %v487_v8  ;;  %495 = vst.msk [vmem:[#allocation3 + $0x21] sm:$0xf] %vm476_vm3, %v493_v9  ;;  %2941 = vmatmul.mubr.msk.bf16.vlgmr.msra.gmra.mrb[0].mxu0 %vm412_vm2, %v388_v6  ;;  %v544_v16 = vld [vmem:[#allocation3 + $0x2] sm:$0xf]  ;;  %v535_v18 = vadd.f32 %v534_v15, %v519_v14 }
  0x14   : > { %2946 = vmatprep.mubr.msk.f32.mxu0 %vm3144_vm0, %v3143_v1  ;;  %v550_v19 = vmul.f32 %v3271_v17, %v544_v16  ;;  %v520_v51 = vld [vmem:[#allocation4 + $0x1] sm:$0xf]  ;;  %v3329_v8 = vsel %vm504_vm4, 1.0, %v3143_v1  ;;  %vm2751_vm8 = vcmask 519168  }
  0x15   : > { %v526_v60 = vmul.f32 %v2820_v52, %v520_v51  ;;  %v536_v61 = vld [vmem:[#allocation4 + $0x2] sm:$0xf]  ;;  %v650_v12 = vsel %vm648_vm5, %v3329_v8, 0 }
  0x16   : > { %v551_v22 = vadd.f32 %v550_v19, %v535_v18  ;;  %v542_v7 = vmul.f32 %v2822_v0, %v536_v61  ;;  %v2824_v10 = vld [vmem:[%s3577_s3 + $0x3] ss:$0 sm:$0xff]  ;;  %v3339_v15 = vld [vmem:[%s3577_s3 + $0x4] ss:$0 sm:$0xff] }
  0x17   : > { %v527_v6 = vadd.f32 %v526_v60, %v512_v59 }
  0x19   : > { %v560_v20 = vld [vmem:[#allocation3 + $0x8] sm:$0xf]  ;;  %v608_v37 = vld [vmem:[#allocation3 + $0x10] sm:$0xf]  ;;  %v543_v14 = vadd.f32 %v542_v7, %v527_v6 }
  0x1a   : > { %v566_v23 = vmul.f32 %v3277_v21, %v560_v20  ;;  %v576_v24 = vld [vmem:[#allocation3 + $0x9] sm:$0xf]  ;;  %v614_v45 = vmul.f32 %v3298_v38, %v608_v37  ;;  %v624_v47 = vld [vmem:[#allocation3 + $0x11] sm:$0xf] }
  0x1b   : > { %v582_v27 = vmul.f32 %v3283_v25, %v576_v24  ;;  %v592_v28 = vld [vmem:[#allocation3 + $0xa] sm:$0xf]  ;;  %v630_v56 = vmul.f32 %v3305_v48, %v624_v47  ;;  %v640_v57 = vld [vmem:[#allocation3 + $0x12] sm:$0xf]  ;;  %v3370_v47 = vld [vmem:[%s3577_s3 + $0x8] ss:$0 sm:$0xff] }
  0x1c   : > { %v567_v26 = vadd.f32 %v566_v23, %v551_v22  ;;  %v598_v34 = vmul.f32 %v3289_v29, %v592_v28  ;;  %v646_v3 = vmul.f32 %v3318_v58, %v640_v57  ;;  %v3342_v22 = vsub.f32 %v650_v12, %v650_v12  ;;  %v3347_v24 = vld [vmem:[%s3577_s3 + $0x5] ss:$0 sm:$0xff]  ;;  %v3353_v28 = vld [vmem:[%s3577_s3 + $0x6] ss:$0 sm:$0xff] }
  0x1d   : > { %v1592_v57 = vld [vmem:[#allocation3 + $0x12] sm:$0xf] }
  0x1e   : > { %v583_v33 = vadd.f32 %v582_v27, %v567_v26  ;;  %v3364_v37 = vand.u32 4294901760, %v3342_v22 }
  0x20   : > { %v599_v44 = vadd.f32 %v598_v34, %v583_v33  ;;  %v725_v59 = vsub.f32 %v3342_v22, %v3364_v37 }
  0x22   : > { %v615_v55 = vadd.f32 %v614_v45, %v599_v44 }
  0x24   : > { %v631_v2 = vadd.f32 %v630_v56, %v615_v55 }
  0x26   : > { %v647_v9 = vadd.f32 %v646_v3, %v631_v2  ;;  %v1598_v3 = vmul.f32 %v3271_v17, %v1592_v57 }
  0x28   : > { %v1105_v19 = vsel %vm652_vm6, %v647_v9, 0 }
  0xe6   : > { %v450_v31 = vpop.f32.mrb[0].mxu0 }
  0xe7   : > { %v451_v35 = vadd.f32 %v2814_v30, %v450_v31  ;;  %v2942_v36 = vpop.f32.mrb[1].mxu0 }
  0xe8   : > { %v453_v39 = vpop.f32.mrb[2].mxu0  ;;  %v3361_v36 = vld [vmem:[%s3577_s3 + $0x7] ss:$0 sm:$0xff] }
  0xe9   : > { %v457_v40 = vmax.f32 %v451_v35, 0.0  ;;  %v454_v41 = vadd.f32 %v2814_v30, %v453_v39  ;;  %v2943_v42 = vpop.f32.mrb[3].mxu0  ;;  %v3355_v30 = vand.u32 4294901760, %v1105_v19 }
  0xeb   : > { %459 = vst.msk [vmem:[#allocation2] sm:$0xff] %vm412_vm2, %v457_v40  ;;  %v458_v46 = vmax.f32 %v454_v41, 0.0  ;;  %v1561_v40 = vld [vmem:[#allocation3 + $0x10] sm:$0xf]  ;;  %v3373_v49 = vsub.f32 %v1105_v19, %v3355_v30 }
  0xec   : > { %v1576_v41 = vld [vmem:[#allocation3 + $0x11] sm:$0xf]  ;;  %v1567_v54 = vmul.f32 %v3259_v11, %v1561_v40  ;;  %v1608_v11 = vld [vmem:[#allocation3 + $0x18] sm:$0xf]  ;;  %v1656_v40 = vld [vmem:[#allocation3 + $0x20] sm:$0xf] }
  0xed   : > { %460 = vst.msk [vmem:[#allocation2 + $0x8] sm:$0xff] %vm412_vm2, %v458_v46  ;;  %v1582_v55 = vmul.f32 %v3264_v13, %v1576_v41  ;;  %v1186_v61 = vand.u32 4294901760, %v3373_v49 }
  0xef   : > { %v1583_v2 = vadd.f32 %v1582_v55, %v1567_v54  ;;  %v1187_v9 = vsub.f32 %v3373_v49, %v1186_v61 }
  0xf2   : > { %v478_v62 = vld [vmem:[#allocation2] sm:$0xf]  ;;  %v484_v63 = vld [vmem:[#allocation2 + $0x4] sm:$0xf] }
  0xf3   : > { %480 = vst.msk [vmem:[#allocation4 + $0x9] sm:$0xf] %vm476_vm3, %v478_v62  ;;  %486 = vst.msk [vmem:[#allocation4 + $0x11] sm:$0xf] %vm476_vm3, %v484_v63 }
  0xf4   : > { %v490_v4 = vld [vmem:[#allocation2 + $0x8] sm:$0xf]  ;;  %v496_v5 = vld [vmem:[#allocation2 + $0xc] sm:$0xf] }
  0xf5   : > { %492 = vst.msk [vmem:[#allocation4 + $0x19] sm:$0xf] %vm476_vm3, %v490_v4  ;;  %498 = vst.msk [vmem:[#allocation4 + $0x21] sm:$0xf] %vm476_vm3, %v496_v5  ;;  %v3384_v5 = vand.u32 4294901760, %v725_v59 }
  0xfa   : > { %v552_v16 = vld [vmem:[#allocation4 + $0x8] sm:$0xf]  ;;  %v600_v31 = vld [vmem:[#allocation4 + $0x10] sm:$0xf] }
  0xfb   : > { %v568_v18 = vld [vmem:[#allocation4 + $0x9] sm:$0xf]  ;;  %v558_v20 = vmul.f32 %v2824_v10, %v552_v16  ;;  %v1554_v32 = vld [vmem:[#allocation4 + $0x10] sm:$0xf]  ;;  %v606_v43 = vmul.f32 %v3353_v28, %v600_v31 }
  0xfc   : > { %v584_v23 = vld [vmem:[#allocation4 + $0xa] sm:$0xf]  ;;  %v574_v27 = vmul.f32 %v3339_v15, %v568_v18  ;;  %v1568_v33 = vld [vmem:[#allocation4 + $0x11] sm:$0xf]  ;;  %v1560_v44 = vmul.f32 %v2818_v50, %v1554_v32  ;;  %v1600_v4 = vld [vmem:[#allocation4 + $0x18] sm:$0xf] }
  0xfd   : > { %v559_v26 = vadd.f32 %v558_v20, %v543_v14  ;;  %v590_v35 = vmul.f32 %v3347_v24, %v584_v23  ;;  %v616_v39 = vld [vmem:[#allocation4 + $0x11] sm:$0xf]  ;;  %v1574_v45 = vmul.f32 %v2820_v52, %v1568_v33  ;;  %v1606_v12 = vmul.f32 %v2824_v10, %v1600_v4  ;;  %v1616_v16 = vld [vmem:[#allocation4 + $0x19] sm:$0xf]  ;;  %v1624_v18 = vld [vmem:[#allocation3 + $0x19] sm:$0xf] }
  0xfe   : > { %v632_v46 = vld [vmem:[#allocation4 + $0x12] sm:$0xf]  ;;  %v622_v53 = vmul.f32 %v3361_v36, %v616_v39  ;;  %v1599_v14 = vadd.f32 %v1598_v3, %v1583_v2  ;;  %v1622_v20 = vmul.f32 %v3339_v15, %v1616_v16  ;;  %v1632_v31 = vld [vmem:[#allocation4 + $0x1a] sm:$0xf]  ;;  %v1640_v32 = vld [vmem:[#allocation3 + $0x1a] sm:$0xf] }
  0xff   : > { %v575_v34 = vadd.f32 %v574_v27, %v559_v26  ;;  %v1584_v56 = vld [vmem:[#allocation4 + $0x12] sm:$0xf]  ;;  %v638_v52 = vmul.f32 %v3370_v47, %v632_v46  ;;  %v1575_v60 = vadd.f32 %v1574_v45, %v1560_v44  ;;  %v1630_v26 = vmul.f32 %v3283_v25, %v1624_v18  ;;  %v1648_v25 = vld [vmem:[#allocation4 + $0x20] sm:$0xf] }
 0x100   : > { %v1590_v63 = vmul.f32 %v2822_v0, %v1584_v56  ;;  %v1614_v0 = vmul.f32 %v3277_v21, %v1608_v11  ;;  %v1188_v21 = vand.u32 4294901760, %v1187_v9  ;;  %v1646_v39 = vmul.f32 %v3289_v29, %v1640_v32  ;;  %v1672_v44 = vld [vmem:[#allocation3 + $0x21] sm:$0xf]  ;;  %v3133_v18 = vld [vmem:[%s3583_s9] sm:$0xff]  }
 0x101   : > { %v591_v42 = vadd.f32 %v590_v35, %v575_v34  ;;  %v1638_v35 = vmul.f32 %v3347_v24, %v1632_v31  ;;  %v1654_v24 = vmul.f32 %v3353_v28, %v1648_v25  ;;  %v1662_v29 = vmul.f32 %v3298_v38, %v1656_v40  ;;  %v1688_v38 = vld [vmem:[#allocation3 + $0x22] sm:$0xf] }
 0x102   : > { %v1591_v6 = vadd.f32 %v1590_v63, %v1575_v60  ;;  %v1615_v23 = vadd.f32 %v1614_v0, %v1599_v14  ;;  %v1678_v28 = vmul.f32 %v3305_v48, %v1672_v44  ;;  %v2866_v0 = vld [vmem:[%s3578_s4] ss:$0 sm:$0xff] }
 0x103   : > { %v607_v51 = vadd.f32 %v606_v43, %v591_v42  ;;  %v1664_v43 = vld [vmem:[#allocation4 + $0x21] sm:$0xf] }
 0x104   : > { %v1607_v19 = vadd.f32 %v1606_v12, %v1591_v6  ;;  %v1631_v15 = vadd.f32 %v1630_v26, %v1615_v23  ;;  %v1670_v46 = vmul.f32 %v3361_v36, %v1664_v43  ;;  %v1694_v36 = vmul.f32 %v3318_v58, %v1688_v38 }
 0x105   : > { %v623_v50 = vadd.f32 %v622_v53, %v607_v51  ;;  %v1680_v53 = vld [vmem:[#allocation4 + $0x22] sm:$0xf] }
 0x106   : > { %v1623_v33 = vadd.f32 %v1622_v20, %v1607_v19  ;;  %v1647_v42 = vadd.f32 %v1646_v39, %v1631_v15  ;;  %v1686_v55 = vmul.f32 %v3370_v47, %v1680_v53  ;;  %v3134_v20 = vld [vmem:[%s3583_s9 + $0x8] sm:$0xff]  }
 0x107   : > { %v639_v62 = vadd.f32 %v638_v52, %v623_v50 }
 0x108   : > { %v1639_v41 = vadd.f32 %v1638_v35, %v1623_v33  ;;  %v1663_v51 = vadd.f32 %v1662_v29, %v1647_v42  ;;  %v2872_v35 = vld [vmem:[%s3584_s10] ss:$0 sm:$0xff] }
 0x109   : > { %v654_v13 = vsel %vm652_vm6, %v639_v62, 0 }
 0x10a   : > { %v3386_v7 = vand.u32 4294901760, %v654_v13  ;;  %v1655_v45 = vadd.f32 %v1654_v24, %v1639_v41  ;;  %v1679_v56 = vadd.f32 %v1678_v28, %v1663_v51 }
 0x10c   : > { %2945 = vmatpush3.msra.mxu0 %v3386_v7  ;;  %v3394_v17 = vsub.f32 %v654_v13, %v3386_v7  ;;  %v1671_v54 = vadd.f32 %v1670_v46, %v1655_v45  ;;  %v1695_v57 = vadd.f32 %v1694_v36, %v1679_v56 }
 0x10d   : > { %2947 = vmatmul.mubr.f32.vlgmr.msra.gmra.mrb[4].mxu0 %v3384_v5  ;;  %2974 = vmatprep.subr.mxu0 %v3143_v1 }
 0x10e   : > { %2975 = vmatpush3.msra.mxu0 %v3355_v30  ;;  %2976 = vmatprep.mubr.msk.f32.mxu0 %vm3144_vm0, %v3143_v1  ;;  %v735_v10 = vand.u32 4294901760, %v3394_v17  ;;  %v1687_v48 = vadd.f32 %v1686_v55, %v1671_v54  ;;  %v2147_v58 = vsel %vm652_vm6, %v1695_v57, 0 }
 0x10f   : > { %2979 = vmatprep.subr.mxu0 %v3143_v1  ;;  %v3454_v52 = vand.u32 4294901760, %v2147_v58 }
 0x110   : > { %v736_v27 = vsub.f32 %v3394_v17, %v735_v10  ;;  %v1697_v50 = vsel %vm652_vm6, %v1687_v48, 0 }
 0x111   : > { %2977 = vmatmul.mubr.f32.vlgmr.msra.gmra.mrb[6].mxu0 %v3384_v5  ;;  %v3447_v47 = vand.u32 4294901760, %v1697_v50 }
 0x112   : > { %v737_v34 = vand.u32 4294901760, %v736_v27  ;;  %2980 = vmatpush3.msra.mxu0 %v1188_v21  ;;  %2981 = vmatprep.mubr.msk.f32.mxu0 %vm3144_vm0, %v3143_v1  ;;  %v2871_v21 = vld [vmem:[%s3582_s8] ss:$0 sm:$0xff] }
 0x113   : > { %2984 = vmatprep.subr.mxu0 %v3143_v1  ;;  %v1777_v59 = vsub.f32 %v1697_v50, %v3447_v47 }
 0x114   : > { %2950 = vmatpush3.msra.mxu1 %v737_v34  ;;  %v2867_v34 = vld [vmem:[%s3580_s6] ss:$0 sm:$0xff] }
 0x115   : > { %2952 = vmatmul.mubr.msk.f32.vlgmr.msra.gmra.mrb[0].mxu1 %vm648_vm5, %v3329_v8  ;;  %2954 = vmatprep.subr.mxu1 %v3143_v1  ;;  %v1778_v60 = vand.u32 4294901760, %v1777_v59 }
 0x116   : > { %2955 = vmatpush3.msra.mxu1 %v3394_v17  ;;  %2956 = vmatprep.mubr.msk.f32.mxu1 %vm3144_vm0, %v3143_v1 }
 0x117   : > { %2959 = vmatprep.subr.mxu1 %v3143_v1  ;;  %v1779_v62 = vsub.f32 %v1777_v59, %v1778_v60 }
 0x119   : > { %2982 = vmatmul.mubr.msk.f32.vlgmr.msra.gmra.mrb[6].mxu0 %vm648_vm5, %v3329_v8  ;;  %v1780_v2 = vand.u32 4294901760, %v1779_v62 }
 0x11a   : > { %2985 = vmatpush3.msra.mxu0 %v3373_v49  ;;  %2986 = vmatprep.mubr.msk.f32.mxu0 %vm3144_vm0, %v3143_v1  ;;  %v2227_v49 = vsub.f32 %v2147_v58, %v3454_v52 }
 0x11b   : > { %2989 = vmatprep.subr.mxu0 %v3143_v1 }
 0x11d   : > { %2957 = vmatmul.mubr.f32.vlgmr.msra.gmra.mrb[0].mxu1 %v3342_v22 }
 0x11e   : > { %2960 = vmatpush3.msra.mxu1 %v3386_v7  ;;  %2961 = vmatprep.mubr.msk.f32.mxu1 %vm3144_vm0, %v3143_v1 }
 0x11f   : > { %2964 = vmatprep.subr.mxu1 %v3143_v1 }
 0x121   : > { %2987 = vmatmul.mubr.f32.vlgmr.msra.gmra.mrb[6].mxu0 %v3342_v22 }
 0x122   : > { %2990 = vmatpush3.msra.mxu0 %v3355_v30  ;;  %2991 = vmatprep.mubr.msk.f32.mxu0 %vm3144_vm0, %v3143_v1 }
 0x123   : > { %2994 = vmatprep.subr.mxu0 %v3143_v1 }
 0x125   : > { %2962 = vmatmul.mubr.f32.vlgmr.msra.gmra.mrb[0].mxu1 %v3364_v37 }
 0x126   : > { %2965 = vmatpush3.msra.mxu1 %v735_v10  ;;  %2966 = vmatprep.mubr.msk.f32.mxu1 %vm3144_vm0, %v3143_v1 }
 0x127   : > { %2969 = vmatprep.subr.mxu1 %v3143_v1 }
 0x129   : > { %2992 = vmatmul.mubr.f32.vlgmr.msra.gmra.mrb[6].mxu0 %v3364_v37 }
 0x12a   : > { %2995 = vmatpush3.msra.mxu0 %v1186_v61  ;;  %2996 = vmatprep.mubr.msk.f32.mxu0 %vm3144_vm0, %v3143_v1  ;;  %v2228_v61 = vand.u32 4294901760, %v2227_v49 }
 0x12b   : > { %2999 = vmatprep.subr.mxu0 %v3143_v1 }
 0x12c   : > { %v2229_v63 = vsub.f32 %v2227_v49, %v2228_v61 }
 0x12d   : > { %2967 = vmatmul.mubr.msk.f32.vlgmr.msra.gmra.mrb[0].mxu1 %vm648_vm5, %v3329_v8 }
 0x12e   : > { %2970 = vmatpush3.msra.mxu1 %v3386_v7  ;;  %2971 = vmatprep.mubr.msk.f32.mxu1 %vm3144_vm0, %v3143_v1 }
 0x12f   : > { %3004 = vmatprep.subr.mxu1 %v3143_v1 }
 0x131   : > { %2997 = vmatmul.mubr.msk.f32.vlgmr.msra.gmra.mrb[6].mxu0 %vm648_vm5, %v3329_v8 }
 0x132   : > { %3000 = vmatpush3.msra.mxu0 %v3355_v30  ;;  %3001 = vmatprep.mubr.msk.f32.mxu0 %vm3144_vm0, %v3143_v1  ;;  %v2230_v30 = vand.u32 4294901760, %v2229_v63 }
 0x133   : > { %3034 = vmatprep.subr.mxu0 %v3143_v1 }
 0x135   : > { %2972 = vmatmul.mubr.msk.f32.vlgmr.msra.gmra.mrb[0].mxu1 %vm648_vm5, %v3329_v8 }
 0x136   : > { %3005 = vmatpush3.msra.mxu1 %v3447_v47  ;;  %3006 = vmatprep.mubr.msk.f32.mxu1 %vm3144_vm0, %v3143_v1 }
 0x137   : > { %3009 = vmatprep.subr.mxu1 %v3143_v1 }
 0x139   : > { %3002 = vmatmul.mubr.msk.f32.vlgmr.msra.gmra.mrb[6].mxu0 %vm648_vm5, %v3329_v8  ;;  %3007 = vmatmul.mubr.f32.vlgmr.msra.gmra.mrb[2].mxu1 %v3384_v5 }
 0x13a   : > { %3010 = vmatpush3.msra.mxu1 %v1780_v2  ;;  %3035 = vmatpush3.msra.mxu0 %v3454_v52 }
 0x13b   : > { %3036 = vmatprep.mubr.msk.f32.mxu0 %vm3144_vm0, %v3143_v1  ;;  %3011 = vmatprep.mubr.msk.f32.mxu1 %vm3144_vm0, %v3143_v1 }
 0x13c   : > { %3014 = vmatprep.subr.mxu1 %v3143_v1  ;;  %3039 = vmatprep.subr.mxu0 %v3143_v1 }
 0x13d   : > { %3037 = vmatmul.mubr.f32.vlgmr.msra.gmra.mrb[8].mxu0 %v3384_v5 }
 0x13e   : > { %3040 = vmatpush3.msra.mxu0 %v2230_v30  ;;  %3041 = vmatprep.mubr.msk.f32.mxu0 %vm3144_vm0, %v3143_v1 }
 0x13f   : > { %3044 = vmatprep.subr.mxu0 %v3143_v1 }
 0x141   : > { %3012 = vmatmul.mubr.msk.f32.vlgmr.msra.gmra.mrb[2].mxu1 %vm648_vm5, %v3329_v8 }
 0x142   : > { %3015 = vmatpush3.msra.mxu1 %v1777_v59  ;;  %3016 = vmatprep.mubr.msk.f32.mxu1 %vm3144_vm0, %v3143_v1 }
 0x143   : > { %3019 = vmatprep.subr.mxu1 %v3143_v1 }
 0x145   : > { %3042 = vmatmul.mubr.msk.f32.vlgmr.msra.gmra.mrb[8].mxu0 %vm648_vm5, %v3329_v8 }
 0x146   : > { %3045 = vmatpush3.msra.mxu0 %v2227_v49  ;;  %3046 = vmatprep.mubr.msk.f32.mxu0 %vm3144_vm0, %v3143_v1 }
 0x147   : > { %3049 = vmatprep.subr.mxu0 %v3143_v1 }
 0x149   : > { %3017 = vmatmul.mubr.f32.vlgmr.msra.gmra.mrb[2].mxu1 %v3342_v22 }
 0x14a   : > { %3020 = vmatpush3.msra.mxu1 %v3447_v47  ;;  %3021 = vmatprep.mubr.msk.f32.mxu1 %vm3144_vm0, %v3143_v1 }
 0x14b   : > { %3024 = vmatprep.subr.mxu1 %v3143_v1 }
 0x14d   : > { %3047 = vmatmul.mubr.f32.vlgmr.msra.gmra.mrb[8].mxu0 %v3342_v22  ;;  %v3131_v22 = vld [vmem:[%s3579_s5] sm:$0xff]  }
 0x14e   : > { %3050 = vmatpush3.msra.mxu0 %v3454_v52  ;;  %3051 = vmatprep.mubr.msk.f32.mxu0 %vm3144_vm0, %v3143_v1 }
 0x14f   : > { %3054 = vmatprep.subr.mxu0 %v3143_v1 }
 0x151   : > { %3022 = vmatmul.mubr.f32.vlgmr.msra.gmra.mrb[2].mxu1 %v3364_v37 }
 0x152   : > { %3025 = vmatpush3.msra.mxu1 %v1778_v60  ;;  %3026 = vmatprep.mubr.msk.f32.mxu1 %vm3144_vm0, %v3143_v1 }
 0x153   : > { %3029 = vmatprep.subr.mxu1 %v3143_v1 }
 0x155   : > { %3052 = vmatmul.mubr.f32.vlgmr.msra.gmra.mrb[8].mxu0 %v3364_v37  ;;  %v3132_v37 = vld [vmem:[%s3579_s5 + $0x8] sm:$0xff]  }
 0x156   : > { %3055 = vmatpush3.msra.mxu0 %v2228_v61  ;;  %3056 = vmatprep.mubr.msk.f32.mxu0 %vm3144_vm0, %v3143_v1 }
 0x157   : > { %3059 = vmatprep.subr.mxu0 %v3143_v1 }
 0x159   : > { %3027 = vmatmul.mubr.msk.f32.vlgmr.msra.gmra.mrb[2].mxu1 %vm648_vm5, %v3329_v8 }
 0x15a   : > { %3030 = vmatpush3.msra.mxu1 %v3447_v47  ;;  %3031 = vmatprep.mubr.msk.f32.mxu1 %vm3144_vm0, %v3143_v1 }
 0x15b   : > { %3064 = vmatprep.subr.bf16.mxu1 %v3143_v1 }
 0x15d   : > { %3057 = vmatmul.mubr.msk.f32.vlgmr.msra.gmra.mrb[8].mxu0 %vm648_vm5, %v3329_v8 }
 0x15e   : > { %3060 = vmatpush3.msra.mxu0 %v3454_v52  ;;  %3061 = vmatprep.mubr.msk.f32.mxu0 %vm3144_vm0, %v3143_v1 }
 0x161   : > { %3032 = vmatmul.mubr.msk.f32.vlgmr.msra.gmra.mrb[2].mxu1 %vm648_vm5, %v3329_v8 }
 0x162   : > { %3068 = vmatprep.mubr.msk.bf16.mxu1 %vm3144_vm0, %v3143_v1  ;;  %3065 = vmatpush3.bf16.msra.mxu1 %v3131_v22 }
 0x163   : > { %3066 = vmatprep.subr.bf16.mxu1 %v3143_v1 }
 0x165   : > { %3062 = vmatmul.mubr.msk.f32.vlgmr.msra.gmra.mrb[8].mxu0 %vm648_vm5, %v3329_v8 }
 0x166   : > { %3067 = vmatpush3.bf16.msra.mxu1 %v3132_v37 }
 0x167   : > { %3072 = vmatprep.subr.bf16.mxu1 %v3143_v1 }
 0x1e0   : > { %v728_v3 = vpop.f32.mrb[4].mxu0 }
 0x1e1   : > { %v2948_v4 = vpop.f32.mrb[5].mxu0 }
 0x208   : > { %v1098_v11 = vpop.f32.mrb[0].mxu1 }
 0x209   : > { %v3080_v13 = vadd.f32 %v1098_v11, %v728_v3  ;;  %v2973_v8 = vpop.f32.mrb[1].mxu1 }
 0x20b   : > { %1103 = vst.msk [vmem:[#allocation5] sm:$0x3] %vm1102_vm7, %v3080_v13 }
 0x20c   : > { %v1549_v5 = vpop.f32.mrb[6].mxu0 }
 0x20d   : > { %1553 = vst.msk [vmem:[#allocation6] sm:$0x3] %vm1102_vm7, %v1549_v5  ;;  %v3003_v6 = vpop.f32.mrb[7].mxu0 }
 0x234   : > { %v2141_v7 = vpop.f32.mrb[2].mxu1 }
 0x235   : > { %2145 = vst.msk [vmem:[#allocation5 + $0x2] sm:$0x3] %vm1102_vm7, %v2141_v7  ;;  %v3033_v9 = vpop.f32.mrb[3].mxu1 }
 0x238   : > { %v2591_v12 = vpop.f32.mrb[8].mxu0 }
 0x239   : > { %2595 = vst.msk [vmem:[#allocation6 + $0x2] sm:$0x3] %vm1102_vm7, %v2591_v12  ;;  %v3063_v14 = vpop.f32.mrb[9].mxu0 }
 0x23c   : > { %v2596_v17 = vld [vmem:[#allocation5] sm:$0xf] }
 0x23d   : > { %v2604_v16 = vadd.f32 %v2866_v0, %v2596_v17 }
 0x23f   : > { %v2605_v19 = vpack.c.bf16 %v2604_v16, %v2604_v16 }
 0x240   : > { %v2673_v10 = vld [vmem:[#allocation6] sm:$0xf] }
 0x241   : > { %3069 = vmatmul.mubr.msk.bf16.vlgmr.msra.gmra.mrb[4].mxu1 %vm412_vm2, %v2605_v19  ;;  %v2681_v23 = vadd.f32 %v2871_v21, %v2673_v10 }
 0x242   : > { %3073 = vmatpush3.bf16.msra.mxu1 %v3133_v18  ;;  %3076 = vmatprep.mubr.msk.bf16.mxu1 %vm3144_vm0, %v3143_v1 }
 0x243   : > { %3074 = vmatprep.subr.bf16.mxu1 %v3143_v1  ;;  %v2682_v26 = vpack.c.bf16 %v2681_v23, %v2681_v23 }
 0x246   : > { %3075 = vmatpush3.bf16.msra.mxu1 %v3134_v20 }
 0x249   : > { %3077 = vmatmul.mubr.msk.bf16.vlgmr.msra.gmra.mrb[8].mxu1 %vm412_vm2, %v2682_v26 }
 0x314   : > { %v2666_v27 = vpop.f32.mrb[4].mxu1 }
 0x315   : > { %v3070_v31 = vpop.f32.mrb[5].mxu1  ;;  %v2667_v15 = vadd.f32 %v2867_v34, %v2666_v27 }
 0x316   : > { %v2669_v32 = vpop.f32.mrb[6].mxu1 }
 0x317   : > { %v3071_v33 = vpop.f32.mrb[7].mxu1  ;;  %v2672_v41 = vmax.f32 %v2667_v15, 0.0 }
 0x31c   : > { %v2743_v39 = vpop.f32.mrb[8].mxu1 }
 0x31d   : > { %v2744_v1 = vadd.f32 %v2872_v35, %v2743_v39  ;;  %v3078_v25 = vpop.f32.mrb[9].mxu1 }
 0x31e   : > { %v2746_v40 = vpop.f32.mrb[10].mxu1 }
 0x31f   : > { %v2749_v24 = vmax.f32 %v2744_v1, 0.0  ;;  %v3079_v42 = vpop.f32.mrb[11].mxu1 }
 0x321   : > { %v2750_v29 = vadd.f32 %v2749_v24, %v2672_v41 }
 0x323   : > { %2752 = vst.msk [vmem:[%s384_s15] sm:$0xf] %vm2751_vm8, %v2750_v29 }
 0x324 PF: > { %s21_s17 = sadd.s32 1, %s3141_s17  }
 0x325   : > { %p18_p4 = scmp.ge.s32.totalorder %s21_s17, 4  }
 0x327   :  { %20 = sbr.rel (!%p18_p4) target bundleno = 1 (0x1), region = 102 }

</bundles_post_ra>
